<compile_context>
chip_gen: v6e
topology: v6e:2x2x1
jax: 0.10.0
libtpu: 0.0.40
codegen_flags: <defaults>
</compile_context>

<pallas_src>
import numpy as np

import jax
import jax.numpy as jnp
from jax.experimental import pallas as pl
from jax.experimental.pallas import tpu as pltpu

BN_EPS = 1e-5
MXU_DTYPE = jnp.bfloat16   # matmul-input dtype; accumulation + BN/ReLU/Tanh stay float32


def _round_up(x, m):
    return ((x + m - 1) // m) * m


# ------------------------- one-time weight precompute ------------------------ #

def _deconv_matrices(w_pt, H, W, stride, pad, opad):
    """ConvTranspose2d -> (M, S) matmul form.

    w_pt: PyTorch layout (Cin, Cout, kH, kW).
    M[kh] (W*Cin, Wo*Cout):  M[kh][(iw,ci),(ow,co)] = w[ci,co,kh,ow-iw*stride+pad]
    S[kh] (Ho, H):           S[kh][oh,ih] = [oh == ih*stride - pad + kh]
    Per image:  y[oh,(ow,co)] = sum_kh (S[kh] @ (x @ M[kh]))  with x laid out (ih, iw*Cin+ci).
    """
    w = np.asarray(w_pt, np.float32)
    Cin, Cout, kH, kW = w.shape
    Ho = (H - 1) * stride - 2 * pad + kH + opad
    Wo = (W - 1) * stride - 2 * pad + kW + opad
    M = np.zeros((kH, W * Cin, Wo * Cout), np.float32)
    S = np.zeros((kH, Ho, H), np.float32)
    for kh in range(kH):
        for ih in range(H):
            oh = ih * stride - pad + kh
            if 0 <= oh < Ho:
                S[kh, oh, ih] = 1.0
        for iw in range(W):
            for kw in range(kW):
                ow = iw * stride - pad + kw
                if 0 <= ow < Wo:
                    M[kh, iw * Cin:(iw + 1) * Cin, ow * Cout:(ow + 1) * Cout] = w[:, :, kh, kw]
    return M, S, Ho, Wo


def _permute_fc(w_fc, b_fc):
    """Permute Linear output columns from torch Unflatten order (ci, ih, iw) to the
    kernel's (ih, iw, ci) order so no activation gather is needed in-kernel."""
    w = np.asarray(w_fc, np.float32)
    b = np.asarray(b_fc, np.float32).reshape(-1)
    new = np.arange(128 * 4 * 4)
    ci = new % 128
    iw = (new // 128) % 4
    ih = new // 512
    old = ci * 16 + ih * 4 + iw
    return w[:, old], b[old].reshape(1, -1)


def _pack_mcat(M, in_pad, out_pad):
    """Concat the per-kernel-row col2im matrices along lanes, each block padded to
    `out_pad` lanes (multiple of 128) and the contraction dim padded to `in_pad`."""
    kH, In, Out = M.shape
    Mc = np.zeros((in_pad, kH * out_pad), np.float32)
    for kh in range(kH):
        Mc[:In, kh * out_pad:kh * out_pad + Out] = M[kh]
    return Mc


def _pack_skron(S, N):
    """Batched row-scatter matrices: kron(S[kh], I_N) for rows ordered (ih, n)."""
    kH, Ho, H = S.shape
    eye = np.eye(N, dtype=np.float32)
    out = np.zeros((kH, Ho * N, H * N), np.float32)
    for kh in range(kH):
        out[kh] = np.kron(S[kh], eye)
    return out


def prepare_params(raw, batch_size):
    """Build all matmul-form weights once at init (no per-call reshapes)."""
    N = int(batch_size)
    f32, bf = jnp.float32, MXU_DTYPE

    wfc, bfc = _permute_fc(raw["w_fc"], raw["b_fc"])

    M1, S1, _, Wo1 = _deconv_matrices(raw["w_dc1"], 4, 4, 2, 2, 0)      # 4x4x128 -> 7x7x64
    M2, S2, _, Wo2 = _deconv_matrices(raw["w_dc2"], 7, 7, 2, 2, 1)      # 7x7x64  -> 14x14x32
    M3, S3, _, Wo3 = _deconv_matrices(raw["w_dc3"], 14, 14, 2, 1, 0)    # 14x14x32-> 28x28xC
    C1, C2 = 64, 32
    C3 = int(raw["w_dc3"].shape[1])

    W1pad = _round_up(Wo1 * C1, 128)     # 448 -> 512
    W2pad = _round_up(Wo2 * C2, 128)     # 448 -> 512
    W3pad = _round_up(Wo3 * C3, 128)     # 28*C -> 128 for C=1

    M1c = _pack_mcat(M1, 4 * 128, W1pad)       # (512, 5*512)
    M2c = _pack_mcat(M2, W1pad, W2pad)         # (512, 5*512)  zero rows for padded lanes
    M3c = _pack_mcat(M3, W2pad, W3pad)         # (512, 4*128)

    # Per-channel pooling (lane-group sum) and its transpose (broadcast back to lanes);
    # zero rows/cols for the padded lanes.
    P1 = np.zeros((W1pad, C1), np.float32)
    P1[:Wo1 * C1] = np.tile(np.eye(C1, dtype=np.float32), (Wo1, 1))
    P2 = np.zeros((W2pad, C2), np.float32)
    P2[:Wo2 * C2] = np.tile(np.eye(C2, dtype=np.float32), (Wo2, 1))

    # Final conv bias pre-broadcast to the (ow, co) lane layout, zero in padded lanes.
    b3 = np.zeros((1, W3pad), np.float32)
    b3[0, :Wo3 * C3] = np.tile(np.asarray(raw["b_dc3"], np.float32).reshape(-1), Wo3)

    # NOTE: b_dc1 / b_dc2 intentionally not packed -- cancelled by train-mode BatchNorm.
    return {
        "w_fc": jnp.asarray(wfc, bf), "b_fc": jnp.asarray(bfc, f32),
        "M1": jnp.asarray(M1c, bf), "S1": jnp.asarray(_pack_skron(S1, N), bf),
        "P1": jnp.asarray(P1, f32), "P1t": jnp.asarray(P1.T.copy(), f32),
        "g1": jnp.asarray(raw["g_bn1"], f32), "be1": jnp.asarray(raw["be_bn1"], f32),
        "M2": jnp.asarray(M2c, bf), "S2": jnp.asarray(_pack_skron(S2, N), bf),
        "P2": jnp.asarray(P2, f32), "P2t": jnp.asarray(P2.T.copy(), f32),
        "g2": jnp.asarray(raw["g_bn2"], f32), "be2": jnp.asarray(raw["be_bn2"], f32),
        "M3": jnp.asarray(M3c, bf), "S3": jnp.asarray(_pack_skron(S3, N), bf),
        "b3": jnp.asarray(b3, f32),
    }


# ------------------------------ fused Pallas forward ------------------------- #

def auto_decoder_forward(h, kp, out_channels):
    """h: (N, latent_dim) f32 -> (N, out_channels, 28, 28) f32 (matches the PyTorch module)."""
    N = h.shape[0]
    assert kp["S1"].shape[2] == 4 * N, "params were prepared for a different batch size"
    W3pad = kp["b3"].shape[1]                      # padded output lane width (>= 28*C)

    def kernel(h_ref, wfc_ref, bfc_ref,
               m1_ref, s1_ref, p1_ref, p1t_ref, g1_ref, be1_ref,
               m2_hbm, s2_ref, p2_ref, p2t_ref, g2_ref, be2_ref,
               m3_hbm, s3_ref, b3_ref,
               o_ref, m2_vmem, m3_vmem, dma_sem):
        f32 = jnp.float32

        # Kick off M2/M3 weight fetches immediately so the HBM DMA overlaps the
        # FC + dc1 + BN1 work (most valuable on v5e, where HBM bandwidth is lowest).
        cp2 = pltpu.make_async_copy(m2_hbm, m2_vmem, dma_sem.at[0])
        cp2.start()
        cp3 = pltpu.make_async_copy(m3_hbm, m3_vmem, dma_sem.at[1])
        cp3.start()

        def deconv(x, m, s_ref, out_pad):
            # Batched ConvTranspose2d: one wide lane-aligned col2im matmul
            # (rows = (ih, n), contraction = iw*Cin) then kH tiny bf16 0/1 row-scatter
            # matmuls (kron(S[kh], I_N)) accumulated in f32.
            kH, HoN = s_ref.shape[0], s_ref.shape[1]
            zw = jnp.dot(x.astype(MXU_DTYPE), m, preferred_element_type=f32)
            zb = zw.astype(MXU_DTYPE)
            y = jnp.zeros((HoN, out_pad), f32)
            for kh in range(kH):
                y = y + jnp.dot(s_ref[kh], zb[:, kh * out_pad:(kh + 1) * out_pad],
                                preferred_element_type=f32)
            return y

        def bn_relu(y, p_ref, pt_ref, g_ref, be_ref, count):
            # Train-mode BatchNorm2d (biased batch stats over N*Ho*Wo per channel) + ReLU
            # on the whole (N*Ho, Wpad) slab; per-channel pooling / re-broadcast via 0/1
            # matmuls (padded lanes have zero rows/cols -> stay zero after the affine).
            stats = jnp.concatenate(
                [jnp.sum(y, axis=0, keepdims=True),
                 jnp.sum(y * y, axis=0, keepdims=True)], axis=0)            # (2, Wpad)
            pooled = jnp.dot(stats, p_ref[...], preferred_element_type=f32) * (1.0 / count)
            mean, msq = pooled[0:1, :], pooled[1:2, :]                       # (1, C)
            var = msq - mean * mean   # TODO(synk): E[x^2]-E[x]^2 in f32; fine at these scales
            scale = g_ref[...] * jax.lax.rsqrt(var + BN_EPS)
            shift = be_ref[...] - mean * scale
            ss = jnp.dot(jnp.concatenate([scale, shift], axis=0), pt_ref[...],
                         preferred_element_type=f32)                        # (2, Wpad)
            return jnp.maximum(y * ss[0:1, :] + ss[1:2, :], 0.0)

        # ---- Linear(latent, 2048) + ReLU (columns pre-permuted to (ih, iw, ci)) ----
        fc = jnp.dot(h_ref[...].astype(MXU_DTYPE), wfc_ref[...],
                     preferred_element_type=f32)
        fc = jnp.maximum(fc + bfc_ref[...], 0.0)                             # (N, 2048)
        # (N, 2048) -> (4N, 512), rows ordered (ih, n): 4 lane-aligned slices, one concat.
        x = jnp.concatenate([fc[:, ih * 512:(ih + 1) * 512] for ih in range(4)], axis=0)

        # ---- dc1 + BN1 + ReLU : (4,4,128) -> (7,7,64)  (conv bias cancelled by BN) ----
        y = bn_relu(deconv(x, m1_ref[...], s1_ref, 512),
                    p1_ref, p1t_ref, g1_ref, be1_ref, float(N * 7 * 7))

        # ---- dc2 + BN2 + ReLU : (7,7,64) -> (14,14,32) ----
        cp2.wait()
        y = bn_relu(deconv(y, m2_vmem[...], s2_ref, 512),
                    p2_ref, p2t_ref, g2_ref, be2_ref, float(N * 14 * 14))

        # ---- dc3 + bias + Tanh : (14,14,32) -> (28,28,C); single lane-dense store ----
        cp3.wait()
        o_ref[...] = jnp.tanh(deconv(y, m3_vmem[...], s3_ref, W3pad) + b3_ref[...])

    def vspec(a):
        return pl.BlockSpec(a.shape, lambda i, nd=a.ndim: (0,) * nd)

    args = (h, kp["w_fc"], kp["b_fc"],
            kp["M1"], kp["S1"], kp["P1"], kp["P1t"], kp["g1"], kp["be1"],
            kp["M2"], kp["S2"], kp["P2"], kp["P2t"], kp["g2"], kp["be2"],
            kp["M3"], kp["S3"], kp["b3"])
    specs = [vspec(a) for a in args]
    specs[9] = pl.BlockSpec(memory_space=pl.ANY)    # M2 stays in HBM, DMA'd in-kernel
    specs[15] = pl.BlockSpec(memory_space=pl.ANY)   # M3 likewise

    out2d = pl.pallas_call(
        kernel,
        grid=(1,),
        in_specs=specs,
        out_specs=pl.BlockSpec((28 * N, W3pad), lambda i: (0, 0)),
        out_shape=jax.ShapeDtypeStruct((28 * N, W3pad), jnp.float32),
        scratch_shapes=[
            pltpu.VMEM(kp["M2"].shape, MXU_DTYPE),
            pltpu.VMEM(kp["M3"].shape, MXU_DTYPE),
            pltpu.SemaphoreType.DMA((2,)),
        ],
        compiler_params=pltpu.CompilerParams(
            dimension_semantics=("arbitrary",),
            vmem_limit_bytes=24 * 1024 * 1024),
    )(*args)

    # rows = (oh, n), lanes = (ow, co) padded to W3pad  ->  NCHW
    out = out2d[:, :28 * out_channels].reshape(28, N, 28, out_channels)
    return out.transpose(1, 3, 0, 2)


# ----------------------------- pure-JAX reference ---------------------------- #

def reference_forward(h, params):
    x = jnp.maximum(h @ params["w_fc"] + params["b_fc"], 0.0)
    x = x.reshape(h.shape[0], 128, 4, 4).transpose(0, 2, 3, 1)

    def deconv(x, w_pt, b, stride, pad, opad):
        Cout, kH = w_pt.shape[1], w_pt.shape[2]
        w_conv = jnp.transpose(w_pt[:, :, ::-1, ::-1], (2, 3, 0, 1))
        lo = kH - 1 - pad
        y = jax.lax.conv_general_dilated(
            x, w_conv, window_strides=(1, 1),
            padding=[(lo, lo + opad), (lo, lo + opad)],
            lhs_dilation=(stride, stride),
            dimension_numbers=("NHWC", "HWIO", "NHWC"))
        return y + b.reshape(1, 1, 1, Cout)

    def bn_relu(y, g, be):
        mean = jnp.mean(y, axis=(0, 1, 2), keepdims=True)
        var = jnp.mean((y - mean) ** 2, axis=(0, 1, 2), keepdims=True)
        z = g.reshape(1, 1, 1, -1) * (y - mean) * jax.lax.rsqrt(var + BN_EPS) \
            + be.reshape(1, 1, 1, -1)
        return jnp.maximum(z, 0.0)

    # Reference keeps the conv biases (Pallas path drops them -> validates BN cancellation).
    x = bn_relu(deconv(x, params["w_dc1"], params["b_dc1"], 2, 2, 0),
                params["g_bn1"], params["be_bn1"])
    x = bn_relu(deconv(x, params["w_dc2"], params["b_dc2"], 2, 2, 1),
                params["g_bn2"], params["be_bn2"])
    x = jnp.tanh(deconv(x, params["w_dc3"], params["b_dc3"], 2, 1, 0))
    return x.transpose(0, 3, 1, 2)


# ------------------------------- parameter setup ------------------------------ #

def init_params(key, latent_dim, out_channels):
    keys = jax.random.split(key, 12)

    def nrm(k, shape, scale=0.05):
        return (scale * jax.random.normal(k, shape)).astype(jnp.float32)

    return {
        # Linear(latent, 2048): stored as (in, out) = torch weight.T
        "w_fc": nrm(keys[0], (latent_dim, 128 * 4 * 4)),
        "b_fc": nrm(keys[1], (1, 128 * 4 * 4)),
        # ConvTranspose2d weights in PyTorch layout (Cin, Cout, kH, kW)
        "w_dc1": nrm(keys[2], (128, 64, 5, 5)),
        "b_dc1": nrm(keys[3], (1, 64)),
        "g_bn1": 1.0 + nrm(keys[4], (1, 64)),
        "be_bn1": nrm(keys[5], (1, 64)),
        "w_dc2": nrm(keys[6], (64, 32, 5, 5)),
        "b_dc2": nrm(keys[7], (1, 32)),
        "g_bn2": 1.0 + nrm(keys[8], (1, 32)),
        "be_bn2": nrm(keys[9], (1, 32)),
        "w_dc3": nrm(keys[10], (32, out_channels, 4, 4)),
        "b_dc3": nrm(keys[11], (1, out_channels)),
    }


if __name__ == "__main__":
    latent_dim, out_channels, N = 32, 1, 2

    key = jax.random.PRNGKey(0)
    kp_key, kh_key = jax.random.split(key)
    raw = init_params(kp_key, latent_dim, out_channels)
    kparams = prepare_params(raw, batch_size=N)        # one-time matmul-form precompute
    h = jax.random.normal(kh_key, (N, latent_dim), jnp.float32)

    fwd = jax.jit(lambda hh, pp: auto_decoder_forward(hh, pp, out_channels))
    out = jax.block_until_ready(fwd(h, kparams))

    assert out.shape == (N, out_channels, 28, 28), out.shape
    ref = jax.block_until_ready(reference_forward(h, raw))
    assert bool(jnp.all(jnp.isfinite(out)))
    # bf16 MXU inputs (f32 accumulation + f32 BN/Tanh epilogue) vs. full-f32 reference.
    err = float(jnp.max(jnp.abs(out - ref)))
    assert err < 5e-2, err

    print("KERNEL_OK")
</pallas_src>

<mosaic_0001>
module attributes {stable_mosaic.version = 11 : i64} {
  func.func @kernel(%arg0: i32, %arg1: memref<2x32xf32, #tpu.memory_space<vmem>>, %arg2: memref<32x2048xbf16, #tpu.memory_space<vmem>>, %arg3: memref<1x2048xf32, #tpu.memory_space<vmem>>, %arg4: memref<512x2560xbf16, #tpu.memory_space<vmem>>, %arg5: memref<5x14x8xbf16, #tpu.memory_space<vmem>>, %arg6: memref<512x64xf32, #tpu.memory_space<vmem>>, %arg7: memref<64x512xf32, #tpu.memory_space<vmem>>, %arg8: memref<1x64xf32, #tpu.memory_space<vmem>>, %arg9: memref<1x64xf32, #tpu.memory_space<vmem>>, %arg10: memref<512x2560xbf16, #tpu.memory_space<any>>, %arg11: memref<5x28x14xbf16, #tpu.memory_space<vmem>>, %arg12: memref<512x32xf32, #tpu.memory_space<vmem>>, %arg13: memref<32x512xf32, #tpu.memory_space<vmem>>, %arg14: memref<1x32xf32, #tpu.memory_space<vmem>>, %arg15: memref<1x32xf32, #tpu.memory_space<vmem>>, %arg16: memref<512x512xbf16, #tpu.memory_space<any>>, %arg17: memref<4x56x28xbf16, #tpu.memory_space<vmem>>, %arg18: memref<1x128xf32, #tpu.memory_space<vmem>>, %arg19: memref<56x128xf32, #tpu.memory_space<vmem>>, %arg20: memref<512x2560xbf16, #tpu.memory_space<vmem>>, %arg21: memref<512x512xbf16, #tpu.memory_space<vmem>>, %arg22: memref<2x!tpu.dma_semaphore, #tpu.memory_space<semaphore_mem>>) attributes {dimension_semantics = [#tpu.dimension_semantics<arbitrary>], iteration_bounds = array<i64: 1>, scalar_prefetch = 0 : i64, scratch_operands = 3 : i64, tpu.core_type = #tpu.core_type<tc>, window_params = [{pipeline_mode = #tpu.pipeline_mode<synchronous>, transform_indices = @transform_0, window_bounds = array<i64: 2, 32>}, {pipeline_mode = #tpu.pipeline_mode<synchronous>, transform_indices = @transform_1, window_bounds = array<i64: 32, 2048>}, {pipeline_mode = #tpu.pipeline_mode<synchronous>, transform_indices = @transform_2, window_bounds = array<i64: 1, 2048>}, {pipeline_mode = #tpu.pipeline_mode<synchronous>, transform_indices = @transform_3, window_bounds = array<i64: 512, 2560>}, {pipeline_mode = #tpu.pipeline_mode<synchronous>, transform_indices = @transform_4, window_bounds = array<i64: 5, 14, 8>}, {pipeline_mode = #tpu.pipeline_mode<synchronous>, transform_indices = @transform_5, window_bounds = array<i64: 512, 64>}, {pipeline_mode = #tpu.pipeline_mode<synchronous>, transform_indices = @transform_6, window_bounds = array<i64: 64, 512>}, {pipeline_mode = #tpu.pipeline_mode<synchronous>, transform_indices = @transform_7, window_bounds = array<i64: 1, 64>}, {pipeline_mode = #tpu.pipeline_mode<synchronous>, transform_indices = @transform_8, window_bounds = array<i64: 1, 64>}, {}, {pipeline_mode = #tpu.pipeline_mode<synchronous>, transform_indices = @transform_10, window_bounds = array<i64: 5, 28, 14>}, {pipeline_mode = #tpu.pipeline_mode<synchronous>, transform_indices = @transform_11, window_bounds = array<i64: 512, 32>}, {pipeline_mode = #tpu.pipeline_mode<synchronous>, transform_indices = @transform_12, window_bounds = array<i64: 32, 512>}, {pipeline_mode = #tpu.pipeline_mode<synchronous>, transform_indices = @transform_13, window_bounds = array<i64: 1, 32>}, {pipeline_mode = #tpu.pipeline_mode<synchronous>, transform_indices = @transform_14, window_bounds = array<i64: 1, 32>}, {}, {pipeline_mode = #tpu.pipeline_mode<synchronous>, transform_indices = @transform_16, window_bounds = array<i64: 4, 56, 28>}, {pipeline_mode = #tpu.pipeline_mode<synchronous>, transform_indices = @transform_17, window_bounds = array<i64: 1, 128>}, {pipeline_mode = #tpu.pipeline_mode<synchronous>, transform_indices = @transform_18, window_bounds = array<i64: 56, 128>}]} {
    %c0_i32 = arith.constant 0 : i32
    %0 = tpu.memref_slice %arg22[%c0_i32] : memref<2x!tpu.dma_semaphore, #tpu.memory_space<semaphore_mem>> -> memref<1x!tpu.dma_semaphore, #tpu.memory_space<semaphore_mem>>
    %1 = tpu.memref_squeeze %0 : memref<1x!tpu.dma_semaphore, #tpu.memory_space<semaphore_mem>> -> memref<!tpu.dma_semaphore, #tpu.memory_space<semaphore_mem>>
    tpu.enqueue_dma source(%arg10 : memref<512x2560xbf16, #tpu.memory_space<any>>) target(%arg20 : memref<512x2560xbf16, #tpu.memory_space<vmem>>) target_semaphore(%1 : memref<!tpu.dma_semaphore, #tpu.memory_space<semaphore_mem>>)
    %c1_i32 = arith.constant 1 : i32
    %2 = tpu.memref_slice %arg22[%c1_i32] : memref<2x!tpu.dma_semaphore, #tpu.memory_space<semaphore_mem>> -> memref<1x!tpu.dma_semaphore, #tpu.memory_space<semaphore_mem>>
    %3 = tpu.memref_squeeze %2 : memref<1x!tpu.dma_semaphore, #tpu.memory_space<semaphore_mem>> -> memref<!tpu.dma_semaphore, #tpu.memory_space<semaphore_mem>>
    tpu.enqueue_dma source(%arg16 : memref<512x512xbf16, #tpu.memory_space<any>>) target(%arg21 : memref<512x512xbf16, #tpu.memory_space<vmem>>) target_semaphore(%3 : memref<!tpu.dma_semaphore, #tpu.memory_space<semaphore_mem>>)
    %c0 = arith.constant 0 : index
    %c0_0 = arith.constant 0 : index
    %4 = vector.load %arg1[%c0, %c0_0] : memref<2x32xf32, #tpu.memory_space<vmem>>, vector<2x32xf32>
    %5 = arith.truncf %4 : vector<2x32xf32> to vector<2x32xbf16>
    %c0_1 = arith.constant 0 : index
    %c0_2 = arith.constant 0 : index
    %6 = vector.load %arg2[%c0_1, %c0_2] : memref<32x2048xbf16, #tpu.memory_space<vmem>>, vector<32x2048xbf16>
    %cst = arith.constant dense<0.000000e+00> : vector<2x2048xf32>
    %7 = tpu.matmul %5, %6, %cst {dimension_numbers = #tpu.dot_dimension_numbers<[1], [0], [0], [1], [0, 0, 1, 1], [], []>} : vector<2x32xbf16>, vector<32x2048xbf16>, vector<2x2048xf32> -> vector<2x2048xf32>
    %c0_3 = arith.constant 0 : index
    %c0_4 = arith.constant 0 : index
    %8 = vector.load %arg3[%c0_3, %c0_4] : memref<1x2048xf32, #tpu.memory_space<vmem>>, vector<1x2048xf32>
    %9 = vector.broadcast %8 : vector<1x2048xf32> to vector<2x2048xf32>
    %10 = arith.addf %7, %9 : vector<2x2048xf32>
    %cst_5 = arith.constant 0.000000e+00 : f32
    %11 = vector.broadcast %cst_5 : f32 to vector<2x2048xf32>
    %12 = arith.maximumf %10, %11 : vector<2x2048xf32>
    %13 = vector.extract_strided_slice %12 {offsets = [0, 0], sizes = [2, 512], strides = [1, 1]} : vector<2x2048xf32> to vector<2x512xf32>
    %14 = vector.extract_strided_slice %12 {offsets = [0, 512], sizes = [2, 512], strides = [1, 1]} : vector<2x2048xf32> to vector<2x512xf32>
    %15 = vector.extract_strided_slice %12 {offsets = [0, 1024], sizes = [2, 512], strides = [1, 1]} : vector<2x2048xf32> to vector<2x512xf32>
    %16 = vector.extract_strided_slice %12 {offsets = [0, 1536], sizes = [2, 512], strides = [1, 1]} : vector<2x2048xf32> to vector<2x512xf32>
    %17 = tpu.concatenate %13, %14, %15, %16 in 0 : vector<2x512xf32>, vector<2x512xf32>, vector<2x512xf32>, vector<2x512xf32> -> vector<8x512xf32>
    %c0_6 = arith.constant 0 : index
    %c0_7 = arith.constant 0 : index
    %18 = vector.load %arg4[%c0_6, %c0_7] : memref<512x2560xbf16, #tpu.memory_space<vmem>>, vector<512x2560xbf16>
    %19 = arith.truncf %17 : vector<8x512xf32> to vector<8x512xbf16>
    %cst_8 = arith.constant dense<0.000000e+00> : vector<8x2560xf32>
    %20 = tpu.matmul %19, %18, %cst_8 {dimension_numbers = #tpu.dot_dimension_numbers<[1], [0], [0], [1], [0, 0, 1, 1], [], []>} : vector<8x512xbf16>, vector<512x2560xbf16>, vector<8x2560xf32> -> vector<8x2560xf32>
    %21 = arith.truncf %20 : vector<8x2560xf32> to vector<8x2560xbf16>
    %cst_9 = arith.constant 0.000000e+00 : f32
    %22 = vector.broadcast %cst_9 : f32 to vector<14x512xf32>
    %c0_10 = arith.constant 0 : index
    %c0_11 = arith.constant 0 : index
    %c0_12 = arith.constant 0 : index
    %23 = vector.load %arg5[%c0_10, %c0_11, %c0_12] : memref<5x14x8xbf16, #tpu.memory_space<vmem>>, vector<1x14x8xbf16>
    %24 = vector.shape_cast %23 : vector<1x14x8xbf16> to vector<14x8xbf16>
    %25 = vector.extract_strided_slice %21 {offsets = [0, 0], sizes = [8, 512], strides = [1, 1]} : vector<8x2560xbf16> to vector<8x512xbf16>
    %cst_13 = arith.constant dense<0.000000e+00> : vector<14x512xf32>
    %26 = tpu.matmul %24, %25, %cst_13 {dimension_numbers = #tpu.dot_dimension_numbers<[1], [0], [0], [1], [0, 0, 1, 1], [], []>} : vector<14x8xbf16>, vector<8x512xbf16>, vector<14x512xf32> -> vector<14x512xf32>
    %27 = arith.addf %22, %26 : vector<14x512xf32>
    %c1 = arith.constant 1 : index
    %c0_14 = arith.constant 0 : index
    %c0_15 = arith.constant 0 : index
    %28 = vector.load %arg5[%c1, %c0_14, %c0_15] : memref<5x14x8xbf16, #tpu.memory_space<vmem>>, vector<1x14x8xbf16>
    %29 = vector.shape_cast %28 : vector<1x14x8xbf16> to vector<14x8xbf16>
    %30 = vector.extract_strided_slice %21 {offsets = [0, 512], sizes = [8, 512], strides = [1, 1]} : vector<8x2560xbf16> to vector<8x512xbf16>
    %cst_16 = arith.constant dense<0.000000e+00> : vector<14x512xf32>
    %31 = tpu.matmul %29, %30, %cst_16 {dimension_numbers = #tpu.dot_dimension_numbers<[1], [0], [0], [1], [0, 0, 1, 1], [], []>} : vector<14x8xbf16>, vector<8x512xbf16>, vector<14x512xf32> -> vector<14x512xf32>
    %32 = arith.addf %27, %31 : vector<14x512xf32>
    %c2 = arith.constant 2 : index
    %c0_17 = arith.constant 0 : index
    %c0_18 = arith.constant 0 : index
    %33 = vector.load %arg5[%c2, %c0_17, %c0_18] : memref<5x14x8xbf16, #tpu.memory_space<vmem>>, vector<1x14x8xbf16>
    %34 = vector.shape_cast %33 : vector<1x14x8xbf16> to vector<14x8xbf16>
    %35 = vector.extract_strided_slice %21 {offsets = [0, 1024], sizes = [8, 512], strides = [1, 1]} : vector<8x2560xbf16> to vector<8x512xbf16>
    %cst_19 = arith.constant dense<0.000000e+00> : vector<14x512xf32>
    %36 = tpu.matmul %34, %35, %cst_19 {dimension_numbers = #tpu.dot_dimension_numbers<[1], [0], [0], [1], [0, 0, 1, 1], [], []>} : vector<14x8xbf16>, vector<8x512xbf16>, vector<14x512xf32> -> vector<14x512xf32>
    %37 = arith.addf %32, %36 : vector<14x512xf32>
    %c3 = arith.constant 3 : index
    %c0_20 = arith.constant 0 : index
    %c0_21 = arith.constant 0 : index
    %38 = vector.load %arg5[%c3, %c0_20, %c0_21] : memref<5x14x8xbf16, #tpu.memory_space<vmem>>, vector<1x14x8xbf16>
    %39 = vector.shape_cast %38 : vector<1x14x8xbf16> to vector<14x8xbf16>
    %40 = vector.extract_strided_slice %21 {offsets = [0, 1536], sizes = [8, 512], strides = [1, 1]} : vector<8x2560xbf16> to vector<8x512xbf16>
    %cst_22 = arith.constant dense<0.000000e+00> : vector<14x512xf32>
    %41 = tpu.matmul %39, %40, %cst_22 {dimension_numbers = #tpu.dot_dimension_numbers<[1], [0], [0], [1], [0, 0, 1, 1], [], []>} : vector<14x8xbf16>, vector<8x512xbf16>, vector<14x512xf32> -> vector<14x512xf32>
    %42 = arith.addf %37, %41 : vector<14x512xf32>
    %c4 = arith.constant 4 : index
    %c0_23 = arith.constant 0 : index
    %c0_24 = arith.constant 0 : index
    %43 = vector.load %arg5[%c4, %c0_23, %c0_24] : memref<5x14x8xbf16, #tpu.memory_space<vmem>>, vector<1x14x8xbf16>
    %44 = vector.shape_cast %43 : vector<1x14x8xbf16> to vector<14x8xbf16>
    %45 = vector.extract_strided_slice %21 {offsets = [0, 2048], sizes = [8, 512], strides = [1, 1]} : vector<8x2560xbf16> to vector<8x512xbf16>
    %cst_25 = arith.constant dense<0.000000e+00> : vector<14x512xf32>
    %46 = tpu.matmul %44, %45, %cst_25 {dimension_numbers = #tpu.dot_dimension_numbers<[1], [0], [0], [1], [0, 0, 1, 1], [], []>} : vector<14x8xbf16>, vector<8x512xbf16>, vector<14x512xf32> -> vector<14x512xf32>
    %47 = arith.addf %42, %46 : vector<14x512xf32>
    %cst_26 = arith.constant dense<0.000000e+00> : vector<512xf32>
    %48 = vector.multi_reduction <add>, %47, %cst_26 [0] : vector<14x512xf32> to vector<512xf32>
    %49 = vector.shape_cast %48 : vector<512xf32> to vector<1x512xf32>
    %50 = arith.mulf %47, %47 : vector<14x512xf32>
    %cst_27 = arith.constant dense<0.000000e+00> : vector<512xf32>
    %51 = vector.multi_reduction <add>, %50, %cst_27 [0] : vector<14x512xf32> to vector<512xf32>
    %52 = vector.shape_cast %51 : vector<512xf32> to vector<1x512xf32>
    %53 = tpu.concatenate %49, %52 in 0 : vector<1x512xf32>, vector<1x512xf32> -> vector<2x512xf32>
    %c0_28 = arith.constant 0 : index
    %c0_29 = arith.constant 0 : index
    %54 = vector.load %arg6[%c0_28, %c0_29] : memref<512x64xf32, #tpu.memory_space<vmem>>, vector<512x64xf32>
    %cst_30 = arith.constant dense<0.000000e+00> : vector<2x64xf32>
    %55 = tpu.matmul %53, %54, %cst_30 {dimension_numbers = #tpu.dot_dimension_numbers<[1], [0], [0], [1], [0, 0, 1, 1], [], []>} : vector<2x512xf32>, vector<512x64xf32>, vector<2x64xf32> -> vector<2x64xf32>
    %cst_31 = arith.constant 0.0102040814 : f32
    %56 = vector.broadcast %cst_31 : f32 to vector<2x64xf32>
    %57 = arith.mulf %55, %56 : vector<2x64xf32>
    %58 = vector.extract_strided_slice %57 {offsets = [0, 0], sizes = [1, 64], strides = [1, 1]} : vector<2x64xf32> to vector<1x64xf32>
    %59 = vector.extract_strided_slice %57 {offsets = [1, 0], sizes = [1, 64], strides = [1, 1]} : vector<2x64xf32> to vector<1x64xf32>
    %60 = arith.mulf %58, %58 : vector<1x64xf32>
    %61 = arith.subf %59, %60 : vector<1x64xf32>
    %c0_32 = arith.constant 0 : index
    %c0_33 = arith.constant 0 : index
    %62 = vector.load %arg8[%c0_32, %c0_33] : memref<1x64xf32, #tpu.memory_space<vmem>>, vector<1x64xf32>
    %cst_34 = arith.constant 9.99999974E-6 : f32
    %63 = vector.broadcast %cst_34 : f32 to vector<1x64xf32>
    %64 = arith.addf %61, %63 : vector<1x64xf32>
    %65 = math.rsqrt %64 : vector<1x64xf32>
    %66 = arith.mulf %62, %65 : vector<1x64xf32>
    %c0_35 = arith.constant 0 : index
    %c0_36 = arith.constant 0 : index
    %67 = vector.load %arg9[%c0_35, %c0_36] : memref<1x64xf32, #tpu.memory_space<vmem>>, vector<1x64xf32>
    %68 = arith.mulf %58, %66 : vector<1x64xf32>
    %69 = arith.subf %67, %68 : vector<1x64xf32>
    %70 = tpu.concatenate %66, %69 in 0 : vector<1x64xf32>, vector<1x64xf32> -> vector<2x64xf32>
    %c0_37 = arith.constant 0 : index
    %c0_38 = arith.constant 0 : index
    %71 = vector.load %arg7[%c0_37, %c0_38] : memref<64x512xf32, #tpu.memory_space<vmem>>, vector<64x512xf32>
    %cst_39 = arith.constant dense<0.000000e+00> : vector<2x512xf32>
    %72 = tpu.matmul %70, %71, %cst_39 {dimension_numbers = #tpu.dot_dimension_numbers<[1], [0], [0], [1], [0, 0, 1, 1], [], []>} : vector<2x64xf32>, vector<64x512xf32>, vector<2x512xf32> -> vector<2x512xf32>
    %73 = vector.extract_strided_slice %72 {offsets = [0, 0], sizes = [1, 512], strides = [1, 1]} : vector<2x512xf32> to vector<1x512xf32>
    %74 = vector.broadcast %73 : vector<1x512xf32> to vector<14x512xf32>
    %75 = arith.mulf %47, %74 : vector<14x512xf32>
    %76 = vector.extract_strided_slice %72 {offsets = [1, 0], sizes = [1, 512], strides = [1, 1]} : vector<2x512xf32> to vector<1x512xf32>
    %77 = vector.broadcast %76 : vector<1x512xf32> to vector<14x512xf32>
    %78 = arith.addf %75, %77 : vector<14x512xf32>
    %cst_40 = arith.constant 0.000000e+00 : f32
    %79 = vector.broadcast %cst_40 : f32 to vector<14x512xf32>
    %80 = arith.maximumf %78, %79 : vector<14x512xf32>
    %c0_i32_41 = arith.constant 0 : i32
    %81 = tpu.memref_slice %arg22[%c0_i32_41] : memref<2x!tpu.dma_semaphore, #tpu.memory_space<semaphore_mem>> -> memref<1x!tpu.dma_semaphore, #tpu.memory_space<semaphore_mem>>
    %82 = tpu.memref_squeeze %81 : memref<1x!tpu.dma_semaphore, #tpu.memory_space<semaphore_mem>> -> memref<!tpu.dma_semaphore, #tpu.memory_space<semaphore_mem>>
    tpu.wait_dma2 semaphore(%82 : memref<!tpu.dma_semaphore, #tpu.memory_space<semaphore_mem>>) src(%arg10 : memref<512x2560xbf16, #tpu.memory_space<any>>) dst(%arg20 : memref<512x2560xbf16, #tpu.memory_space<vmem>>)
    %c0_42 = arith.constant 0 : index
    %c0_43 = arith.constant 0 : index
    %83 = vector.load %arg20[%c0_42, %c0_43] : memref<512x2560xbf16, #tpu.memory_space<vmem>>, vector<512x2560xbf16>
    %84 = arith.truncf %80 : vector<14x512xf32> to vector<14x512xbf16>
    %cst_44 = arith.constant dense<0.000000e+00> : vector<14x2560xf32>
    %85 = tpu.matmul %84, %83, %cst_44 {dimension_numbers = #tpu.dot_dimension_numbers<[1], [0], [0], [1], [0, 0, 1, 1], [], []>} : vector<14x512xbf16>, vector<512x2560xbf16>, vector<14x2560xf32> -> vector<14x2560xf32>
    %86 = arith.truncf %85 : vector<14x2560xf32> to vector<14x2560xbf16>
    %cst_45 = arith.constant 0.000000e+00 : f32
    %87 = vector.broadcast %cst_45 : f32 to vector<28x512xf32>
    %c0_46 = arith.constant 0 : index
    %c0_47 = arith.constant 0 : index
    %c0_48 = arith.constant 0 : index
    %88 = vector.load %arg11[%c0_46, %c0_47, %c0_48] : memref<5x28x14xbf16, #tpu.memory_space<vmem>>, vector<1x28x14xbf16>
    %89 = vector.shape_cast %88 : vector<1x28x14xbf16> to vector<28x14xbf16>
    %90 = vector.extract_strided_slice %86 {offsets = [0, 0], sizes = [14, 512], strides = [1, 1]} : vector<14x2560xbf16> to vector<14x512xbf16>
    %cst_49 = arith.constant dense<0.000000e+00> : vector<28x512xf32>
    %91 = tpu.matmul %89, %90, %cst_49 {dimension_numbers = #tpu.dot_dimension_numbers<[1], [0], [0], [1], [0, 0, 1, 1], [], []>} : vector<28x14xbf16>, vector<14x512xbf16>, vector<28x512xf32> -> vector<28x512xf32>
    %92 = arith.addf %87, %91 : vector<28x512xf32>
    %c1_50 = arith.constant 1 : index
    %c0_51 = arith.constant 0 : index
    %c0_52 = arith.constant 0 : index
    %93 = vector.load %arg11[%c1_50, %c0_51, %c0_52] : memref<5x28x14xbf16, #tpu.memory_space<vmem>>, vector<1x28x14xbf16>
    %94 = vector.shape_cast %93 : vector<1x28x14xbf16> to vector<28x14xbf16>
    %95 = vector.extract_strided_slice %86 {offsets = [0, 512], sizes = [14, 512], strides = [1, 1]} : vector<14x2560xbf16> to vector<14x512xbf16>
    %cst_53 = arith.constant dense<0.000000e+00> : vector<28x512xf32>
    %96 = tpu.matmul %94, %95, %cst_53 {dimension_numbers = #tpu.dot_dimension_numbers<[1], [0], [0], [1], [0, 0, 1, 1], [], []>} : vector<28x14xbf16>, vector<14x512xbf16>, vector<28x512xf32> -> vector<28x512xf32>
    %97 = arith.addf %92, %96 : vector<28x512xf32>
    %c2_54 = arith.constant 2 : index
    %c0_55 = arith.constant 0 : index
    %c0_56 = arith.constant 0 : index
    %98 = vector.load %arg11[%c2_54, %c0_55, %c0_56] : memref<5x28x14xbf16, #tpu.memory_space<vmem>>, vector<1x28x14xbf16>
    %99 = vector.shape_cast %98 : vector<1x28x14xbf16> to vector<28x14xbf16>
    %100 = vector.extract_strided_slice %86 {offsets = [0, 1024], sizes = [14, 512], strides = [1, 1]} : vector<14x2560xbf16> to vector<14x512xbf16>
    %cst_57 = arith.constant dense<0.000000e+00> : vector<28x512xf32>
    %101 = tpu.matmul %99, %100, %cst_57 {dimension_numbers = #tpu.dot_dimension_numbers<[1], [0], [0], [1], [0, 0, 1, 1], [], []>} : vector<28x14xbf16>, vector<14x512xbf16>, vector<28x512xf32> -> vector<28x512xf32>
    %102 = arith.addf %97, %101 : vector<28x512xf32>
    %c3_58 = arith.constant 3 : index
    %c0_59 = arith.constant 0 : index
    %c0_60 = arith.constant 0 : index
    %103 = vector.load %arg11[%c3_58, %c0_59, %c0_60] : memref<5x28x14xbf16, #tpu.memory_space<vmem>>, vector<1x28x14xbf16>
    %104 = vector.shape_cast %103 : vector<1x28x14xbf16> to vector<28x14xbf16>
    %105 = vector.extract_strided_slice %86 {offsets = [0, 1536], sizes = [14, 512], strides = [1, 1]} : vector<14x2560xbf16> to vector<14x512xbf16>
    %cst_61 = arith.constant dense<0.000000e+00> : vector<28x512xf32>
    %106 = tpu.matmul %104, %105, %cst_61 {dimension_numbers = #tpu.dot_dimension_numbers<[1], [0], [0], [1], [0, 0, 1, 1], [], []>} : vector<28x14xbf16>, vector<14x512xbf16>, vector<28x512xf32> -> vector<28x512xf32>
    %107 = arith.addf %102, %106 : vector<28x512xf32>
    %c4_62 = arith.constant 4 : index
    %c0_63 = arith.constant 0 : index
    %c0_64 = arith.constant 0 : index
    %108 = vector.load %arg11[%c4_62, %c0_63, %c0_64] : memref<5x28x14xbf16, #tpu.memory_space<vmem>>, vector<1x28x14xbf16>
    %109 = vector.shape_cast %108 : vector<1x28x14xbf16> to vector<28x14xbf16>
    %110 = vector.extract_strided_slice %86 {offsets = [0, 2048], sizes = [14, 512], strides = [1, 1]} : vector<14x2560xbf16> to vector<14x512xbf16>
    %cst_65 = arith.constant dense<0.000000e+00> : vector<28x512xf32>
    %111 = tpu.matmul %109, %110, %cst_65 {dimension_numbers = #tpu.dot_dimension_numbers<[1], [0], [0], [1], [0, 0, 1, 1], [], []>} : vector<28x14xbf16>, vector<14x512xbf16>, vector<28x512xf32> -> vector<28x512xf32>
    %112 = arith.addf %107, %111 : vector<28x512xf32>
    %cst_66 = arith.constant dense<0.000000e+00> : vector<512xf32>
    %113 = vector.multi_reduction <add>, %112, %cst_66 [0] : vector<28x512xf32> to vector<512xf32>
    %114 = vector.shape_cast %113 : vector<512xf32> to vector<1x512xf32>
    %115 = arith.mulf %112, %112 : vector<28x512xf32>
    %cst_67 = arith.constant dense<0.000000e+00> : vector<512xf32>
    %116 = vector.multi_reduction <add>, %115, %cst_67 [0] : vector<28x512xf32> to vector<512xf32>
    %117 = vector.shape_cast %116 : vector<512xf32> to vector<1x512xf32>
    %118 = tpu.concatenate %114, %117 in 0 : vector<1x512xf32>, vector<1x512xf32> -> vector<2x512xf32>
    %c0_68 = arith.constant 0 : index
    %c0_69 = arith.constant 0 : index
    %119 = vector.load %arg12[%c0_68, %c0_69] : memref<512x32xf32, #tpu.memory_space<vmem>>, vector<512x32xf32>
    %cst_70 = arith.constant dense<0.000000e+00> : vector<2x32xf32>
    %120 = tpu.matmul %118, %119, %cst_70 {dimension_numbers = #tpu.dot_dimension_numbers<[1], [0], [0], [1], [0, 0, 1, 1], [], []>} : vector<2x512xf32>, vector<512x32xf32>, vector<2x32xf32> -> vector<2x32xf32>
    %cst_71 = arith.constant 0.00255102036 : f32
    %121 = vector.broadcast %cst_71 : f32 to vector<2x32xf32>
    %122 = arith.mulf %120, %121 : vector<2x32xf32>
    %123 = vector.extract_strided_slice %122 {offsets = [0, 0], sizes = [1, 32], strides = [1, 1]} : vector<2x32xf32> to vector<1x32xf32>
    %124 = vector.extract_strided_slice %122 {offsets = [1, 0], sizes = [1, 32], strides = [1, 1]} : vector<2x32xf32> to vector<1x32xf32>
    %125 = arith.mulf %123, %123 : vector<1x32xf32>
    %126 = arith.subf %124, %125 : vector<1x32xf32>
    %c0_72 = arith.constant 0 : index
    %c0_73 = arith.constant 0 : index
    %127 = vector.load %arg14[%c0_72, %c0_73] : memref<1x32xf32, #tpu.memory_space<vmem>>, vector<1x32xf32>
    %cst_74 = arith.constant 9.99999974E-6 : f32
    %128 = vector.broadcast %cst_74 : f32 to vector<1x32xf32>
    %129 = arith.addf %126, %128 : vector<1x32xf32>
    %130 = math.rsqrt %129 : vector<1x32xf32>
    %131 = arith.mulf %127, %130 : vector<1x32xf32>
    %c0_75 = arith.constant 0 : index
    %c0_76 = arith.constant 0 : index
    %132 = vector.load %arg15[%c0_75, %c0_76] : memref<1x32xf32, #tpu.memory_space<vmem>>, vector<1x32xf32>
    %133 = arith.mulf %123, %131 : vector<1x32xf32>
    %134 = arith.subf %132, %133 : vector<1x32xf32>
    %135 = tpu.concatenate %131, %134 in 0 : vector<1x32xf32>, vector<1x32xf32> -> vector<2x32xf32>
    %c0_77 = arith.constant 0 : index
    %c0_78 = arith.constant 0 : index
    %136 = vector.load %arg13[%c0_77, %c0_78] : memref<32x512xf32, #tpu.memory_space<vmem>>, vector<32x512xf32>
    %cst_79 = arith.constant dense<0.000000e+00> : vector<2x512xf32>
    %137 = tpu.matmul %135, %136, %cst_79 {dimension_numbers = #tpu.dot_dimension_numbers<[1], [0], [0], [1], [0, 0, 1, 1], [], []>} : vector<2x32xf32>, vector<32x512xf32>, vector<2x512xf32> -> vector<2x512xf32>
    %138 = vector.extract_strided_slice %137 {offsets = [0, 0], sizes = [1, 512], strides = [1, 1]} : vector<2x512xf32> to vector<1x512xf32>
    %139 = vector.broadcast %138 : vector<1x512xf32> to vector<28x512xf32>
    %140 = arith.mulf %112, %139 : vector<28x512xf32>
    %141 = vector.extract_strided_slice %137 {offsets = [1, 0], sizes = [1, 512], strides = [1, 1]} : vector<2x512xf32> to vector<1x512xf32>
    %142 = vector.broadcast %141 : vector<1x512xf32> to vector<28x512xf32>
    %143 = arith.addf %140, %142 : vector<28x512xf32>
    %cst_80 = arith.constant 0.000000e+00 : f32
    %144 = vector.broadcast %cst_80 : f32 to vector<28x512xf32>
    %145 = arith.maximumf %143, %144 : vector<28x512xf32>
    %c1_i32_81 = arith.constant 1 : i32
    %146 = tpu.memref_slice %arg22[%c1_i32_81] : memref<2x!tpu.dma_semaphore, #tpu.memory_space<semaphore_mem>> -> memref<1x!tpu.dma_semaphore, #tpu.memory_space<semaphore_mem>>
    %147 = tpu.memref_squeeze %146 : memref<1x!tpu.dma_semaphore, #tpu.memory_space<semaphore_mem>> -> memref<!tpu.dma_semaphore, #tpu.memory_space<semaphore_mem>>
    tpu.wait_dma2 semaphore(%147 : memref<!tpu.dma_semaphore, #tpu.memory_space<semaphore_mem>>) src(%arg16 : memref<512x512xbf16, #tpu.memory_space<any>>) dst(%arg21 : memref<512x512xbf16, #tpu.memory_space<vmem>>)
    %c0_82 = arith.constant 0 : index
    %c0_83 = arith.constant 0 : index
    %148 = vector.load %arg21[%c0_82, %c0_83] : memref<512x512xbf16, #tpu.memory_space<vmem>>, vector<512x512xbf16>
    %149 = arith.truncf %145 : vector<28x512xf32> to vector<28x512xbf16>
    %cst_84 = arith.constant dense<0.000000e+00> : vector<28x512xf32>
    %150 = tpu.matmul %149, %148, %cst_84 {dimension_numbers = #tpu.dot_dimension_numbers<[1], [0], [0], [1], [0, 0, 1, 1], [], []>} : vector<28x512xbf16>, vector<512x512xbf16>, vector<28x512xf32> -> vector<28x512xf32>
    %151 = arith.truncf %150 : vector<28x512xf32> to vector<28x512xbf16>
    %cst_85 = arith.constant 0.000000e+00 : f32
    %152 = vector.broadcast %cst_85 : f32 to vector<56x128xf32>
    %c0_86 = arith.constant 0 : index
    %c0_87 = arith.constant 0 : index
    %c0_88 = arith.constant 0 : index
    %153 = vector.load %arg17[%c0_86, %c0_87, %c0_88] : memref<4x56x28xbf16, #tpu.memory_space<vmem>>, vector<1x56x28xbf16>
    %154 = vector.shape_cast %153 : vector<1x56x28xbf16> to vector<56x28xbf16>
    %155 = vector.extract_strided_slice %151 {offsets = [0, 0], sizes = [28, 128], strides = [1, 1]} : vector<28x512xbf16> to vector<28x128xbf16>
    %cst_89 = arith.constant dense<0.000000e+00> : vector<56x128xf32>
    %156 = tpu.matmul %154, %155, %cst_89 {dimension_numbers = #tpu.dot_dimension_numbers<[1], [0], [0], [1], [0, 0, 1, 1], [], []>} : vector<56x28xbf16>, vector<28x128xbf16>, vector<56x128xf32> -> vector<56x128xf32>
    %157 = arith.addf %152, %156 : vector<56x128xf32>
    %c1_90 = arith.constant 1 : index
    %c0_91 = arith.constant 0 : index
    %c0_92 = arith.constant 0 : index
    %158 = vector.load %arg17[%c1_90, %c0_91, %c0_92] : memref<4x56x28xbf16, #tpu.memory_space<vmem>>, vector<1x56x28xbf16>
    %159 = vector.shape_cast %158 : vector<1x56x28xbf16> to vector<56x28xbf16>
    %160 = vector.extract_strided_slice %151 {offsets = [0, 128], sizes = [28, 128], strides = [1, 1]} : vector<28x512xbf16> to vector<28x128xbf16>
    %cst_93 = arith.constant dense<0.000000e+00> : vector<56x128xf32>
    %161 = tpu.matmul %159, %160, %cst_93 {dimension_numbers = #tpu.dot_dimension_numbers<[1], [0], [0], [1], [0, 0, 1, 1], [], []>} : vector<56x28xbf16>, vector<28x128xbf16>, vector<56x128xf32> -> vector<56x128xf32>
    %162 = arith.addf %157, %161 : vector<56x128xf32>
    %c2_94 = arith.constant 2 : index
    %c0_95 = arith.constant 0 : index
    %c0_96 = arith.constant 0 : index
    %163 = vector.load %arg17[%c2_94, %c0_95, %c0_96] : memref<4x56x28xbf16, #tpu.memory_space<vmem>>, vector<1x56x28xbf16>
    %164 = vector.shape_cast %163 : vector<1x56x28xbf16> to vector<56x28xbf16>
    %165 = vector.extract_strided_slice %151 {offsets = [0, 256], sizes = [28, 128], strides = [1, 1]} : vector<28x512xbf16> to vector<28x128xbf16>
    %cst_97 = arith.constant dense<0.000000e+00> : vector<56x128xf32>
    %166 = tpu.matmul %164, %165, %cst_97 {dimension_numbers = #tpu.dot_dimension_numbers<[1], [0], [0], [1], [0, 0, 1, 1], [], []>} : vector<56x28xbf16>, vector<28x128xbf16>, vector<56x128xf32> -> vector<56x128xf32>
    %167 = arith.addf %162, %166 : vector<56x128xf32>
    %c3_98 = arith.constant 3 : index
    %c0_99 = arith.constant 0 : index
    %c0_100 = arith.constant 0 : index
    %168 = vector.load %arg17[%c3_98, %c0_99, %c0_100] : memref<4x56x28xbf16, #tpu.memory_space<vmem>>, vector<1x56x28xbf16>
    %169 = vector.shape_cast %168 : vector<1x56x28xbf16> to vector<56x28xbf16>
    %170 = vector.extract_strided_slice %151 {offsets = [0, 384], sizes = [28, 128], strides = [1, 1]} : vector<28x512xbf16> to vector<28x128xbf16>
    %cst_101 = arith.constant dense<0.000000e+00> : vector<56x128xf32>
    %171 = tpu.matmul %169, %170, %cst_101 {dimension_numbers = #tpu.dot_dimension_numbers<[1], [0], [0], [1], [0, 0, 1, 1], [], []>} : vector<56x28xbf16>, vector<28x128xbf16>, vector<56x128xf32> -> vector<56x128xf32>
    %172 = arith.addf %167, %171 : vector<56x128xf32>
    %c0_102 = arith.constant 0 : index
    %c0_103 = arith.constant 0 : index
    %173 = vector.load %arg18[%c0_102, %c0_103] : memref<1x128xf32, #tpu.memory_space<vmem>>, vector<1x128xf32>
    %174 = vector.broadcast %173 : vector<1x128xf32> to vector<56x128xf32>
    %175 = arith.addf %172, %174 : vector<56x128xf32>
    %176 = math.tanh %175 : vector<56x128xf32>
    %c0_104 = arith.constant 0 : index
    %c0_105 = arith.constant 0 : index
    %177 = vector.load %arg19[%c0_104, %c0_105] : memref<56x128xf32, #tpu.memory_space<vmem>>, vector<56x128xf32>
    tpu.vector_store %arg19[%c0_104, %c0_105], %176 {strides = array<i32>} : memref<56x128xf32, #tpu.memory_space<vmem>>, vector<56x128xf32>,
    return
  }
  func.func @transform_0(%arg0: i32) -> (i32, i32) {
    %c0_i32 = arith.constant 0 : i32
    %c0_i32_0 = arith.constant 0 : i32
    %c0_i32_1 = arith.constant 0 : i32
    return %c0_i32, %c0_i32_0 : i32, i32
  }
  func.func @transform_1(%arg0: i32) -> (i32, i32) {
    %c0_i32 = arith.constant 0 : i32
    %c0_i32_0 = arith.constant 0 : i32
    %c0_i32_1 = arith.constant 0 : i32
    return %c0_i32, %c0_i32_0 : i32, i32
  }
  func.func @transform_2(%arg0: i32) -> (i32, i32) {
    %c0_i32 = arith.constant 0 : i32
    %c0_i32_0 = arith.constant 0 : i32
    %c0_i32_1 = arith.constant 0 : i32
    return %c0_i32, %c0_i32_0 : i32, i32
  }
  func.func @transform_3(%arg0: i32) -> (i32, i32) {
    %c0_i32 = arith.constant 0 : i32
    %c0_i32_0 = arith.constant 0 : i32
    %c0_i32_1 = arith.constant 0 : i32
    return %c0_i32, %c0_i32_0 : i32, i32
  }
  func.func @transform_4(%arg0: i32) -> (i32, i32, i32) {
    %c0_i32 = arith.constant 0 : i32
    %c0_i32_0 = arith.constant 0 : i32
    %c0_i32_1 = arith.constant 0 : i32
    %c0_i32_2 = arith.constant 0 : i32
    return %c0_i32, %c0_i32_0, %c0_i32_1 : i32, i32, i32
  }
  func.func @transform_5(%arg0: i32) -> (i32, i32) {
    %c0_i32 = arith.constant 0 : i32
    %c0_i32_0 = arith.constant 0 : i32
    %c0_i32_1 = arith.constant 0 : i32
    return %c0_i32, %c0_i32_0 : i32, i32
  }
  func.func @transform_6(%arg0: i32) -> (i32, i32) {
    %c0_i32 = arith.constant 0 : i32
    %c0_i32_0 = arith.constant 0 : i32
    %c0_i32_1 = arith.constant 0 : i32
    return %c0_i32, %c0_i32_0 : i32, i32
  }
  func.func @transform_7(%arg0: i32) -> (i32, i32) {
    %c0_i32 = arith.constant 0 : i32
    %c0_i32_0 = arith.constant 0 : i32
    %c0_i32_1 = arith.constant 0 : i32
    return %c0_i32, %c0_i32_0 : i32, i32
  }
  func.func @transform_8(%arg0: i32) -> (i32, i32) {
    %c0_i32 = arith.constant 0 : i32
    %c0_i32_0 = arith.constant 0 : i32
    %c0_i32_1 = arith.constant 0 : i32
    return %c0_i32, %c0_i32_0 : i32, i32
  }
  func.func @transform_10(%arg0: i32) -> (i32, i32, i32) {
    %c0_i32 = arith.constant 0 : i32
    %c0_i32_0 = arith.constant 0 : i32
    %c0_i32_1 = arith.constant 0 : i32
    %c0_i32_2 = arith.constant 0 : i32
    return %c0_i32, %c0_i32_0, %c0_i32_1 : i32, i32, i32
  }
  func.func @transform_11(%arg0: i32) -> (i32, i32) {
    %c0_i32 = arith.constant 0 : i32
    %c0_i32_0 = arith.constant 0 : i32
    %c0_i32_1 = arith.constant 0 : i32
    return %c0_i32, %c0_i32_0 : i32, i32
  }
  func.func @transform_12(%arg0: i32) -> (i32, i32) {
    %c0_i32 = arith.constant 0 : i32
    %c0_i32_0 = arith.constant 0 : i32
    %c0_i32_1 = arith.constant 0 : i32
    return %c0_i32, %c0_i32_0 : i32, i32
  }
  func.func @transform_13(%arg0: i32) -> (i32, i32) {
    %c0_i32 = arith.constant 0 : i32
    %c0_i32_0 = arith.constant 0 : i32
    %c0_i32_1 = arith.constant 0 : i32
    return %c0_i32, %c0_i32_0 : i32, i32
  }
  func.func @transform_14(%arg0: i32) -> (i32, i32) {
    %c0_i32 = arith.constant 0 : i32
    %c0_i32_0 = arith.constant 0 : i32
    %c0_i32_1 = arith.constant 0 : i32
    return %c0_i32, %c0_i32_0 : i32, i32
  }
  func.func @transform_16(%arg0: i32) -> (i32, i32, i32) {
    %c0_i32 = arith.constant 0 : i32
    %c0_i32_0 = arith.constant 0 : i32
    %c0_i32_1 = arith.constant 0 : i32
    %c0_i32_2 = arith.constant 0 : i32
    return %c0_i32, %c0_i32_0, %c0_i32_1 : i32, i32, i32
  }
  func.func @transform_17(%arg0: i32) -> (i32, i32) {
    %c0_i32 = arith.constant 0 : i32
    %c0_i32_0 = arith.constant 0 : i32
    %c0_i32_1 = arith.constant 0 : i32
    return %c0_i32, %c0_i32_0 : i32, i32
  }
  func.func @transform_18(%arg0: i32) -> (i32, i32) {
    %c0_i32 = arith.constant 0 : i32
    %c0_i32_0 = arith.constant 0 : i32
    %c0_i32_1 = arith.constant 0 : i32
    return %c0_i32, %c0_i32_0 : i32, i32
  }
}

</mosaic_0001>

<bundles_post_ra>
// kernel: _lambda_.1
= control target key start
LH: loop header
LB: loop body
LE: loop exit
PB: predicated region body
PF: predicated region fallthrough
CT: control target
= control target key end

     0   :  { %s20058_s0 = inlined_call_operand.hbm [shape: f32[2,32], index: 0, kind: input, shape index: {}]   ;;  %s20059_s1 = inlined_call_operand.hbm [shape: bf16[32,2048], index: 1, kind: input, shape index: {}]   ;;  %s20060_s2 = inlined_call_operand.hbm [shape: f32[1,2048], index: 2, kind: input, shape index: {}]   ;;  %s20061_s3 = inlined_call_operand.hbm [shape: bf16[512,2560], index: 3, kind: input, shape index: {}]   ;;  %s20062_s4 = inlined_call_operand.vmem [shape: bf16[5,14,8], index: 4, kind: input, shape index: {}]   ;;  %s20063_s5 = inlined_call_operand.vmem [shape: f32[512,64], index: 5, kind: input, shape index: {}]   ;;  %s20064_s6 = inlined_call_operand.hbm [shape: f32[64,512], index: 6, kind: input, shape index: {}]   ;;  %s20065_s7 = inlined_call_operand.hbm [shape: f32[1,64], index: 7, kind: input, shape index: {}]   ;;  %s20066_s8 = inlined_call_operand.hbm [shape: f32[1,64], index: 8, kind: input, shape index: {}]   ;;  %s20067_s9 = inlined_call_operand.hbm [shape: bf16[512,2560], index: 9, kind: input, shape index: {}]   ;;  %s20068_s10 = inlined_call_operand.vmem [shape: bf16[5,28,14], index: 10, kind: input, shape index: {}]   ;;  %s20069_s11 = inlined_call_operand.vmem [shape: f32[512,32], index: 11, kind: input, shape index: {}]   ;;  %s20070_s12 = inlined_call_operand.hbm [shape: f32[32,512], index: 12, kind: input, shape index: {}]   ;;  %s20071_s13 = inlined_call_operand.hbm [shape: f32[1,32], index: 13, kind: input, shape index: {}]   ;;  %s20072_s14 = inlined_call_operand.hbm [shape: f32[1,32], index: 14, kind: input, shape index: {}]   ;;  %s20073_s15 = inlined_call_operand.hbm [shape: bf16[512,512], index: 15, kind: input, shape index: {}]   ;;  %s20074_s16 = inlined_call_operand.vmem [shape: bf16[4,56,28], index: 16, kind: input, shape index: {}]   ;;  %s20075_s17 = inlined_call_operand.hbm [shape: f32[1,128], index: 17, kind: input, shape index: {}]   ;;  %s20076_s18 = inlined_call_operand.vmem [shape: f32[56,128], index: 18, kind: output, shape index: {}]  }
   0x1   :  { %20077 = sst [smem:[#allocation36_spill]] %s20058_s0 }
   0x2   :  { %20078 = sst [smem:[#allocation37_spill]] %s20059_s1 }
   0x3   :  { %20079 = sst [smem:[#allocation38_spill]] %s20060_s2 }
   0x4   :  { %23 = vsyncpa [#allocation6], 0 }
   0x5   :  { %24 = vsyncpa [#allocation8], 0 }
   0x6   :  { %25 = vsyncpa [#allocation11], 0 }
   0x7   :  { %26 = vsyncpa [#allocation14], 0 }
   0x8   :  { %27 = vsyncpa [#allocation17], 0 }
   0x9   :  { %28 = vsyncpa [#allocation20], 0  ;;  %s18506_s27 = smov [#allocation7]  }
   0xa   :  { %s44_s28 = sshll.u32 %s18506_s27, 4  ;;  %s45_s28 = int_to_ptr.vmem [resolvable:$true] %s44_s28 }
   0xb   :  { %s18238_s29 = scalar_lea.vmem %s45_s28, 4096  ;;  %p18243_p1 = scmp.lt.s32.totalorder %s45_s28, %s45_s28 }
   0xc   :  { %p18239_p0 = scmp.ne.s32.totalorder %s45_s28, %s18238_s29  ;;  %p18244_p2 = scmp.lt.s32.totalorder %s18238_s29, %s18238_s29 }
   0xe   :  { %p18245_p3 = por %p18244_p2, %p18243_p1 }
  0x10   :  { %p18246_p4 = pnand %p18245_p3, %p18239_p0 }
  0x12   :  { %18249 = shalt.err (!%p18246_p4)
}
  0x13   :  { %s18507_s30 = smov 1024   ;;  %s18508_s0 = smov 64  }
  0x14   :  { %s20080_s20 = sld [smem:[#allocation37_spill]]  ;;  %s18509_s21 = smov [#allocation10]  }
  0x15   :  { %s66_s22 = sshll.u32 %s18509_s21, 4  ;;  %s67_s22 = int_to_ptr.vmem [resolvable:$true] %s66_s22 }
  0x16   :  { %s18258_s2 = scalar_lea.vmem %s67_s22, 81920  ;;  %p18263_p6 = scmp.lt.s32.totalorder %s67_s22, %s67_s22 }
  0x17   :  { %p18259_p5 = scmp.ne.s32.totalorder %s67_s22, %s18258_s2  ;;  %p18264_p7 = scmp.lt.s32.totalorder %s18258_s2, %s18258_s2 }
  0x19   :  { %p18265_p8 = por %p18264_p7, %p18263_p6 }
  0x1a   :  { %50 = dma.hbm_to_vmem [thread:$0]  %s20080_s20, 4096, %s45_s28, [#allocation8], %s18507_s30, %s18507_s30, %s18508_s0  }
  0x1b   :  { %p18266_p9 = pnand %p18265_p8, %p18259_p5 }
  0x1d   :  { %18269 = shalt.err (!%p18266_p9)
}
  0x1e   :  { %s18510_s23 = smov 1280   ;;  %s18511_s24 = smov 80  }
  0x1f   :  { %72 = dma.hbm_to_vmem [thread:$0]  %s20061_s3, 81920, %s67_s22, [#allocation11], %s18510_s23, %s18510_s23, %s18511_s24  }
  0x20   :  { %s18512_s27 = smov [#allocation13]  }
  0x21   :  { %s95_s29 = sshll.u32 %s18512_s27, 4  ;;  %s96_s29 = int_to_ptr.vmem [resolvable:$true] %s95_s29 }
  0x22   :  { %s18278_s28 = scalar_lea.vmem %s96_s29, 16  ;;  %s18282_s30 = scalar_lea.vmem %s96_s29, 32 }
  0x23   :  { %p18279_p10 = scmp.ne.s32.totalorder %s96_s29, %s18278_s28  ;;  %p18283_p11 = scmp.lt.s32.totalorder %s96_s29, %s96_s29 }
  0x24   :  { %p18284_p12 = scmp.lt.s32.totalorder %s18282_s30, %s18278_s28 }
  0x26   :  { %p18285_p13 = por %p18284_p12, %p18283_p11 }
  0x28   :  { %p18286_p0 = pnand %p18285_p13, %p18279_p10 }
  0x2a   :  { %18289 = shalt.err (!%p18286_p0)
}
  0x2b   :  { %98 = dma.hbm_to_vmem [thread:$0]  %s20065_s7, 16, %s96_s29, [#allocation14]  }
  0x2c   :  { %s18513_s1 = smov [#allocation16]   ;;  %s18514_s21 = smov [#allocation19]  }
  0x2d   :  { %s118_s20 = sshll.u32 %s18513_s1, 4  ;;  %s141_s3 = sshll.u32 %s18514_s21, 4  ;;  %s119_s20 = int_to_ptr.vmem [resolvable:$true] %s118_s20  ;;  %s142_s3 = int_to_ptr.vmem [resolvable:$true] %s141_s3 }
  0x2e   :  { %s18298_s22 = scalar_lea.vmem %s119_s20, 2048  ;;  %p18303_p2 = scmp.lt.s32.totalorder %s119_s20, %s119_s20 }
  0x2f   :  { %p18299_p1 = scmp.ne.s32.totalorder %s119_s20, %s18298_s22  ;;  %p18304_p3 = scmp.lt.s32.totalorder %s18298_s22, %s18298_s22 }
  0x31   :  { %p18305_p4 = por %p18304_p3, %p18303_p2 }
  0x33   :  { %p18306_p5 = pnand %p18305_p4, %p18299_p1 }
  0x35   :  { %18309 = shalt.err (!%p18306_p5)
}
  0x36   :  { %s18515_s2 = smov 512   ;;  %s18516_s23 = smov 32  }
  0x37   :  { %124 = dma.hbm_to_vmem [thread:$0]  %s20070_s12, 2048, %s119_s20, [#allocation17], %s18515_s2, %s18515_s2, %s18516_s23  }
  0x38   :  { %s18318_s7 = scalar_lea.vmem %s142_s3, 16  ;;  %s18322_s26 = scalar_lea.vmem %s142_s3, 32 }
  0x39   :  { %p18319_p6 = scmp.ne.s32.totalorder %s142_s3, %s18318_s7  ;;  %p18323_p7 = scmp.lt.s32.totalorder %s142_s3, %s142_s3 }
  0x3a   :  { %p18324_p8 = scmp.lt.s32.totalorder %s18322_s26, %s18318_s7 }
  0x3c   :  { %p18325_p9 = por %p18324_p8, %p18323_p7 }
  0x3e   :  { %p18326_p10 = pnand %p18325_p9, %p18319_p6 }
  0x40   :  { %18329 = shalt.err (!%p18326_p10)
}
  0x41   :  { %144 = dma.hbm_to_vmem [thread:$0]  %s20072_s14, 16, %s142_s3, [#allocation20]  }
  0x42   :  { %s18517_s28 = smov [#allocation5]   ;;  %s18518_s0 = smov [#allocation9]  }
  0x43   :  { %s35_s30 = sshll.u32 %s18517_s28, 4  ;;  %s57_s19 = sshll.u32 %s18518_s0, 4  ;;  %s36_s30 = int_to_ptr.vmem [resolvable:$true] %s35_s30  ;;  %s58_s19 = int_to_ptr.vmem [resolvable:$true] %s57_s19 }
  0x44   :  { %s18338_s1 = scalar_lea.vmem %s36_s30, 32  ;;  %p18343_p12 = scmp.lt.s32.totalorder %s36_s30, %s36_s30 }
  0x45   :  { %p18339_p11 = scmp.ne.s32.totalorder %s36_s30, %s18338_s1  ;;  %p18344_p13 = scmp.lt.s32.totalorder %s18338_s1, %s18338_s1 }
  0x47   :  { %p18345_p0 = por %p18344_p13, %p18343_p12 }
  0x49   :  { %p18346_p1 = pnand %p18345_p0, %p18339_p11 }
  0x4b   :  { %18349 = shalt.err (!%p18346_p1)
}
  0x4c   :  { %s20081_s21 = sld [smem:[#allocation36_spill]]  ;;  %s18358_s22 = scalar_lea.vmem %s58_s19, 256 }
  0x4d   :  { %p18359_p2 = scmp.ne.s32.totalorder %s58_s19, %s18358_s22  ;;  %p18363_p3 = scmp.lt.s32.totalorder %s58_s19, %s58_s19 }
  0x4e   :  { %p18364_p4 = scmp.lt.s32.totalorder %s18358_s22, %s18358_s22 }
  0x50   :  { %p18365_p5 = por %p18364_p4, %p18363_p3 }
  0x52   :  { %38 = dma.hbm_to_vmem [thread:$0]  %s20081_s21, 32, %s36_s30, [#allocation6]  }
  0x53   :  { %p18366_p6 = pnand %p18365_p5, %p18359_p2 }
  0x55   :  { %18369 = shalt.err (!%p18366_p6)
}
  0x56   :  { %s20082_s24 = sld [smem:[#allocation38_spill]]  ;;  %s18519_s25 = smov [#allocation12]  }
  0x57   :  { %s82_s7 = sshll.u32 %s18519_s25, 4  ;;  %s18520_s26 = smov [#allocation15]   ;;  %s83_s7 = int_to_ptr.vmem [resolvable:$true] %s82_s7 }
  0x58   :  { %s105_s27 = sshll.u32 %s18520_s26, 4  ;;  %s18378_s29 = scalar_lea.vmem %s83_s7, 4096  ;;  %s106_s27 = int_to_ptr.vmem [resolvable:$true] %s105_s27 }
  0x59   :  { %p18379_p7 = scmp.ne.s32.totalorder %s83_s7, %s18378_s29  ;;  %p18383_p8 = scmp.lt.s32.totalorder %s83_s7, %s83_s7 }
  0x5a   :  { %p18384_p9 = scmp.lt.s32.totalorder %s18378_s29, %s18378_s29 }
  0x5c   :  { %60 = dma.hbm_to_vmem [thread:$0]  %s20082_s24, 256, %s58_s19, [#allocation8]  }
  0x5d   :  { %p18385_p10 = por %p18384_p9, %p18383_p8 }
  0x5f   :  { %p18386_p11 = pnand %p18385_p10, %p18379_p7 }
  0x61   :  { %18389 = shalt.err (!%p18386_p11)
}
  0x62   :  { %88 = dma.hbm_to_vmem [thread:$0]  %s20064_s6, 4096, %s83_s7, [#allocation11], %s18515_s2, %s18515_s2, %s18516_s23  }
  0x63   :  { %s18398_s0 = scalar_lea.vmem %s106_s27, 16  ;;  %s18402_s19 = scalar_lea.vmem %s106_s27, 32 }
  0x64   :  { %p18399_p12 = scmp.ne.s32.totalorder %s106_s27, %s18398_s0  ;;  %p18403_p13 = scmp.lt.s32.totalorder %s106_s27, %s106_s27 }
  0x65   :  { %p18404_p0 = scmp.lt.s32.totalorder %s18402_s19, %s18398_s0 }
  0x67   :  { %p18405_p1 = por %p18404_p0, %p18403_p13 }
  0x69   :  { %p18406_p2 = pnand %p18405_p1, %p18399_p12 }
  0x6b   :  { %18409 = shalt.err (!%p18406_p2)
}
  0x6c   :  { %108 = dma.hbm_to_vmem [thread:$0]  %s20066_s8, 16, %s106_s27, [#allocation14]  }
  0x6d   :  { %s18521_s20 = smov [#allocation18]   ;;  %s18522_s22 = smov [#allocation21]  }
  0x6e   :  { %s131_s21 = sshll.u32 %s18521_s20, 4  ;;  %s153_s14 = sshll.u32 %s18522_s22, 4  ;;  %s132_s21 = int_to_ptr.vmem [resolvable:$true] %s131_s21  ;;  %s154_s14 = int_to_ptr.vmem [resolvable:$true] %s153_s14 }
  0x6f   :  { %s18418_s3 = scalar_lea.vmem %s132_s21, 16  ;;  %s18422_s6 = scalar_lea.vmem %s132_s21, 32 }
  0x70   :  { %p18419_p3 = scmp.ne.s32.totalorder %s132_s21, %s18418_s3  ;;  %p18423_p4 = scmp.lt.s32.totalorder %s132_s21, %s132_s21 }
  0x71   :  { %p18424_p5 = scmp.lt.s32.totalorder %s18422_s6, %s18418_s3 }
  0x73   :  { %p18425_p6 = por %p18424_p5, %p18423_p4 }
  0x75   :  { %p18426_p7 = pnand %p18425_p6, %p18419_p3 }
  0x77   :  { %18429 = shalt.err (!%p18426_p7)
}
  0x78   :  { %134 = dma.hbm_to_vmem [thread:$0]  %s20071_s13, 16, %s132_s21, [#allocation17]  }
  0x79   :  { %s18438_s24 = scalar_lea.vmem %s154_s14, 16  ;;  %s18442_s8 = scalar_lea.vmem %s154_s14, 32 }
  0x7a   :  { %p18439_p8 = scmp.ne.s32.totalorder %s154_s14, %s18438_s24  ;;  %p18443_p9 = scmp.lt.s32.totalorder %s154_s14, %s154_s14 }
  0x7b   :  { %p18444_p10 = scmp.lt.s32.totalorder %s18442_s8, %s18438_s24 }
  0x7d   :  { %p18445_p11 = por %p18444_p10, %p18443_p9 }
  0x7f   :  { %p18446_p12 = pnand %p18445_p11, %p18439_p8 }
  0x81   :  { %18449 = shalt.err (!%p18446_p12)
}
  0x82   :  { %156 = dma.hbm_to_vmem [thread:$0]  %s20075_s17, 16, %s154_s14, [#allocation20]  }
  0x83   :  { %18490 = dma.done.wait [#allocation6], 32  }
  0x84   :  { %18491 = vsyncadd [#allocation6], 4294967264 }
  0x85   :  { %18492 = dma.done.wait [#allocation8], 4352  }
  0x86   :  { %18493 = vsyncadd [#allocation8], 4294962944 }
  0x87   :  { %18494 = dma.done.wait [#allocation11], 86016  }
  0x88   :  { %18495 = vsyncadd [#allocation11], 4294881280 }
  0x89   :  { %18496 = dma.done.wait [#allocation14], 32  }
  0x8a   :  { %18497 = vsyncadd [#allocation14], 4294967264 }
  0x8b   :  { %18498 = dma.done.wait [#allocation17], 2064  }
  0x8c   :  { %18499 = vsyncadd [#allocation17], 4294965232 }
  0x8d   :  { %18500 = dma.done.wait [#allocation20], 32  }
  0x8e   :  { %18501 = vsyncadd [#allocation20], 4294967264  ;;  %v18523_v0 = vmov 0   ;;  %v232_v1 = vld [vmem:[#allocation7 + $0x80] sm:$0xff]  ;;  %v233_v3 = vld [vmem:[#allocation7 + $0x88] sm:$0xff]  ;;  %vm492_vm0 = vcmask 261120  }
  0x8f   :  { %528 = vmatprep.mubr.bf16.mxu0 %v18523_v0  ;;  %569 = vmatprep.mubr.bf16.mxu1 %v18523_v0  ;;  %v240_v2 = vld [vmem:[#allocation7 + $0xc0] sm:$0xff]  ;;  %v241_v5 = vld [vmem:[#allocation7 + $0xc8] sm:$0xff]  ;;  %v234_v15 = vld [vmem:[#allocation7 + $0x90] sm:$0xff]  ;;  %vm876_vm1 = vcmask 1041408   ;;  %vm881_vm2 = vcmask 1043456   ;;  %vm886_vm3 = vcmask 1045504  }
  0x90   :  { %v14251_v4 = vcombine.high %v232_v1, %v240_v2  ;;  %v14250_v6 = vcombine.low %v232_v1, %v240_v2  ;;  %v216_v7 = vld [vmem:[#allocation7] sm:$0xff]  ;;  %v14253_v9 = vcombine.high %v233_v3, %v241_v5  ;;  %v14252_v10 = vcombine.low %v233_v3, %v241_v5  ;;  %v217_v12 = vld [vmem:[#allocation7 + $0x8] sm:$0xff]  ;;  %v242_v16 = vld [vmem:[#allocation7 + $0xd0] sm:$0xff]  ;;  %s18527_s23 = smov [#allocation3]  }
  0x91   :  { %v224_v8 = vld [vmem:[#allocation7 + $0x40] sm:$0xff]  ;;  %v225_v13 = vld [vmem:[#allocation7 + $0x48] sm:$0xff]  ;;  %v235_v17 = vld [vmem:[#allocation7 + $0x98] sm:$0xff]  ;;  %v14255_v22 = vcombine.high %v234_v15, %v242_v16  ;;  %v14254_v29 = vcombine.low %v234_v15, %v242_v16  ;;  %vm5585_vm4 = vcmask 64512   ;;  %vm6216_vm5 = vcmask 1040384   ;;  %s210_s24 = sshll.u32 %s18527_s23, 4  ;;  %s211_s24 = int_to_ptr.vmem [resolvable:$true] %s210_s24 }
  0x92   :  { %v14235_v11 = vcombine.high %v216_v7, %v224_v8  ;;  %508 = vmatprep.subr.bf16.mxu0 %v14251_v4  ;;  %v14237_v14 = vcombine.high %v217_v12, %v225_v13  ;;  %549 = vmatprep.subr.bf16.mxu1 %v14253_v9  ;;  %v14234_v18 = vcombine.low %v216_v7, %v224_v8  ;;  %v214_v19 = vld [vmem:[#allocation5] sm:$0x3]  ;;  %v218_v24 = vld [vmem:[#allocation7 + $0x10] sm:$0xff]  ;;  %v236_v33 = vld [vmem:[#allocation7 + $0xa0] sm:$0xff]  ;;  %vm6494_vm6 = vcmask 523264  }
  0x93   :  { %509 = vmatpush1.bf16.msra.mxu0 %v14250_v6  ;;  %v243_v20 = vld [vmem:[#allocation7 + $0xd8] sm:$0xff]  ;;  %550 = vmatpush1.bf16.msra.mxu1 %v14252_v10  ;;  %v14236_v21 = vcombine.low %v217_v12, %v225_v13  ;;  %v226_v25 = vld [vmem:[#allocation7 + $0x50] sm:$0xff]  ;;  %v18664_v26 = vpack.c.bf16 %v214_v19, %v214_v19  ;;  %v244_v34 = vld [vmem:[#allocation7 + $0xe0] sm:$0xff] }
  0x94   :  { %510 = vmatprep.subr.bf16.mxu0 %v14235_v11  ;;  %551 = vmatprep.subr.bf16.mxu1 %v14237_v14  ;;  %v14257_v23 = vcombine.high %v235_v17, %v243_v20  ;;  %v219_v27 = vld [vmem:[#allocation7 + $0x18] sm:$0xff]  ;;  %v14256_v30 = vcombine.low %v235_v17, %v243_v20  ;;  %v14239_v31 = vcombine.high %v218_v24, %v226_v25  ;;  %v237_v35 = vld [vmem:[#allocation7 + $0xa8] sm:$0xff]  ;;  %v220_v40 = vld [vmem:[#allocation7 + $0x20] sm:$0xff] }
  0x95   :  { %v227_v28 = vld [vmem:[#allocation7 + $0x58] sm:$0xff]  ;;  %v245_v36 = vld [vmem:[#allocation7 + $0xe8] sm:$0xff]  ;;  %v14238_v37 = vcombine.low %v218_v24, %v226_v25  ;;  %v14259_v39 = vcombine.high %v236_v33, %v244_v34  ;;  %v228_v42 = vld [vmem:[#allocation7 + $0x60] sm:$0xff]  ;;  %v14258_v45 = vcombine.low %v236_v33, %v244_v34 }
  0x96   :  { %v14241_v32 = vcombine.high %v219_v27, %v227_v28  ;;  %v14240_v38 = vcombine.low %v219_v27, %v227_v28  ;;  %v14261_v41 = vcombine.high %v237_v35, %v245_v36  ;;  %v221_v43 = vld [vmem:[#allocation7 + $0x28] sm:$0xff]  ;;  %v14260_v46 = vcombine.low %v237_v35, %v245_v36  ;;  %v238_v48 = vld [vmem:[#allocation7 + $0xb0] sm:$0xff]  ;;  %v239_v51 = vld [vmem:[#allocation7 + $0xb8] sm:$0xff] }
  0x97   :  { %511 = vmatpush1.bf16.msra.mxu0 %v14234_v18  ;;  %552 = vmatpush1.bf16.msra.mxu1 %v14236_v21  ;;  %v229_v44 = vld [vmem:[#allocation7 + $0x68] sm:$0xff]  ;;  %v14243_v47 = vcombine.high %v220_v40, %v228_v42  ;;  %v246_v50 = vld [vmem:[#allocation7 + $0xf0] sm:$0xff]  ;;  %v247_v52 = vld [vmem:[#allocation7 + $0xf8] sm:$0xff]  ;;  %v14242_v53 = vcombine.low %v220_v40, %v228_v42 }
  0x98   :  { %590 = vmatprep.subr.bf16.mxu0 %v14255_v22  ;;  %631 = vmatprep.subr.bf16.mxu1 %v14257_v23  ;;  %v14245_v49 = vcombine.high %v221_v43, %v229_v44  ;;  %v14244_v54 = vcombine.low %v221_v43, %v229_v44  ;;  %v14263_v55 = vcombine.high %v238_v48, %v246_v50  ;;  %v222_v56 = vld [vmem:[#allocation7 + $0x30] sm:$0xff]  ;;  %v223_v59 = vld [vmem:[#allocation7 + $0x38] sm:$0xff] }
  0x99   :  { %v14265_v57 = vcombine.high %v239_v51, %v247_v52  ;;  %v230_v58 = vld [vmem:[#allocation7 + $0x70] sm:$0xff]  ;;  %v231_v60 = vld [vmem:[#allocation7 + $0x78] sm:$0xff]  ;;  %v14262_v61 = vcombine.low %v238_v48, %v246_v50  ;;  %v14264_v62 = vcombine.low %v239_v51, %v247_v52 }
  0x9a   :  { %14266 = vmatmul.mubr.msk.bf16.vlgmr.msra.gmra.mxu0 %vm492_vm0, %v18664_v26  ;;  %14267 = vmatmul.mubr.msk.bf16.vlgmr.msra.gmra.mxu1 %vm492_vm0, %v18664_v26  ;;  %v14247_v63 = vcombine.high %v222_v56, %v230_v58  ;;  %v14249_v1 = vcombine.high %v223_v59, %v231_v60  ;;  %v14246_v2 = vcombine.low %v222_v56, %v230_v58  ;;  %v16071_v4 = vld [vmem:[#allocation10 + $0x464] ss:$80 sps:$4 sm:$0xff]   ;;  %v16069_v6 = vld [vmem:[#allocation10 + $0x460] ss:$80 sps:$4 sm:$0xff]  }
  0x9b   :  { %591 = vmatpush1.bf16.msra.mxu0 %v14254_v29  ;;  %632 = vmatpush1.bf16.msra.mxu1 %v14256_v30  ;;  %v14248_v3 = vcombine.low %v223_v59, %v231_v60  ;;  %v16074_v5 = vld [vmem:[#allocation10 + $0xe64] ss:$80 sps:$4 sm:$0xff]   ;;  %v16072_v7 = vld [vmem:[#allocation10 + $0xe60] ss:$80 sps:$4 sm:$0xff]  }
  0x9c   :  { %592 = vmatprep.subr.bf16.mxu0 %v14239_v31  ;;  %633 = vmatprep.subr.bf16.mxu1 %v14241_v32  ;;  %v16077_v8 = vld [vmem:[#allocation10 + $0x3c4] ss:$80 sps:$4 sm:$0xff]   ;;  %v16075_v10 = vld [vmem:[#allocation10 + $0x3c0] ss:$80 sps:$4 sm:$0xff]  }
  0x9d   :  { %610 = vmatprep.mubr.bf16.mxu0 %v18523_v0  ;;  %651 = vmatprep.mubr.bf16.mxu1 %v18523_v0  ;;  %v16080_v9 = vld [vmem:[#allocation10 + $0xdc4] ss:$80 sps:$4 sm:$0xff]   ;;  %v16078_v11 = vld [vmem:[#allocation10 + $0xdc0] ss:$80 sps:$4 sm:$0xff]  }
  0x9e   :  { %v16083_v12 = vld [vmem:[#allocation10 + $0x324] ss:$80 sps:$4 sm:$0xff]   ;;  %v16081_v14 = vld [vmem:[#allocation10 + $0x320] ss:$80 sps:$4 sm:$0xff]  }
  0x9f   :  { %593 = vmatpush1.bf16.msra.mxu0 %v14238_v37  ;;  %634 = vmatpush1.bf16.msra.mxu1 %v14240_v38  ;;  %v16086_v13 = vld [vmem:[#allocation10 + $0xd24] ss:$80 sps:$4 sm:$0xff]   ;;  %v16084_v15 = vld [vmem:[#allocation10 + $0xd20] ss:$80 sps:$4 sm:$0xff]  }
  0xa0   :  { %672 = vmatprep.subr.bf16.mxu0 %v14259_v39  ;;  %713 = vmatprep.subr.bf16.mxu1 %v14261_v41  ;;  %v16089_v16 = vld [vmem:[#allocation10 + $0x284] ss:$80 sps:$4 sm:$0xff]   ;;  %v16087_v18 = vld [vmem:[#allocation10 + $0x280] ss:$80 sps:$4 sm:$0xff]  }
  0xa1   :  { %v16092_v17 = vld [vmem:[#allocation10 + $0xc84] ss:$80 sps:$4 sm:$0xff]   ;;  %v16090_v19 = vld [vmem:[#allocation10 + $0xc80] ss:$80 sps:$4 sm:$0xff]  }
  0xa2   :  { %14268 = vmatmul.mubr.msk.bf16.vlgmr.msra.gmra.mxu0 %vm492_vm0, %v18664_v26  ;;  %14269 = vmatmul.mubr.msk.bf16.vlgmr.msra.gmra.mxu1 %vm492_vm0, %v18664_v26  ;;  %v16095_v20 = vld [vmem:[#allocation10 + $0x1e4] ss:$80 sps:$4 sm:$0xff]   ;;  %v16093_v22 = vld [vmem:[#allocation10 + $0x1e0] ss:$80 sps:$4 sm:$0xff]  }
  0xa3   :  { %673 = vmatpush1.bf16.msra.mxu0 %v14258_v45  ;;  %714 = vmatpush1.bf16.msra.mxu1 %v14260_v46  ;;  %v16098_v21 = vld [vmem:[#allocation10 + $0xbe4] ss:$80 sps:$4 sm:$0xff]   ;;  %v16096_v23 = vld [vmem:[#allocation10 + $0xbe0] ss:$80 sps:$4 sm:$0xff]  }
  0xa4   :  { %674 = vmatprep.subr.bf16.mxu0 %v14243_v47  ;;  %715 = vmatprep.subr.bf16.mxu1 %v14245_v49  ;;  %v16101_v24 = vld [vmem:[#allocation10 + $0x144] ss:$80 sps:$4 sm:$0xff]   ;;  %v16102_v27 = vld [vmem:[#allocation10 + $0xb40] ss:$80 sps:$4 sm:$0xff]  }
  0xa5   :  { %692 = vmatprep.mubr.bf16.mxu0 %v18523_v0  ;;  %733 = vmatprep.mubr.bf16.mxu1 %v18523_v0  ;;  %v16104_v25 = vld [vmem:[#allocation10 + $0xb44] ss:$80 sps:$4 sm:$0xff]   ;;  %v16105_v30 = vld [vmem:[#allocation10 + $0xa0] ss:$80 sps:$4 sm:$0xff]  }
  0xa6   :  { %v16107_v28 = vld [vmem:[#allocation10 + $0xa4] ss:$80 sps:$4 sm:$0xff]   ;;  %v16108_v31 = vld [vmem:[#allocation10 + $0xaa0] ss:$80 sps:$4 sm:$0xff]  }
  0xa7   :  { %675 = vmatpush1.bf16.msra.mxu0 %v14242_v53  ;;  %716 = vmatpush1.bf16.msra.mxu1 %v14244_v54  ;;  %v16110_v29 = vld [vmem:[#allocation10 + $0xaa4] ss:$80 sps:$4 sm:$0xff]   ;;  %v16111_v34 = vld [vmem:[#allocation10] ss:$80 sps:$4 sm:$0xff]  }
  0xa8   :  { %754 = vmatprep.subr.bf16.mxu0 %v14263_v55  ;;  %795 = vmatprep.subr.bf16.mxu1 %v14265_v57  ;;  %v16113_v32 = vld [vmem:[#allocation10 + $0x4] ss:$80 sps:$4 sm:$0xff]   ;;  %v16114_v35 = vld [vmem:[#allocation10 + $0xa00] ss:$80 sps:$4 sm:$0xff]  }
  0xa9   :  { %v16116_v33 = vld [vmem:[#allocation10 + $0xa04] ss:$80 sps:$4 sm:$0xff]   ;;  %v16117_v38 = vld [vmem:[#allocation10 + $0x960] ss:$80 sps:$4 sm:$0xff]  }
  0xaa   :  { %14270 = vmatmul.mubr.msk.bf16.vlgmr.msra.gmra.mxu0 %vm492_vm0, %v18664_v26  ;;  %14271 = vmatmul.mubr.msk.bf16.vlgmr.msra.gmra.mxu1 %vm492_vm0, %v18664_v26  ;;  %v16119_v36 = vld [vmem:[#allocation10 + $0x964] ss:$80 sps:$4 sm:$0xff]   ;;  %v16120_v39 = vld [vmem:[#allocation10 + $0x1360] ss:$80 sps:$4 sm:$0xff]  }
  0xab   :  { %755 = vmatpush1.bf16.msra.mxu0 %v14262_v61  ;;  %796 = vmatpush1.bf16.msra.mxu1 %v14264_v62  ;;  %v16122_v37 = vld [vmem:[#allocation10 + $0x1364] ss:$80 sps:$4 sm:$0xff]   ;;  %v16123_v42 = vld [vmem:[#allocation10 + $0x8c0] ss:$80 sps:$4 sm:$0xff]  }
  0xac   :  { %756 = vmatprep.subr.bf16.mxu0 %v14247_v63  ;;  %797 = vmatprep.subr.bf16.mxu1 %v14249_v1  ;;  %v16125_v40 = vld [vmem:[#allocation10 + $0x8c4] ss:$80 sps:$4 sm:$0xff]   ;;  %v16126_v43 = vld [vmem:[#allocation10 + $0x12c0] ss:$80 sps:$4 sm:$0xff]  }
  0xad   :  { %774 = vmatprep.mubr.bf16.mxu0 %v18523_v0  ;;  %815 = vmatprep.mubr.bf16.mxu1 %v18523_v0  ;;  %v16128_v41 = vld [vmem:[#allocation10 + $0x12c4] ss:$80 sps:$4 sm:$0xff]   ;;  %v16129_v46 = vld [vmem:[#allocation10 + $0x820] ss:$80 sps:$4 sm:$0xff]  }
  0xae   :  { %v16131_v44 = vld [vmem:[#allocation10 + $0x824] ss:$80 sps:$4 sm:$0xff]   ;;  %v16132_v47 = vld [vmem:[#allocation10 + $0x1220] ss:$80 sps:$4 sm:$0xff]  }
  0xaf   :  { %757 = vmatpush1.bf16.msra.mxu0 %v14246_v2  ;;  %798 = vmatpush1.bf16.msra.mxu1 %v14248_v3  ;;  %v16134_v45 = vld [vmem:[#allocation10 + $0x1224] ss:$80 sps:$4 sm:$0xff]   ;;  %v16135_v50 = vld [vmem:[#allocation10 + $0x780] ss:$80 sps:$4 sm:$0xff]  }
  0xb0   :  { %4735 = vmatprep.subr.bf16.mxu0 %v16071_v4  ;;  %4776 = vmatprep.subr.bf16.mxu1 %v16074_v5  ;;  %v16137_v48 = vld [vmem:[#allocation10 + $0x784] ss:$80 sps:$4 sm:$0xff]   ;;  %v16138_v51 = vld [vmem:[#allocation10 + $0x1180] ss:$80 sps:$4 sm:$0xff]   ;;  %v16167_v5 = vld [vmem:[#allocation10 + $0x46c] ss:$80 sps:$4 sm:$0xff]  }
  0xb1   :  { %v16140_v49 = vld [vmem:[#allocation10 + $0x1184] ss:$80 sps:$4 sm:$0xff]   ;;  %v16141_v54 = vld [vmem:[#allocation10 + $0x6e0] ss:$80 sps:$4 sm:$0xff]  }
  0xb2   :  { %14272 = vmatmul.mubr.msk.bf16.vlgmr.msra.gmra.mxu0 %vm492_vm0, %v18664_v26  ;;  %14273 = vmatmul.mubr.msk.bf16.vlgmr.msra.gmra.mxu1 %vm492_vm0, %v18664_v26  ;;  %v16099_v26 = vld [vmem:[#allocation10 + $0x140] ss:$80 sps:$4 sm:$0xff]   ;;  %v16143_v52 = vld [vmem:[#allocation10 + $0x6e4] ss:$80 sps:$4 sm:$0xff]  }
  0xb3   :  { %4736 = vmatpush1.bf16.msra.mxu0 %v16069_v6  ;;  %4777 = vmatpush1.bf16.msra.mxu1 %v16072_v7  ;;  %v16146_v53 = vld [vmem:[#allocation10 + $0x10e4] ss:$80 sps:$4 sm:$0xff]   ;;  %v16144_v55 = vld [vmem:[#allocation10 + $0x10e0] ss:$80 sps:$4 sm:$0xff]   ;;  %v16170_v6 = vld [vmem:[#allocation10 + $0xe6c] ss:$80 sps:$4 sm:$0xff]  }
  0xb4   :  { %4737 = vmatprep.subr.bf16.mxu0 %v16077_v8  ;;  %4778 = vmatprep.subr.bf16.mxu1 %v16080_v9  ;;  %v16149_v56 = vld [vmem:[#allocation10 + $0x644] ss:$80 sps:$4 sm:$0xff]   ;;  %v16147_v58 = vld [vmem:[#allocation10 + $0x640] ss:$80 sps:$4 sm:$0xff]  }
  0xb5   :  { %v16152_v57 = vld [vmem:[#allocation10 + $0x1044] ss:$80 sps:$4 sm:$0xff]   ;;  %v16150_v59 = vld [vmem:[#allocation10 + $0x1040] ss:$80 sps:$4 sm:$0xff]  }
  0xb6   :  { %v16155_v60 = vld [vmem:[#allocation10 + $0x5a4] ss:$80 sps:$4 sm:$0xff]   ;;  %v16153_v62 = vld [vmem:[#allocation10 + $0x5a0] ss:$80 sps:$4 sm:$0xff]  }
  0xb7   :  { %4738 = vmatpush1.bf16.msra.mxu0 %v16075_v10  ;;  %4779 = vmatpush1.bf16.msra.mxu1 %v16078_v11  ;;  %v16158_v61 = vld [vmem:[#allocation10 + $0xfa4] ss:$80 sps:$4 sm:$0xff]   ;;  %v16156_v63 = vld [vmem:[#allocation10 + $0xfa0] ss:$80 sps:$4 sm:$0xff]   ;;  %v252_v11 = vlaneseq }
  0xb8   :  { %4739 = vmatprep.subr.bf16.mxu0 %v16083_v12  ;;  %4780 = vmatprep.subr.bf16.mxu1 %v16086_v13  ;;  %v16161_v1 = vld [vmem:[#allocation10 + $0x504] ss:$80 sps:$4 sm:$0xff]   ;;  %v16159_v3 = vld [vmem:[#allocation10 + $0x500] ss:$80 sps:$4 sm:$0xff]  }
  0xb9   :  { %v16164_v2 = vld [vmem:[#allocation10 + $0xf04] ss:$80 sps:$4 sm:$0xff]   ;;  %v16162_v4 = vld [vmem:[#allocation10 + $0xf00] ss:$80 sps:$4 sm:$0xff]  }
  0xbb   :  { %4740 = vmatpush1.bf16.msra.mxu0 %v16081_v14  ;;  %4781 = vmatpush1.bf16.msra.mxu1 %v16084_v15 }
  0xbc   :  { %4741 = vmatprep.subr.bf16.mxu0 %v16089_v16  ;;  %4782 = vmatprep.subr.bf16.mxu1 %v16092_v17  ;;  %v18688_v16 = vshrl.u32 %v252_v11, 7 }
  0xbf   :  { %4742 = vmatpush1.bf16.msra.mxu0 %v16087_v18  ;;  %4783 = vmatpush1.bf16.msra.mxu1 %v16090_v19  ;;  %v270_v19 = vsub.s32 4, %v18688_v16 }
  0xc0   :  { %4743 = vmatprep.subr.bf16.mxu0 %v16095_v20  ;;  %4784 = vmatprep.subr.bf16.mxu1 %v16098_v21  ;;  %v278_v20 = vsub.s32 6, %v18688_v16  ;;  %v274_v21 = vsub.s32 5, %v18688_v16 }
  0xc3   :  { %4744 = vmatpush1.bf16.msra.mxu0 %v16093_v22  ;;  %4785 = vmatpush1.bf16.msra.mxu1 %v16096_v23  ;;  %v282_v23 = vsub.s32 7, %v18688_v16 }
  0xc4   :  { %4745 = vmatprep.subr.bf16.mxu0 %v16101_v24  ;;  %4786 = vmatprep.subr.bf16.mxu1 %v16104_v25  ;;  %v248_v25 = vld [vmem:[#allocation9] sm:$0xff] }
  0xc7   :  { %4746 = vmatpush1.bf16.msra.mxu0 %v16099_v26  ;;  %4787 = vmatpush1.bf16.msra.mxu1 %v16102_v27  ;;  %v18695_v26 = vsub.s32 0, %v18688_v16  ;;  %v262_v27 = vsub.s32 2, %v18688_v16 }
  0xc8   :  { %4747 = vmatprep.subr.bf16.mxu0 %v16107_v28  ;;  %4788 = vmatprep.subr.bf16.mxu1 %v16110_v29  ;;  %v249_v29 = vld [vmem:[#allocation9 + $0x8] sm:$0xff] }
  0xcb   :  { %4748 = vmatpush1.bf16.msra.mxu0 %v16105_v30  ;;  %4789 = vmatpush1.bf16.msra.mxu1 %v16108_v31  ;;  %v18699_v30 = vsub.s32 1, %v18688_v16  ;;  %v266_v31 = vsub.s32 3, %v18688_v16 }
  0xcc   :  { %4749 = vmatprep.subr.bf16.mxu0 %v16113_v32  ;;  %4790 = vmatprep.subr.bf16.mxu1 %v16116_v33  ;;  %v271_v33 = vrot.slane %v248_v25, %v270_v19 }
  0xcf   :  { %4750 = vmatpush1.bf16.msra.mxu0 %v16111_v34  ;;  %4791 = vmatpush1.bf16.msra.mxu1 %v16114_v35  ;;  %v279_v34 = vrot.slane %v248_v25, %v278_v20  ;;  %v275_v35 = vrot.slane %v248_v25, %v274_v21 }
  0xd0   :  { %4751 = vmatprep.subr.bf16.mxu0 %v16119_v36  ;;  %4792 = vmatprep.subr.bf16.mxu1 %v16122_v37  ;;  %v283_v37 = vrot.slane %v248_v25, %v282_v23 }
  0xd3   :  { %4752 = vmatpush2.bf16.msra.mxu0 %v16117_v38  ;;  %4793 = vmatpush2.bf16.msra.mxu1 %v16120_v39  ;;  %v287_v39 = vrot.slane %v249_v29, %v18695_v26 }
  0xd4   :  { %4753 = vmatprep.subr.bf16.mxu0 %v16125_v40  ;;  %4794 = vmatprep.subr.bf16.mxu1 %v16128_v41  ;;  %v255_v40 = vrot.slane %v248_v25, %v18695_v26  ;;  %v263_v41 = vrot.slane %v248_v25, %v262_v27 }
  0xd7   :  { %4754 = vmatpush2.bf16.msra.mxu0 %v16123_v42  ;;  %4795 = vmatpush2.bf16.msra.mxu1 %v16126_v43  ;;  %v295_v43 = vrot.slane %v249_v29, %v262_v27 }
  0xd8   :  { %4755 = vmatprep.subr.bf16.mxu0 %v16131_v44  ;;  %4796 = vmatprep.subr.bf16.mxu1 %v16134_v45  ;;  %v291_v44 = vrot.slane %v249_v29, %v18699_v30  ;;  %v259_v45 = vrot.slane %v248_v25, %v18699_v30 }
  0xdb   :  { %4756 = vmatpush2.bf16.msra.mxu0 %v16129_v46  ;;  %4797 = vmatpush2.bf16.msra.mxu1 %v16132_v47  ;;  %v267_v46 = vrot.slane %v248_v25, %v266_v31 }
  0xdc   :  { %4757 = vmatprep.subr.bf16.mxu0 %v16137_v48  ;;  %4798 = vmatprep.subr.bf16.mxu1 %v16140_v49  ;;  %v299_v48 = vrot.slane %v249_v29, %v266_v31 }
  0xdf   :  { %4758 = vmatpush2.bf16.msra.mxu0 %v16135_v50  ;;  %4799 = vmatpush2.bf16.msra.mxu1 %v16138_v51 }
  0xe0   :  { %4759 = vmatprep.subr.bf16.mxu0 %v16143_v52  ;;  %4800 = vmatprep.subr.bf16.mxu1 %v16146_v53 }
  0xe3   :  { %4760 = vmatpush2.bf16.msra.mxu0 %v16141_v54  ;;  %4801 = vmatpush2.bf16.msra.mxu1 %v16144_v55 }
  0xe4   :  { %4761 = vmatprep.subr.bf16.mxu0 %v16149_v56  ;;  %4802 = vmatprep.subr.bf16.mxu1 %v16152_v57  ;;  %v303_v56 = vrot.slane %v249_v29, %v270_v19 }
  0xe7   :  { %4762 = vmatpush2.bf16.msra.mxu0 %v16147_v58  ;;  %4803 = vmatpush2.bf16.msra.mxu1 %v16150_v59 }
  0xe8   :  { %4763 = vmatprep.subr.bf16.mxu0 %v16155_v60  ;;  %4804 = vmatprep.subr.bf16.mxu1 %v16158_v61 }
  0xeb   :  { %4764 = vmatpush2.bf16.msra.mxu0 %v16153_v62  ;;  %4805 = vmatpush2.bf16.msra.mxu1 %v16156_v63 }
  0xec   :  { %4765 = vmatprep.subr.bf16.mxu0 %v16161_v1  ;;  %4806 = vmatprep.subr.bf16.mxu1 %v16164_v2 }
  0xef   :  { %4766 = vmatpush2.bf16.msra.mxu0 %v16159_v3  ;;  %4807 = vmatpush2.bf16.msra.mxu1 %v16162_v4  ;;  %v311_v3 = vrot.slane %v249_v29, %v278_v20 }
  0xf0   :  { %4817 = vmatprep.subr.bf16.mxu0 %v16167_v5  ;;  %4858 = vmatprep.subr.bf16.mxu1 %v16170_v6 }
 0x15a   :  { %v530_v7 = vpop.f32.mrf.mxu0  ;;  %v571_v8 = vpop.f32.mrf.mxu1 }
 0x15b   :  { %v531_v57 = vadd.f32 %v530_v7, %v255_v40  ;;  %v572_v58 = vadd.f32 %v571_v8, %v263_v41  ;;  %v315_v7 = vrot.slane %v249_v29, %v282_v23 }
 0x15c   :  { %v532_v9 = vpop.f32.mrf.mxu0  ;;  %v573_v10 = vpop.f32.mrf.mxu1 }
 0x15d   :  { %v533_v62 = vadd.f32 %v532_v9, %v259_v45  ;;  %v574_v63 = vadd.f32 %v573_v10, %v267_v46  ;;  %v824_v8 = vmax.f32 %v531_v57, 0.0 }
 0x15e   :  { %v534_v12 = vpop.f32.mrf.mxu0  ;;  %v575_v13 = vpop.f32.mrf.mxu1 }
 0x15f   :  { %v307_v12 = vrot.slane %v249_v29, %v274_v21  ;;  %v825_v9 = vmax.f32 %v533_v62, 0.0  ;;  %v827_v10 = vmax.f32 %v574_v63, 0.0  ;;  %v16168_v63 = vld [vmem:[#allocation10 + $0xe68] ss:$80 sps:$4 sm:$0xff]  }
 0x160   :  { %v535_v14 = vpop.f32.mrf.mxu0  ;;  %v576_v15 = vpop.f32.mrf.mxu1 }
 0x162   :  { %v612_v17 = vpop.f32.mrf.mxu0  ;;  %v653_v18 = vpop.f32.mrf.mxu1 }
 0x163   :  { %v613_v49 = vadd.f32 %v612_v17, %v271_v33  ;;  %v654_v50 = vadd.f32 %v653_v18, %v279_v34  ;;  %v826_v17 = vmax.f32 %v572_v58, 0.0 }
 0x164   :  { %v614_v22 = vpop.f32.mrf.mxu0  ;;  %v655_v24 = vpop.f32.mrf.mxu1 }
 0x165   :  { %v615_v51 = vadd.f32 %v614_v22, %v275_v35  ;;  %v656_v53 = vadd.f32 %v655_v24, %v283_v37  ;;  %v828_v4 = vmax.f32 %v613_v49, 0.0  ;;  %v830_v5 = vmax.f32 %v654_v50, 0.0 }
 0x166   :  { %v616_v28 = vpop.f32.mrf.mxu0  ;;  %v657_v32 = vpop.f32.mrf.mxu1 }
 0x167   :  { %v829_v6 = vmax.f32 %v615_v51, 0.0  ;;  %v831_v13 = vmax.f32 %v656_v53, 0.0  ;;  %v844_v27 = vrot.slane %v828_v4, 6  ;;  %v846_v28 = vrot.slane %v830_v5, 6 }
 0x168   :  { %v617_v36 = vpop.f32.mrf.mxu0  ;;  %v658_v38 = vpop.f32.mrf.mxu1 }
 0x169   :  { %v845_v31 = vrot.slane %v829_v6, 6  ;;  %v847_v33 = vrot.slane %v831_v13, 6  ;;  %v877_v45 = vsel %vm876_vm1, %v824_v8, %v844_v27  ;;  %v879_v46 = vsel %vm876_vm1, %v826_v17, %v846_v28  ;;  %v16174_v13 = vld [vmem:[#allocation10 + $0xdc8] ss:$80 sps:$4 sm:$0xff]   ;;  %v16185_v17 = vld [vmem:[#allocation10 + $0x28c] ss:$80 sps:$4 sm:$0xff]  }
 0x16a   :  { %v694_v42 = vpop.f32.mrf.mxu0  ;;  %v735_v47 = vpop.f32.mrf.mxu1  ;;  %v16180_v8 = vld [vmem:[#allocation10 + $0xd28] ss:$80 sps:$4 sm:$0xff]   ;;  %v16200_v28 = vld [vmem:[#allocation10 + $0xb4c] ss:$80 sps:$4 sm:$0xff]  }
 0x16b   :  { %v695_v54 = vadd.f32 %v694_v42, %v287_v39  ;;  %v736_v59 = vadd.f32 %v735_v47, %v295_v43  ;;  %v878_v50 = vsel %vm876_vm1, %v825_v9, %v845_v31  ;;  %v880_v51 = vsel %vm876_vm1, %v827_v10, %v847_v33  ;;  %v16191_v9 = vld [vmem:[#allocation10 + $0x1ec] ss:$80 sps:$4 sm:$0xff]   ;;  %v16189_v10 = vld [vmem:[#allocation10 + $0x1e8] ss:$80 sps:$4 sm:$0xff]  }
 0x16c   :  { %v696_v52 = vpop.f32.mrf.mxu0  ;;  %v737_v55 = vpop.f32.mrf.mxu1  ;;  %v16195_v27 = vld [vmem:[#allocation10 + $0x148] ss:$80 sps:$4 sm:$0xff]   ;;  %v16206_v33 = vld [vmem:[#allocation10 + $0xaac] ss:$80 sps:$4 sm:$0xff]  }
 0x16d   :  { %v697_v60 = vadd.f32 %v696_v52, %v291_v44  ;;  %v738_v1 = vadd.f32 %v737_v55, %v299_v48  ;;  %v832_v14 = vmax.f32 %v695_v54, 0.0  ;;  %v834_v18 = vmax.f32 %v736_v59, 0.0  ;;  %v16165_v59 = vld [vmem:[#allocation10 + $0x468] ss:$80 sps:$4 sm:$0xff]  }
 0x16e   :  { %v698_v61 = vpop.f32.mrf.mxu0  ;;  %v739_v2 = vpop.f32.mrf.mxu1  ;;  %v16198_v31 = vld [vmem:[#allocation10 + $0xb48] ss:$80 sps:$4 sm:$0xff]  }
 0x16f   :  { %v833_v19 = vmax.f32 %v697_v60, 0.0  ;;  %v835_v24 = vmax.f32 %v738_v1, 0.0  ;;  %v856_v34 = vrot.slane %v832_v14, 4  ;;  %v858_v29 = vrot.slane %v834_v18, 4  ;;  %v16179_v14 = vld [vmem:[#allocation10 + $0x32c] ss:$80 sps:$4 sm:$0xff]  }
 0x170   :  { %v699_v11 = vpop.f32.mrf.mxu0  ;;  %v740_v15 = vpop.f32.mrf.mxu1  ;;  %v16183_v18 = vld [vmem:[#allocation10 + $0x288] ss:$80 sps:$4 sm:$0xff]  }
 0x171   :  { %v857_v37 = vrot.slane %v833_v19, 4  ;;  %v859_v41 = vrot.slane %v835_v24, 4  ;;  %v882_v52 = vsel %vm881_vm2, %v877_v45, %v856_v34  ;;  %v884_v55 = vsel %vm881_vm2, %v879_v46, %v858_v29  ;;  %v16171_v11 = vld [vmem:[#allocation10 + $0x3c8] ss:$80 sps:$4 sm:$0xff]   ;;  %v16182_v15 = vld [vmem:[#allocation10 + $0xd2c] ss:$80 sps:$4 sm:$0xff]  }
 0x172   :  { %v776_v22 = vpop.f32.mrf.mxu0  ;;  %v817_v20 = vpop.f32.mrf.mxu1  ;;  %v16188_v19 = vld [vmem:[#allocation10 + $0xc8c] ss:$80 sps:$4 sm:$0xff]   ;;  %v16204_v34 = vld [vmem:[#allocation10 + $0xaa8] ss:$80 sps:$4 sm:$0xff]  }
 0x173   :  { %v777_v25 = vadd.f32 %v776_v22, %v303_v56  ;;  %v818_v32 = vadd.f32 %v817_v20, %v311_v3  ;;  %v883_v56 = vsel %vm881_vm2, %v878_v50, %v857_v37  ;;  %v885_v60 = vsel %vm881_vm2, %v880_v51, %v859_v41  ;;  %v16173_v3 = vld [vmem:[#allocation10 + $0x3cc] ss:$80 sps:$4 sm:$0xff]   ;;  %v16186_v22 = vld [vmem:[#allocation10 + $0xc88] ss:$80 sps:$4 sm:$0xff]  }
 0x174   :  { %v778_v21 = vpop.f32.mrf.mxu0  ;;  %v819_v23 = vpop.f32.mrf.mxu1  ;;  %v16194_v24 = vld [vmem:[#allocation10 + $0xbec] ss:$80 sps:$4 sm:$0xff]   ;;  %v16210_v29 = vld [vmem:[#allocation10 + $0xa08] ss:$80 sps:$4 sm:$0xff]  }
 0x175   :  { %v836_v35 = vmax.f32 %v777_v25, 0.0  ;;  %v779_v36 = vadd.f32 %v778_v21, %v307_v12  ;;  %v838_v38 = vmax.f32 %v818_v32, 0.0  ;;  %v820_v39 = vadd.f32 %v819_v23, %v315_v7  ;;  %v16176_v12 = vld [vmem:[#allocation10 + $0xdcc] ss:$80 sps:$4 sm:$0xff]   ;;  %v16177_v7 = vld [vmem:[#allocation10 + $0x328] ss:$80 sps:$4 sm:$0xff]  }
 0x176   :  { %v780_v40 = vpop.f32.mrf.mxu0  ;;  %v821_v44 = vpop.f32.mrf.mxu1  ;;  %v16192_v25 = vld [vmem:[#allocation10 + $0xbe8] ss:$80 sps:$4 sm:$0xff]   ;;  %v16197_v20 = vld [vmem:[#allocation10 + $0x14c] ss:$80 sps:$4 sm:$0xff]  }
 0x177   :  { %v868_v42 = vrot.slane %v836_v35, 2  ;;  %v837_v43 = vmax.f32 %v779_v36, 0.0  ;;  %v870_v47 = vrot.slane %v838_v38, 2  ;;  %v839_v48 = vmax.f32 %v820_v39, 0.0  ;;  %v16203_v32 = vld [vmem:[#allocation10 + $0xac] ss:$80 sps:$4 sm:$0xff]  }
 0x178   :  { %v781_v49 = vpop.f32.mrf.mxu0  ;;  %v822_v54 = vpop.f32.mrf.mxu1  ;;  %v16201_v21 = vld [vmem:[#allocation10 + $0xa8] ss:$80 sps:$4 sm:$0xff]   ;;  %v16209_v35 = vld [vmem:[#allocation10 + $0xc] ss:$80 sps:$4 sm:$0xff]  }
 0x179   :  { %v869_v53 = vrot.slane %v837_v43, 2  ;;  %v887_v57 = vsel %vm886_vm3, %v882_v52, %v868_v42  ;;  %v871_v58 = vrot.slane %v839_v48, 2  ;;  %v889_v61 = vsel %vm886_vm3, %v884_v55, %v870_v47  ;;  %v16207_v36 = vld [vmem:[#allocation10 + $0x8] ss:$80 sps:$4 sm:$0xff]   ;;  %v16212_v23 = vld [vmem:[#allocation10 + $0xa0c] ss:$80 sps:$4 sm:$0xff]  }
 0x17a   :  { %v18720_v4 = vpack.c.bf16 %v887_v57, %v887_v57  ;;  %v18724_v6 = vpack.c.bf16 %v889_v61, %v889_v61  ;;  %v16215_v37 = vld [vmem:[#allocation10 + $0x96c] ss:$80 sps:$4 sm:$0xff]   ;;  %v16213_v38 = vld [vmem:[#allocation10 + $0x968] ss:$80 sps:$4 sm:$0xff]  }
 0x17b   :  { %v888_v62 = vsel %vm886_vm3, %v883_v56, %v869_v53  ;;  %v890_v2 = vsel %vm886_vm3, %v885_v60, %v871_v58  ;;  %v16218_v39 = vld [vmem:[#allocation10 + $0x136c] ss:$80 sps:$4 sm:$0xff]   ;;  %v16216_v40 = vld [vmem:[#allocation10 + $0x1368] ss:$80 sps:$4 sm:$0xff]  }
 0x17c   :  { %v18717_v1 = vpack.c.bf16 %v888_v62, %v888_v62  ;;  %v18722_v5 = vpack.c.bf16 %v890_v2, %v890_v2  ;;  %v16221_v41 = vld [vmem:[#allocation10 + $0x8cc] ss:$80 sps:$4 sm:$0xff]   ;;  %v16219_v42 = vld [vmem:[#allocation10 + $0x8c8] ss:$80 sps:$4 sm:$0xff]  }
 0x17d   :  { %v16224_v43 = vld [vmem:[#allocation10 + $0x12cc] ss:$80 sps:$4 sm:$0xff]   ;;  %v16222_v44 = vld [vmem:[#allocation10 + $0x12c8] ss:$80 sps:$4 sm:$0xff]  }
 0x17e   :  { %4767 = vmatprep.mubr.bf16.mxu0 %v18717_v1  ;;  %4808 = vmatprep.mubr.bf16.mxu1 %v18722_v5  ;;  %v16227_v45 = vld [vmem:[#allocation10 + $0x82c] ss:$80 sps:$4 sm:$0xff]   ;;  %v16225_v46 = vld [vmem:[#allocation10 + $0x828] ss:$80 sps:$4 sm:$0xff]  }
 0x17f   :  { %4768 = vmatmul.mubr.bf16.vlgmr.msra.gmra.mxu0 %v18720_v4  ;;  %4809 = vmatmul.mubr.bf16.vlgmr.msra.gmra.mxu1 %v18724_v6  ;;  %v16230_v47 = vld [vmem:[#allocation10 + $0x122c] ss:$80 sps:$4 sm:$0xff]   ;;  %v16228_v48 = vld [vmem:[#allocation10 + $0x1228] ss:$80 sps:$4 sm:$0xff]  }
 0x180   :  { %4818 = vmatpush1.bf16.msra.mxu0 %v16165_v59  ;;  %4859 = vmatpush1.bf16.msra.mxu1 %v16168_v63  ;;  %v16233_v49 = vld [vmem:[#allocation10 + $0x78c] ss:$80 sps:$4 sm:$0xff]   ;;  %v16231_v50 = vld [vmem:[#allocation10 + $0x788] ss:$80 sps:$4 sm:$0xff]  }
 0x181   :  { %4849 = vmatprep.mubr.bf16.mxu0 %v18717_v1  ;;  %4890 = vmatprep.mubr.bf16.mxu1 %v18722_v5  ;;  %v16236_v51 = vld [vmem:[#allocation10 + $0x118c] ss:$80 sps:$4 sm:$0xff]   ;;  %v16234_v52 = vld [vmem:[#allocation10 + $0x1188] ss:$80 sps:$4 sm:$0xff]  }
 0x182   :  { %4819 = vmatprep.subr.bf16.mxu0 %v16173_v3  ;;  %4860 = vmatprep.subr.bf16.mxu1 %v16176_v12  ;;  %v16239_v53 = vld [vmem:[#allocation10 + $0x6ec] ss:$80 sps:$4 sm:$0xff]   ;;  %v16237_v54 = vld [vmem:[#allocation10 + $0x6e8] ss:$80 sps:$4 sm:$0xff]  }
 0x183   :  { %v16242_v55 = vld [vmem:[#allocation10 + $0x10ec] ss:$80 sps:$4 sm:$0xff]   ;;  %v16240_v56 = vld [vmem:[#allocation10 + $0x10e8] ss:$80 sps:$4 sm:$0xff]  }
 0x184   :  { %4820 = vmatpush1.bf16.msra.mxu0 %v16171_v11  ;;  %4861 = vmatpush1.bf16.msra.mxu1 %v16174_v13  ;;  %v16245_v57 = vld [vmem:[#allocation10 + $0x64c] ss:$80 sps:$4 sm:$0xff]   ;;  %v16243_v58 = vld [vmem:[#allocation10 + $0x648] ss:$80 sps:$4 sm:$0xff]  }
 0x185   :  { %4821 = vmatprep.subr.bf16.mxu0 %v16179_v14  ;;  %4862 = vmatprep.subr.bf16.mxu1 %v16182_v15  ;;  %v16248_v59 = vld [vmem:[#allocation10 + $0x104c] ss:$80 sps:$4 sm:$0xff]   ;;  %v16246_v60 = vld [vmem:[#allocation10 + $0x1048] ss:$80 sps:$4 sm:$0xff]   ;;  %v16263_v14 = vld [vmem:[#allocation10 + $0x474] ss:$80 sps:$4 sm:$0xff]  }
 0x186   :  { %v16251_v61 = vld [vmem:[#allocation10 + $0x5ac] ss:$80 sps:$4 sm:$0xff]   ;;  %v16249_v62 = vld [vmem:[#allocation10 + $0x5a8] ss:$80 sps:$4 sm:$0xff]   ;;  %v16266_v15 = vld [vmem:[#allocation10 + $0xe74] ss:$80 sps:$4 sm:$0xff]  }
 0x187   :  { %v16254_v63 = vld [vmem:[#allocation10 + $0xfac] ss:$80 sps:$4 sm:$0xff]   ;;  %v16252_v2 = vld [vmem:[#allocation10 + $0xfa8] ss:$80 sps:$4 sm:$0xff]  }
 0x188   :  { %4822 = vmatpush1.bf16.msra.mxu0 %v16177_v7  ;;  %4863 = vmatpush1.bf16.msra.mxu1 %v16180_v8  ;;  %v16257_v3 = vld [vmem:[#allocation10 + $0x50c] ss:$80 sps:$4 sm:$0xff]   ;;  %v16255_v11 = vld [vmem:[#allocation10 + $0x508] ss:$80 sps:$4 sm:$0xff]   ;;  %v16261_v7 = vld [vmem:[#allocation10 + $0x470] ss:$80 sps:$4 sm:$0xff]  }
 0x189   :  { %4823 = vmatprep.subr.bf16.mxu0 %v16185_v17  ;;  %4864 = vmatprep.subr.bf16.mxu1 %v16188_v19  ;;  %v16260_v12 = vld [vmem:[#allocation10 + $0xf0c] ss:$80 sps:$4 sm:$0xff]   ;;  %v16258_v13 = vld [vmem:[#allocation10 + $0xf08] ss:$80 sps:$4 sm:$0xff]   ;;  %v16264_v8 = vld [vmem:[#allocation10 + $0xe70] ss:$80 sps:$4 sm:$0xff]  }
 0x18a   :  { %v16269_v17 = vld [vmem:[#allocation10 + $0x3d4] ss:$80 sps:$4 sm:$0xff]   ;;  %v16270_v19 = vld [vmem:[#allocation10 + $0xdd0] ss:$80 sps:$4 sm:$0xff]  }
 0x18c   :  { %4824 = vmatpush1.bf16.msra.mxu0 %v16183_v18  ;;  %4865 = vmatpush1.bf16.msra.mxu1 %v16186_v22  ;;  %v16267_v18 = vld [vmem:[#allocation10 + $0x3d0] ss:$80 sps:$4 sm:$0xff]   ;;  %v16272_v22 = vld [vmem:[#allocation10 + $0xdd4] ss:$80 sps:$4 sm:$0xff]  }
 0x18d   :  { %4825 = vmatprep.subr.bf16.mxu0 %v16191_v9  ;;  %4866 = vmatprep.subr.bf16.mxu1 %v16194_v24  ;;  %v16275_v9 = vld [vmem:[#allocation10 + $0x334] ss:$80 sps:$4 sm:$0xff]   ;;  %v16273_v24 = vld [vmem:[#allocation10 + $0x330] ss:$80 sps:$4 sm:$0xff]  }
 0x190   :  { %4826 = vmatpush1.bf16.msra.mxu0 %v16189_v10  ;;  %4867 = vmatpush1.bf16.msra.mxu1 %v16192_v25  ;;  %v16278_v10 = vld [vmem:[#allocation10 + $0xd34] ss:$80 sps:$4 sm:$0xff]   ;;  %v16276_v25 = vld [vmem:[#allocation10 + $0xd30] ss:$80 sps:$4 sm:$0xff]  }
 0x191   :  { %4827 = vmatprep.subr.bf16.mxu0 %v16197_v20  ;;  %4868 = vmatprep.subr.bf16.mxu1 %v16200_v28  ;;  %v16281_v20 = vld [vmem:[#allocation10 + $0x294] ss:$80 sps:$4 sm:$0xff]   ;;  %v16279_v28 = vld [vmem:[#allocation10 + $0x290] ss:$80 sps:$4 sm:$0xff]  }
 0x194   :  { %4828 = vmatpush1.bf16.msra.mxu0 %v16195_v27  ;;  %4869 = vmatpush1.bf16.msra.mxu1 %v16198_v31  ;;  %v16284_v27 = vld [vmem:[#allocation10 + $0xc94] ss:$80 sps:$4 sm:$0xff]   ;;  %v16282_v31 = vld [vmem:[#allocation10 + $0xc90] ss:$80 sps:$4 sm:$0xff]  }
 0x195   :  { %4829 = vmatprep.subr.bf16.mxu0 %v16203_v32  ;;  %4870 = vmatprep.subr.bf16.mxu1 %v16206_v33  ;;  %v16287_v32 = vld [vmem:[#allocation10 + $0x1f4] ss:$80 sps:$4 sm:$0xff]  }
 0x196   :  { %v16290_v33 = vld [vmem:[#allocation10 + $0xbf4] ss:$80 sps:$4 sm:$0xff]  }
 0x198   :  { %4830 = vmatpush1.bf16.msra.mxu0 %v16201_v21  ;;  %4871 = vmatpush1.bf16.msra.mxu1 %v16204_v34  ;;  %v16285_v21 = vld [vmem:[#allocation10 + $0x1f0] ss:$80 sps:$4 sm:$0xff]  }
 0x199   :  { %4831 = vmatprep.subr.bf16.mxu0 %v16209_v35  ;;  %4872 = vmatprep.subr.bf16.mxu1 %v16212_v23  ;;  %v16288_v34 = vld [vmem:[#allocation10 + $0xbf0] ss:$80 sps:$4 sm:$0xff]   ;;  %v16293_v35 = vld [vmem:[#allocation10 + $0x154] ss:$80 sps:$4 sm:$0xff]  }
 0x19a   :  { %v16291_v23 = vld [vmem:[#allocation10 + $0x150] ss:$80 sps:$4 sm:$0xff]  }
 0x19c   :  { %4832 = vmatpush1.bf16.msra.mxu0 %v16207_v36  ;;  %4873 = vmatpush1.bf16.msra.mxu1 %v16210_v29  ;;  %v16296_v36 = vld [vmem:[#allocation10 + $0xb54] ss:$80 sps:$4 sm:$0xff]   ;;  %v16294_v29 = vld [vmem:[#allocation10 + $0xb50] ss:$80 sps:$4 sm:$0xff]  }
 0x19d   :  { %4833 = vmatprep.subr.bf16.mxu0 %v16215_v37  ;;  %4874 = vmatprep.subr.bf16.mxu1 %v16218_v39  ;;  %v16299_v37 = vld [vmem:[#allocation10 + $0xb4] ss:$80 sps:$4 sm:$0xff]   ;;  %v16297_v39 = vld [vmem:[#allocation10 + $0xb0] ss:$80 sps:$4 sm:$0xff]  }
 0x1a0   :  { %4834 = vmatpush2.bf16.msra.mxu0 %v16213_v38  ;;  %4875 = vmatpush2.bf16.msra.mxu1 %v16216_v40  ;;  %v16302_v38 = vld [vmem:[#allocation10 + $0xab4] ss:$80 sps:$4 sm:$0xff]   ;;  %v16300_v40 = vld [vmem:[#allocation10 + $0xab0] ss:$80 sps:$4 sm:$0xff]  }
 0x1a1   :  { %4835 = vmatprep.subr.bf16.mxu0 %v16221_v41  ;;  %4876 = vmatprep.subr.bf16.mxu1 %v16224_v43  ;;  %v16305_v41 = vld [vmem:[#allocation10 + $0x14] ss:$80 sps:$4 sm:$0xff]   ;;  %v16303_v43 = vld [vmem:[#allocation10 + $0x10] ss:$80 sps:$4 sm:$0xff]  }
 0x1a4   :  { %4836 = vmatpush2.bf16.msra.mxu0 %v16219_v42  ;;  %4877 = vmatpush2.bf16.msra.mxu1 %v16222_v44  ;;  %v16308_v42 = vld [vmem:[#allocation10 + $0xa14] ss:$80 sps:$4 sm:$0xff]   ;;  %v16306_v44 = vld [vmem:[#allocation10 + $0xa10] ss:$80 sps:$4 sm:$0xff]  }
 0x1a5   :  { %4837 = vmatprep.subr.bf16.mxu0 %v16227_v45  ;;  %4878 = vmatprep.subr.bf16.mxu1 %v16230_v47  ;;  %v16311_v45 = vld [vmem:[#allocation10 + $0x974] ss:$80 sps:$4 sm:$0xff]   ;;  %v16309_v47 = vld [vmem:[#allocation10 + $0x970] ss:$80 sps:$4 sm:$0xff]  }
 0x1a8   :  { %4838 = vmatpush2.bf16.msra.mxu0 %v16225_v46  ;;  %4879 = vmatpush2.bf16.msra.mxu1 %v16228_v48  ;;  %v16314_v46 = vld [vmem:[#allocation10 + $0x1374] ss:$80 sps:$4 sm:$0xff]   ;;  %v16312_v48 = vld [vmem:[#allocation10 + $0x1370] ss:$80 sps:$4 sm:$0xff]  }
 0x1a9   :  { %4839 = vmatprep.subr.bf16.mxu0 %v16233_v49  ;;  %4880 = vmatprep.subr.bf16.mxu1 %v16236_v51  ;;  %v16317_v49 = vld [vmem:[#allocation10 + $0x8d4] ss:$80 sps:$4 sm:$0xff]   ;;  %v16315_v51 = vld [vmem:[#allocation10 + $0x8d0] ss:$80 sps:$4 sm:$0xff]  }
 0x1ac   :  { %4840 = vmatpush2.bf16.msra.mxu0 %v16231_v50  ;;  %4881 = vmatpush2.bf16.msra.mxu1 %v16234_v52  ;;  %v16320_v50 = vld [vmem:[#allocation10 + $0x12d4] ss:$80 sps:$4 sm:$0xff]   ;;  %v16318_v52 = vld [vmem:[#allocation10 + $0x12d0] ss:$80 sps:$4 sm:$0xff]  }
 0x1ad   :  { %4841 = vmatprep.subr.bf16.mxu0 %v16239_v53  ;;  %4882 = vmatprep.subr.bf16.mxu1 %v16242_v55  ;;  %v16323_v53 = vld [vmem:[#allocation10 + $0x834] ss:$80 sps:$4 sm:$0xff]   ;;  %v16321_v55 = vld [vmem:[#allocation10 + $0x830] ss:$80 sps:$4 sm:$0xff]  }
 0x1b0   :  { %4842 = vmatpush2.bf16.msra.mxu0 %v16237_v54  ;;  %4883 = vmatpush2.bf16.msra.mxu1 %v16240_v56  ;;  %v16326_v54 = vld [vmem:[#allocation10 + $0x1234] ss:$80 sps:$4 sm:$0xff]   ;;  %v16324_v56 = vld [vmem:[#allocation10 + $0x1230] ss:$80 sps:$4 sm:$0xff]  }
 0x1b1   :  { %4843 = vmatprep.subr.bf16.mxu0 %v16245_v57  ;;  %4884 = vmatprep.subr.bf16.mxu1 %v16248_v59  ;;  %v16329_v57 = vld [vmem:[#allocation10 + $0x794] ss:$80 sps:$4 sm:$0xff]   ;;  %v16327_v59 = vld [vmem:[#allocation10 + $0x790] ss:$80 sps:$4 sm:$0xff]  }
 0x1b4   :  { %4844 = vmatpush2.bf16.msra.mxu0 %v16243_v58  ;;  %4885 = vmatpush2.bf16.msra.mxu1 %v16246_v60  ;;  %v16332_v58 = vld [vmem:[#allocation10 + $0x1194] ss:$80 sps:$4 sm:$0xff]   ;;  %v16330_v60 = vld [vmem:[#allocation10 + $0x1190] ss:$80 sps:$4 sm:$0xff]  }
 0x1b5   :  { %4845 = vmatprep.subr.bf16.mxu0 %v16251_v61  ;;  %4886 = vmatprep.subr.bf16.mxu1 %v16254_v63  ;;  %v16335_v61 = vld [vmem:[#allocation10 + $0x6f4] ss:$80 sps:$4 sm:$0xff]   ;;  %v16333_v63 = vld [vmem:[#allocation10 + $0x6f0] ss:$80 sps:$4 sm:$0xff]  }
 0x1b8   :  { %4846 = vmatpush2.bf16.msra.mxu0 %v16249_v62  ;;  %4887 = vmatpush2.bf16.msra.mxu1 %v16252_v2  ;;  %v16338_v62 = vld [vmem:[#allocation10 + $0x10f4] ss:$80 sps:$4 sm:$0xff]   ;;  %v16336_v2 = vld [vmem:[#allocation10 + $0x10f0] ss:$80 sps:$4 sm:$0xff]  }
 0x1b9   :  { %4847 = vmatprep.subr.bf16.mxu0 %v16257_v3  ;;  %4888 = vmatprep.subr.bf16.mxu1 %v16260_v12  ;;  %v16341_v3 = vld [vmem:[#allocation10 + $0x654] ss:$80 sps:$4 sm:$0xff]   ;;  %v16339_v12 = vld [vmem:[#allocation10 + $0x650] ss:$80 sps:$4 sm:$0xff]  }
 0x1bc   :  { %4848 = vmatpush2.bf16.msra.mxu0 %v16255_v11  ;;  %4889 = vmatpush2.bf16.msra.mxu1 %v16258_v13  ;;  %v16344_v11 = vld [vmem:[#allocation10 + $0x1054] ss:$80 sps:$4 sm:$0xff]   ;;  %v16342_v13 = vld [vmem:[#allocation10 + $0x1050] ss:$80 sps:$4 sm:$0xff]  }
 0x1bd   :  { %4899 = vmatprep.subr.bf16.mxu0 %v16263_v14  ;;  %4940 = vmatprep.subr.bf16.mxu1 %v16266_v15  ;;  %v16347_v14 = vld [vmem:[#allocation10 + $0x5b4] ss:$80 sps:$4 sm:$0xff]  }
 0x1be   :  { %v16350_v15 = vld [vmem:[#allocation10 + $0xfb4] ss:$80 sps:$4 sm:$0xff]  }
 0x1bf   :  { %4850 = vmatmul.mubr.bf16.vlgmr.msra.gmra.mxu0 %v18720_v4  ;;  %4891 = vmatmul.mubr.bf16.vlgmr.msra.gmra.mxu1 %v18724_v6 }
 0x1c0   :  { %4900 = vmatpush1.bf16.msra.mxu0 %v16261_v7  ;;  %4931 = vmatprep.mubr.bf16.mxu0 %v18717_v1  ;;  %v16345_v7 = vld [vmem:[#allocation10 + $0x5b0] ss:$80 sps:$4 sm:$0xff]  }
 0x1c1   :  { %4941 = vmatpush1.bf16.msra.mxu1 %v16264_v8  ;;  %4972 = vmatprep.mubr.bf16.mxu1 %v18722_v5  ;;  %v16348_v8 = vld [vmem:[#allocation10 + $0xfb0] ss:$80 sps:$4 sm:$0xff]  }
 0x1c2   :  { %4901 = vmatprep.subr.bf16.mxu0 %v16269_v17  ;;  %4942 = vmatprep.subr.bf16.mxu1 %v16272_v22  ;;  %v16353_v17 = vld [vmem:[#allocation10 + $0x514] ss:$80 sps:$4 sm:$0xff]   ;;  %v16354_v22 = vld [vmem:[#allocation10 + $0xf10] ss:$80 sps:$4 sm:$0xff]  }
 0x1c4   :  { %4902 = vmatpush1.bf16.msra.mxu0 %v16267_v18  ;;  %v16356_v18 = vld [vmem:[#allocation10 + $0xf14] ss:$80 sps:$4 sm:$0xff]  }
 0x1c5   :  { %4943 = vmatpush1.bf16.msra.mxu1 %v16270_v19  ;;  %4903 = vmatprep.subr.bf16.mxu0 %v16275_v9  ;;  %v16351_v19 = vld [vmem:[#allocation10 + $0x510] ss:$80 sps:$4 sm:$0xff]   ;;  %v16359_v9 = vld [vmem:[#allocation10 + $0x47c] ss:$80 sps:$4 sm:$0xff]  }
 0x1c6   :  { %4944 = vmatprep.subr.bf16.mxu1 %v16278_v10  ;;  %v16362_v10 = vld [vmem:[#allocation10 + $0xe7c] ss:$80 sps:$4 sm:$0xff]  }
 0x1c8   :  { %4904 = vmatpush1.bf16.msra.mxu0 %v16273_v24  ;;  %v16357_v24 = vld [vmem:[#allocation10 + $0x478] ss:$80 sps:$4 sm:$0xff]  }
 0x1c9   :  { %4945 = vmatpush1.bf16.msra.mxu1 %v16276_v25  ;;  %4905 = vmatprep.subr.bf16.mxu0 %v16281_v20  ;;  %v16360_v25 = vld [vmem:[#allocation10 + $0xe78] ss:$80 sps:$4 sm:$0xff]   ;;  %v16365_v20 = vld [vmem:[#allocation10 + $0x3dc] ss:$80 sps:$4 sm:$0xff]  }
 0x1ca   :  { %4946 = vmatprep.subr.bf16.mxu1 %v16284_v27  ;;  %v16368_v27 = vld [vmem:[#allocation10 + $0xddc] ss:$80 sps:$4 sm:$0xff]  }
 0x1cc   :  { %4906 = vmatpush1.bf16.msra.mxu0 %v16279_v28  ;;  %v16363_v28 = vld [vmem:[#allocation10 + $0x3d8] ss:$80 sps:$4 sm:$0xff]  }
 0x1cd   :  { %4947 = vmatpush1.bf16.msra.mxu1 %v16282_v31  ;;  %4907 = vmatprep.subr.bf16.mxu0 %v16287_v32  ;;  %v16366_v31 = vld [vmem:[#allocation10 + $0xdd8] ss:$80 sps:$4 sm:$0xff]   ;;  %v16371_v32 = vld [vmem:[#allocation10 + $0x33c] ss:$80 sps:$4 sm:$0xff]  }
 0x1ce   :  { %4948 = vmatprep.subr.bf16.mxu1 %v16290_v33  ;;  %v16369_v33 = vld [vmem:[#allocation10 + $0x338] ss:$80 sps:$4 sm:$0xff]  }
 0x1d0   :  { %4908 = vmatpush1.bf16.msra.mxu0 %v16285_v21  ;;  %v16374_v21 = vld [vmem:[#allocation10 + $0xd3c] ss:$80 sps:$4 sm:$0xff]  }
 0x1d1   :  { %4949 = vmatpush1.bf16.msra.mxu1 %v16288_v34  ;;  %4909 = vmatprep.subr.bf16.mxu0 %v16293_v35  ;;  %v16372_v34 = vld [vmem:[#allocation10 + $0xd38] ss:$80 sps:$4 sm:$0xff]   ;;  %v16377_v35 = vld [vmem:[#allocation10 + $0x29c] ss:$80 sps:$4 sm:$0xff]  }
 0x1d2   :  { %4950 = vmatprep.subr.bf16.mxu1 %v16296_v36  ;;  %v16380_v36 = vld [vmem:[#allocation10 + $0xc9c] ss:$80 sps:$4 sm:$0xff]  }
 0x1d4   :  { %4910 = vmatpush1.bf16.msra.mxu0 %v16291_v23  ;;  %v16375_v23 = vld [vmem:[#allocation10 + $0x298] ss:$80 sps:$4 sm:$0xff]  }
 0x1d5   :  { %4951 = vmatpush1.bf16.msra.mxu1 %v16294_v29  ;;  %4911 = vmatprep.subr.bf16.mxu0 %v16299_v37  ;;  %v16378_v29 = vld [vmem:[#allocation10 + $0xc98] ss:$80 sps:$4 sm:$0xff]   ;;  %v16383_v37 = vld [vmem:[#allocation10 + $0x1fc] ss:$80 sps:$4 sm:$0xff]  }
 0x1d6   :  { %4952 = vmatprep.subr.bf16.mxu1 %v16302_v38  ;;  %v16386_v38 = vld [vmem:[#allocation10 + $0xbfc] ss:$80 sps:$4 sm:$0xff]  }
 0x1d8   :  { %4912 = vmatpush1.bf16.msra.mxu0 %v16297_v39  ;;  %v16381_v39 = vld [vmem:[#allocation10 + $0x1f8] ss:$80 sps:$4 sm:$0xff]  }
 0x1d9   :  { %4953 = vmatpush1.bf16.msra.mxu1 %v16300_v40  ;;  %4913 = vmatprep.subr.bf16.mxu0 %v16305_v41  ;;  %v16384_v40 = vld [vmem:[#allocation10 + $0xbf8] ss:$80 sps:$4 sm:$0xff]   ;;  %v16389_v41 = vld [vmem:[#allocation10 + $0x15c] ss:$80 sps:$4 sm:$0xff]  }
 0x1da   :  { %4954 = vmatprep.subr.bf16.mxu1 %v16308_v42  ;;  %v16392_v42 = vld [vmem:[#allocation10 + $0xb5c] ss:$80 sps:$4 sm:$0xff]  }
 0x1dc   :  { %4914 = vmatpush1.bf16.msra.mxu0 %v16303_v43  ;;  %v16387_v43 = vld [vmem:[#allocation10 + $0x158] ss:$80 sps:$4 sm:$0xff]  }
 0x1dd   :  { %4955 = vmatpush1.bf16.msra.mxu1 %v16306_v44  ;;  %4915 = vmatprep.subr.bf16.mxu0 %v16311_v45  ;;  %v16390_v44 = vld [vmem:[#allocation10 + $0xb58] ss:$80 sps:$4 sm:$0xff]   ;;  %v16395_v45 = vld [vmem:[#allocation10 + $0xbc] ss:$80 sps:$4 sm:$0xff]  }
 0x1de   :  { %4956 = vmatprep.subr.bf16.mxu1 %v16314_v46  ;;  %v16398_v46 = vld [vmem:[#allocation10 + $0xabc] ss:$80 sps:$4 sm:$0xff]  }
 0x1e0   :  { %4916 = vmatpush2.bf16.msra.mxu0 %v16309_v47  ;;  %v16393_v47 = vld [vmem:[#allocation10 + $0xb8] ss:$80 sps:$4 sm:$0xff]  }
 0x1e1   :  { %4957 = vmatpush2.bf16.msra.mxu1 %v16312_v48  ;;  %4917 = vmatprep.subr.bf16.mxu0 %v16317_v49  ;;  %v16396_v48 = vld [vmem:[#allocation10 + $0xab8] ss:$80 sps:$4 sm:$0xff]   ;;  %v16401_v49 = vld [vmem:[#allocation10 + $0x1c] ss:$80 sps:$4 sm:$0xff]  }
 0x1e2   :  { %4958 = vmatprep.subr.bf16.mxu1 %v16320_v50  ;;  %v16404_v50 = vld [vmem:[#allocation10 + $0xa1c] ss:$80 sps:$4 sm:$0xff]  }
 0x1e4   :  { %4918 = vmatpush2.bf16.msra.mxu0 %v16315_v51  ;;  %v16399_v51 = vld [vmem:[#allocation10 + $0x18] ss:$80 sps:$4 sm:$0xff]  }
 0x1e5   :  { %4959 = vmatpush2.bf16.msra.mxu1 %v16318_v52  ;;  %4919 = vmatprep.subr.bf16.mxu0 %v16323_v53  ;;  %v16402_v52 = vld [vmem:[#allocation10 + $0xa18] ss:$80 sps:$4 sm:$0xff]   ;;  %v16407_v53 = vld [vmem:[#allocation10 + $0x97c] ss:$80 sps:$4 sm:$0xff]  }
 0x1e6   :  { %4960 = vmatprep.subr.bf16.mxu1 %v16326_v54  ;;  %v16410_v54 = vld [vmem:[#allocation10 + $0x137c] ss:$80 sps:$4 sm:$0xff]  }
 0x1e8   :  { %4920 = vmatpush2.bf16.msra.mxu0 %v16321_v55  ;;  %v16405_v55 = vld [vmem:[#allocation10 + $0x978] ss:$80 sps:$4 sm:$0xff]  }
 0x1e9   :  { %4961 = vmatpush2.bf16.msra.mxu1 %v16324_v56  ;;  %4921 = vmatprep.subr.bf16.mxu0 %v16329_v57  ;;  %v16408_v56 = vld [vmem:[#allocation10 + $0x1378] ss:$80 sps:$4 sm:$0xff]   ;;  %v16413_v57 = vld [vmem:[#allocation10 + $0x8dc] ss:$80 sps:$4 sm:$0xff]  }
 0x1ea   :  { %4962 = vmatprep.subr.bf16.mxu1 %v16332_v58  ;;  %v16416_v58 = vld [vmem:[#allocation10 + $0x12dc] ss:$80 sps:$4 sm:$0xff]  }
 0x1ec   :  { %4922 = vmatpush2.bf16.msra.mxu0 %v16327_v59  ;;  %v16411_v59 = vld [vmem:[#allocation10 + $0x8d8] ss:$80 sps:$4 sm:$0xff]  }
 0x1ed   :  { %4963 = vmatpush2.bf16.msra.mxu1 %v16330_v60  ;;  %4923 = vmatprep.subr.bf16.mxu0 %v16335_v61  ;;  %v16414_v60 = vld [vmem:[#allocation10 + $0x12d8] ss:$80 sps:$4 sm:$0xff]   ;;  %v16419_v61 = vld [vmem:[#allocation10 + $0x83c] ss:$80 sps:$4 sm:$0xff]  }
 0x1ee   :  { %4964 = vmatprep.subr.bf16.mxu1 %v16338_v62  ;;  %v16422_v62 = vld [vmem:[#allocation10 + $0x123c] ss:$80 sps:$4 sm:$0xff]  }
 0x1f0   :  { %4924 = vmatpush2.bf16.msra.mxu0 %v16333_v63  ;;  %v16417_v63 = vld [vmem:[#allocation10 + $0x838] ss:$80 sps:$4 sm:$0xff]  }
 0x1f1   :  { %4965 = vmatpush2.bf16.msra.mxu1 %v16336_v2  ;;  %4925 = vmatprep.subr.bf16.mxu0 %v16341_v3  ;;  %v16420_v2 = vld [vmem:[#allocation10 + $0x1238] ss:$80 sps:$4 sm:$0xff]   ;;  %v16425_v3 = vld [vmem:[#allocation10 + $0x79c] ss:$80 sps:$4 sm:$0xff]  }
 0x1f2   :  { %4966 = vmatprep.subr.bf16.mxu1 %v16344_v11  ;;  %v16428_v11 = vld [vmem:[#allocation10 + $0x119c] ss:$80 sps:$4 sm:$0xff]  }
 0x1f4   :  { %4926 = vmatpush2.bf16.msra.mxu0 %v16339_v12  ;;  %v16423_v12 = vld [vmem:[#allocation10 + $0x798] ss:$80 sps:$4 sm:$0xff]  }
 0x1f5   :  { %4967 = vmatpush2.bf16.msra.mxu1 %v16342_v13  ;;  %4927 = vmatprep.subr.bf16.mxu0 %v16347_v14  ;;  %v16426_v13 = vld [vmem:[#allocation10 + $0x1198] ss:$80 sps:$4 sm:$0xff]   ;;  %v16431_v14 = vld [vmem:[#allocation10 + $0x6fc] ss:$80 sps:$4 sm:$0xff]  }
 0x1f6   :  { %4968 = vmatprep.subr.bf16.mxu1 %v16350_v15  ;;  %v16434_v15 = vld [vmem:[#allocation10 + $0x10fc] ss:$80 sps:$4 sm:$0xff]  }
 0x1f8   :  { %4928 = vmatpush2.bf16.msra.mxu0 %v16345_v7  ;;  %v16429_v7 = vld [vmem:[#allocation10 + $0x6f8] ss:$80 sps:$4 sm:$0xff]  }
 0x1f9   :  { %4969 = vmatpush2.bf16.msra.mxu1 %v16348_v8  ;;  %4929 = vmatprep.subr.bf16.mxu0 %v16353_v17  ;;  %v16432_v8 = vld [vmem:[#allocation10 + $0x10f8] ss:$80 sps:$4 sm:$0xff]   ;;  %v16437_v17 = vld [vmem:[#allocation10 + $0x65c] ss:$80 sps:$4 sm:$0xff]  }
 0x1fa   :  { %4970 = vmatprep.subr.bf16.mxu1 %v16356_v18  ;;  %v16440_v18 = vld [vmem:[#allocation10 + $0x105c] ss:$80 sps:$4 sm:$0xff]  }
 0x1fc   :  { %4930 = vmatpush2.bf16.msra.mxu0 %v16351_v19  ;;  %v16435_v19 = vld [vmem:[#allocation10 + $0x658] ss:$80 sps:$4 sm:$0xff]  }
 0x1fd   :  { %4971 = vmatpush2.bf16.msra.mxu1 %v16354_v22  ;;  %4981 = vmatprep.subr.bf16.mxu0 %v16359_v9  ;;  %v16438_v22 = vld [vmem:[#allocation10 + $0x1058] ss:$80 sps:$4 sm:$0xff]   ;;  %v16443_v9 = vld [vmem:[#allocation10 + $0x5bc] ss:$80 sps:$4 sm:$0xff]  }
 0x1fe   :  { %5022 = vmatprep.subr.bf16.mxu1 %v16362_v10  ;;  %v16446_v10 = vld [vmem:[#allocation10 + $0xfbc] ss:$80 sps:$4 sm:$0xff]  }
 0x1ff   :  { %4932 = vmatmul.mubr.bf16.vlgmr.msra.gmra.mxu0 %v18720_v4 }
 0x200   :  { %4973 = vmatmul.mubr.bf16.vlgmr.msra.gmra.mxu1 %v18724_v6  ;;  %4982 = vmatpush1.bf16.msra.mxu0 %v16357_v24  ;;  %v16441_v24 = vld [vmem:[#allocation10 + $0x5b8] ss:$80 sps:$4 sm:$0xff]  }
 0x201   :  { %5013 = vmatprep.mubr.bf16.mxu0 %v18717_v1  ;;  %5023 = vmatpush1.bf16.msra.mxu1 %v16360_v25  ;;  %v16444_v25 = vld [vmem:[#allocation10 + $0xfb8] ss:$80 sps:$4 sm:$0xff]  }
 0x202   :  { %5054 = vmatprep.mubr.bf16.mxu1 %v18722_v5  ;;  %4983 = vmatprep.subr.bf16.mxu0 %v16365_v20  ;;  %v16449_v20 = vld [vmem:[#allocation10 + $0x51c] ss:$80 sps:$4 sm:$0xff]  }
 0x203   :  { %5024 = vmatprep.subr.bf16.mxu1 %v16368_v27  ;;  %v16452_v27 = vld [vmem:[#allocation10 + $0xf1c] ss:$80 sps:$4 sm:$0xff]  }
 0x204   :  { %4984 = vmatpush1.bf16.msra.mxu0 %v16363_v28  ;;  %v16447_v28 = vld [vmem:[#allocation10 + $0x518] ss:$80 sps:$4 sm:$0xff]  }
 0x205   :  { %5025 = vmatpush1.bf16.msra.mxu1 %v16366_v31  ;;  %4985 = vmatprep.subr.bf16.mxu0 %v16371_v32  ;;  %v16450_v31 = vld [vmem:[#allocation10 + $0xf18] ss:$80 sps:$4 sm:$0xff]   ;;  %v16455_v32 = vld [vmem:[#allocation10 + $0x484] ss:$80 sps:$4 sm:$0xff]  }
 0x206   :  { %5026 = vmatprep.subr.bf16.mxu1 %v16374_v21  ;;  %v16458_v21 = vld [vmem:[#allocation10 + $0xe84] ss:$80 sps:$4 sm:$0xff]  }
 0x208   :  { %4986 = vmatpush1.bf16.msra.mxu0 %v16369_v33  ;;  %v16453_v33 = vld [vmem:[#allocation10 + $0x480] ss:$80 sps:$4 sm:$0xff]  }
 0x209   :  { %5027 = vmatpush1.bf16.msra.mxu1 %v16372_v34  ;;  %4987 = vmatprep.subr.bf16.mxu0 %v16377_v35  ;;  %v16456_v34 = vld [vmem:[#allocation10 + $0xe80] ss:$80 sps:$4 sm:$0xff]   ;;  %v16461_v35 = vld [vmem:[#allocation10 + $0x3e4] ss:$80 sps:$4 sm:$0xff]  }
 0x20a   :  { %5028 = vmatprep.subr.bf16.mxu1 %v16380_v36 }
 0x20c   :  { %4988 = vmatpush1.bf16.msra.mxu0 %v16375_v23  ;;  %v16464_v23 = vld [vmem:[#allocation10 + $0xde4] ss:$80 sps:$4 sm:$0xff]  }
 0x20d   :  { %5029 = vmatpush1.bf16.msra.mxu1 %v16378_v29  ;;  %4989 = vmatprep.subr.bf16.mxu0 %v16383_v37  ;;  %v16459_v37 = vld [vmem:[#allocation10 + $0x3e0] ss:$80 sps:$4 sm:$0xff]  }
 0x20e   :  { %5030 = vmatprep.subr.bf16.mxu1 %v16386_v38 }
 0x210   :  { %4990 = vmatpush1.bf16.msra.mxu0 %v16381_v39 }
 0x211   :  { %5031 = vmatpush1.bf16.msra.mxu1 %v16384_v40  ;;  %4991 = vmatprep.subr.bf16.mxu0 %v16389_v41  ;;  %v16462_v40 = vld [vmem:[#allocation10 + $0xde0] ss:$80 sps:$4 sm:$0xff]   ;;  %v16467_v41 = vld [vmem:[#allocation10 + $0x344] ss:$80 sps:$4 sm:$0xff]  }
 0x212   :  { %5032 = vmatprep.subr.bf16.mxu1 %v16392_v42 }
 0x214   :  { %4992 = vmatpush1.bf16.msra.mxu0 %v16387_v43  ;;  %v16470_v43 = vld [vmem:[#allocation10 + $0xd44] ss:$80 sps:$4 sm:$0xff]  }
 0x215   :  { %5033 = vmatpush1.bf16.msra.mxu1 %v16390_v44  ;;  %4993 = vmatprep.subr.bf16.mxu0 %v16395_v45 }
 0x216   :  { %5034 = vmatprep.subr.bf16.mxu1 %v16398_v46 }
 0x218   :  { %4994 = vmatpush1.bf16.msra.mxu0 %v16393_v47  ;;  %v16465_v47 = vld [vmem:[#allocation10 + $0x340] ss:$80 sps:$4 sm:$0xff]  }
 0x219   :  { %5035 = vmatpush1.bf16.msra.mxu1 %v16396_v48  ;;  %4995 = vmatprep.subr.bf16.mxu0 %v16401_v49  ;;  %v16468_v49 = vld [vmem:[#allocation10 + $0xd40] ss:$80 sps:$4 sm:$0xff]  }
 0x21a   :  { %5036 = vmatprep.subr.bf16.mxu1 %v16404_v50  ;;  %v16473_v50 = vld [vmem:[#allocation10 + $0x2a4] ss:$80 sps:$4 sm:$0xff]  }
 0x21c   :  { %4996 = vmatpush1.bf16.msra.mxu0 %v16399_v51 }
 0x21d   :  { %5037 = vmatpush1.bf16.msra.mxu1 %v16402_v52  ;;  %4997 = vmatprep.subr.bf16.mxu0 %v16407_v53  ;;  %v16476_v52 = vld [vmem:[#allocation10 + $0xca4] ss:$80 sps:$4 sm:$0xff]   ;;  %v16471_v53 = vld [vmem:[#allocation10 + $0x2a0] ss:$80 sps:$4 sm:$0xff]  }
 0x21e   :  { %5038 = vmatprep.subr.bf16.mxu1 %v16410_v54  ;;  %v16474_v54 = vld [vmem:[#allocation10 + $0xca0] ss:$80 sps:$4 sm:$0xff]  }
 0x220   :  { %4998 = vmatpush2.bf16.msra.mxu0 %v16405_v55  ;;  %v16479_v55 = vld [vmem:[#allocation10 + $0x204] ss:$80 sps:$4 sm:$0xff]  }
 0x221   :  { %5039 = vmatpush2.bf16.msra.mxu1 %v16408_v56  ;;  %4999 = vmatprep.subr.bf16.mxu0 %v16413_v57  ;;  %v16482_v56 = vld [vmem:[#allocation10 + $0xc04] ss:$80 sps:$4 sm:$0xff]   ;;  %v16477_v57 = vld [vmem:[#allocation10 + $0x200] ss:$80 sps:$4 sm:$0xff]  }
 0x222   :  { %5040 = vmatprep.subr.bf16.mxu1 %v16416_v58  ;;  %v16480_v58 = vld [vmem:[#allocation10 + $0xc00] ss:$80 sps:$4 sm:$0xff]  }
 0x224   :  { %5000 = vmatpush2.bf16.msra.mxu0 %v16411_v59  ;;  %v16485_v59 = vld [vmem:[#allocation10 + $0x164] ss:$80 sps:$4 sm:$0xff]  }
 0x225   :  { %5041 = vmatpush2.bf16.msra.mxu1 %v16414_v60  ;;  %5001 = vmatprep.subr.bf16.mxu0 %v16419_v61  ;;  %v16488_v60 = vld [vmem:[#allocation10 + $0xb64] ss:$80 sps:$4 sm:$0xff]   ;;  %v16483_v61 = vld [vmem:[#allocation10 + $0x160] ss:$80 sps:$4 sm:$0xff]  }
 0x226   :  { %5042 = vmatprep.subr.bf16.mxu1 %v16422_v62  ;;  %v16486_v62 = vld [vmem:[#allocation10 + $0xb60] ss:$80 sps:$4 sm:$0xff]  }
 0x228   :  { %5002 = vmatpush2.bf16.msra.mxu0 %v16417_v63  ;;  %v16491_v63 = vld [vmem:[#allocation10 + $0xc4] ss:$80 sps:$4 sm:$0xff]  }
 0x229   :  { %5043 = vmatpush2.bf16.msra.mxu1 %v16420_v2  ;;  %5003 = vmatprep.subr.bf16.mxu0 %v16425_v3  ;;  %v16494_v2 = vld [vmem:[#allocation10 + $0xac4] ss:$80 sps:$4 sm:$0xff]   ;;  %v16489_v3 = vld [vmem:[#allocation10 + $0xc0] ss:$80 sps:$4 sm:$0xff]  }
 0x22a   :  { %5044 = vmatprep.subr.bf16.mxu1 %v16428_v11  ;;  %v16492_v11 = vld [vmem:[#allocation10 + $0xac0] ss:$80 sps:$4 sm:$0xff]  }
 0x22c   :  { %5004 = vmatpush2.bf16.msra.mxu0 %v16423_v12  ;;  %v16497_v12 = vld [vmem:[#allocation10 + $0x24] ss:$80 sps:$4 sm:$0xff]  }
 0x22d   :  { %5045 = vmatpush2.bf16.msra.mxu1 %v16426_v13  ;;  %5005 = vmatprep.subr.bf16.mxu0 %v16431_v14  ;;  %v16500_v13 = vld [vmem:[#allocation10 + $0xa24] ss:$80 sps:$4 sm:$0xff]   ;;  %v16495_v14 = vld [vmem:[#allocation10 + $0x20] ss:$80 sps:$4 sm:$0xff]  }
 0x22e   :  { %5046 = vmatprep.subr.bf16.mxu1 %v16434_v15  ;;  %v16498_v15 = vld [vmem:[#allocation10 + $0xa20] ss:$80 sps:$4 sm:$0xff]  }
 0x230   :  { %5006 = vmatpush2.bf16.msra.mxu0 %v16429_v7  ;;  %v16503_v7 = vld [vmem:[#allocation10 + $0x984] ss:$80 sps:$4 sm:$0xff]  }
 0x231   :  { %5047 = vmatpush2.bf16.msra.mxu1 %v16432_v8  ;;  %5007 = vmatprep.subr.bf16.mxu0 %v16437_v17  ;;  %v16506_v8 = vld [vmem:[#allocation10 + $0x1384] ss:$80 sps:$4 sm:$0xff]   ;;  %v16501_v17 = vld [vmem:[#allocation10 + $0x980] ss:$80 sps:$4 sm:$0xff]  }
 0x232   :  { %5048 = vmatprep.subr.bf16.mxu1 %v16440_v18  ;;  %v16504_v18 = vld [vmem:[#allocation10 + $0x1380] ss:$80 sps:$4 sm:$0xff]  }
 0x234   :  { %5008 = vmatpush2.bf16.msra.mxu0 %v16435_v19  ;;  %v16509_v19 = vld [vmem:[#allocation10 + $0x8e4] ss:$80 sps:$4 sm:$0xff]  }
 0x235   :  { %5049 = vmatpush2.bf16.msra.mxu1 %v16438_v22  ;;  %5009 = vmatprep.subr.bf16.mxu0 %v16443_v9  ;;  %v16512_v22 = vld [vmem:[#allocation10 + $0x12e4] ss:$80 sps:$4 sm:$0xff]   ;;  %v16507_v9 = vld [vmem:[#allocation10 + $0x8e0] ss:$80 sps:$4 sm:$0xff]  }
 0x236   :  { %5050 = vmatprep.subr.bf16.mxu1 %v16446_v10  ;;  %v16510_v10 = vld [vmem:[#allocation10 + $0x12e0] ss:$80 sps:$4 sm:$0xff]  }
 0x238   :  { %5010 = vmatpush2.bf16.msra.mxu0 %v16441_v24  ;;  %v16515_v24 = vld [vmem:[#allocation10 + $0x844] ss:$80 sps:$4 sm:$0xff]  }
 0x239   :  { %5051 = vmatpush2.bf16.msra.mxu1 %v16444_v25  ;;  %5011 = vmatprep.subr.bf16.mxu0 %v16449_v20  ;;  %v16518_v25 = vld [vmem:[#allocation10 + $0x1244] ss:$80 sps:$4 sm:$0xff]   ;;  %v16513_v20 = vld [vmem:[#allocation10 + $0x840] ss:$80 sps:$4 sm:$0xff]  }
 0x23a   :  { %5052 = vmatprep.subr.bf16.mxu1 %v16452_v27  ;;  %v16516_v27 = vld [vmem:[#allocation10 + $0x1240] ss:$80 sps:$4 sm:$0xff]  }
 0x23c   :  { %5012 = vmatpush2.bf16.msra.mxu0 %v16447_v28  ;;  %v16521_v28 = vld [vmem:[#allocation10 + $0x7a4] ss:$80 sps:$4 sm:$0xff]  }
 0x23d   :  { %5053 = vmatpush2.bf16.msra.mxu1 %v16450_v31  ;;  %5063 = vmatprep.subr.bf16.mxu0 %v16455_v32  ;;  %v16524_v31 = vld [vmem:[#allocation10 + $0x11a4] ss:$80 sps:$4 sm:$0xff]   ;;  %v16519_v32 = vld [vmem:[#allocation10 + $0x7a0] ss:$80 sps:$4 sm:$0xff]  }
 0x23e   :  { %5104 = vmatprep.subr.bf16.mxu1 %v16458_v21  ;;  %v16522_v21 = vld [vmem:[#allocation10 + $0x11a0] ss:$80 sps:$4 sm:$0xff]  }
 0x23f   :  { %5014 = vmatmul.mubr.bf16.vlgmr.msra.gmra.mxu0 %v18720_v4  ;;  %v4769_v36 = vpop.f32.mrf.mxu0  ;;  %v4810_v29 = vpop.f32.mrf.mxu1 }
 0x240   :  { %5055 = vmatmul.mubr.bf16.vlgmr.msra.gmra.mxu1 %v18724_v6  ;;  %5064 = vmatpush1.bf16.msra.mxu0 %v16453_v33  ;;  %v18742_v38 = vadd.f32 %v4810_v29, %v4769_v36  ;;  %v16527_v33 = vld [vmem:[#allocation10 + $0x704] ss:$80 sps:$4 sm:$0xff]   ;;  %v16528_v36 = vld [vmem:[#allocation10 + $0x1100] ss:$80 sps:$4 sm:$0xff]  }
 0x241   :  { %5095 = vmatprep.mubr.bf16.mxu0 %v18717_v1  ;;  %5105 = vmatpush1.bf16.msra.mxu1 %v16456_v34  ;;  %v4771_v39 = vpop.f32.mrf.mxu0  ;;  %v4812_v42 = vpop.f32.mrf.mxu1  ;;  %v16530_v34 = vld [vmem:[#allocation10 + $0x1104] ss:$80 sps:$4 sm:$0xff]  }
 0x242   :  { %5136 = vmatprep.mubr.bf16.mxu1 %v18722_v5  ;;  %5065 = vmatprep.subr.bf16.mxu0 %v16461_v35  ;;  %v18746_v44 = vadd.f32 %v4812_v42, %v4771_v39  ;;  %v16525_v35 = vld [vmem:[#allocation10 + $0x700] ss:$80 sps:$4 sm:$0xff]   ;;  %v16536_v29 = vld [vmem:[#allocation10 + $0x1064] ss:$80 sps:$4 sm:$0xff]  }
 0x243   :  { %5106 = vmatprep.subr.bf16.mxu1 %v16464_v23  ;;  %v4773_v45 = vpop.f32.mrf.mxu0  ;;  %v4814_v46 = vpop.f32.mrf.mxu1  ;;  %v16533_v23 = vld [vmem:[#allocation10 + $0x664] ss:$80 sps:$4 sm:$0xff]   ;;  %v16534_v39 = vld [vmem:[#allocation10 + $0x1060] ss:$80 sps:$4 sm:$0xff]  }
 0x244   :  { %5066 = vmatpush1.bf16.msra.mxu0 %v16459_v37  ;;  %v16531_v37 = vld [vmem:[#allocation10 + $0x660] ss:$80 sps:$4 sm:$0xff]   ;;  %v16545_v45 = vld [vmem:[#allocation10 + $0x524] ss:$80 sps:$4 sm:$0xff]  }
 0x245   :  { %5107 = vmatpush1.bf16.msra.mxu1 %v16462_v40  ;;  %v4774_v48 = vpop.f32.mrf.mxu0  ;;  %5067 = vmatprep.subr.bf16.mxu0 %v16467_v41  ;;  %v4815_v51 = vpop.f32.mrf.mxu1  ;;  %v16539_v40 = vld [vmem:[#allocation10 + $0x5c4] ss:$80 sps:$4 sm:$0xff]   ;;  %v16537_v42 = vld [vmem:[#allocation10 + $0x5c0] ss:$80 sps:$4 sm:$0xff]  }
 0x246   :  { %5108 = vmatprep.subr.bf16.mxu1 %v16470_v43  ;;  %v16542_v41 = vld [vmem:[#allocation10 + $0xfc4] ss:$80 sps:$4 sm:$0xff]   ;;  %v16540_v43 = vld [vmem:[#allocation10 + $0xfc0] ss:$80 sps:$4 sm:$0xff]   ;;  %v16549_v51 = vld [vmem:[#allocation10 + $0x488] ss:$80 sps:$4 sm:$0xff]  }
 0x247   :  { %v16548_v46 = vld [vmem:[#allocation10 + $0xf24] ss:$80 sps:$4 sm:$0xff]   ;;  %v16546_v48 = vld [vmem:[#allocation10 + $0xf20] ss:$80 sps:$4 sm:$0xff]  }
 0x248   :  { %5068 = vmatpush1.bf16.msra.mxu0 %v16465_v47  ;;  %v16543_v47 = vld [vmem:[#allocation10 + $0x520] ss:$80 sps:$4 sm:$0xff]  }
 0x249   :  { %5109 = vmatpush1.bf16.msra.mxu1 %v16468_v49  ;;  %5069 = vmatprep.subr.bf16.mxu0 %v16473_v50  ;;  %v16551_v49 = vld [vmem:[#allocation10 + $0x48c] ss:$80 sps:$4 sm:$0xff]  }
 0x24a   :  { %5110 = vmatprep.subr.bf16.mxu1 %v16476_v52  ;;  %v16554_v50 = vld [vmem:[#allocation10 + $0xe8c] ss:$80 sps:$4 sm:$0xff]   ;;  %v16552_v52 = vld [vmem:[#allocation10 + $0xe88] ss:$80 sps:$4 sm:$0xff]  }
 0x24c   :  { %5070 = vmatpush1.bf16.msra.mxu0 %v16471_v53  ;;  %v16557_v53 = vld [vmem:[#allocation10 + $0x3ec] ss:$80 sps:$4 sm:$0xff]  }
 0x24d   :  { %5111 = vmatpush1.bf16.msra.mxu1 %v16474_v54  ;;  %5071 = vmatprep.subr.bf16.mxu0 %v16479_v55  ;;  %v16560_v55 = vld [vmem:[#allocation10 + $0xdec] ss:$80 sps:$4 sm:$0xff]  }
 0x24e   :  { %5112 = vmatprep.subr.bf16.mxu1 %v16482_v56 }
 0x250   :  { %5072 = vmatpush1.bf16.msra.mxu0 %v16477_v57  ;;  %v16555_v57 = vld [vmem:[#allocation10 + $0x3e8] ss:$80 sps:$4 sm:$0xff]  }
 0x251   :  { %5113 = vmatpush1.bf16.msra.mxu1 %v16480_v58  ;;  %5073 = vmatprep.subr.bf16.mxu0 %v16485_v59 }
 0x252   :  { %5114 = vmatprep.subr.bf16.mxu1 %v16488_v60  ;;  %v16558_v60 = vld [vmem:[#allocation10 + $0xde8] ss:$80 sps:$4 sm:$0xff]  }
 0x254   :  { %5074 = vmatpush1.bf16.msra.mxu0 %v16483_v61  ;;  %v16563_v61 = vld [vmem:[#allocation10 + $0x34c] ss:$80 sps:$4 sm:$0xff]  }
 0x255   :  { %5115 = vmatpush1.bf16.msra.mxu1 %v16486_v62  ;;  %5075 = vmatprep.subr.bf16.mxu0 %v16491_v63  ;;  %v16566_v63 = vld [vmem:[#allocation10 + $0xd4c] ss:$80 sps:$4 sm:$0xff]  }
 0x256   :  { %5116 = vmatprep.subr.bf16.mxu1 %v16494_v2 }
 0x258   :  { %5076 = vmatpush1.bf16.msra.mxu0 %v16489_v3 }
 0x259   :  { %5117 = vmatpush1.bf16.msra.mxu1 %v16492_v11  ;;  %5077 = vmatprep.subr.bf16.mxu0 %v16497_v12  ;;  %v16561_v12 = vld [vmem:[#allocation10 + $0x348] ss:$80 sps:$4 sm:$0xff]  }
 0x25a   :  { %5118 = vmatprep.subr.bf16.mxu1 %v16500_v13 }
 0x25c   :  { %5078 = vmatpush1.bf16.msra.mxu0 %v16495_v14  ;;  %v16564_v14 = vld [vmem:[#allocation10 + $0xd48] ss:$80 sps:$4 sm:$0xff]  }
 0x25d   :  { %5119 = vmatpush1.bf16.msra.mxu1 %v16498_v15  ;;  %5079 = vmatprep.subr.bf16.mxu0 %v16503_v7  ;;  %v16569_v15 = vld [vmem:[#allocation10 + $0x2ac] ss:$80 sps:$4 sm:$0xff]  }
 0x25e   :  { %5120 = vmatprep.subr.bf16.mxu1 %v16506_v8  ;;  %v16572_v8 = vld [vmem:[#allocation10 + $0xcac] ss:$80 sps:$4 sm:$0xff]  }
 0x260   :  { %5080 = vmatpush2.bf16.msra.mxu0 %v16501_v17  ;;  %v16567_v17 = vld [vmem:[#allocation10 + $0x2a8] ss:$80 sps:$4 sm:$0xff]  }
 0x261   :  { %5121 = vmatpush2.bf16.msra.mxu1 %v16504_v18  ;;  %5081 = vmatprep.subr.bf16.mxu0 %v16509_v19  ;;  %v16570_v18 = vld [vmem:[#allocation10 + $0xca8] ss:$80 sps:$4 sm:$0xff]   ;;  %v16575_v19 = vld [vmem:[#allocation10 + $0x20c] ss:$80 sps:$4 sm:$0xff]  }
 0x262   :  { %5122 = vmatprep.subr.bf16.mxu1 %v16512_v22  ;;  %v16578_v22 = vld [vmem:[#allocation10 + $0xc0c] ss:$80 sps:$4 sm:$0xff]  }
 0x264   :  { %5082 = vmatpush2.bf16.msra.mxu0 %v16507_v9  ;;  %v16573_v9 = vld [vmem:[#allocation10 + $0x208] ss:$80 sps:$4 sm:$0xff]  }
 0x265   :  { %5123 = vmatpush2.bf16.msra.mxu1 %v16510_v10  ;;  %5083 = vmatprep.subr.bf16.mxu0 %v16515_v24  ;;  %v16576_v10 = vld [vmem:[#allocation10 + $0xc08] ss:$80 sps:$4 sm:$0xff]   ;;  %v16581_v24 = vld [vmem:[#allocation10 + $0x16c] ss:$80 sps:$4 sm:$0xff]  }
 0x266   :  { %5124 = vmatprep.subr.bf16.mxu1 %v16518_v25  ;;  %v16584_v25 = vld [vmem:[#allocation10 + $0xb6c] ss:$80 sps:$4 sm:$0xff]  }
 0x268   :  { %5084 = vmatpush2.bf16.msra.mxu0 %v16513_v20  ;;  %v16579_v20 = vld [vmem:[#allocation10 + $0x168] ss:$80 sps:$4 sm:$0xff]  }
 0x269   :  { %5125 = vmatpush2.bf16.msra.mxu1 %v16516_v27  ;;  %5085 = vmatprep.subr.bf16.mxu0 %v16521_v28  ;;  %v16582_v27 = vld [vmem:[#allocation10 + $0xb68] ss:$80 sps:$4 sm:$0xff]   ;;  %v16587_v28 = vld [vmem:[#allocation10 + $0xcc] ss:$80 sps:$4 sm:$0xff]  }
 0x26a   :  { %5126 = vmatprep.subr.bf16.mxu1 %v16524_v31  ;;  %v16590_v31 = vld [vmem:[#allocation10 + $0xacc] ss:$80 sps:$4 sm:$0xff]  }
 0x26c   :  { %5086 = vmatpush2.bf16.msra.mxu0 %v16519_v32  ;;  %v16585_v32 = vld [vmem:[#allocation10 + $0xc8] ss:$80 sps:$4 sm:$0xff]  }
 0x26d   :  { %5127 = vmatpush2.bf16.msra.mxu1 %v16522_v21  ;;  %5087 = vmatprep.subr.bf16.mxu0 %v16527_v33  ;;  %v16588_v21 = vld [vmem:[#allocation10 + $0xac8] ss:$80 sps:$4 sm:$0xff]   ;;  %v16593_v33 = vld [vmem:[#allocation10 + $0x2c] ss:$80 sps:$4 sm:$0xff]  }
 0x26e   :  { %5128 = vmatprep.subr.bf16.mxu1 %v16530_v34  ;;  %v16596_v34 = vld [vmem:[#allocation10 + $0xa2c] ss:$80 sps:$4 sm:$0xff]  }
 0x270   :  { %5088 = vmatpush2.bf16.msra.mxu0 %v16525_v35  ;;  %v16591_v35 = vld [vmem:[#allocation10 + $0x28] ss:$80 sps:$4 sm:$0xff]  }
 0x271   :  { %5129 = vmatpush2.bf16.msra.mxu1 %v16528_v36  ;;  %5089 = vmatprep.subr.bf16.mxu0 %v16533_v23  ;;  %v16594_v36 = vld [vmem:[#allocation10 + $0xa28] ss:$80 sps:$4 sm:$0xff]   ;;  %v16599_v23 = vld [vmem:[#allocation10 + $0x98c] ss:$80 sps:$4 sm:$0xff]  }
 0x272   :  { %5130 = vmatprep.subr.bf16.mxu1 %v16536_v29  ;;  %v16602_v29 = vld [vmem:[#allocation10 + $0x138c] ss:$80 sps:$4 sm:$0xff]  }
 0x274   :  { %5090 = vmatpush2.bf16.msra.mxu0 %v16531_v37  ;;  %v16597_v37 = vld [vmem:[#allocation10 + $0x988] ss:$80 sps:$4 sm:$0xff]  }
 0x275   :  { %5131 = vmatpush2.bf16.msra.mxu1 %v16534_v39  ;;  %5091 = vmatprep.subr.bf16.mxu0 %v16539_v40  ;;  %v16600_v39 = vld [vmem:[#allocation10 + $0x1388] ss:$80 sps:$4 sm:$0xff]   ;;  %v16605_v40 = vld [vmem:[#allocation10 + $0x8ec] ss:$80 sps:$4 sm:$0xff]  }
 0x276   :  { %5132 = vmatprep.subr.bf16.mxu1 %v16542_v41  ;;  %v16608_v41 = vld [vmem:[#allocation10 + $0x12ec] ss:$80 sps:$4 sm:$0xff]  }
 0x278   :  { %5092 = vmatpush2.bf16.msra.mxu0 %v16537_v42  ;;  %v16603_v42 = vld [vmem:[#allocation10 + $0x8e8] ss:$80 sps:$4 sm:$0xff]  }
 0x279   :  { %5133 = vmatpush2.bf16.msra.mxu1 %v16540_v43  ;;  %5093 = vmatprep.subr.bf16.mxu0 %v16545_v45  ;;  %v16606_v43 = vld [vmem:[#allocation10 + $0x12e8] ss:$80 sps:$4 sm:$0xff]   ;;  %v16611_v45 = vld [vmem:[#allocation10 + $0x84c] ss:$80 sps:$4 sm:$0xff]  }
 0x27a   :  { %5134 = vmatprep.subr.bf16.mxu1 %v16548_v46  ;;  %v16614_v46 = vld [vmem:[#allocation10 + $0x124c] ss:$80 sps:$4 sm:$0xff]  }
 0x27c   :  { %5094 = vmatpush2.bf16.msra.mxu0 %v16543_v47  ;;  %v16609_v47 = vld [vmem:[#allocation10 + $0x848] ss:$80 sps:$4 sm:$0xff]  }
 0x27d   :  { %5135 = vmatpush2.bf16.msra.mxu1 %v16546_v48  ;;  %5145 = vmatprep.subr.bf16.mxu0 %v16551_v49  ;;  %v16612_v48 = vld [vmem:[#allocation10 + $0x1248] ss:$80 sps:$4 sm:$0xff]   ;;  %v16617_v49 = vld [vmem:[#allocation10 + $0x7ac] ss:$80 sps:$4 sm:$0xff]  }
 0x27e   :  { %5186 = vmatprep.subr.bf16.mxu1 %v16554_v50  ;;  %v16620_v50 = vld [vmem:[#allocation10 + $0x11ac] ss:$80 sps:$4 sm:$0xff]  }
 0x27f   :  { %v4851_v54 = vpop.f32.mrf.mxu0  ;;  %5096 = vmatmul.mubr.bf16.vlgmr.msra.gmra.mxu0 %v18720_v4  ;;  %v4892_v56 = vpop.f32.mrf.mxu1 }
 0x280   :  { %5137 = vmatmul.mubr.bf16.vlgmr.msra.gmra.mxu1 %v18724_v6  ;;  %5146 = vmatpush1.bf16.msra.mxu0 %v16549_v51  ;;  %v18750_v58 = vadd.f32 %v4892_v56, %v4851_v54  ;;  %v16615_v51 = vld [vmem:[#allocation10 + $0x7a8] ss:$80 sps:$4 sm:$0xff]   ;;  %v16626_v54 = vld [vmem:[#allocation10 + $0x110c] ss:$80 sps:$4 sm:$0xff]  }
 0x281   :  { %5177 = vmatprep.mubr.bf16.mxu0 %v18717_v1  ;;  %5187 = vmatpush1.bf16.msra.mxu1 %v16552_v52  ;;  %v4853_v59 = vpop.f32.mrf.mxu0  ;;  %v4894_v62 = vpop.f32.mrf.mxu1  ;;  %v16618_v52 = vld [vmem:[#allocation10 + $0x11a8] ss:$80 sps:$4 sm:$0xff]  }
 0x282   :  { %5218 = vmatprep.mubr.bf16.mxu1 %v18722_v5  ;;  %5147 = vmatprep.subr.bf16.mxu0 %v16557_v53  ;;  %v18754_v2 = vadd.f32 %v4894_v62, %v4853_v59  ;;  %v16623_v53 = vld [vmem:[#allocation10 + $0x70c] ss:$80 sps:$4 sm:$0xff]   ;;  %v16624_v56 = vld [vmem:[#allocation10 + $0x1108] ss:$80 sps:$4 sm:$0xff]  }
 0x283   :  { %v4855_v3 = vpop.f32.mrf.mxu0  ;;  %5188 = vmatprep.subr.bf16.mxu1 %v16560_v55  ;;  %v4896_v11 = vpop.f32.mrf.mxu1  ;;  %v16621_v55 = vld [vmem:[#allocation10 + $0x708] ss:$80 sps:$4 sm:$0xff]   ;;  %v16632_v59 = vld [vmem:[#allocation10 + $0x106c] ss:$80 sps:$4 sm:$0xff]  }
 0x284   :  { %5148 = vmatpush1.bf16.msra.mxu0 %v16555_v57  ;;  %v16629_v57 = vld [vmem:[#allocation10 + $0x66c] ss:$80 sps:$4 sm:$0xff]   ;;  %v16633_v3 = vld [vmem:[#allocation10 + $0x5c8] ss:$80 sps:$4 sm:$0xff]  }
 0x285   :  { %5189 = vmatpush1.bf16.msra.mxu1 %v16558_v60  ;;  %v4856_v13 = vpop.f32.mrf.mxu0  ;;  %5149 = vmatprep.subr.bf16.mxu0 %v16563_v61  ;;  %v4897_v7 = vpop.f32.mrf.mxu1  ;;  %v16627_v60 = vld [vmem:[#allocation10 + $0x668] ss:$80 sps:$4 sm:$0xff]   ;;  %v16635_v62 = vld [vmem:[#allocation10 + $0x5cc] ss:$80 sps:$4 sm:$0xff]  }
 0x286   :  { %5190 = vmatprep.subr.bf16.mxu1 %v16566_v63  ;;  %v16630_v61 = vld [vmem:[#allocation10 + $0x1068] ss:$80 sps:$4 sm:$0xff]   ;;  %v16638_v63 = vld [vmem:[#allocation10 + $0xfcc] ss:$80 sps:$4 sm:$0xff]   ;;  %v16647_v7 = vld [vmem:[#allocation10 + $0x494] ss:$80 sps:$4 sm:$0xff]  }
 0x287   :  { %v16636_v11 = vld [vmem:[#allocation10 + $0xfc8] ss:$80 sps:$4 sm:$0xff]   ;;  %v16644_v13 = vld [vmem:[#allocation10 + $0xf2c] ss:$80 sps:$4 sm:$0xff]  }
 0x288   :  { %5150 = vmatpush1.bf16.msra.mxu0 %v16561_v12  ;;  %v16641_v12 = vld [vmem:[#allocation10 + $0x52c] ss:$80 sps:$4 sm:$0xff]  }
 0x289   :  { %5191 = vmatpush1.bf16.msra.mxu1 %v16564_v14  ;;  %5151 = vmatprep.subr.bf16.mxu0 %v16569_v15  ;;  %v16639_v14 = vld [vmem:[#allocation10 + $0x528] ss:$80 sps:$4 sm:$0xff]  }
 0x28a   :  { %5192 = vmatprep.subr.bf16.mxu1 %v16572_v8  ;;  %v16642_v15 = vld [vmem:[#allocation10 + $0xf28] ss:$80 sps:$4 sm:$0xff]   ;;  %v16650_v8 = vld [vmem:[#allocation10 + $0xe94] ss:$80 sps:$4 sm:$0xff]  }
 0x28c   :  { %5152 = vmatpush1.bf16.msra.mxu0 %v16567_v17  ;;  %v16645_v17 = vld [vmem:[#allocation10 + $0x490] ss:$80 sps:$4 sm:$0xff]  }
 0x28d   :  { %5193 = vmatpush1.bf16.msra.mxu1 %v16570_v18  ;;  %5153 = vmatprep.subr.bf16.mxu0 %v16575_v19  ;;  %v16648_v18 = vld [vmem:[#allocation10 + $0xe90] ss:$80 sps:$4 sm:$0xff]   ;;  %v16653_v19 = vld [vmem:[#allocation10 + $0x3f4] ss:$80 sps:$4 sm:$0xff]  }
 0x28e   :  { %5194 = vmatprep.subr.bf16.mxu1 %v16578_v22 }
 0x290   :  { %5154 = vmatpush1.bf16.msra.mxu0 %v16573_v9  ;;  %v16656_v9 = vld [vmem:[#allocation10 + $0xdf4] ss:$80 sps:$4 sm:$0xff]  }
 0x291   :  { %5195 = vmatpush1.bf16.msra.mxu1 %v16576_v10  ;;  %5155 = vmatprep.subr.bf16.mxu0 %v16581_v24  ;;  %v16651_v24 = vld [vmem:[#allocation10 + $0x3f0] ss:$80 sps:$4 sm:$0xff]  }
 0x292   :  { %5196 = vmatprep.subr.bf16.mxu1 %v16584_v25 }
 0x294   :  { %5156 = vmatpush1.bf16.msra.mxu0 %v16579_v20 }
 0x295   :  { %5197 = vmatpush1.bf16.msra.mxu1 %v16582_v27  ;;  %5157 = vmatprep.subr.bf16.mxu0 %v16587_v28  ;;  %v16654_v27 = vld [vmem:[#allocation10 + $0xdf0] ss:$80 sps:$4 sm:$0xff]   ;;  %v16659_v28 = vld [vmem:[#allocation10 + $0x354] ss:$80 sps:$4 sm:$0xff]  }
 0x296   :  { %5198 = vmatprep.subr.bf16.mxu1 %v16590_v31 }
 0x298   :  { %5158 = vmatpush1.bf16.msra.mxu0 %v16585_v32  ;;  %v16662_v32 = vld [vmem:[#allocation10 + $0xd54] ss:$80 sps:$4 sm:$0xff]  }
 0x299   :  { %5199 = vmatpush1.bf16.msra.mxu1 %v16588_v21  ;;  %5159 = vmatprep.subr.bf16.mxu0 %v16593_v33 }
 0x29a   :  { %5200 = vmatprep.subr.bf16.mxu1 %v16596_v34 }
 0x29c   :  { %5160 = vmatpush1.bf16.msra.mxu0 %v16591_v35  ;;  %v16657_v35 = vld [vmem:[#allocation10 + $0x350] ss:$80 sps:$4 sm:$0xff]  }
 0x29d   :  { %5201 = vmatpush1.bf16.msra.mxu1 %v16594_v36  ;;  %5161 = vmatprep.subr.bf16.mxu0 %v16599_v23  ;;  %v16660_v23 = vld [vmem:[#allocation10 + $0xd50] ss:$80 sps:$4 sm:$0xff]  }
 0x29e   :  { %5202 = vmatprep.subr.bf16.mxu1 %v16602_v29  ;;  %v16665_v29 = vld [vmem:[#allocation10 + $0x2b4] ss:$80 sps:$4 sm:$0xff]  }
 0x2a0   :  { %5162 = vmatpush2.bf16.msra.mxu0 %v16597_v37 }
 0x2a1   :  { %5203 = vmatpush2.bf16.msra.mxu1 %v16600_v39  ;;  %5163 = vmatprep.subr.bf16.mxu0 %v16605_v40  ;;  %v16668_v39 = vld [vmem:[#allocation10 + $0xcb4] ss:$80 sps:$4 sm:$0xff]   ;;  %v16663_v40 = vld [vmem:[#allocation10 + $0x2b0] ss:$80 sps:$4 sm:$0xff]  }
 0x2a2   :  { %5204 = vmatprep.subr.bf16.mxu1 %v16608_v41  ;;  %v16666_v41 = vld [vmem:[#allocation10 + $0xcb0] ss:$80 sps:$4 sm:$0xff]  }
 0x2a4   :  { %5164 = vmatpush2.bf16.msra.mxu0 %v16603_v42  ;;  %v16671_v42 = vld [vmem:[#allocation10 + $0x214] ss:$80 sps:$4 sm:$0xff]  }
 0x2a5   :  { %5205 = vmatpush2.bf16.msra.mxu1 %v16606_v43  ;;  %5165 = vmatprep.subr.bf16.mxu0 %v16611_v45  ;;  %v16674_v43 = vld [vmem:[#allocation10 + $0xc14] ss:$80 sps:$4 sm:$0xff]   ;;  %v16669_v45 = vld [vmem:[#allocation10 + $0x210] ss:$80 sps:$4 sm:$0xff]  }
 0x2a6   :  { %5206 = vmatprep.subr.bf16.mxu1 %v16614_v46  ;;  %v16672_v46 = vld [vmem:[#allocation10 + $0xc10] ss:$80 sps:$4 sm:$0xff]  }
 0x2a8   :  { %5166 = vmatpush2.bf16.msra.mxu0 %v16609_v47  ;;  %v16677_v47 = vld [vmem:[#allocation10 + $0x174] ss:$80 sps:$4 sm:$0xff]  }
 0x2a9   :  { %5207 = vmatpush2.bf16.msra.mxu1 %v16612_v48  ;;  %5167 = vmatprep.subr.bf16.mxu0 %v16617_v49  ;;  %v16680_v48 = vld [vmem:[#allocation10 + $0xb74] ss:$80 sps:$4 sm:$0xff]   ;;  %v16675_v49 = vld [vmem:[#allocation10 + $0x170] ss:$80 sps:$4 sm:$0xff]  }
 0x2aa   :  { %5208 = vmatprep.subr.bf16.mxu1 %v16620_v50  ;;  %v16678_v50 = vld [vmem:[#allocation10 + $0xb70] ss:$80 sps:$4 sm:$0xff]  }
 0x2ac   :  { %5168 = vmatpush2.bf16.msra.mxu0 %v16615_v51  ;;  %v16683_v51 = vld [vmem:[#allocation10 + $0xd4] ss:$80 sps:$4 sm:$0xff]  }
 0x2ad   :  { %5209 = vmatpush2.bf16.msra.mxu1 %v16618_v52  ;;  %5169 = vmatprep.subr.bf16.mxu0 %v16623_v53  ;;  %v16686_v52 = vld [vmem:[#allocation10 + $0xad4] ss:$80 sps:$4 sm:$0xff]   ;;  %v16681_v53 = vld [vmem:[#allocation10 + $0xd0] ss:$80 sps:$4 sm:$0xff]  }
 0x2ae   :  { %5210 = vmatprep.subr.bf16.mxu1 %v16626_v54  ;;  %v16684_v54 = vld [vmem:[#allocation10 + $0xad0] ss:$80 sps:$4 sm:$0xff]  }
 0x2b0   :  { %5170 = vmatpush2.bf16.msra.mxu0 %v16621_v55  ;;  %v16689_v55 = vld [vmem:[#allocation10 + $0x34] ss:$80 sps:$4 sm:$0xff]  }
 0x2b1   :  { %5211 = vmatpush2.bf16.msra.mxu1 %v16624_v56  ;;  %5171 = vmatprep.subr.bf16.mxu0 %v16629_v57  ;;  %v16692_v56 = vld [vmem:[#allocation10 + $0xa34] ss:$80 sps:$4 sm:$0xff]   ;;  %v16687_v57 = vld [vmem:[#allocation10 + $0x30] ss:$80 sps:$4 sm:$0xff]  }
 0x2b2   :  { %5212 = vmatprep.subr.bf16.mxu1 %v16632_v59  ;;  %v16690_v59 = vld [vmem:[#allocation10 + $0xa30] ss:$80 sps:$4 sm:$0xff]  }
 0x2b4   :  { %5172 = vmatpush2.bf16.msra.mxu0 %v16627_v60  ;;  %v16695_v60 = vld [vmem:[#allocation10 + $0x994] ss:$80 sps:$4 sm:$0xff]  }
 0x2b5   :  { %5213 = vmatpush2.bf16.msra.mxu1 %v16630_v61  ;;  %5173 = vmatprep.subr.bf16.mxu0 %v16635_v62  ;;  %v16698_v61 = vld [vmem:[#allocation10 + $0x1394] ss:$80 sps:$4 sm:$0xff]   ;;  %v16693_v62 = vld [vmem:[#allocation10 + $0x990] ss:$80 sps:$4 sm:$0xff]  }
 0x2b6   :  { %5214 = vmatprep.subr.bf16.mxu1 %v16638_v63  ;;  %v16696_v63 = vld [vmem:[#allocation10 + $0x1390] ss:$80 sps:$4 sm:$0xff]  }
 0x2b8   :  { %5174 = vmatpush2.bf16.msra.mxu0 %v16633_v3  ;;  %v16701_v3 = vld [vmem:[#allocation10 + $0x8f4] ss:$80 sps:$4 sm:$0xff]  }
 0x2b9   :  { %5215 = vmatpush2.bf16.msra.mxu1 %v16636_v11  ;;  %5175 = vmatprep.subr.bf16.mxu0 %v16641_v12  ;;  %v16704_v11 = vld [vmem:[#allocation10 + $0x12f4] ss:$80 sps:$4 sm:$0xff]   ;;  %v16699_v12 = vld [vmem:[#allocation10 + $0x8f0] ss:$80 sps:$4 sm:$0xff]  }
 0x2ba   :  { %5216 = vmatprep.subr.bf16.mxu1 %v16644_v13  ;;  %v16702_v13 = vld [vmem:[#allocation10 + $0x12f0] ss:$80 sps:$4 sm:$0xff]  }
 0x2bc   :  { %5176 = vmatpush2.bf16.msra.mxu0 %v16639_v14  ;;  %v16707_v14 = vld [vmem:[#allocation10 + $0x854] ss:$80 sps:$4 sm:$0xff]  }
 0x2bd   :  { %5217 = vmatpush2.bf16.msra.mxu1 %v16642_v15  ;;  %5227 = vmatprep.subr.bf16.mxu0 %v16647_v7  ;;  %v16710_v15 = vld [vmem:[#allocation10 + $0x1254] ss:$80 sps:$4 sm:$0xff]   ;;  %v16705_v7 = vld [vmem:[#allocation10 + $0x850] ss:$80 sps:$4 sm:$0xff]  }
 0x2be   :  { %5268 = vmatprep.subr.bf16.mxu1 %v16650_v8  ;;  %v16708_v8 = vld [vmem:[#allocation10 + $0x1250] ss:$80 sps:$4 sm:$0xff]  }
 0x2bf   :  { %v4933_v22 = vpop.f32.mrf.mxu0  ;;  %5178 = vmatmul.mubr.bf16.vlgmr.msra.gmra.mxu0 %v18720_v4 }
 0x2c0   :  { %v4974_v10 = vpop.f32.mrf.mxu1  ;;  %5219 = vmatmul.mubr.bf16.vlgmr.msra.gmra.mxu1 %v18724_v6  ;;  %5228 = vmatpush1.bf16.msra.mxu0 %v16645_v17  ;;  %v16713_v17 = vld [vmem:[#allocation10 + $0x7b4] ss:$80 sps:$4 sm:$0xff]  }
 0x2c1   :  { %v18758_v25 = vadd.f32 %v4974_v10, %v4933_v22  ;;  %5259 = vmatprep.mubr.bf16.mxu0 %v18717_v1  ;;  %5269 = vmatpush1.bf16.msra.mxu1 %v16648_v18  ;;  %v4935_v20 = vpop.f32.mrf.mxu0  ;;  %v16716_v18 = vld [vmem:[#allocation10 + $0x11b4] ss:$80 sps:$4 sm:$0xff]   ;;  %v16714_v22 = vld [vmem:[#allocation10 + $0x11b0] ss:$80 sps:$4 sm:$0xff]  }
 0x2c2   :  { %5300 = vmatprep.mubr.bf16.mxu1 %v18722_v5  ;;  %v4976_v31 = vpop.f32.mrf.mxu1  ;;  %5229 = vmatprep.subr.bf16.mxu0 %v16653_v19  ;;  %v16711_v19 = vld [vmem:[#allocation10 + $0x7b0] ss:$80 sps:$4 sm:$0xff]   ;;  %v16722_v10 = vld [vmem:[#allocation10 + $0x1114] ss:$80 sps:$4 sm:$0xff]  }
 0x2c3   :  { %v18762_v21 = vadd.f32 %v4976_v31, %v4935_v20  ;;  %v4937_v33 = vpop.f32.mrf.mxu0  ;;  %5270 = vmatprep.subr.bf16.mxu1 %v16656_v9  ;;  %v16719_v9 = vld [vmem:[#allocation10 + $0x714] ss:$80 sps:$4 sm:$0xff]   ;;  %v16720_v20 = vld [vmem:[#allocation10 + $0x1110] ss:$80 sps:$4 sm:$0xff]  }
 0x2c4   :  { %v4978_v34 = vpop.f32.mrf.mxu1  ;;  %5230 = vmatpush1.bf16.msra.mxu0 %v16651_v24  ;;  %v16717_v24 = vld [vmem:[#allocation10 + $0x710] ss:$80 sps:$4 sm:$0xff]   ;;  %v16731_v33 = vld [vmem:[#allocation10 + $0x5d4] ss:$80 sps:$4 sm:$0xff]  }
 0x2c5   :  { %5271 = vmatpush1.bf16.msra.mxu1 %v16654_v27  ;;  %v4938_v36 = vpop.f32.mrf.mxu0  ;;  %5231 = vmatprep.subr.bf16.mxu0 %v16659_v28  ;;  %v16725_v27 = vld [vmem:[#allocation10 + $0x674] ss:$80 sps:$4 sm:$0xff]   ;;  %v16723_v31 = vld [vmem:[#allocation10 + $0x670] ss:$80 sps:$4 sm:$0xff]  }
 0x2c6   :  { %v4979_v37 = vpop.f32.mrf.mxu1  ;;  %5272 = vmatprep.subr.bf16.mxu1 %v16662_v32  ;;  %v16728_v28 = vld [vmem:[#allocation10 + $0x1074] ss:$80 sps:$4 sm:$0xff]   ;;  %v16726_v32 = vld [vmem:[#allocation10 + $0x1070] ss:$80 sps:$4 sm:$0xff]  }
 0x2c7   :  { %v16734_v34 = vld [vmem:[#allocation10 + $0xfd4] ss:$80 sps:$4 sm:$0xff]   ;;  %v16732_v36 = vld [vmem:[#allocation10 + $0xfd0] ss:$80 sps:$4 sm:$0xff]  }
 0x2c8   :  { %5232 = vmatpush1.bf16.msra.mxu0 %v16657_v35  ;;  %v16729_v35 = vld [vmem:[#allocation10 + $0x5d0] ss:$80 sps:$4 sm:$0xff]  }
 0x2c9   :  { %5273 = vmatpush1.bf16.msra.mxu1 %v16660_v23  ;;  %5233 = vmatprep.subr.bf16.mxu0 %v16665_v29  ;;  %v16737_v23 = vld [vmem:[#allocation10 + $0x534] ss:$80 sps:$4 sm:$0xff]   ;;  %v16735_v37 = vld [vmem:[#allocation10 + $0x530] ss:$80 sps:$4 sm:$0xff]  }
 0x2ca   :  { %5274 = vmatprep.subr.bf16.mxu1 %v16668_v39  ;;  %v16740_v29 = vld [vmem:[#allocation10 + $0xf34] ss:$80 sps:$4 sm:$0xff]   ;;  %v16738_v39 = vld [vmem:[#allocation10 + $0xf30] ss:$80 sps:$4 sm:$0xff]  }
 0x2cc   :  { %5234 = vmatpush1.bf16.msra.mxu0 %v16663_v40  ;;  %v16743_v40 = vld [vmem:[#allocation10 + $0x49c] ss:$80 sps:$4 sm:$0xff]  }
 0x2cd   :  { %5275 = vmatpush1.bf16.msra.mxu1 %v16666_v41  ;;  %5235 = vmatprep.subr.bf16.mxu0 %v16671_v42  ;;  %v16746_v41 = vld [vmem:[#allocation10 + $0xe9c] ss:$80 sps:$4 sm:$0xff]   ;;  %v16741_v42 = vld [vmem:[#allocation10 + $0x498] ss:$80 sps:$4 sm:$0xff]  }
 0x2ce   :  { %5276 = vmatprep.subr.bf16.mxu1 %v16674_v43  ;;  %v16744_v43 = vld [vmem:[#allocation10 + $0xe98] ss:$80 sps:$4 sm:$0xff]  }
 0x2d0   :  { %5236 = vmatpush1.bf16.msra.mxu0 %v16669_v45  ;;  %v16749_v45 = vld [vmem:[#allocation10 + $0x3fc] ss:$80 sps:$4 sm:$0xff]  }
 0x2d1   :  { %5277 = vmatpush1.bf16.msra.mxu1 %v16672_v46  ;;  %5237 = vmatprep.subr.bf16.mxu0 %v16677_v47  ;;  %v16752_v47 = vld [vmem:[#allocation10 + $0xdfc] ss:$80 sps:$4 sm:$0xff]  }
 0x2d2   :  { %5278 = vmatprep.subr.bf16.mxu1 %v16680_v48 }
 0x2d4   :  { %5238 = vmatpush1.bf16.msra.mxu0 %v16675_v49  ;;  %v16747_v49 = vld [vmem:[#allocation10 + $0x3f8] ss:$80 sps:$4 sm:$0xff]  }
 0x2d5   :  { %5279 = vmatpush1.bf16.msra.mxu1 %v16678_v50  ;;  %5239 = vmatprep.subr.bf16.mxu0 %v16683_v51 }
 0x2d6   :  { %5280 = vmatprep.subr.bf16.mxu1 %v16686_v52  ;;  %v16750_v52 = vld [vmem:[#allocation10 + $0xdf8] ss:$80 sps:$4 sm:$0xff]  }
 0x2d8   :  { %5240 = vmatpush1.bf16.msra.mxu0 %v16681_v53  ;;  %v16755_v53 = vld [vmem:[#allocation10 + $0x35c] ss:$80 sps:$4 sm:$0xff]  }
 0x2d9   :  { %5281 = vmatpush1.bf16.msra.mxu1 %v16684_v54  ;;  %5241 = vmatprep.subr.bf16.mxu0 %v16689_v55  ;;  %v16758_v55 = vld [vmem:[#allocation10 + $0xd5c] ss:$80 sps:$4 sm:$0xff]  }
 0x2da   :  { %5282 = vmatprep.subr.bf16.mxu1 %v16692_v56 }
 0x2dc   :  { %5242 = vmatpush1.bf16.msra.mxu0 %v16687_v57 }
 0x2dd   :  { %5283 = vmatpush1.bf16.msra.mxu1 %v16690_v59  ;;  %5243 = vmatprep.subr.bf16.mxu0 %v16695_v60  ;;  %v16753_v60 = vld [vmem:[#allocation10 + $0x358] ss:$80 sps:$4 sm:$0xff]  }
 0x2de   :  { %5284 = vmatprep.subr.bf16.mxu1 %v16698_v61 }
 0x2e0   :  { %5244 = vmatpush2.bf16.msra.mxu0 %v16693_v62  ;;  %v16756_v62 = vld [vmem:[#allocation10 + $0xd58] ss:$80 sps:$4 sm:$0xff]  }
 0x2e1   :  { %5285 = vmatpush2.bf16.msra.mxu1 %v16696_v63  ;;  %5245 = vmatprep.subr.bf16.mxu0 %v16701_v3  ;;  %v16761_v63 = vld [vmem:[#allocation10 + $0x2bc] ss:$80 sps:$4 sm:$0xff]  }
 0x2e2   :  { %5286 = vmatprep.subr.bf16.mxu1 %v16704_v11  ;;  %v16764_v11 = vld [vmem:[#allocation10 + $0xcbc] ss:$80 sps:$4 sm:$0xff]  }
 0x2e4   :  { %5246 = vmatpush2.bf16.msra.mxu0 %v16699_v12  ;;  %v16759_v12 = vld [vmem:[#allocation10 + $0x2b8] ss:$80 sps:$4 sm:$0xff]  }
 0x2e5   :  { %5287 = vmatpush2.bf16.msra.mxu1 %v16702_v13  ;;  %5247 = vmatprep.subr.bf16.mxu0 %v16707_v14  ;;  %v16762_v13 = vld [vmem:[#allocation10 + $0xcb8] ss:$80 sps:$4 sm:$0xff]   ;;  %v16767_v14 = vld [vmem:[#allocation10 + $0x21c] ss:$80 sps:$4 sm:$0xff]  }
 0x2e6   :  { %5288 = vmatprep.subr.bf16.mxu1 %v16710_v15  ;;  %v16770_v15 = vld [vmem:[#allocation10 + $0xc1c] ss:$80 sps:$4 sm:$0xff]  }
 0x2e8   :  { %5248 = vmatpush2.bf16.msra.mxu0 %v16705_v7  ;;  %v16765_v7 = vld [vmem:[#allocation10 + $0x218] ss:$80 sps:$4 sm:$0xff]  }
 0x2e9   :  { %5289 = vmatpush2.bf16.msra.mxu1 %v16708_v8  ;;  %5249 = vmatprep.subr.bf16.mxu0 %v16713_v17  ;;  %v16768_v8 = vld [vmem:[#allocation10 + $0xc18] ss:$80 sps:$4 sm:$0xff]   ;;  %v16773_v17 = vld [vmem:[#allocation10 + $0x17c] ss:$80 sps:$4 sm:$0xff]  }
 0x2ea   :  { %5290 = vmatprep.subr.bf16.mxu1 %v16716_v18  ;;  %v16776_v18 = vld [vmem:[#allocation10 + $0xb7c] ss:$80 sps:$4 sm:$0xff]  }
 0x2ec   :  { %5250 = vmatpush2.bf16.msra.mxu0 %v16711_v19  ;;  %v16771_v19 = vld [vmem:[#allocation10 + $0x178] ss:$80 sps:$4 sm:$0xff]  }
 0x2ed   :  { %5291 = vmatpush2.bf16.msra.mxu1 %v16714_v22  ;;  %5251 = vmatprep.subr.bf16.mxu0 %v16719_v9  ;;  %v16774_v22 = vld [vmem:[#allocation10 + $0xb78] ss:$80 sps:$4 sm:$0xff]   ;;  %v16779_v9 = vld [vmem:[#allocation10 + $0xdc] ss:$80 sps:$4 sm:$0xff]  }
 0x2ee   :  { %5292 = vmatprep.subr.bf16.mxu1 %v16722_v10  ;;  %v16782_v10 = vld [vmem:[#allocation10 + $0xadc] ss:$80 sps:$4 sm:$0xff]  }
 0x2f0   :  { %5252 = vmatpush2.bf16.msra.mxu0 %v16717_v24  ;;  %v16777_v24 = vld [vmem:[#allocation10 + $0xd8] ss:$80 sps:$4 sm:$0xff]  }
 0x2f1   :  { %5293 = vmatpush2.bf16.msra.mxu1 %v16720_v20  ;;  %5253 = vmatprep.subr.bf16.mxu0 %v16725_v27  ;;  %v16780_v20 = vld [vmem:[#allocation10 + $0xad8] ss:$80 sps:$4 sm:$0xff]   ;;  %v16785_v27 = vld [vmem:[#allocation10 + $0x3c] ss:$80 sps:$4 sm:$0xff]  }
 0x2f2   :  { %5294 = vmatprep.subr.bf16.mxu1 %v16728_v28  ;;  %v16788_v28 = vld [vmem:[#allocation10 + $0xa3c] ss:$80 sps:$4 sm:$0xff]  }
 0x2f4   :  { %5254 = vmatpush2.bf16.msra.mxu0 %v16723_v31  ;;  %v16783_v31 = vld [vmem:[#allocation10 + $0x38] ss:$80 sps:$4 sm:$0xff]  }
 0x2f5   :  { %5295 = vmatpush2.bf16.msra.mxu1 %v16726_v32  ;;  %5255 = vmatprep.subr.bf16.mxu0 %v16731_v33  ;;  %v16786_v32 = vld [vmem:[#allocation10 + $0xa38] ss:$80 sps:$4 sm:$0xff]   ;;  %v16791_v33 = vld [vmem:[#allocation10 + $0x99c] ss:$80 sps:$4 sm:$0xff]  }
 0x2f6   :  { %5296 = vmatprep.subr.bf16.mxu1 %v16734_v34  ;;  %v16794_v34 = vld [vmem:[#allocation10 + $0x139c] ss:$80 sps:$4 sm:$0xff]  }
 0x2f8   :  { %5256 = vmatpush2.bf16.msra.mxu0 %v16729_v35  ;;  %v16789_v35 = vld [vmem:[#allocation10 + $0x998] ss:$80 sps:$4 sm:$0xff]  }
 0x2f9   :  { %5297 = vmatpush2.bf16.msra.mxu1 %v16732_v36  ;;  %5257 = vmatprep.subr.bf16.mxu0 %v16737_v23  ;;  %v16792_v36 = vld [vmem:[#allocation10 + $0x1398] ss:$80 sps:$4 sm:$0xff]   ;;  %v16797_v23 = vld [vmem:[#allocation10 + $0x8fc] ss:$80 sps:$4 sm:$0xff]  }
 0x2fa   :  { %5298 = vmatprep.subr.bf16.mxu1 %v16740_v29  ;;  %v16800_v29 = vld [vmem:[#allocation10 + $0x12fc] ss:$80 sps:$4 sm:$0xff]  }
 0x2fc   :  { %5258 = vmatpush2.bf16.msra.mxu0 %v16735_v37  ;;  %v16795_v37 = vld [vmem:[#allocation10 + $0x8f8] ss:$80 sps:$4 sm:$0xff]  }
 0x2fd   :  { %5299 = vmatpush2.bf16.msra.mxu1 %v16738_v39  ;;  %5309 = vmatprep.subr.bf16.mxu0 %v16743_v40  ;;  %v16798_v39 = vld [vmem:[#allocation10 + $0x12f8] ss:$80 sps:$4 sm:$0xff]   ;;  %v16803_v40 = vld [vmem:[#allocation10 + $0x85c] ss:$80 sps:$4 sm:$0xff]  }
 0x2fe   :  { %5350 = vmatprep.subr.bf16.mxu1 %v16746_v41  ;;  %v16806_v41 = vld [vmem:[#allocation10 + $0x125c] ss:$80 sps:$4 sm:$0xff]  }
 0x2ff   :  { %v5015_v46 = vpop.f32.mrf.mxu0  ;;  %5260 = vmatmul.mubr.bf16.vlgmr.msra.gmra.mxu0 %v18720_v4 }
 0x300   :  { %v5056_v48 = vpop.f32.mrf.mxu1  ;;  %5301 = vmatmul.mubr.bf16.vlgmr.msra.gmra.mxu1 %v18724_v6  ;;  %5310 = vmatpush1.bf16.msra.mxu0 %v16741_v42  ;;  %v16801_v42 = vld [vmem:[#allocation10 + $0x858] ss:$80 sps:$4 sm:$0xff]  }
 0x301   :  { %v18766_v50 = vadd.f32 %v5056_v48, %v5015_v46  ;;  %5341 = vmatprep.mubr.bf16.mxu0 %v18717_v1  ;;  %5351 = vmatpush1.bf16.msra.mxu1 %v16744_v43  ;;  %v5017_v51 = vpop.f32.mrf.mxu0  ;;  %v16804_v43 = vld [vmem:[#allocation10 + $0x1258] ss:$80 sps:$4 sm:$0xff]   ;;  %v16812_v46 = vld [vmem:[#allocation10 + $0x11bc] ss:$80 sps:$4 sm:$0xff]  }
 0x302   :  { %5382 = vmatprep.mubr.bf16.mxu1 %v18722_v5  ;;  %v5058_v54 = vpop.f32.mrf.mxu1  ;;  %5311 = vmatprep.subr.bf16.mxu0 %v16749_v45  ;;  %v16809_v45 = vld [vmem:[#allocation10 + $0x7bc] ss:$80 sps:$4 sm:$0xff]   ;;  %v16810_v48 = vld [vmem:[#allocation10 + $0x11b8] ss:$80 sps:$4 sm:$0xff]  }
 0x303   :  { %v18770_v56 = vadd.f32 %v5058_v54, %v5017_v51  ;;  %v5019_v57 = vpop.f32.mrf.mxu0  ;;  %5352 = vmatprep.subr.bf16.mxu1 %v16752_v47  ;;  %v16807_v47 = vld [vmem:[#allocation10 + $0x7b8] ss:$80 sps:$4 sm:$0xff]   ;;  %v16818_v51 = vld [vmem:[#allocation10 + $0x111c] ss:$80 sps:$4 sm:$0xff]  }
 0x304   :  { %v5060_v59 = vpop.f32.mrf.mxu1  ;;  %5312 = vmatpush1.bf16.msra.mxu0 %v16747_v49  ;;  %v16815_v49 = vld [vmem:[#allocation10 + $0x71c] ss:$80 sps:$4 sm:$0xff]   ;;  %v16819_v57 = vld [vmem:[#allocation10 + $0x678] ss:$80 sps:$4 sm:$0xff]  }
 0x305   :  { %5353 = vmatpush1.bf16.msra.mxu1 %v16750_v52  ;;  %v5020_v61 = vpop.f32.mrf.mxu0  ;;  %5313 = vmatprep.subr.bf16.mxu0 %v16755_v53  ;;  %v16813_v52 = vld [vmem:[#allocation10 + $0x718] ss:$80 sps:$4 sm:$0xff]   ;;  %v16821_v54 = vld [vmem:[#allocation10 + $0x67c] ss:$80 sps:$4 sm:$0xff]  }
 0x306   :  { %v5061_v3 = vpop.f32.mrf.mxu1  ;;  %5354 = vmatprep.subr.bf16.mxu1 %v16758_v55  ;;  %v16816_v53 = vld [vmem:[#allocation10 + $0x1118] ss:$80 sps:$4 sm:$0xff]   ;;  %v16824_v55 = vld [vmem:[#allocation10 + $0x107c] ss:$80 sps:$4 sm:$0xff]  }
 0x307   :  { %v16822_v59 = vld [vmem:[#allocation10 + $0x1078] ss:$80 sps:$4 sm:$0xff]   ;;  %v16830_v61 = vld [vmem:[#allocation10 + $0xfdc] ss:$80 sps:$4 sm:$0xff]  }
 0x308   :  { %5314 = vmatpush1.bf16.msra.mxu0 %v16753_v60  ;;  %v16827_v60 = vld [vmem:[#allocation10 + $0x5dc] ss:$80 sps:$4 sm:$0xff]  }
 0x309   :  { %5355 = vmatpush1.bf16.msra.mxu1 %v16756_v62  ;;  %5315 = vmatprep.subr.bf16.mxu0 %v16761_v63  ;;  %v16825_v62 = vld [vmem:[#allocation10 + $0x5d8] ss:$80 sps:$4 sm:$0xff]   ;;  %v16833_v3 = vld [vmem:[#allocation10 + $0x53c] ss:$80 sps:$4 sm:$0xff]  }
 0x30a   :  { %5356 = vmatprep.subr.bf16.mxu1 %v16764_v11  ;;  %v16828_v63 = vld [vmem:[#allocation10 + $0xfd8] ss:$80 sps:$4 sm:$0xff]   ;;  %v16836_v11 = vld [vmem:[#allocation10 + $0xf3c] ss:$80 sps:$4 sm:$0xff]  }
 0x30c   :  { %5316 = vmatpush1.bf16.msra.mxu0 %v16759_v12  ;;  %v16831_v12 = vld [vmem:[#allocation10 + $0x538] ss:$80 sps:$4 sm:$0xff]  }
 0x30d   :  { %5357 = vmatpush1.bf16.msra.mxu1 %v16762_v13  ;;  %5317 = vmatprep.subr.bf16.mxu0 %v16767_v14  ;;  %v16834_v13 = vld [vmem:[#allocation10 + $0xf38] ss:$80 sps:$4 sm:$0xff]   ;;  %v16839_v14 = vld [vmem:[#allocation10 + $0x4a4] ss:$80 sps:$4 sm:$0xff]  }
 0x30e   :  { %5358 = vmatprep.subr.bf16.mxu1 %v16770_v15  ;;  %v16842_v15 = vld [vmem:[#allocation10 + $0xea4] ss:$80 sps:$4 sm:$0xff]  }
 0x310   :  { %5318 = vmatpush1.bf16.msra.mxu0 %v16765_v7  ;;  %v16837_v7 = vld [vmem:[#allocation10 + $0x4a0] ss:$80 sps:$4 sm:$0xff]  }
 0x311   :  { %5359 = vmatpush1.bf16.msra.mxu1 %v16768_v8  ;;  %5319 = vmatprep.subr.bf16.mxu0 %v16773_v17  ;;  %v16840_v8 = vld [vmem:[#allocation10 + $0xea0] ss:$80 sps:$4 sm:$0xff]   ;;  %v16845_v17 = vld [vmem:[#allocation10 + $0x404] ss:$80 sps:$4 sm:$0xff]  }
 0x312   :  { %5360 = vmatprep.subr.bf16.mxu1 %v16776_v18 }
 0x314   :  { %5320 = vmatpush1.bf16.msra.mxu0 %v16771_v19  ;;  %v16848_v19 = vld [vmem:[#allocation10 + $0xe04] ss:$80 sps:$4 sm:$0xff]  }
 0x315   :  { %5361 = vmatpush1.bf16.msra.mxu1 %v16774_v22  ;;  %5321 = vmatprep.subr.bf16.mxu0 %v16779_v9  ;;  %v16843_v9 = vld [vmem:[#allocation10 + $0x400] ss:$80 sps:$4 sm:$0xff]  }
 0x316   :  { %5362 = vmatprep.subr.bf16.mxu1 %v16782_v10 }
 0x318   :  { %5322 = vmatpush1.bf16.msra.mxu0 %v16777_v24 }
 0x319   :  { %5363 = vmatpush1.bf16.msra.mxu1 %v16780_v20  ;;  %5323 = vmatprep.subr.bf16.mxu0 %v16785_v27  ;;  %v16846_v20 = vld [vmem:[#allocation10 + $0xe00] ss:$80 sps:$4 sm:$0xff]   ;;  %v16851_v27 = vld [vmem:[#allocation10 + $0x364] ss:$80 sps:$4 sm:$0xff]  }
 0x31a   :  { %5364 = vmatprep.subr.bf16.mxu1 %v16788_v28 }
 0x31c   :  { %5324 = vmatpush1.bf16.msra.mxu0 %v16783_v31  ;;  %v16854_v31 = vld [vmem:[#allocation10 + $0xd64] ss:$80 sps:$4 sm:$0xff]  }
 0x31d   :  { %5365 = vmatpush1.bf16.msra.mxu1 %v16786_v32  ;;  %5325 = vmatprep.subr.bf16.mxu0 %v16791_v33 }
 0x31e   :  { %5366 = vmatprep.subr.bf16.mxu1 %v16794_v34 }
 0x320   :  { %5326 = vmatpush2.bf16.msra.mxu0 %v16789_v35  ;;  %v16849_v35 = vld [vmem:[#allocation10 + $0x360] ss:$80 sps:$4 sm:$0xff]  }
 0x321   :  { %5367 = vmatpush2.bf16.msra.mxu1 %v16792_v36  ;;  %5327 = vmatprep.subr.bf16.mxu0 %v16797_v23  ;;  %v16852_v23 = vld [vmem:[#allocation10 + $0xd60] ss:$80 sps:$4 sm:$0xff]  }
 0x322   :  { %5368 = vmatprep.subr.bf16.mxu1 %v16800_v29  ;;  %v16857_v29 = vld [vmem:[#allocation10 + $0x2c4] ss:$80 sps:$4 sm:$0xff]  }
 0x324   :  { %5328 = vmatpush2.bf16.msra.mxu0 %v16795_v37 }
 0x325   :  { %5369 = vmatpush2.bf16.msra.mxu1 %v16798_v39  ;;  %5329 = vmatprep.subr.bf16.mxu0 %v16803_v40  ;;  %v16860_v39 = vld [vmem:[#allocation10 + $0xcc4] ss:$80 sps:$4 sm:$0xff]   ;;  %v16855_v40 = vld [vmem:[#allocation10 + $0x2c0] ss:$80 sps:$4 sm:$0xff]  }
 0x326   :  { %5370 = vmatprep.subr.bf16.mxu1 %v16806_v41  ;;  %v16858_v41 = vld [vmem:[#allocation10 + $0xcc0] ss:$80 sps:$4 sm:$0xff]  }
 0x328   :  { %5330 = vmatpush2.bf16.msra.mxu0 %v16801_v42  ;;  %v16863_v42 = vld [vmem:[#allocation10 + $0x224] ss:$80 sps:$4 sm:$0xff]  }
 0x329   :  { %5371 = vmatpush2.bf16.msra.mxu1 %v16804_v43  ;;  %5331 = vmatprep.subr.bf16.mxu0 %v16809_v45  ;;  %v16866_v43 = vld [vmem:[#allocation10 + $0xc24] ss:$80 sps:$4 sm:$0xff]   ;;  %v16861_v45 = vld [vmem:[#allocation10 + $0x220] ss:$80 sps:$4 sm:$0xff]  }
 0x32a   :  { %5372 = vmatprep.subr.bf16.mxu1 %v16812_v46  ;;  %v16864_v46 = vld [vmem:[#allocation10 + $0xc20] ss:$80 sps:$4 sm:$0xff]  }
 0x32c   :  { %5332 = vmatpush2.bf16.msra.mxu0 %v16807_v47  ;;  %v16869_v47 = vld [vmem:[#allocation10 + $0x184] ss:$80 sps:$4 sm:$0xff]  }
 0x32d   :  { %5373 = vmatpush2.bf16.msra.mxu1 %v16810_v48  ;;  %5333 = vmatprep.subr.bf16.mxu0 %v16815_v49  ;;  %v16872_v48 = vld [vmem:[#allocation10 + $0xb84] ss:$80 sps:$4 sm:$0xff]   ;;  %v16867_v49 = vld [vmem:[#allocation10 + $0x180] ss:$80 sps:$4 sm:$0xff]  }
 0x32e   :  { %5374 = vmatprep.subr.bf16.mxu1 %v16818_v51  ;;  %v16870_v51 = vld [vmem:[#allocation10 + $0xb80] ss:$80 sps:$4 sm:$0xff]  }
 0x330   :  { %5334 = vmatpush2.bf16.msra.mxu0 %v16813_v52  ;;  %v16875_v52 = vld [vmem:[#allocation10 + $0xe4] ss:$80 sps:$4 sm:$0xff]  }
 0x331   :  { %5375 = vmatpush2.bf16.msra.mxu1 %v16816_v53  ;;  %5335 = vmatprep.subr.bf16.mxu0 %v16821_v54  ;;  %v16878_v53 = vld [vmem:[#allocation10 + $0xae4] ss:$80 sps:$4 sm:$0xff]   ;;  %v16873_v54 = vld [vmem:[#allocation10 + $0xe0] ss:$80 sps:$4 sm:$0xff]  }
 0x332   :  { %5376 = vmatprep.subr.bf16.mxu1 %v16824_v55  ;;  %v16876_v55 = vld [vmem:[#allocation10 + $0xae0] ss:$80 sps:$4 sm:$0xff]  }
 0x334   :  { %5336 = vmatpush2.bf16.msra.mxu0 %v16819_v57  ;;  %v16881_v57 = vld [vmem:[#allocation10 + $0x44] ss:$80 sps:$4 sm:$0xff]  }
 0x335   :  { %5377 = vmatpush2.bf16.msra.mxu1 %v16822_v59  ;;  %5337 = vmatprep.subr.bf16.mxu0 %v16827_v60  ;;  %v16884_v59 = vld [vmem:[#allocation10 + $0xa44] ss:$80 sps:$4 sm:$0xff]   ;;  %v16879_v60 = vld [vmem:[#allocation10 + $0x40] ss:$80 sps:$4 sm:$0xff]  }
 0x336   :  { %5378 = vmatprep.subr.bf16.mxu1 %v16830_v61  ;;  %v16882_v61 = vld [vmem:[#allocation10 + $0xa40] ss:$80 sps:$4 sm:$0xff]  }
 0x338   :  { %5338 = vmatpush2.bf16.msra.mxu0 %v16825_v62  ;;  %v16887_v62 = vld [vmem:[#allocation10 + $0x9a4] ss:$80 sps:$4 sm:$0xff]  }
 0x339   :  { %5379 = vmatpush2.bf16.msra.mxu1 %v16828_v63  ;;  %5339 = vmatprep.subr.bf16.mxu0 %v16833_v3  ;;  %v16890_v63 = vld [vmem:[#allocation10 + $0x13a4] ss:$80 sps:$4 sm:$0xff]   ;;  %v16885_v3 = vld [vmem:[#allocation10 + $0x9a0] ss:$80 sps:$4 sm:$0xff]  }
 0x33a   :  { %5380 = vmatprep.subr.bf16.mxu1 %v16836_v11  ;;  %v16888_v11 = vld [vmem:[#allocation10 + $0x13a0] ss:$80 sps:$4 sm:$0xff]  }
 0x33c   :  { %5340 = vmatpush2.bf16.msra.mxu0 %v16831_v12  ;;  %v16893_v12 = vld [vmem:[#allocation10 + $0x904] ss:$80 sps:$4 sm:$0xff]  }
 0x33d   :  { %5381 = vmatpush2.bf16.msra.mxu1 %v16834_v13  ;;  %5391 = vmatprep.subr.bf16.mxu0 %v16839_v14  ;;  %v16896_v13 = vld [vmem:[#allocation10 + $0x1304] ss:$80 sps:$4 sm:$0xff]   ;;  %v16891_v14 = vld [vmem:[#allocation10 + $0x900] ss:$80 sps:$4 sm:$0xff]  }
 0x33e   :  { %5432 = vmatprep.subr.bf16.mxu1 %v16842_v15  ;;  %v16894_v15 = vld [vmem:[#allocation10 + $0x1300] ss:$80 sps:$4 sm:$0xff]  }
 0x33f   :  { %v5097_v18 = vpop.f32.mrf.mxu0  ;;  %5342 = vmatmul.mubr.bf16.vlgmr.msra.gmra.mxu0 %v18720_v4 }
 0x340   :  { %v5138_v22 = vpop.f32.mrf.mxu1  ;;  %5383 = vmatmul.mubr.bf16.vlgmr.msra.gmra.mxu1 %v18724_v6  ;;  %5392 = vmatpush1.bf16.msra.mxu0 %v16837_v7  ;;  %v16899_v7 = vld [vmem:[#allocation10 + $0x864] ss:$80 sps:$4 sm:$0xff]  }
 0x341   :  { %v18774_v10 = vadd.f32 %v5138_v22, %v5097_v18  ;;  %5423 = vmatprep.mubr.bf16.mxu0 %v18717_v1  ;;  %5433 = vmatpush1.bf16.msra.mxu1 %v16840_v8  ;;  %v5099_v24 = vpop.f32.mrf.mxu0  ;;  %v16902_v8 = vld [vmem:[#allocation10 + $0x1264] ss:$80 sps:$4 sm:$0xff]   ;;  %v16900_v18 = vld [vmem:[#allocation10 + $0x1260] ss:$80 sps:$4 sm:$0xff]  }
 0x342   :  { %5464 = vmatprep.mubr.bf16.mxu1 %v18722_v5  ;;  %v5140_v28 = vpop.f32.mrf.mxu1  ;;  %5393 = vmatprep.subr.bf16.mxu0 %v16845_v17  ;;  %v16897_v17 = vld [vmem:[#allocation10 + $0x860] ss:$80 sps:$4 sm:$0xff]   ;;  %v16908_v22 = vld [vmem:[#allocation10 + $0x11c4] ss:$80 sps:$4 sm:$0xff]  }
 0x343   :  { %v18778_v32 = vadd.f32 %v5140_v28, %v5099_v24  ;;  %v5101_v33 = vpop.f32.mrf.mxu0  ;;  %5434 = vmatprep.subr.bf16.mxu1 %v16848_v19  ;;  %v16905_v19 = vld [vmem:[#allocation10 + $0x7c4] ss:$80 sps:$4 sm:$0xff]   ;;  %v16906_v24 = vld [vmem:[#allocation10 + $0x11c0] ss:$80 sps:$4 sm:$0xff]  }
 0x344   :  { %v5142_v34 = vpop.f32.mrf.mxu1  ;;  %5394 = vmatpush1.bf16.msra.mxu0 %v16843_v9  ;;  %v16903_v9 = vld [vmem:[#allocation10 + $0x7c0] ss:$80 sps:$4 sm:$0xff]   ;;  %v16917_v33 = vld [vmem:[#allocation10 + $0x684] ss:$80 sps:$4 sm:$0xff]  }
 0x345   :  { %5435 = vmatpush1.bf16.msra.mxu1 %v16846_v20  ;;  %v5102_v36 = vpop.f32.mrf.mxu0  ;;  %5395 = vmatprep.subr.bf16.mxu0 %v16851_v27  ;;  %v16911_v20 = vld [vmem:[#allocation10 + $0x724] ss:$80 sps:$4 sm:$0xff]   ;;  %v16909_v28 = vld [vmem:[#allocation10 + $0x720] ss:$80 sps:$4 sm:$0xff]  }
 0x346   :  { %v5143_v37 = vpop.f32.mrf.mxu1  ;;  %5436 = vmatprep.subr.bf16.mxu1 %v16854_v31  ;;  %v16914_v27 = vld [vmem:[#allocation10 + $0x1124] ss:$80 sps:$4 sm:$0xff]   ;;  %v16912_v31 = vld [vmem:[#allocation10 + $0x1120] ss:$80 sps:$4 sm:$0xff]  }
 0x347   :  { %v16920_v34 = vld [vmem:[#allocation10 + $0x1084] ss:$80 sps:$4 sm:$0xff]   ;;  %v16918_v36 = vld [vmem:[#allocation10 + $0x1080] ss:$80 sps:$4 sm:$0xff]  }
 0x348   :  { %5396 = vmatpush1.bf16.msra.mxu0 %v16849_v35  ;;  %v16915_v35 = vld [vmem:[#allocation10 + $0x680] ss:$80 sps:$4 sm:$0xff]  }
 0x349   :  { %5437 = vmatpush1.bf16.msra.mxu1 %v16852_v23  ;;  %5397 = vmatprep.subr.bf16.mxu0 %v16857_v29  ;;  %v16923_v23 = vld [vmem:[#allocation10 + $0x5e4] ss:$80 sps:$4 sm:$0xff]   ;;  %v16921_v37 = vld [vmem:[#allocation10 + $0x5e0] ss:$80 sps:$4 sm:$0xff]  }
 0x34a   :  { %5438 = vmatprep.subr.bf16.mxu1 %v16860_v39  ;;  %v16926_v29 = vld [vmem:[#allocation10 + $0xfe4] ss:$80 sps:$4 sm:$0xff]   ;;  %v16924_v39 = vld [vmem:[#allocation10 + $0xfe0] ss:$80 sps:$4 sm:$0xff]  }
 0x34c   :  { %5398 = vmatpush1.bf16.msra.mxu0 %v16855_v40  ;;  %v16929_v40 = vld [vmem:[#allocation10 + $0x544] ss:$80 sps:$4 sm:$0xff]  }
 0x34d   :  { %5439 = vmatpush1.bf16.msra.mxu1 %v16858_v41  ;;  %5399 = vmatprep.subr.bf16.mxu0 %v16863_v42  ;;  %v16932_v41 = vld [vmem:[#allocation10 + $0xf44] ss:$80 sps:$4 sm:$0xff]   ;;  %v16927_v42 = vld [vmem:[#allocation10 + $0x540] ss:$80 sps:$4 sm:$0xff]  }
 0x34e   :  { %5440 = vmatprep.subr.bf16.mxu1 %v16866_v43  ;;  %v16930_v43 = vld [vmem:[#allocation10 + $0xf40] ss:$80 sps:$4 sm:$0xff]  }
 0x350   :  { %5400 = vmatpush1.bf16.msra.mxu0 %v16861_v45  ;;  %v16935_v45 = vld [vmem:[#allocation10 + $0x4ac] ss:$80 sps:$4 sm:$0xff]  }
 0x351   :  { %5441 = vmatpush1.bf16.msra.mxu1 %v16864_v46  ;;  %5401 = vmatprep.subr.bf16.mxu0 %v16869_v47  ;;  %v16938_v46 = vld [vmem:[#allocation10 + $0xeac] ss:$80 sps:$4 sm:$0xff]   ;;  %v16933_v47 = vld [vmem:[#allocation10 + $0x4a8] ss:$80 sps:$4 sm:$0xff]  }
 0x352   :  { %5442 = vmatprep.subr.bf16.mxu1 %v16872_v48  ;;  %v16936_v48 = vld [vmem:[#allocation10 + $0xea8] ss:$80 sps:$4 sm:$0xff]  }
 0x354   :  { %5402 = vmatpush1.bf16.msra.mxu0 %v16867_v49  ;;  %v16941_v49 = vld [vmem:[#allocation10 + $0x40c] ss:$80 sps:$4 sm:$0xff]  }
 0x355   :  { %5443 = vmatpush1.bf16.msra.mxu1 %v16870_v51  ;;  %5403 = vmatprep.subr.bf16.mxu0 %v16875_v52  ;;  %v16944_v52 = vld [vmem:[#allocation10 + $0xe0c] ss:$80 sps:$4 sm:$0xff]  }
 0x356   :  { %5444 = vmatprep.subr.bf16.mxu1 %v16878_v53 }
 0x358   :  { %5404 = vmatpush1.bf16.msra.mxu0 %v16873_v54  ;;  %v16939_v54 = vld [vmem:[#allocation10 + $0x408] ss:$80 sps:$4 sm:$0xff]  }
 0x359   :  { %5445 = vmatpush1.bf16.msra.mxu1 %v16876_v55  ;;  %5405 = vmatprep.subr.bf16.mxu0 %v16881_v57 }
 0x35a   :  { %5446 = vmatprep.subr.bf16.mxu1 %v16884_v59  ;;  %v16942_v59 = vld [vmem:[#allocation10 + $0xe08] ss:$80 sps:$4 sm:$0xff]  }
 0x35c   :  { %5406 = vmatpush1.bf16.msra.mxu0 %v16879_v60  ;;  %v16947_v60 = vld [vmem:[#allocation10 + $0x36c] ss:$80 sps:$4 sm:$0xff]  }
 0x35d   :  { %5447 = vmatpush1.bf16.msra.mxu1 %v16882_v61  ;;  %5407 = vmatprep.subr.bf16.mxu0 %v16887_v62  ;;  %v16950_v62 = vld [vmem:[#allocation10 + $0xd6c] ss:$80 sps:$4 sm:$0xff]  }
 0x35e   :  { %5448 = vmatprep.subr.bf16.mxu1 %v16890_v63 }
 0x360   :  { %5408 = vmatpush2.bf16.msra.mxu0 %v16885_v3 }
 0x361   :  { %5449 = vmatpush2.bf16.msra.mxu1 %v16888_v11  ;;  %5409 = vmatprep.subr.bf16.mxu0 %v16893_v12  ;;  %v16945_v12 = vld [vmem:[#allocation10 + $0x368] ss:$80 sps:$4 sm:$0xff]  }
 0x362   :  { %5450 = vmatprep.subr.bf16.mxu1 %v16896_v13 }
 0x364   :  { %5410 = vmatpush2.bf16.msra.mxu0 %v16891_v14  ;;  %v16953_v14 = vld [vmem:[#allocation10 + $0x2cc] ss:$80 sps:$4 sm:$0xff]  }
 0x365   :  { %5451 = vmatpush2.bf16.msra.mxu1 %v16894_v15  ;;  %5411 = vmatprep.subr.bf16.mxu0 %v16899_v7  ;;  %v16956_v7 = vld [vmem:[#allocation10 + $0xccc] ss:$80 sps:$4 sm:$0xff]  }
 0x366   :  { %5452 = vmatprep.subr.bf16.mxu1 %v16902_v8  ;;  %v16954_v8 = vld [vmem:[#allocation10 + $0xcc8] ss:$80 sps:$4 sm:$0xff]  }
 0x368   :  { %5412 = vmatpush2.bf16.msra.mxu0 %v16897_v17  ;;  %v16959_v17 = vld [vmem:[#allocation10 + $0x22c] ss:$80 sps:$4 sm:$0xff]  }
 0x369   :  { %5453 = vmatpush2.bf16.msra.mxu1 %v16900_v18  ;;  %5413 = vmatprep.subr.bf16.mxu0 %v16905_v19  ;;  %v16962_v18 = vld [vmem:[#allocation10 + $0xc2c] ss:$80 sps:$4 sm:$0xff]   ;;  %v16957_v19 = vld [vmem:[#allocation10 + $0x228] ss:$80 sps:$4 sm:$0xff]  }
 0x36a   :  { %5454 = vmatprep.subr.bf16.mxu1 %v16908_v22  ;;  %v16960_v22 = vld [vmem:[#allocation10 + $0xc28] ss:$80 sps:$4 sm:$0xff]  }
 0x36c   :  { %5414 = vmatpush2.bf16.msra.mxu0 %v16903_v9  ;;  %v16965_v9 = vld [vmem:[#allocation10 + $0x18c] ss:$80 sps:$4 sm:$0xff]  }
 0x36d   :  { %5455 = vmatpush2.bf16.msra.mxu1 %v16906_v24  ;;  %5415 = vmatprep.subr.bf16.mxu0 %v16911_v20  ;;  %v16968_v24 = vld [vmem:[#allocation10 + $0xb8c] ss:$80 sps:$4 sm:$0xff]   ;;  %v16963_v20 = vld [vmem:[#allocation10 + $0x188] ss:$80 sps:$4 sm:$0xff]  }
 0x36e   :  { %5456 = vmatprep.subr.bf16.mxu1 %v16914_v27  ;;  %v16966_v27 = vld [vmem:[#allocation10 + $0xb88] ss:$80 sps:$4 sm:$0xff]  }
 0x370   :  { %5416 = vmatpush2.bf16.msra.mxu0 %v16909_v28  ;;  %v16971_v28 = vld [vmem:[#allocation10 + $0xec] ss:$80 sps:$4 sm:$0xff]  }
 0x371   :  { %5457 = vmatpush2.bf16.msra.mxu1 %v16912_v31  ;;  %5417 = vmatprep.subr.bf16.mxu0 %v16917_v33  ;;  %v16974_v31 = vld [vmem:[#allocation10 + $0xaec] ss:$80 sps:$4 sm:$0xff]   ;;  %v16969_v33 = vld [vmem:[#allocation10 + $0xe8] ss:$80 sps:$4 sm:$0xff]  }
 0x372   :  { %5458 = vmatprep.subr.bf16.mxu1 %v16920_v34  ;;  %v16972_v34 = vld [vmem:[#allocation10 + $0xae8] ss:$80 sps:$4 sm:$0xff]  }
 0x374   :  { %5418 = vmatpush2.bf16.msra.mxu0 %v16915_v35  ;;  %v16977_v35 = vld [vmem:[#allocation10 + $0x4c] ss:$80 sps:$4 sm:$0xff]  }
 0x375   :  { %5459 = vmatpush2.bf16.msra.mxu1 %v16918_v36  ;;  %5419 = vmatprep.subr.bf16.mxu0 %v16923_v23  ;;  %v16980_v36 = vld [vmem:[#allocation10 + $0xa4c] ss:$80 sps:$4 sm:$0xff]   ;;  %v16975_v23 = vld [vmem:[#allocation10 + $0x48] ss:$80 sps:$4 sm:$0xff]  }
 0x376   :  { %5460 = vmatprep.subr.bf16.mxu1 %v16926_v29  ;;  %v16978_v29 = vld [vmem:[#allocation10 + $0xa48] ss:$80 sps:$4 sm:$0xff]  }
 0x378   :  { %5420 = vmatpush2.bf16.msra.mxu0 %v16921_v37  ;;  %v16983_v37 = vld [vmem:[#allocation10 + $0x9ac] ss:$80 sps:$4 sm:$0xff]  }
 0x379   :  { %5461 = vmatpush2.bf16.msra.mxu1 %v16924_v39  ;;  %5421 = vmatprep.subr.bf16.mxu0 %v16929_v40  ;;  %v16986_v39 = vld [vmem:[#allocation10 + $0x13ac] ss:$80 sps:$4 sm:$0xff]   ;;  %v16981_v40 = vld [vmem:[#allocation10 + $0x9a8] ss:$80 sps:$4 sm:$0xff]  }
 0x37a   :  { %5462 = vmatprep.subr.bf16.mxu1 %v16932_v41  ;;  %v16984_v41 = vld [vmem:[#allocation10 + $0x13a8] ss:$80 sps:$4 sm:$0xff]  }
 0x37c   :  { %5422 = vmatpush2.bf16.msra.mxu0 %v16927_v42  ;;  %v16989_v42 = vld [vmem:[#allocation10 + $0x90c] ss:$80 sps:$4 sm:$0xff]  }
 0x37d   :  { %5463 = vmatpush2.bf16.msra.mxu1 %v16930_v43  ;;  %5473 = vmatprep.subr.bf16.mxu0 %v16935_v45  ;;  %v16992_v43 = vld [vmem:[#allocation10 + $0x130c] ss:$80 sps:$4 sm:$0xff]   ;;  %v16987_v45 = vld [vmem:[#allocation10 + $0x908] ss:$80 sps:$4 sm:$0xff]  }
 0x37e   :  { %5514 = vmatprep.subr.bf16.mxu1 %v16938_v46  ;;  %v16990_v46 = vld [vmem:[#allocation10 + $0x1308] ss:$80 sps:$4 sm:$0xff]  }
 0x37f   :  { %v5179_v51 = vpop.f32.mrf.mxu0  ;;  %5424 = vmatmul.mubr.bf16.vlgmr.msra.gmra.mxu0 %v18720_v4 }
 0x380   :  { %v5220_v53 = vpop.f32.mrf.mxu1  ;;  %5465 = vmatmul.mubr.bf16.vlgmr.msra.gmra.mxu1 %v18724_v6  ;;  %5474 = vmatpush1.bf16.msra.mxu0 %v16933_v47  ;;  %v16995_v47 = vld [vmem:[#allocation10 + $0x86c] ss:$80 sps:$4 sm:$0xff]  }
 0x381   :  { %v18782_v55 = vadd.f32 %v5220_v53, %v5179_v51  ;;  %5505 = vmatprep.mubr.bf16.mxu0 %v18717_v1  ;;  %5515 = vmatpush1.bf16.msra.mxu1 %v16936_v48  ;;  %v5181_v57 = vpop.f32.mrf.mxu0  ;;  %v16948_v1 = vld [vmem:[#allocation10 + $0xd68] ss:$80 sps:$4 sm:$0xff]   ;;  %v16998_v48 = vld [vmem:[#allocation10 + $0x126c] ss:$80 sps:$4 sm:$0xff]  }
 0x382   :  { %5546 = vmatprep.mubr.bf16.mxu1 %v18722_v5  ;;  %v5222_v61 = vpop.f32.mrf.mxu1  ;;  %5475 = vmatprep.subr.bf16.mxu0 %v16941_v49  ;;  %v16951_v5 = vld [vmem:[#allocation10 + $0x2c8] ss:$80 sps:$4 sm:$0xff]   ;;  %v17004_v53 = vld [vmem:[#allocation10 + $0x11cc] ss:$80 sps:$4 sm:$0xff]  }
 0x383   :  { %v18786_v63 = vadd.f32 %v5222_v61, %v5181_v57  ;;  %v5183_v3 = vpop.f32.mrf.mxu0  ;;  %5516 = vmatprep.subr.bf16.mxu1 %v16944_v52  ;;  %v16993_v49 = vld [vmem:[#allocation10 + $0x868] ss:$80 sps:$4 sm:$0xff]   ;;  %v17001_v52 = vld [vmem:[#allocation10 + $0x7cc] ss:$80 sps:$4 sm:$0xff]  }
 0x384   :  { %v5224_v11 = vpop.f32.mrf.mxu1  ;;  %5476 = vmatpush1.bf16.msra.mxu0 %v16939_v54  ;;  %v16996_v51 = vld [vmem:[#allocation10 + $0x1268] ss:$80 sps:$4 sm:$0xff]   ;;  %v17013_v3 = vld [vmem:[#allocation10 + $0x68c] ss:$80 sps:$4 sm:$0xff]  }
 0x385   :  { %5517 = vmatpush1.bf16.msra.mxu1 %v16942_v59  ;;  %v5184_v13 = vpop.f32.mrf.mxu0  ;;  %5477 = vmatprep.subr.bf16.mxu0 %v16947_v60  ;;  %v16999_v54 = vld [vmem:[#allocation10 + $0x7c8] ss:$80 sps:$4 sm:$0xff]   ;;  %v17007_v59 = vld [vmem:[#allocation10 + $0x72c] ss:$80 sps:$4 sm:$0xff]  }
 0x386   :  { %v5225_v15 = vpop.f32.mrf.mxu1  ;;  %5518 = vmatprep.subr.bf16.mxu1 %v16950_v62  ;;  %v17002_v57 = vld [vmem:[#allocation10 + $0x11c8] ss:$80 sps:$4 sm:$0xff]   ;;  %v17010_v60 = vld [vmem:[#allocation10 + $0x112c] ss:$80 sps:$4 sm:$0xff]  }
 0x387   :  { %v17005_v61 = vld [vmem:[#allocation10 + $0x728] ss:$80 sps:$4 sm:$0xff]   ;;  %v17016_v11 = vld [vmem:[#allocation10 + $0x108c] ss:$80 sps:$4 sm:$0xff]  }
 0x388   :  { %5478 = vmatpush1.bf16.msra.mxu0 %v16945_v12  ;;  %v17008_v62 = vld [vmem:[#allocation10 + $0x1128] ss:$80 sps:$4 sm:$0xff]  }
 0x389   :  { %5519 = vmatpush1.bf16.msra.mxu1 %v16948_v1  ;;  %5479 = vmatprep.subr.bf16.mxu0 %v16953_v14  ;;  %v17011_v12 = vld [vmem:[#allocation10 + $0x688] ss:$80 sps:$4 sm:$0xff]   ;;  %v17019_v1 = vld [vmem:[#allocation10 + $0x5ec] ss:$80 sps:$4 sm:$0xff]  }
 0x38a   :  { %5520 = vmatprep.subr.bf16.mxu1 %v16956_v7  ;;  %v17014_v13 = vld [vmem:[#allocation10 + $0x1088] ss:$80 sps:$4 sm:$0xff]   ;;  %v17022_v14 = vld [vmem:[#allocation10 + $0xfec] ss:$80 sps:$4 sm:$0xff]  }
 0x38b   :  { %v17017_v15 = vld [vmem:[#allocation10 + $0x5e8] ss:$80 sps:$4 sm:$0xff]  }
 0x38c   :  { %5480 = vmatpush1.bf16.msra.mxu0 %v16951_v5  ;;  %v17020_v7 = vld [vmem:[#allocation10 + $0xfe8] ss:$80 sps:$4 sm:$0xff]   ;;  %v17025_v5 = vld [vmem:[#allocation10 + $0x54c] ss:$80 sps:$4 sm:$0xff]  }
 0x38d   :  { %5521 = vmatpush1.bf16.msra.mxu1 %v16954_v8  ;;  %5481 = vmatprep.subr.bf16.mxu0 %v16959_v17  ;;  %v17028_v8 = vld [vmem:[#allocation10 + $0xf4c] ss:$80 sps:$4 sm:$0xff]   ;;  %v17023_v17 = vld [vmem:[#allocation10 + $0x548] ss:$80 sps:$4 sm:$0xff]  }
 0x38e   :  { %5522 = vmatprep.subr.bf16.mxu1 %v16962_v18  ;;  %v17026_v18 = vld [vmem:[#allocation10 + $0xf48] ss:$80 sps:$4 sm:$0xff]  }
 0x390   :  { %5482 = vmatpush1.bf16.msra.mxu0 %v16957_v19  ;;  %v5559_v19 = vpack.c.bf16 %v18758_v25, %v18758_v25 }
 0x391   :  { %5523 = vmatpush1.bf16.msra.mxu1 %v16960_v22  ;;  %5483 = vmatprep.subr.bf16.mxu0 %v16965_v9  ;;  %v5560_v22 = vpack.c.bf16 %v18762_v21, %v18762_v21  ;;  %v5561_v9 = vpack.c.bf16 %v18766_v50, %v18766_v50  ;;  %v5558_v21 = vpack.c.bf16 %v18754_v2, %v18754_v2 }
 0x392   :  { %5524 = vmatprep.subr.bf16.mxu1 %v16968_v24  ;;  %v5562_v24 = vpack.c.bf16 %v18770_v56, %v18770_v56  ;;  %v5590_v25 = vsel %vm881_vm2, %v5559_v19, 0  ;;  %v5557_v2 = vpack.c.bf16 %v18750_v58, %v18750_v58  ;;  %v5563_v58 = vpack.c.bf16 %v18774_v10, %v18774_v10  ;;  %v6252_v19 = vld [vmem:[%s20063_s5 + $0xf8] sm:$0xff] }
 0x393   :  { %v5596_v50 = vsel %vm881_vm2, %v5561_v9, 0  ;;  %v17033_v9 = vld [vmem:[%s20062_s4 + $0x20] sm:$0x7f]  }
 0x394   :  { %5484 = vmatpush1.bf16.msra.mxu0 %v16963_v20  ;;  %v5556_v20 = vpack.c.bf16 %v18746_v44, %v18746_v44 }
 0x395   :  { %5525 = vmatpush1.bf16.msra.mxu1 %v16966_v27  ;;  %5485 = vmatprep.subr.bf16.mxu0 %v16971_v28 }
 0x396   :  { %5526 = vmatprep.subr.bf16.mxu1 %v16974_v31 }
 0x398   :  { %5486 = vmatpush1.bf16.msra.mxu0 %v16969_v33 }
 0x399   :  { %5527 = vmatpush1.bf16.msra.mxu1 %v16972_v34  ;;  %5487 = vmatprep.subr.bf16.mxu0 %v16977_v35 }
 0x39a   :  { %5528 = vmatprep.subr.bf16.mxu1 %v16980_v36 }
 0x39c   :  { %5488 = vmatpush1.bf16.msra.mxu0 %v16975_v23  ;;  %v5564_v23 = vpack.c.bf16 %v18778_v32, %v18778_v32 }
 0x39d   :  { %5529 = vmatpush1.bf16.msra.mxu1 %v16978_v29  ;;  %5489 = vmatprep.subr.bf16.mxu0 %v16983_v37  ;;  %v5566_v29 = vpack.c.bf16 %v18786_v63, %v18786_v63  ;;  %v17030_v63 = vld [vmem:[%s20062_s4] sm:$0x7f]   ;;  %v5565_v37 = vpack.c.bf16 %v18782_v55, %v18782_v55  ;;  %v17031_v55 = vld [vmem:[%s20062_s4 + $0x10] sm:$0x7f]  }
 0x39e   :  { %5530 = vmatprep.subr.bf16.mxu1 %v16986_v39  ;;  %v5805_v39 = vsel %vm881_vm2, %v5563_v58, 0  ;;  %v6248_v58 = vld [vmem:[%s20063_s5 + $0xd8] sm:$0xff] }
 0x3a0   :  { %5490 = vmatpush2.bf16.msra.mxu0 %v16981_v40 }
 0x3a1   :  { %5531 = vmatpush2.bf16.msra.mxu1 %v16984_v41  ;;  %5491 = vmatprep.subr.bf16.mxu0 %v16989_v42  ;;  %v5811_v42 = vsel %vm881_vm2, %v5565_v37, 0  ;;  %v6231_v37 = vld [vmem:[%s20063_s5 + $0x50] sm:$0xff] }
 0x3a2   :  { %5532 = vmatprep.subr.bf16.mxu1 %v16992_v43 }
 0x3a4   :  { %5492 = vmatpush2.bf16.msra.mxu0 %v16987_v45  ;;  %v17032_v45 = vld [vmem:[%s20062_s4 + $0x18] sm:$0x7f]  }
 0x3a5   :  { %5533 = vmatpush2.bf16.msra.mxu1 %v16990_v46  ;;  %5493 = vmatprep.subr.bf16.mxu0 %v16995_v47 }
 0x3a6   :  { %5534 = vmatprep.subr.bf16.mxu1 %v16998_v48 }
 0x3a8   :  { %5494 = vmatpush2.bf16.msra.mxu0 %v16993_v49 }
 0x3a9   :  { %5535 = vmatpush2.bf16.msra.mxu1 %v16996_v51  ;;  %5495 = vmatprep.subr.bf16.mxu0 %v17001_v52 }
 0x3aa   :  { %5536 = vmatprep.subr.bf16.mxu1 %v17004_v53 }
 0x3ac   :  { %5496 = vmatpush2.bf16.msra.mxu0 %v16999_v54 }
 0x3ad   :  { %5537 = vmatpush2.bf16.msra.mxu1 %v17002_v57  ;;  %5497 = vmatprep.subr.bf16.mxu0 %v17007_v59 }
 0x3ae   :  { %5538 = vmatprep.subr.bf16.mxu1 %v17010_v60 }
 0x3b0   :  { %5498 = vmatpush2.bf16.msra.mxu0 %v17005_v61 }
 0x3b1   :  { %5539 = vmatpush2.bf16.msra.mxu1 %v17008_v62  ;;  %5499 = vmatprep.subr.bf16.mxu0 %v17013_v3 }
 0x3b2   :  { %5540 = vmatprep.subr.bf16.mxu1 %v17016_v11 }
 0x3b4   :  { %5500 = vmatpush2.bf16.msra.mxu0 %v17011_v12 }
 0x3b5   :  { %5541 = vmatpush2.bf16.msra.mxu1 %v17014_v13  ;;  %5501 = vmatprep.subr.bf16.mxu0 %v17019_v1 }
 0x3b6   :  { %5542 = vmatprep.subr.bf16.mxu1 %v17022_v14 }
 0x3b8   :  { %5502 = vmatpush2.bf16.msra.mxu0 %v17017_v15 }
 0x3b9   :  { %5543 = vmatpush2.bf16.msra.mxu1 %v17020_v7  ;;  %5503 = vmatprep.subr.bf16.mxu0 %v17025_v5 }
 0x3ba   :  { %5544 = vmatprep.subr.bf16.mxu1 %v17028_v8 }
 0x3bc   :  { %5504 = vmatpush2.bf16.msra.mxu0 %v17023_v17 }
 0x3bd   :  { %5545 = vmatpush2.bf16.msra.mxu1 %v17026_v18  ;;  %14917 = vmatprep.subr.msk.bf16.mxu0 %vm881_vm2, %v5560_v22 }
 0x3be   :  { %14919 = vmatprep.subr.msk.bf16.mxu1 %vm881_vm2, %v5562_v24  ;;  %v6236_v24 = vld [vmem:[%s20063_s5 + $0x78] sm:$0xff] }
 0x3bf   :  { %v5261_v27 = vpop.f32.mrf.mxu0  ;;  %5506 = vmatmul.mubr.bf16.vlgmr.msra.gmra.mxu0 %v18720_v4  ;;  %v5555_v4 = vpack.c.bf16 %v18742_v38, %v18742_v38  ;;  %v5702_v38 = vsel %vm881_vm2, %v5557_v2, 0 }
 0x3c0   :  { %v5302_v56 = vpop.f32.mrf.mxu1  ;;  %5547 = vmatmul.mubr.bf16.vlgmr.msra.gmra.mxu1 %v18724_v6  ;;  %5616 = vmatpush1.bf16.msra.mxu0 %v5590_v25  ;;  %v17029_v6 = vld [vmem:[%s20062_s4 + $0x8] sm:$0x7f]   ;;  %v6235_v25 = vld [vmem:[%s20063_s5 + $0x70] sm:$0xff] }
 0x3c1   :  { %5659 = vmatpush1.bf16.msra.mxu1 %v5596_v50  ;;  %v5263_v28 = vpop.f32.mrf.mxu0  ;;  %14922 = vmatprep.subr.msk.bf16.mxu0 %vm881_vm2, %v5556_v20  ;;  %v5696_v36 = vsel %vm881_vm2, %v5555_v4, 0  ;;  %v5303_v40 = vadd.f32 %v5302_v56, %v5261_v27  ;;  %v6251_v20 = vld [vmem:[%s20063_s5 + $0xf0] sm:$0xff] }
 0x3c2   :  { %v5304_v31 = vpop.f32.mrf.mxu1  ;;  %14924 = vmatprep.subr.msk.bf16.mxu1 %vm881_vm2, %v5558_v21  ;;  %5633 = vmatprep.mubr.bf16.mxu0 %v18523_v0 }
 0x3c3   :  { %v5265_v44 = vpop.f32.mrf.mxu0  ;;  %5676 = vmatprep.mubr.bf16.mxu1 %v18523_v0  ;;  %v5305_v32 = vadd.f32 %v5304_v31, %v5263_v28  ;;  %v5567_v10 = vpack.c.bf16 %v5303_v40, %v5303_v40  ;;  %v6230_v40 = vld [vmem:[%s20063_s5 + $0x48] sm:$0xff] }
 0x3c4   :  { %v5306_v33 = vpop.f32.mrf.mxu1 }
 0x3c5   :  { %v5266_v34 = vpop.f32.mrf.mxu0  ;;  %v5568_v41 = vpack.c.bf16 %v5305_v32, %v5305_v32  ;;  %v5922_v43 = vsel %vm881_vm2, %v5567_v10, 0  ;;  %v6232_v32 = vld [vmem:[%s20063_s5 + $0x58] sm:$0xff] }
 0x3c6   :  { %v5307_v35 = vpop.f32.mrf.mxu1  ;;  %v6244_v10 = vld [vmem:[%s20063_s5 + $0xb8] sm:$0xff] }
 0x3c7   :  { %14918 = vmatmul.mubr.msk.bf16.vlgmr.msra.gmra.mxu0 %vm5585_vm4, %v17029_v6 }
 0x3c8   :  { %14920 = vmatmul.mubr.msk.bf16.vlgmr.msra.gmra.mxu1 %vm5585_vm4, %v17029_v6  ;;  %5722 = vmatpush1.bf16.msra.mxu0 %v5696_v36  ;;  %v6250_v36 = vld [vmem:[%s20063_s5 + $0xe8] sm:$0xff] }
 0x3c9   :  { %5765 = vmatpush1.bf16.msra.mxu1 %v5702_v38  ;;  %14929 = vmatprep.subr.msk.bf16.mxu0 %vm881_vm2, %v5564_v23  ;;  %v6234_v23 = vld [vmem:[%s20063_s5 + $0x68] sm:$0xff]  ;;  %v6249_v38 = vld [vmem:[%s20063_s5 + $0xe0] sm:$0xff] }
 0x3ca   :  { %14931 = vmatprep.subr.msk.bf16.mxu1 %vm881_vm2, %v5566_v29  ;;  %5739 = vmatprep.mubr.bf16.mxu0 %v18523_v0  ;;  %v6233_v29 = vld [vmem:[%s20063_s5 + $0x60] sm:$0xff] }
 0x3cb   :  { %5782 = vmatprep.mubr.bf16.mxu1 %v18523_v0 }
 0x3cf   :  { %14923 = vmatmul.mubr.msk.bf16.vlgmr.msra.gmra.mxu0 %vm5585_vm4, %v17030_v63 }
 0x3d0   :  { %14925 = vmatmul.mubr.msk.bf16.vlgmr.msra.gmra.mxu1 %vm5585_vm4, %v17030_v63  ;;  %5831 = vmatpush1.bf16.msra.mxu0 %v5805_v39  ;;  %v6247_v63 = vld [vmem:[%s20063_s5 + $0xd0] sm:$0xff]  ;;  %v6246_v39 = vld [vmem:[%s20063_s5 + $0xc8] sm:$0xff] }
 0x3d1   :  { %5874 = vmatpush1.bf16.msra.mxu1 %v5811_v42  ;;  %14936 = vmatprep.subr.msk.bf16.mxu0 %vm881_vm2, %v5568_v41  ;;  %v6245_v41 = vld [vmem:[%s20063_s5 + $0xc0] sm:$0xff] }
 0x3d2   :  { %5848 = vmatprep.mubr.bf16.mxu0 %v18523_v0  ;;  %5891 = vmatprep.mubr.bf16.mxu1 %v18523_v0  ;;  %v6229_v42 = vld [vmem:[%s20063_s5 + $0x40] sm:$0xff] }
 0x3d7   :  { %14930 = vmatmul.mubr.msk.bf16.vlgmr.msra.gmra.mxu0 %vm5585_vm4, %v17031_v55 }
 0x3d8   :  { %5948 = vmatpush1.bf16.msra.mxu0 %v5922_v43  ;;  %14932 = vmatmul.mubr.msk.bf16.vlgmr.msra.gmra.mxu1 %vm5585_vm4, %v17031_v55  ;;  %v6228_v55 = vld [vmem:[%s20063_s5 + $0x38] sm:$0xff]  ;;  %v6243_v43 = vld [vmem:[%s20063_s5 + $0xb0] sm:$0xff] }
 0x3d9   :  { %5965 = vmatprep.mubr.bf16.mxu0 %v18523_v0  ;;  %6008 = vmatprep.mubr.bf16.mxu1 %v18523_v0 }
 0x3df   :  { %14937 = vmatmul.mubr.msk.bf16.vlgmr.msra.gmra.mxu0 %vm5585_vm4, %v17032_v45 }
 0x3e0   :  { %6082 = vmatprep.mubr.bf16.mxu0 %v18523_v0 }
 0x3ff   :  { %v5343_v46 = vpop.f32.mrf.mxu0 }
 0x400   :  { %v5384_v47 = vpop.f32.mrf.mxu1 }
 0x401   :  { %v5385_v48 = vadd.f32 %v5384_v47, %v5343_v46  ;;  %v5345_v49 = vpop.f32.mrf.mxu0  ;;  %v6242_v46 = vld [vmem:[%s20063_s5 + $0xa8] sm:$0xff] }
 0x402   :  { %v5386_v51 = vpop.f32.mrf.mxu1  ;;  %v6226_v47 = vld [vmem:[%s20063_s5 + $0x28] sm:$0xff] }
 0x403   :  { %v5569_v52 = vpack.c.bf16 %v5385_v48, %v5385_v48  ;;  %v5387_v53 = vadd.f32 %v5386_v51, %v5345_v49  ;;  %v5347_v54 = vpop.f32.mrf.mxu0  ;;  %v6241_v48 = vld [vmem:[%s20063_s5 + $0xa0] sm:$0xff]  ;;  %v6240_v51 = vld [vmem:[%s20063_s5 + $0x98] sm:$0xff] }
 0x404   :  { %v5388_v57 = vpop.f32.mrf.mxu1  ;;  %v6225_v49 = vld [vmem:[%s20063_s5 + $0x20] sm:$0xff]  ;;  %v6283_v54 = vld [vmem:[%s20063_s5 + $0x1f0] sm:$0xff] }
 0x405   :  { %v5570_v59 = vpack.c.bf16 %v5387_v53, %v5387_v53  ;;  %v5348_v60 = vpop.f32.mrf.mxu0  ;;  %v5928_v62 = vsel %vm881_vm2, %v5569_v52, 0  ;;  %v6284_v52 = vld [vmem:[%s20063_s5 + $0x1f8] sm:$0xff] }
 0x406   :  { %v5389_v61 = vpop.f32.mrf.mxu1  ;;  %v6268_v53 = vld [vmem:[%s20063_s5 + $0x178] sm:$0xff]  ;;  %v6239_v60 = vld [vmem:[%s20063_s5 + $0x90] sm:$0xff] }
 0x407   :  { %14938 = vmatprep.subr.msk.bf16.mxu1 %vm881_vm2, %v5570_v59  ;;  %v6224_v57 = vld [vmem:[%s20063_s5 + $0x18] sm:$0xff]  ;;  %v6267_v59 = vld [vmem:[%s20063_s5 + $0x170] sm:$0xff] }
 0x408   :  { %5991 = vmatpush1.bf16.msra.mxu1 %v5928_v62  ;;  %v6223_v61 = vld [vmem:[%s20063_s5 + $0x10] sm:$0xff]  ;;  %v6238_v62 = vld [vmem:[%s20063_s5 + $0x88] sm:$0xff] }
 0x40b   :  { %14939 = vmatmul.mubr.msk.bf16.vlgmr.msra.gmra.mxu1 %vm5585_vm4, %v17032_v45  ;;  %v6227_v45 = vld [vmem:[%s20063_s5 + $0x30] sm:$0xff] }
 0x40c   :  { %6125 = vmatprep.mubr.bf16.mxu1 %v18523_v0 }
 0x43f   :  { %v5425_v3 = vpop.f32.mrf.mxu0 }
 0x440   :  { %v5466_v11 = vpop.f32.mrf.mxu1 }
 0x441   :  { %v5467_v12 = vadd.f32 %v5466_v11, %v5425_v3  ;;  %v5427_v13 = vpop.f32.mrf.mxu0  ;;  %v6222_v3 = vld [vmem:[%s20063_s5 + $0x8] sm:$0xff]  ;;  %v6237_v11 = vld [vmem:[%s20063_s5 + $0x80] sm:$0xff] }
 0x442   :  { %v5468_v1 = vpop.f32.mrf.mxu1 }
 0x443   :  { %v5571_v14 = vpack.c.bf16 %v5467_v12, %v5467_v12  ;;  %v5469_v15 = vadd.f32 %v5468_v1, %v5427_v13  ;;  %v5429_v7 = vpop.f32.mrf.mxu0  ;;  %v6221_v12 = vld [vmem:[%s20063_s5] sm:$0xff]  ;;  %v6282_v1 = vld [vmem:[%s20063_s5 + $0x1e8] sm:$0xff] }
 0x444   :  { %v5470_v5 = vpop.f32.mrf.mxu1  ;;  %v6265_v7 = vld [vmem:[%s20063_s5 + $0x160] sm:$0xff] }
 0x445   :  { %v5572_v8 = vpack.c.bf16 %v5469_v15, %v5469_v15  ;;  %v5430_v17 = vpop.f32.mrf.mxu0  ;;  %v6039_v22 = vsel %vm881_vm2, %v5571_v14, 0  ;;  %v6266_v14 = vld [vmem:[%s20063_s5 + $0x168] sm:$0xff]  ;;  %v6281_v15 = vld [vmem:[%s20063_s5 + $0x1e0] sm:$0xff] }
 0x446   :  { %v5471_v18 = vpop.f32.mrf.mxu1  ;;  %v6264_v17 = vld [vmem:[%s20063_s5 + $0x158] sm:$0xff] }
 0x447   :  { %14943 = vmatprep.subr.msk.bf16.mxu0 %vm881_vm2, %v5572_v8  ;;  %v6280_v8 = vld [vmem:[%s20063_s5 + $0x1d8] sm:$0xff]  ;;  %v6279_v18 = vld [vmem:[%s20063_s5 + $0x1d0] sm:$0xff] }
 0x448   :  { %6065 = vmatpush1.bf16.msra.mxu0 %v6039_v22 }
 0x449   :  { %15831 = vmatprep.subr.mxu0 %v6252_v19  ;;  %v6263_v19 = vld [vmem:[%s20063_s5 + $0x150] sm:$0xff] }
 0x44b   :  { %14944 = vmatmul.mubr.msk.bf16.vlgmr.msra.gmra.mxu0 %vm5585_vm4, %v17033_v9 }
 0x44c   :  { %15832 = vmatpush3.msra.mxu0 %v6236_v24  ;;  %v6262_v24 = vld [vmem:[%s20063_s5 + $0x148] sm:$0xff] }
 0x44d   :  { %15833 = vmatprep.subr.mxu0 %v6251_v20  ;;  %v6277_v20 = vld [vmem:[%s20063_s5 + $0x1c0] sm:$0xff] }
 0x44e   :  { %15834 = vmatpush3.msra.mxu0 %v6235_v25  ;;  %v6261_v25 = vld [vmem:[%s20063_s5 + $0x140] sm:$0xff] }
 0x44f   :  { %15835 = vmatprep.subr.mxu0 %v6250_v36  ;;  %v6271_v36 = vld [vmem:[%s20063_s5 + $0x190] sm:$0xff] }
 0x450   :  { %15836 = vmatpush3.msra.mxu0 %v6234_v23  ;;  %v6255_v23 = vld [vmem:[%s20063_s5 + $0x110] sm:$0xff] }
 0x451   :  { %15837 = vmatprep.subr.mxu0 %v6249_v38  ;;  %v6270_v38 = vld [vmem:[%s20063_s5 + $0x188] sm:$0xff] }
 0x452   :  { %15838 = vmatpush3.msra.mxu0 %v6233_v29  ;;  %v6254_v29 = vld [vmem:[%s20063_s5 + $0x108] sm:$0xff] }
 0x453   :  { %15839 = vmatprep.subr.mxu0 %v6248_v58 }
 0x454   :  { %15840 = vmatpush3.msra.mxu0 %v6232_v32  ;;  %v6269_v32 = vld [vmem:[%s20063_s5 + $0x180] sm:$0xff] }
 0x455   :  { %15841 = vmatprep.subr.mxu0 %v6247_v63  ;;  %v6253_v63 = vld [vmem:[%s20063_s5 + $0x100] sm:$0xff] }
 0x456   :  { %15842 = vmatpush3.msra.mxu0 %v6231_v37 }
 0x457   :  { %15843 = vmatprep.subr.mxu0 %v6246_v39 }
 0x458   :  { %15844 = vmatpush3.msra.mxu0 %v6230_v40 }
 0x459   :  { %15845 = vmatprep.subr.mxu0 %v6245_v41 }
 0x45a   :  { %15846 = vmatpush3.msra.mxu0 %v6229_v42 }
 0x45b   :  { %15847 = vmatprep.subr.mxu0 %v6244_v10 }
 0x45c   :  { %15848 = vmatpush3.msra.mxu0 %v6228_v55 }
 0x45d   :  { %15849 = vmatprep.subr.mxu0 %v6243_v43 }
 0x45e   :  { %15850 = vmatpush3.msra.mxu0 %v6227_v45 }
 0x45f   :  { %15851 = vmatprep.subr.mxu0 %v6242_v46 }
 0x460   :  { %15852 = vmatpush3.msra.mxu0 %v6226_v47 }
 0x461   :  { %15853 = vmatprep.subr.mxu0 %v6241_v48 }
 0x462   :  { %15854 = vmatpush3.msra.mxu0 %v6225_v49 }
 0x463   :  { %15855 = vmatprep.subr.mxu0 %v6240_v51 }
 0x464   :  { %15856 = vmatpush3.msra.mxu0 %v6224_v57 }
 0x465   :  { %15857 = vmatprep.subr.mxu0 %v6239_v60 }
 0x466   :  { %15858 = vmatpush3.msra.mxu0 %v6223_v61 }
 0x467   :  { %15859 = vmatprep.subr.mxu0 %v6238_v62 }
 0x468   :  { %15860 = vmatpush3.msra.mxu0 %v6222_v3 }
 0x469   :  { %15861 = vmatprep.subr.mxu0 %v6237_v11 }
 0x46a   :  { %15862 = vmatpush3.msra.mxu0 %v6221_v12 }
 0x47f   :  { %v5507_v27 = vpop.f32.mrf.mxu0 }
 0x480   :  { %v5548_v21 = vpop.f32.mrf.mxu1 }
 0x481   :  { %v5549_v50 = vadd.f32 %v5548_v21, %v5507_v27  ;;  %v5509_v56 = vpop.f32.mrf.mxu0  ;;  %v6276_v21 = vld [vmem:[%s20063_s5 + $0x1b8] sm:$0xff] }
 0x482   :  { %v5550_v28 = vpop.f32.mrf.mxu1 }
 0x483   :  { %v5573_v31 = vpack.c.bf16 %v5549_v50, %v5549_v50  ;;  %v5551_v4 = vadd.f32 %v5550_v28, %v5509_v56  ;;  %v5511_v44 = vpop.f32.mrf.mxu0  ;;  %v6260_v50 = vld [vmem:[%s20063_s5 + $0x138] sm:$0xff]  ;;  %v6275_v56 = vld [vmem:[%s20063_s5 + $0x1b0] sm:$0xff] }
 0x484   :  { %v5552_v6 = vpop.f32.mrf.mxu1  ;;  %v6259_v28 = vld [vmem:[%s20063_s5 + $0x130] sm:$0xff]  ;;  %v6258_v44 = vld [vmem:[%s20063_s5 + $0x128] sm:$0xff] }
 0x485   :  { %v5574_v2 = vpack.c.bf16 %v5551_v4, %v5551_v4  ;;  %v5512_v33 = vpop.f32.mrf.mxu0  ;;  %v6045_v35 = vsel %vm881_vm2, %v5573_v31, 0  ;;  %v6274_v4 = vld [vmem:[%s20063_s5 + $0x1a8] sm:$0xff]  ;;  %v6273_v6 = vld [vmem:[%s20063_s5 + $0x1a0] sm:$0xff] }
 0x486   :  { %v5553_v34 = vpop.f32.mrf.mxu1  ;;  %v6272_v33 = vld [vmem:[%s20063_s5 + $0x198] sm:$0xff] }
 0x487   :  { %14945 = vmatprep.subr.msk.bf16.mxu1 %vm881_vm2, %v5574_v2  ;;  %v18977_v13 = vpop.f32.mrf.mxu0  ;;  %v6257_v2 = vld [vmem:[%s20063_s5 + $0x120] sm:$0xff]  ;;  %v6256_v34 = vld [vmem:[%s20063_s5 + $0x118] sm:$0xff] }
 0x488   :  { %6108 = vmatpush1.bf16.msra.mxu1 %v6045_v35  ;;  %v19067_v62 = vpop.f32.mrf.mxu1 }
 0x489   :  { %15866 = vmatprep.subr.mxu1 %v6284_v52  ;;  %v18991_v5 = vpop.f32.mrf.mxu0 }
 0x48b   :  { %14946 = vmatmul.mubr.msk.bf16.vlgmr.msra.gmra.mxu1 %vm5585_vm4, %v17033_v9  ;;  %v5639_v22 = vpop.f32.mrf.mxu0  ;;  %v6278_v9 = vld [vmem:[%s20063_s5 + $0x1c8] sm:$0xff]  ;;  %s18526_s5 = smov [#allocation2]  }
 0x48c   :  { %15867 = vmatpush3.msra.mxu1 %v6268_v53  ;;  %s198_s4 = sshll.u32 %s18526_s5, 4  ;;  %s199_s4 = int_to_ptr.vmem [resolvable:$true] %s198_s4 }
 0x48d   :  { %15868 = vmatprep.subr.mxu1 %v6283_v54  ;;  %v5641_v27 = vpop.f32.mrf.mxu0  ;;  %s18458_s8 = scalar_lea.vmem %s199_s4, 81920  ;;  %p18463_p0 = scmp.lt.s32.totalorder %s199_s4, %s199_s4 }
 0x48e   :  { %15869 = vmatpush3.msra.mxu1 %v6267_v59  ;;  %p18459_p13 = scmp.ne.s32.totalorder %s199_s4, %s18458_s8  ;;  %p18464_p1 = scmp.lt.s32.totalorder %s18458_s8, %s18458_s8 }
 0x48f   :  { %15870 = vmatprep.subr.mxu1 %v6282_v1  ;;  %v5741_v31 = vpop.f32.mrf.mxu0 }
 0x490   :  { %15871 = vmatpush3.msra.mxu1 %v6266_v14  ;;  %v5742_v43 = vadd.f32 %v5741_v31, %v18977_v13  ;;  %p18465_p2 = por %p18464_p1, %p18463_p0 }
 0x491   :  { %15872 = vmatprep.subr.mxu1 %v6281_v15  ;;  %v5743_v35 = vpop.f32.mrf.mxu0  ;;  %v5680_v15 = vpop.f32.mrf.mxu1 }
 0x492   :  { %15873 = vmatpush3.msra.mxu1 %v6265_v7  ;;  %v5744_v45 = vadd.f32 %v5743_v35, %v18991_v5  ;;  %p18466_p3 = pnand %p18465_p2, %p18459_p13 }
 0x493   :  { %15874 = vmatprep.subr.mxu1 %v6280_v8  ;;  %v5745_v58 = vpop.f32.mrf.mxu0 }
 0x494   :  { %15875 = vmatpush3.msra.mxu1 %v6264_v17  ;;  %v5746_v47 = vadd.f32 %v5745_v58, %v5639_v22 }
 0x495   :  { %15876 = vmatprep.subr.mxu1 %v6279_v18  ;;  %v5747_v37 = vpop.f32.mrf.mxu0 }
 0x496   :  { %15877 = vmatpush3.msra.mxu1 %v6263_v19  ;;  %v5748_v49 = vadd.f32 %v5747_v37, %v5641_v27 }
 0x497   :  { %15878 = vmatprep.subr.mxu1 %v6278_v9  ;;  %v5850_v39 = vpop.f32.mrf.mxu0 }
 0x498   :  { %15879 = vmatpush3.msra.mxu1 %v6262_v24  ;;  %v5902_v48 = vadd.f32 %v5850_v39, %v5742_v43 }
 0x499   :  { %15880 = vmatprep.subr.mxu1 %v6277_v20  ;;  %v5852_v40 = vpop.f32.mrf.mxu0 }
 0x49a   :  { %15881 = vmatpush3.msra.mxu1 %v6261_v25  ;;  %v5903_v51 = vadd.f32 %v5852_v40, %v5744_v45  ;;  %v5682_v25 = vpop.f32.mrf.mxu1 }
 0x49b   :  { %15882 = vmatprep.subr.mxu1 %v6276_v21  ;;  %v5854_v41 = vpop.f32.mrf.mxu0 }
 0x49c   :  { %15883 = vmatpush3.msra.mxu1 %v6260_v50  ;;  %v5906_v53 = vadd.f32 %v5854_v41, %v5746_v47 }
 0x49d   :  { %15884 = vmatprep.subr.mxu1 %v6275_v56  ;;  %v5856_v42 = vpop.f32.mrf.mxu0 }
 0x49e   :  { %15885 = vmatpush3.msra.mxu1 %v6259_v28  ;;  %v5907_v57 = vadd.f32 %v5856_v42, %v5748_v49 }
 0x49f   :  { %15886 = vmatprep.subr.mxu1 %v6274_v4  ;;  %v5967_v10 = vpop.f32.mrf.mxu0 }
 0x4a0   :  { %15887 = vmatpush3.msra.mxu1 %v6258_v44  ;;  %v6019_v54 = vadd.f32 %v5967_v10, %v5902_v48 }
 0x4a1   :  { %15888 = vmatprep.subr.mxu1 %v6273_v6  ;;  %v5969_v55 = vpop.f32.mrf.mxu0  ;;  %v5684_v6 = vpop.f32.mrf.mxu1 }
 0x4a2   :  { %15889 = vmatpush3.msra.mxu1 %v6257_v2  ;;  %v6020_v59 = vadd.f32 %v5969_v55, %v5903_v51 }
 0x4a3   :  { %15890 = vmatprep.subr.mxu1 %v6272_v33  ;;  %v5971_v46 = vpop.f32.mrf.mxu0  ;;  %v5784_v58 = vpop.f32.mrf.mxu1 }
 0x4a4   :  { %15891 = vmatpush3.msra.mxu1 %v6256_v34  ;;  %v6023_v61 = vadd.f32 %v5971_v46, %v5906_v53 }
 0x4a5   :  { %15892 = vmatprep.subr.mxu1 %v6271_v36  ;;  %v5973_v52 = vpop.f32.mrf.mxu0  ;;  %v5786_v55 = vpop.f32.mrf.mxu1 }
 0x4a6   :  { %15893 = vmatpush3.msra.mxu1 %v6255_v23  ;;  %v6024_v12 = vadd.f32 %v5973_v52, %v5907_v57 }
 0x4a7   :  { %15894 = vmatprep.subr.mxu1 %v6270_v38  ;;  %v5788_v49 = vpop.f32.mrf.mxu1 }
 0x4a8   :  { %15895 = vmatpush3.msra.mxu1 %v6254_v29 }
 0x4a9   :  { %15896 = vmatprep.subr.mxu1 %v6269_v32  ;;  %v5790_v52 = vpop.f32.mrf.mxu1 }
 0x4aa   :  { %15897 = vmatpush3.msra.mxu1 %v6253_v63 }
 0x4ab   :  { %v5893_v53 = vpop.f32.mrf.mxu1 }
 0x50b   :  { %v6084_v60 = vpop.f32.mrf.mxu0 }
 0x50c   :  { %v19069_v3 = vadd.f32 %v6084_v60, %v6019_v54  ;;  %v5895_v54 = vpop.f32.mrf.mxu1 }
 0x50d   :  { %v6086_v11 = vpop.f32.mrf.mxu0 }
 0x50e   :  { %v19071_v13 = vadd.f32 %v6086_v11, %v6020_v59  ;;  %v6176_v7 = vmul.f32 %v19069_v3, %v19069_v3  ;;  %v5897_v57 = vpop.f32.mrf.mxu1  ;;  %v5785_v11 = vadd.f32 %v5784_v58, %v19067_v62 }
 0x50f   :  { %v6088_v1 = vpop.f32.mrf.mxu0 }
 0x510   :  { %v19073_v14 = vadd.f32 %v6088_v1, %v6023_v61  ;;  %v6177_v19 = vmul.f32 %v19071_v13, %v19071_v13  ;;  %v5899_v59 = vpop.f32.mrf.mxu1  ;;  %v5789_v1 = vadd.f32 %v5788_v49, %v5682_v25 }
 0x511   :  { %v6090_v5 = vpop.f32.mrf.mxu0 }
 0x512   :  { %v6144_v8 = vsel %vm886_vm3, %v19073_v14, 0.0  ;;  %v6180_v17 = vmul.f32 %v19073_v14, %v19073_v14  ;;  %v19081_v18 = vadd.f32 %v6090_v5, %v6024_v12  ;;  %v6010_v60 = vpop.f32.mrf.mxu1  ;;  %v5791_v5 = vadd.f32 %v5790_v52, %v5684_v6 }
 0x513   :  { %v6145_v22 = vadd.f32 %v6144_v8, %v19069_v3  ;;  %v5904_v8 = vadd.f32 %v5893_v53, %v5785_v11 }
 0x514   :  { %v6184_v9 = vsel %vm886_vm3, %v6180_v17, 0.0  ;;  %v6152_v24 = vsel %vm886_vm3, %v19081_v18, 0.0  ;;  %v6181_v20 = vmul.f32 %v19081_v18, %v19081_v18  ;;  %v6012_v61 = vpop.f32.mrf.mxu1 }
 0x515   :  { %v6146_v27 = vrot.slane %v6145_v22, 4  ;;  %v6185_v21 = vadd.f32 %v6184_v9, %v6176_v7  ;;  %v6153_v50 = vadd.f32 %v6152_v24, %v19071_v13  ;;  %v5787_v7 = vadd.f32 %v5786_v55, %v5680_v15 }
 0x516   :  { %v6192_v56 = vsel %vm886_vm3, %v6181_v20, 0.0  ;;  %v6014_v12 = vpop.f32.mrf.mxu1  ;;  %v5909_v24 = vadd.f32 %v5899_v59, %v5791_v5  ;;  %v6021_v20 = vadd.f32 %v6010_v60, %v5904_v8  ;;  %v6491_v5 = vld [vmem:[#allocation12 + $0xe8] sm:$0xff]  ;;  %v6493_v8 = vld [vmem:[#allocation12 + $0xf8] sm:$0xff] }
 0x517   :  { %v6147_v28 = vadd.f32 %v6146_v27, %v6145_v22  ;;  %v6186_v31 = vrot.slane %v6185_v21, 4  ;;  %v6154_v4 = vrot.slane %v6153_v50, 4  ;;  %v6193_v44 = vadd.f32 %v6192_v56, %v6177_v19  ;;  %6514 = vmatprep.subr.mxu0 %v6491_v5  ;;  %6585 = vmatprep.subr.mxu1 %v6493_v8  ;;  %v6431_v5 = vld [vmem:[#allocation13] sm:$0x1] }
 0x518   :  { %v6016_v17 = vpop.f32.mrf.mxu1  ;;  %v5908_v19 = vadd.f32 %v5897_v57, %v5789_v1  ;;  %v5905_v22 = vadd.f32 %v5895_v54, %v5787_v7 }
 0x519   :  { %v6148_v2 = vrot.slane %v6147_v28, 2  ;;  %v6187_v33 = vadd.f32 %v6186_v31, %v6185_v21  ;;  %v6155_v34 = vadd.f32 %v6154_v4, %v6153_v50  ;;  %v6194_v35 = vrot.slane %v6193_v44, 4 }
 0x51a   :  { %v6025_v21 = vadd.f32 %v6014_v12, %v5908_v19  ;;  %v6022_v50 = vadd.f32 %v6012_v61, %v5905_v22  ;;  %v6026_v31 = vadd.f32 %v6016_v17, %v5909_v24  ;;  %v6490_v17 = vld [vmem:[#allocation12 + $0xe0] sm:$0xff]  ;;  %v6492_v19 = vld [vmem:[#allocation12 + $0xf0] sm:$0xff]  ;;  %v6487_v22 = vld [vmem:[#allocation12 + $0xc8] sm:$0xff] }
 0x51b   :  { %v6156_v36 = vrot.slane %v6155_v34, 2  ;;  %v6195_v23 = vadd.f32 %v6194_v35, %v6193_v44  ;;  %v6149_v38 = vadd.f32 %v6148_v2, %v6147_v28  ;;  %v6188_v29 = vrot.slane %v6187_v33, 2  ;;  %v6486_v24 = vld [vmem:[#allocation12 + $0xc0] sm:$0xff] }
 0x51d   :  { %v6157_v32 = vadd.f32 %v6156_v36, %v6155_v34  ;;  %v6196_v63 = vrot.slane %v6195_v23, 2  ;;  %v6150_v37 = vrot.slane %v6149_v38, 1  ;;  %v6189_v39 = vadd.f32 %v6188_v29, %v6187_v33 }
 0x51f   :  { %v6158_v40 = vrot.slane %v6157_v32, 1  ;;  %v6197_v41 = vadd.f32 %v6196_v63, %v6195_v23  ;;  %v6190_v42 = vrot.slane %v6189_v39, 1  ;;  %v6151_v10 = vadd.f32 %v6150_v37, %v6149_v38 }
 0x521   :  { %v6159_v43 = vadd.f32 %v6158_v40, %v6157_v32  ;;  %v6198_v45 = vrot.slane %v6197_v41, 1  ;;  %v6191_v46 = vadd.f32 %v6190_v42, %v6189_v39 }
 0x523   :  { %v6199_v47 = vadd.f32 %v6198_v45, %v6197_v41  ;;  %v6217_v48 = vsel %vm6216_vm5, %v6151_v10, %v6191_v46 }
 0x525   :  { %v6218_v51 = vsel %vm6216_vm5, %v6159_v43, %v6199_v47 }
 0x526   :  { %6349 = vmatprep.mubr.f32.mxu0 %v6218_v51 }
 0x527   :  { %6350 = vmatmul.mubr.f32.vlgmr.msra.gmra.mxu0 %v6217_v48 }
 0x528   :  { %6515 = vmatpush1.msra.mxu0 %v6490_v17 }
 0x529   :  { %6516 = vmatprep.subr.mxu0 %v6487_v22 }
 0x52a   :  { %6517 = vmatpush1.msra.mxu0 %v6486_v24 }
 0x54b   :  { %v6127_v9 = vpop.f32.mrf.mxu1 }
 0x54c   :  { %v19096_v56 = vadd.f32 %v6127_v9, %v6021_v20  ;;  %v6489_v9 = vld [vmem:[#allocation12 + $0xd8] sm:$0xff]  ;;  %v6488_v20 = vld [vmem:[#allocation12 + $0xd0] sm:$0xff] }
 0x54d   :  { %v6129_v27 = vpop.f32.mrf.mxu1 }
 0x54e   :  { %v19100_v62 = vadd.f32 %v6129_v27, %v6022_v50  ;;  %v6178_v2 = vmul.f32 %v19096_v56, %v19096_v56  ;;  %v6483_v27 = vld [vmem:[#allocation12 + $0xa8] sm:$0xff]  ;;  %v6482_v50 = vld [vmem:[#allocation12 + $0xa0] sm:$0xff] }
 0x54f   :  { %v6131_v28 = vpop.f32.mrf.mxu1  ;;  %6518 = vmatprep.subr.mxu0 %v6483_v27 }
 0x550   :  { %v19098_v4 = vadd.f32 %v6131_v28, %v6025_v21  ;;  %v6179_v23 = vmul.f32 %v19100_v62, %v19100_v62  ;;  %v6485_v21 = vld [vmem:[#allocation12 + $0xb8] sm:$0xff]  ;;  %v6484_v28 = vld [vmem:[#allocation12 + $0xb0] sm:$0xff]  ;;  %6519 = vmatpush1.msra.mxu0 %v6482_v50 }
 0x551   :  { %v6133_v15 = vpop.f32.mrf.mxu1 }
 0x552   :  { %v6160_v25 = vsel %vm886_vm3, %v19098_v4, 0.0  ;;  %v6182_v44 = vmul.f32 %v19098_v4, %v19098_v4  ;;  %v19106_v6 = vadd.f32 %v6133_v15, %v6026_v31  ;;  %v6479_v31 = vld [vmem:[#allocation12 + $0x88] sm:$0xff]  ;;  %v6481_v15 = vld [vmem:[#allocation12 + $0x98] sm:$0xff] }
 0x553   :  { %v6161_v33 = vadd.f32 %v6160_v25, %v19096_v56  ;;  %6520 = vmatprep.subr.mxu0 %v6479_v31  ;;  %v6478_v25 = vld [vmem:[#allocation12 + $0x80] sm:$0xff] }
 0x554   :  { %v6200_v34 = vsel %vm886_vm3, %v6182_v44, 0.0  ;;  %v6168_v35 = vsel %vm886_vm3, %v19106_v6, 0.0  ;;  %v6183_v36 = vmul.f32 %v19106_v6, %v19106_v6  ;;  %v6480_v44 = vld [vmem:[#allocation12 + $0x90] sm:$0xff]  ;;  %6521 = vmatpush1.msra.mxu0 %v6478_v25 }
 0x555   :  { %v6162_v38 = vrot.slane %v6161_v33, 4  ;;  %v6201_v29 = vadd.f32 %v6200_v34, %v6178_v2  ;;  %v6169_v58 = vadd.f32 %v6168_v35, %v19100_v62  ;;  %v6475_v2 = vld [vmem:[#allocation12 + $0x68] sm:$0xff]  ;;  %v6474_v34 = vld [vmem:[#allocation12 + $0x60] sm:$0xff]  ;;  %v6476_v35 = vld [vmem:[#allocation12 + $0x70] sm:$0xff] }
 0x556   :  { %v6208_v32 = vsel %vm886_vm3, %v6183_v36, 0.0  ;;  %6522 = vmatprep.subr.mxu0 %v6475_v2  ;;  %v6471_v36 = vld [vmem:[#allocation12 + $0x48] sm:$0xff] }
 0x557   :  { %v6163_v63 = vadd.f32 %v6162_v38, %v6161_v33  ;;  %v6202_v37 = vrot.slane %v6201_v29, 4  ;;  %v6170_v39 = vrot.slane %v6169_v58, 4  ;;  %v6209_v40 = vadd.f32 %v6208_v32, %v6179_v23  ;;  %v6477_v33 = vld [vmem:[#allocation12 + $0x78] sm:$0xff]  ;;  %6523 = vmatpush1.msra.mxu0 %v6474_v34  ;;  %v6470_v38 = vld [vmem:[#allocation12 + $0x40] sm:$0xff] }
 0x558   :  { %v6473_v23 = vld [vmem:[#allocation12 + $0x58] sm:$0xff]  ;;  %6524 = vmatprep.subr.mxu0 %v6471_v36 }
 0x559   :  { %v6164_v41 = vrot.slane %v6163_v63, 2  ;;  %v6203_v42 = vadd.f32 %v6202_v37, %v6201_v29  ;;  %v6171_v10 = vadd.f32 %v6170_v39, %v6169_v58  ;;  %v6210_v55 = vrot.slane %v6209_v40, 4  ;;  %v6472_v29 = vld [vmem:[#allocation12 + $0x50] sm:$0xff]  ;;  %v6467_v58 = vld [vmem:[#allocation12 + $0x28] sm:$0xff]  ;;  %6525 = vmatpush1.msra.mxu0 %v6470_v38  ;;  %v6469_v32 = vld [vmem:[#allocation12 + $0x38] sm:$0xff] }
 0x55a   :  { %v6468_v37 = vld [vmem:[#allocation12 + $0x30] sm:$0xff]  ;;  %6526 = vmatprep.subr.mxu0 %v6467_v58  ;;  %v6463_v39 = vld [vmem:[#allocation12 + $0x8] sm:$0xff] }
 0x55b   :  { %v6172_v43 = vrot.slane %v6171_v10, 2  ;;  %v6211_v45 = vadd.f32 %v6210_v55, %v6209_v40  ;;  %v6204_v46 = vrot.slane %v6203_v42, 2  ;;  %v6165_v47 = vadd.f32 %v6164_v41, %v6163_v63  ;;  %v6466_v63 = vld [vmem:[#allocation12 + $0x20] sm:$0xff]  ;;  %v6465_v40 = vld [vmem:[#allocation12 + $0x18] sm:$0xff] }
 0x55c   :  { %v6462_v41 = vld [vmem:[#allocation12] sm:$0xff]  ;;  %6527 = vmatpush1.msra.mxu0 %v6466_v63 }
 0x55d   :  { %v6173_v48 = vadd.f32 %v6172_v43, %v6171_v10  ;;  %v6212_v49 = vrot.slane %v6211_v45, 2  ;;  %v6205_v51 = vadd.f32 %v6204_v46, %v6203_v42  ;;  %v6166_v57 = vrot.slane %v6165_v47, 1  ;;  %v6464_v42 = vld [vmem:[#allocation12 + $0x10] sm:$0xff]  ;;  %6528 = vmatprep.subr.mxu0 %v6463_v39 }
 0x55e   :  { %6529 = vmatpush1.msra.mxu0 %v6462_v41  ;;  %v18524_v10 = vmov 0.0  }
 0x55f   :  { %v6174_v52 = vrot.slane %v6173_v48, 1  ;;  %v6213_v53 = vadd.f32 %v6212_v49, %v6211_v45  ;;  %v6206_v54 = vrot.slane %v6205_v51, 1  ;;  %v6167_v12 = vadd.f32 %v6166_v57, %v6165_v47  ;;  %6562 = vmatprep.mubr.f32.mxu0 %v18524_v10 }
 0x561   :  { %v6214_v59 = vrot.slane %v6213_v53, 1  ;;  %v6207_v60 = vadd.f32 %v6206_v54, %v6205_v51  ;;  %v6175_v61 = vadd.f32 %v6174_v52, %v6173_v48 }
 0x563   :  { %v6215_v11 = vadd.f32 %v6214_v59, %v6213_v53  ;;  %v6219_v7 = vsel %vm6216_vm5, %v6167_v12, %v6207_v60  ;;  %v18525_v59 = vmov 1966171168  }
 0x564   :  { %v6436_v60 = vunpack.c.l.s4 %v18525_v59 }
 0x565   :  { %v6220_v1 = vsel %vm6216_vm5, %v6175_v61, %v6215_v11 }
 0x566   :  { %6419 = vmatprep.mubr.f32.mxu1 %v6220_v1  ;;  %v6437_v61 = vunpack.c.0.s8 %v6436_v60 }
 0x567   :  { %6420 = vmatmul.mubr.f32.vlgmr.msra.gmra.mxu1 %v6219_v7 }
 0x568   :  { %6586 = vmatpush1.msra.mxu1 %v6492_v19  ;;  %6633 = vmatprep.mubr.f32.mxu1 %v18524_v10  ;;  %v19125_v11 = vsub.s32 %v6437_v61, %v18688_v16  ;;  %v6452_v19 = vld [vmem:[#allocation15] sm:$0x1] }
 0x569   :  { %6587 = vmatprep.subr.mxu1 %v6489_v9 }
 0x56a   :  { %6588 = vmatpush1.msra.mxu1 %v6488_v20 }
 0x56b   :  { %6589 = vmatprep.subr.mxu1 %v6485_v21 }
 0x56c   :  { %6590 = vmatpush1.msra.mxu1 %v6484_v28 }
 0x56d   :  { %6591 = vmatprep.subr.mxu1 %v6481_v15 }
 0x56e   :  { %6592 = vmatpush1.msra.mxu1 %v6480_v44 }
 0x56f   :  { %6593 = vmatprep.subr.mxu1 %v6477_v33 }
 0x570   :  { %6594 = vmatpush1.msra.mxu1 %v6476_v35 }
 0x571   :  { %6595 = vmatprep.subr.mxu1 %v6473_v23 }
 0x572   :  { %6596 = vmatpush1.msra.mxu1 %v6472_v29 }
 0x573   :  { %6597 = vmatprep.subr.mxu1 %v6469_v32 }
 0x574   :  { %6598 = vmatpush1.msra.mxu1 %v6468_v37 }
 0x575   :  { %6599 = vmatprep.subr.mxu1 %v6465_v40 }
 0x576   :  { %6600 = vmatpush1.msra.mxu1 %v6464_v42 }
 0x5e7   :  { %v15863_v55 = vpop.f32.mrf.mxu0 }
 0x5e9   :  { %v15864_v43 = vpop.f32.mrf.mxu0 }
 0x5ea   :  { %v15865_v47 = vadd.f32 %v15864_v43, %v15863_v55 }
 0x627   :  { %v15898_v45 = vpop.f32.mrf.mxu1 }
 0x629   :  { %v15899_v46 = vpop.f32.mrf.mxu1 }
 0x62a   :  { %v15900_v48 = vadd.f32 %v15899_v46, %v15898_v45 }
 0x62c   :  { %v6422_v49 = vadd.f32 %v15900_v48, %v15865_v47 }
 0x62e   :  { %v6425_v51 = vmul.f32 0.010204081, %v6422_v49 }
 0x630   :  { %v6426_v52 = vmul.f32 %v6425_v51, %v6425_v51 }
 0x632   :  { %v6428_v53 = vrot.slane %v6426_v52, 7 }
 0x634   :  { %v6430_v54 = vsub.f32 %v6425_v51, %v6428_v53 }
 0x636   :  { %v6432_v57 = vadd.f32 1e-05, %v6430_v54 }
 0x638   :  { %17034 = vrsqrt.f32 %v6432_v57 }
 0x645   :  { %v17035_v12 = vpop.eup %17034 }
 0x646   :  { %v6441_v1 = vrot.slane %v17035_v12, %v19125_v11 }
 0x648   :  { %v6442_v7 = vcombine.high %v6441_v1, %v6441_v1 }
 0x64a   :  { %v6449_v8 = vrot.slane %v6442_v7, %v19125_v11 }
 0x64c   :  { %v6451_v17 = vmul.f32 %v6449_v8, %v6431_v5 }
 0x64e   :  { %v6453_v22 = vmul.f32 %v6451_v17, %v6425_v51 }
 0x650   :  { %v6454_v9 = vsub.f32 %v6452_v19, %v6453_v22 }
 0x652   :  { %v6459_v24 = vrot.slane %v6454_v9, %v18695_v26 }
 0x654   :  { %v6461_v20 = vsel %vm6216_vm5, %v6451_v17, %v6459_v24 }
 0x655   :  { %14947 = vmatmul.mubr.msk.f32.vlgmr.msra.gmra.mxu0 %vm6494_vm6, %v6461_v20  ;;  %14948 = vmatmul.mubr.msk.f32.vlgmr.msra.gmra.mxu1 %vm6494_vm6, %v6461_v20 }
 0x656   :  { %18469 = shalt.err (!%p18466_p3)  }
 0x657   :  { %201 = dma.hbm_to_vmem [thread:$0]  %s20067_s9, 81920, %s199_s4, [#allocation4] }
 0x658   :  { %s18478_s13 = scalar_lea.vmem %s211_s24, 16384  ;;  %p18483_p5 = scmp.lt.s32.totalorder %s211_s24, %s211_s24 }
 0x659   :  { %p18479_p4 = scmp.ne.s32.totalorder %s211_s24, %s18478_s13  ;;  %p18484_p6 = scmp.lt.s32.totalorder %s18478_s13, %s18478_s13 }
 0x65b   :  { %p18485_p7 = por %p18484_p6, %p18483_p5 }
 0x65d   :  { %p18486_p8 = pnand %p18485_p7, %p18479_p4 }
 0x65f   :  { %18489 = shalt.err (!%p18486_p8)  }
 0x660   :  { %213 = dma.hbm_to_vmem [thread:$0]  %s20073_s15, 16384, %s211_s24, [#allocation4 + $0x1] }
 0x715   :  { %v6564_v16 = vpop.f32.mrf.mxu0  ;;  %v6635_v27 = vpop.f32.mrf.mxu1 }
 0x716   :  { %v6643_v21 = vrot.slane %v6564_v16, %v18695_v26  ;;  %v6651_v50 = vrot.slane %v6635_v27, %v18695_v26  ;;  %v6667_v28 = vrot.slane %v6564_v16, %v18699_v30  ;;  %v6675_v31 = vrot.slane %v6635_v27, %v18699_v30 }
 0x717   :  { %v6566_v15 = vpop.f32.mrf.mxu0  ;;  %v6637_v25 = vpop.f32.mrf.mxu1 }
 0x718   :  { %v6656_v44 = vmul.f32 %v6643_v21, %v19069_v3  ;;  %v6660_v2 = vmul.f32 %v6643_v21, %v19073_v14  ;;  %v6658_v33 = vmul.f32 %v6651_v50, %v19096_v56  ;;  %v6662_v34 = vmul.f32 %v6651_v50, %v19098_v4 }
 0x719   :  { %v6647_v35 = vrot.slane %v6566_v15, %v18695_v26  ;;  %v6671_v36 = vrot.slane %v6566_v15, %v18699_v30  ;;  %v6655_v23 = vrot.slane %v6637_v25, %v18695_v26  ;;  %v6679_v38 = vrot.slane %v6637_v25, %v18699_v30 }
 0x71a   :  { %v19149_v29 = vadd.f32 %v6667_v28, %v6656_v44  ;;  %v19151_v58 = vadd.f32 %v6667_v28, %v6660_v2  ;;  %v19153_v32 = vadd.f32 %v6675_v31, %v6658_v33  ;;  %v19155_v3 = vadd.f32 %v6675_v31, %v6662_v34 }
 0x71b   :  { %v6657_v14 = vmul.f32 %v6647_v35, %v19071_v13  ;;  %v6661_v56 = vmul.f32 %v6647_v35, %v19081_v18  ;;  %v6659_v4 = vmul.f32 %v6655_v23, %v19100_v62  ;;  %v6663_v63 = vmul.f32 %v6655_v23, %v19106_v6 }
 0x71c   :  { %v6688_v37 = vmax.f32 %v19149_v29, 0.0  ;;  %v6692_v39 = vmax.f32 %v19151_v58, 0.0  ;;  %v6690_v40 = vmax.f32 %v19153_v32, 0.0  ;;  %v6694_v41 = vmax.f32 %v19155_v3, 0.0 }
 0x71d   :  { %v6681_v42 = vadd.f32 %v6671_v36, %v6657_v14  ;;  %v6685_v55 = vadd.f32 %v6671_v36, %v6661_v56  ;;  %v6683_v43 = vadd.f32 %v6679_v38, %v6659_v4  ;;  %v6687_v45 = vadd.f32 %v6679_v38, %v6663_v63 }
 0x71f   :  { %v6689_v46 = vmax.f32 %v6681_v42, 0.0  ;;  %v6693_v13 = vmax.f32 %v6685_v55, 0.0  ;;  %v6691_v47 = vmax.f32 %v6683_v43, 0.0  ;;  %v6695_v18 = vmax.f32 %v6687_v45, 0.0 }
 0x720   :  { %18502 = dma.done.wait [#allocation4], 81920 }
 0x721   :  { %18503 = vsyncadd [#allocation4], 4294885376  ;;  %v19165_v62 = vpack.c.bf16 %v6693_v13, %v6689_v46  ;;  %v19167_v6 = vpack.c.bf16 %v6695_v18, %v6691_v47  ;;  %v17036_v48 = vld [vmem:[#allocation2 + $0x464] ss:$80 sps:$4 sm:$0xff]   ;;  %v17040_v51 = vld [vmem:[#allocation2 + $0x460] ss:$80 sps:$4 sm:$0xff]  }
 0x722   :  { %v17038_v49 = vld [vmem:[#allocation2 + $0xe64] ss:$80 sps:$4 sm:$0xff]   ;;  %10544 = vmatprep.subr.bf16.mxu0 %v17036_v48  ;;  %v17041_v52 = vld [vmem:[#allocation2 + $0xe60] ss:$80 sps:$4 sm:$0xff]   ;;  %v17138_v29 = vld [vmem:[#allocation2 + $0x3c8] ss:$80 sps:$4 sm:$0xff]  }
 0x723   :  { %10576 = vmatprep.mubr.bf16.mxu0 %v19165_v62  ;;  %10619 = vmatprep.mubr.bf16.mxu1 %v19167_v6  ;;  %v17042_v53 = vld [vmem:[#allocation2 + $0x3c4] ss:$80 sps:$4 sm:$0xff]   ;;  %v17046_v57 = vld [vmem:[#allocation2 + $0x3c0] ss:$80 sps:$4 sm:$0xff]   ;;  %v17141_v58 = vld [vmem:[#allocation2 + $0xdc8] ss:$80 sps:$4 sm:$0xff]  }
 0x724   :  { %10587 = vmatprep.subr.bf16.mxu1 %v17038_v49  ;;  %10545 = vmatpush1.bf16.msra.mxu0 %v17040_v51  ;;  %v17044_v54 = vld [vmem:[#allocation2 + $0xdc4] ss:$80 sps:$4 sm:$0xff]   ;;  %v17047_v59 = vld [vmem:[#allocation2 + $0xdc0] ss:$80 sps:$4 sm:$0xff]   ;;  %v17146_v32 = vld [vmem:[#allocation2 + $0x32c] ss:$80 sps:$4 sm:$0xff]  }
 0x725   :  { %10588 = vmatpush1.bf16.msra.mxu1 %v17041_v52  ;;  %10546 = vmatprep.subr.bf16.mxu0 %v17042_v53  ;;  %v17048_v60 = vld [vmem:[#allocation2 + $0x324] ss:$80 sps:$4 sm:$0xff]   ;;  %v17052_v12 = vld [vmem:[#allocation2 + $0x320] ss:$80 sps:$4 sm:$0xff]   ;;  %v17149_v3 = vld [vmem:[#allocation2 + $0xd2c] ss:$80 sps:$4 sm:$0xff]  }
 0x726   :  { %10589 = vmatprep.subr.bf16.mxu1 %v17044_v54  ;;  %v17050_v61 = vld [vmem:[#allocation2 + $0xd24] ss:$80 sps:$4 sm:$0xff]   ;;  %v17053_v1 = vld [vmem:[#allocation2 + $0xd20] ss:$80 sps:$4 sm:$0xff]   ;;  %vm11450_vm7 = vcmask 1046528   ;;  %vm11443_vm8 = vcmask 113664  }
 0x727   :  { %v17054_v7 = vld [vmem:[#allocation2 + $0x284] ss:$80 sps:$4 sm:$0xff]   ;;  %v17058_v8 = vld [vmem:[#allocation2 + $0x280] ss:$80 sps:$4 sm:$0xff]  }
 0x728   :  { %10547 = vmatpush1.bf16.msra.mxu0 %v17046_v57  ;;  %v17056_v5 = vld [vmem:[#allocation2 + $0xc84] ss:$80 sps:$4 sm:$0xff]   ;;  %v17059_v17 = vld [vmem:[#allocation2 + $0xc80] ss:$80 sps:$4 sm:$0xff]  }
 0x729   :  { %10590 = vmatpush1.bf16.msra.mxu1 %v17047_v59  ;;  %10548 = vmatprep.subr.bf16.mxu0 %v17048_v60  ;;  %v17060_v19 = vld [vmem:[#allocation2 + $0x1e4] ss:$80 sps:$4 sm:$0xff]   ;;  %v17064_v9 = vld [vmem:[#allocation2 + $0x1e0] ss:$80 sps:$4 sm:$0xff]  }
 0x72a   :  { %10591 = vmatprep.subr.bf16.mxu1 %v17050_v61  ;;  %v17062_v22 = vld [vmem:[#allocation2 + $0xbe4] ss:$80 sps:$4 sm:$0xff]   ;;  %v17065_v24 = vld [vmem:[#allocation2 + $0xbe0] ss:$80 sps:$4 sm:$0xff]  }
 0x72b   :  { %v17066_v20 = vld [vmem:[#allocation2 + $0x144] ss:$80 sps:$4 sm:$0xff]   ;;  %v17070_v27 = vld [vmem:[#allocation2 + $0x140] ss:$80 sps:$4 sm:$0xff]  }
 0x72c   :  { %10549 = vmatpush1.bf16.msra.mxu0 %v17052_v12  ;;  %v17068_v16 = vld [vmem:[#allocation2 + $0xb44] ss:$80 sps:$4 sm:$0xff]   ;;  %v17071_v21 = vld [vmem:[#allocation2 + $0xb40] ss:$80 sps:$4 sm:$0xff]  }
 0x72d   :  { %10592 = vmatpush1.bf16.msra.mxu1 %v17053_v1  ;;  %10550 = vmatprep.subr.bf16.mxu0 %v17054_v7  ;;  %v17072_v50 = vld [vmem:[#allocation2 + $0xa4] ss:$80 sps:$4 sm:$0xff]   ;;  %v17076_v31 = vld [vmem:[#allocation2 + $0xa0] ss:$80 sps:$4 sm:$0xff]  }
 0x72e   :  { %10593 = vmatprep.subr.bf16.mxu1 %v17056_v5  ;;  %v17074_v28 = vld [vmem:[#allocation2 + $0xaa4] ss:$80 sps:$4 sm:$0xff]   ;;  %v17077_v15 = vld [vmem:[#allocation2 + $0xaa0] ss:$80 sps:$4 sm:$0xff]  }
 0x72f   :  { %v17078_v25 = vld [vmem:[#allocation2 + $0x4] ss:$80 sps:$4 sm:$0xff]   ;;  %v17082_v2 = vld [vmem:[#allocation2] ss:$80 sps:$4 sm:$0xff]  }
 0x730   :  { %10551 = vmatpush1.bf16.msra.mxu0 %v17058_v8  ;;  %v17080_v44 = vld [vmem:[#allocation2 + $0xa04] ss:$80 sps:$4 sm:$0xff]   ;;  %v17083_v33 = vld [vmem:[#allocation2 + $0xa00] ss:$80 sps:$4 sm:$0xff]  }
 0x731   :  { %10594 = vmatpush1.bf16.msra.mxu1 %v17059_v17  ;;  %10552 = vmatprep.subr.bf16.mxu0 %v17060_v19  ;;  %v17084_v34 = vld [vmem:[#allocation2 + $0x964] ss:$80 sps:$4 sm:$0xff]   ;;  %v17088_v36 = vld [vmem:[#allocation2 + $0x960] ss:$80 sps:$4 sm:$0xff]   ;;  %v17134_v17 = vld [vmem:[#allocation2 + $0x46c] ss:$80 sps:$4 sm:$0xff]  }
 0x732   :  { %10595 = vmatprep.subr.bf16.mxu1 %v17062_v22  ;;  %v17086_v35 = vld [vmem:[#allocation2 + $0x1364] ss:$80 sps:$4 sm:$0xff]   ;;  %v17089_v23 = vld [vmem:[#allocation2 + $0x1360] ss:$80 sps:$4 sm:$0xff]   ;;  %v17137_v19 = vld [vmem:[#allocation2 + $0xe6c] ss:$80 sps:$4 sm:$0xff]   ;;  %v19175_v22 = vpack.c.bf16 %v6692_v39, %v6688_v37 }
 0x733   :  { %v17090_v38 = vld [vmem:[#allocation2 + $0x8c4] ss:$80 sps:$4 sm:$0xff]   ;;  %v17094_v56 = vld [vmem:[#allocation2 + $0x8c0] ss:$80 sps:$4 sm:$0xff]   ;;  %v17144_v37 = vld [vmem:[#allocation2 + $0x328] ss:$80 sps:$4 sm:$0xff]  }
 0x734   :  { %10553 = vmatpush1.bf16.msra.mxu0 %v17064_v9  ;;  %v17092_v14 = vld [vmem:[#allocation2 + $0x12c4] ss:$80 sps:$4 sm:$0xff]   ;;  %v17095_v4 = vld [vmem:[#allocation2 + $0x12c0] ss:$80 sps:$4 sm:$0xff]   ;;  %v19181_v9 = vpack.c.bf16 %v6694_v41, %v6690_v40  ;;  %v17147_v39 = vld [vmem:[#allocation2 + $0xd28] ss:$80 sps:$4 sm:$0xff]  }
 0x735   :  { %10596 = vmatpush1.bf16.msra.mxu1 %v17065_v24  ;;  %10554 = vmatprep.subr.bf16.mxu0 %v17066_v20  ;;  %v17096_v63 = vld [vmem:[#allocation2 + $0x824] ss:$80 sps:$4 sm:$0xff]   ;;  %v17100_v55 = vld [vmem:[#allocation2 + $0x820] ss:$80 sps:$4 sm:$0xff]   ;;  %v17132_v24 = vld [vmem:[#allocation2 + $0x468] ss:$80 sps:$4 sm:$0xff]  }
 0x736   :  { %10597 = vmatprep.subr.bf16.mxu1 %v17068_v16  ;;  %v17098_v42 = vld [vmem:[#allocation2 + $0x1224] ss:$80 sps:$4 sm:$0xff]   ;;  %v17101_v43 = vld [vmem:[#allocation2 + $0x1220] ss:$80 sps:$4 sm:$0xff]   ;;  %v17135_v20 = vld [vmem:[#allocation2 + $0xe68] ss:$80 sps:$4 sm:$0xff]  }
 0x737   :  { %v17102_v45 = vld [vmem:[#allocation2 + $0x784] ss:$80 sps:$4 sm:$0xff]   ;;  %v17106_v13 = vld [vmem:[#allocation2 + $0x780] ss:$80 sps:$4 sm:$0xff]   ;;  %v17140_v16 = vld [vmem:[#allocation2 + $0x3cc] ss:$80 sps:$4 sm:$0xff]  }
 0x738   :  { %10555 = vmatpush1.bf16.msra.mxu0 %v17070_v27  ;;  %v17104_v46 = vld [vmem:[#allocation2 + $0x1184] ss:$80 sps:$4 sm:$0xff]   ;;  %v17107_v47 = vld [vmem:[#allocation2 + $0x1180] ss:$80 sps:$4 sm:$0xff]   ;;  %v17143_v27 = vld [vmem:[#allocation2 + $0xdcc] ss:$80 sps:$4 sm:$0xff]  }
 0x739   :  { %10598 = vmatpush1.bf16.msra.mxu1 %v17071_v21  ;;  %10556 = vmatprep.subr.bf16.mxu0 %v17072_v50  ;;  %v17108_v18 = vld [vmem:[#allocation2 + $0x6e4] ss:$80 sps:$4 sm:$0xff]   ;;  %v17112_v49 = vld [vmem:[#allocation2 + $0x6e0] ss:$80 sps:$4 sm:$0xff]   ;;  %v17152_v40 = vld [vmem:[#allocation2 + $0x28c] ss:$80 sps:$4 sm:$0xff]  }
 0x73a   :  { %10599 = vmatprep.subr.bf16.mxu1 %v17074_v28  ;;  %v17110_v48 = vld [vmem:[#allocation2 + $0x10e4] ss:$80 sps:$4 sm:$0xff]   ;;  %v17113_v51 = vld [vmem:[#allocation2 + $0x10e0] ss:$80 sps:$4 sm:$0xff]   ;;  %v17155_v41 = vld [vmem:[#allocation2 + $0xc8c] ss:$80 sps:$4 sm:$0xff]  }
 0x73b   :  { %v17114_v52 = vld [vmem:[#allocation2 + $0x644] ss:$80 sps:$4 sm:$0xff]   ;;  %v17118_v54 = vld [vmem:[#allocation2 + $0x640] ss:$80 sps:$4 sm:$0xff]   ;;  %v17150_v21 = vld [vmem:[#allocation2 + $0x288] ss:$80 sps:$4 sm:$0xff]  }
 0x73c   :  { %10557 = vmatpush1.bf16.msra.mxu0 %v17076_v31  ;;  %v17116_v53 = vld [vmem:[#allocation2 + $0x1044] ss:$80 sps:$4 sm:$0xff]   ;;  %v17119_v57 = vld [vmem:[#allocation2 + $0x1040] ss:$80 sps:$4 sm:$0xff]   ;;  %v17153_v50 = vld [vmem:[#allocation2 + $0xc88] ss:$80 sps:$4 sm:$0xff]  }
 0x73d   :  { %10600 = vmatpush1.bf16.msra.mxu1 %v17077_v15  ;;  %10558 = vmatprep.subr.bf16.mxu0 %v17078_v25  ;;  %v17120_v59 = vld [vmem:[#allocation2 + $0x5a4] ss:$80 sps:$4 sm:$0xff]   ;;  %v17124_v61 = vld [vmem:[#allocation2 + $0x5a0] ss:$80 sps:$4 sm:$0xff]   ;;  %v17158_v28 = vld [vmem:[#allocation2 + $0x1ec] ss:$80 sps:$4 sm:$0xff]  }
 0x73e   :  { %10601 = vmatprep.subr.bf16.mxu1 %v17080_v44  ;;  %v17122_v60 = vld [vmem:[#allocation2 + $0xfa4] ss:$80 sps:$4 sm:$0xff]   ;;  %v17125_v12 = vld [vmem:[#allocation2 + $0xfa0] ss:$80 sps:$4 sm:$0xff]   ;;  %v17161_v31 = vld [vmem:[#allocation2 + $0xbec] ss:$80 sps:$4 sm:$0xff]  }
 0x73f   :  { %v17126_v1 = vld [vmem:[#allocation2 + $0x504] ss:$80 sps:$4 sm:$0xff]   ;;  %v17130_v5 = vld [vmem:[#allocation2 + $0x500] ss:$80 sps:$4 sm:$0xff]   ;;  %v17156_v15 = vld [vmem:[#allocation2 + $0x1e8] ss:$80 sps:$4 sm:$0xff]  }
 0x740   :  { %10559 = vmatpush1.bf16.msra.mxu0 %v17082_v2  ;;  %v17128_v7 = vld [vmem:[#allocation2 + $0xf04] ss:$80 sps:$4 sm:$0xff]   ;;  %v17131_v8 = vld [vmem:[#allocation2 + $0xf00] ss:$80 sps:$4 sm:$0xff]   ;;  %v17159_v25 = vld [vmem:[#allocation2 + $0xbe8] ss:$80 sps:$4 sm:$0xff]  }
 0x741   :  { %10602 = vmatpush1.bf16.msra.mxu1 %v17083_v33  ;;  %10560 = vmatprep.subr.bf16.mxu0 %v17084_v34  ;;  %v17164_v44 = vld [vmem:[#allocation2 + $0x14c] ss:$80 sps:$4 sm:$0xff]   ;;  %v17162_v33 = vld [vmem:[#allocation2 + $0x148] ss:$80 sps:$4 sm:$0xff]  }
 0x742   :  { %10603 = vmatprep.subr.bf16.mxu1 %v17086_v35  ;;  %v17167_v2 = vld [vmem:[#allocation2 + $0xb4c] ss:$80 sps:$4 sm:$0xff]   ;;  %v17165_v34 = vld [vmem:[#allocation2 + $0xb48] ss:$80 sps:$4 sm:$0xff]  }
 0x743   :  { %v17170_v35 = vld [vmem:[#allocation2 + $0xac] ss:$80 sps:$4 sm:$0xff]  }
 0x744   :  { %10561 = vmatpush2.bf16.msra.mxu0 %v17088_v36  ;;  %v17173_v36 = vld [vmem:[#allocation2 + $0xaac] ss:$80 sps:$4 sm:$0xff]  }
 0x745   :  { %10604 = vmatpush2.bf16.msra.mxu1 %v17089_v23  ;;  %10562 = vmatprep.subr.bf16.mxu0 %v17090_v38  ;;  %v17168_v23 = vld [vmem:[#allocation2 + $0xa8] ss:$80 sps:$4 sm:$0xff]  }
 0x746   :  { %10605 = vmatprep.subr.bf16.mxu1 %v17092_v14  ;;  %v17171_v38 = vld [vmem:[#allocation2 + $0xaa8] ss:$80 sps:$4 sm:$0xff]   ;;  %v17176_v14 = vld [vmem:[#allocation2 + $0xc] ss:$80 sps:$4 sm:$0xff]  }
 0x748   :  { %10563 = vmatpush2.bf16.msra.mxu0 %v17094_v56  ;;  %v17179_v56 = vld [vmem:[#allocation2 + $0xa0c] ss:$80 sps:$4 sm:$0xff]  }
 0x749   :  { %10606 = vmatpush2.bf16.msra.mxu1 %v17095_v4  ;;  %10564 = vmatprep.subr.bf16.mxu0 %v17096_v63  ;;  %v17174_v4 = vld [vmem:[#allocation2 + $0x8] ss:$80 sps:$4 sm:$0xff]  }
 0x74a   :  { %10607 = vmatprep.subr.bf16.mxu1 %v17098_v42  ;;  %v17177_v63 = vld [vmem:[#allocation2 + $0xa08] ss:$80 sps:$4 sm:$0xff]   ;;  %v17182_v42 = vld [vmem:[#allocation2 + $0x96c] ss:$80 sps:$4 sm:$0xff]  }
 0x74c   :  { %10565 = vmatpush2.bf16.msra.mxu0 %v17100_v55  ;;  %v17185_v55 = vld [vmem:[#allocation2 + $0x136c] ss:$80 sps:$4 sm:$0xff]  }
 0x74d   :  { %10608 = vmatpush2.bf16.msra.mxu1 %v17101_v43  ;;  %10566 = vmatprep.subr.bf16.mxu0 %v17102_v45  ;;  %v17180_v43 = vld [vmem:[#allocation2 + $0x968] ss:$80 sps:$4 sm:$0xff]  }
 0x74e   :  { %10609 = vmatprep.subr.bf16.mxu1 %v17104_v46  ;;  %v17183_v45 = vld [vmem:[#allocation2 + $0x1368] ss:$80 sps:$4 sm:$0xff]   ;;  %v17188_v46 = vld [vmem:[#allocation2 + $0x8cc] ss:$80 sps:$4 sm:$0xff]  }
 0x750   :  { %10567 = vmatpush2.bf16.msra.mxu0 %v17106_v13  ;;  %v17191_v13 = vld [vmem:[#allocation2 + $0x12cc] ss:$80 sps:$4 sm:$0xff]  }
 0x751   :  { %10610 = vmatpush2.bf16.msra.mxu1 %v17107_v47  ;;  %10568 = vmatprep.subr.bf16.mxu0 %v17108_v18  ;;  %v17186_v47 = vld [vmem:[#allocation2 + $0x8c8] ss:$80 sps:$4 sm:$0xff]  }
 0x752   :  { %10611 = vmatprep.subr.bf16.mxu1 %v17110_v48  ;;  %v17189_v18 = vld [vmem:[#allocation2 + $0x12c8] ss:$80 sps:$4 sm:$0xff]   ;;  %v17194_v48 = vld [vmem:[#allocation2 + $0x82c] ss:$80 sps:$4 sm:$0xff]  }
 0x754   :  { %10569 = vmatpush2.bf16.msra.mxu0 %v17112_v49  ;;  %v17197_v49 = vld [vmem:[#allocation2 + $0x122c] ss:$80 sps:$4 sm:$0xff]  }
 0x755   :  { %10612 = vmatpush2.bf16.msra.mxu1 %v17113_v51  ;;  %10570 = vmatprep.subr.bf16.mxu0 %v17114_v52  ;;  %v17192_v51 = vld [vmem:[#allocation2 + $0x828] ss:$80 sps:$4 sm:$0xff]  }
 0x756   :  { %10613 = vmatprep.subr.bf16.mxu1 %v17116_v53  ;;  %v17195_v52 = vld [vmem:[#allocation2 + $0x1228] ss:$80 sps:$4 sm:$0xff]   ;;  %v17200_v53 = vld [vmem:[#allocation2 + $0x78c] ss:$80 sps:$4 sm:$0xff]  }
 0x758   :  { %10571 = vmatpush2.bf16.msra.mxu0 %v17118_v54  ;;  %v17203_v54 = vld [vmem:[#allocation2 + $0x118c] ss:$80 sps:$4 sm:$0xff]  }
 0x759   :  { %10614 = vmatpush2.bf16.msra.mxu1 %v17119_v57  ;;  %10572 = vmatprep.subr.bf16.mxu0 %v17120_v59  ;;  %v17198_v57 = vld [vmem:[#allocation2 + $0x788] ss:$80 sps:$4 sm:$0xff]  }
 0x75a   :  { %10615 = vmatprep.subr.bf16.mxu1 %v17122_v60  ;;  %v17201_v59 = vld [vmem:[#allocation2 + $0x1188] ss:$80 sps:$4 sm:$0xff]   ;;  %v17206_v60 = vld [vmem:[#allocation2 + $0x6ec] ss:$80 sps:$4 sm:$0xff]  }
 0x75c   :  { %10573 = vmatpush2.bf16.msra.mxu0 %v17124_v61  ;;  %v17209_v61 = vld [vmem:[#allocation2 + $0x10ec] ss:$80 sps:$4 sm:$0xff]  }
 0x75d   :  { %10616 = vmatpush2.bf16.msra.mxu1 %v17125_v12  ;;  %10574 = vmatprep.subr.bf16.mxu0 %v17126_v1  ;;  %v17204_v12 = vld [vmem:[#allocation2 + $0x6e8] ss:$80 sps:$4 sm:$0xff]  }
 0x75e   :  { %10617 = vmatprep.subr.bf16.mxu1 %v17128_v7  ;;  %v17207_v1 = vld [vmem:[#allocation2 + $0x10e8] ss:$80 sps:$4 sm:$0xff]   ;;  %v17212_v7 = vld [vmem:[#allocation2 + $0x64c] ss:$80 sps:$4 sm:$0xff]  }
 0x760   :  { %10575 = vmatpush2.bf16.msra.mxu0 %v17130_v5  ;;  %v17215_v5 = vld [vmem:[#allocation2 + $0x104c] ss:$80 sps:$4 sm:$0xff]  }
 0x761   :  { %10618 = vmatpush2.bf16.msra.mxu1 %v17131_v8  ;;  %10630 = vmatprep.subr.bf16.mxu0 %v17134_v17  ;;  %v17210_v8 = vld [vmem:[#allocation2 + $0x648] ss:$80 sps:$4 sm:$0xff]  }
 0x762   :  { %10673 = vmatprep.subr.bf16.mxu1 %v17137_v19  ;;  %v17213_v17 = vld [vmem:[#allocation2 + $0x1048] ss:$80 sps:$4 sm:$0xff]   ;;  %v17218_v19 = vld [vmem:[#allocation2 + $0x5ac] ss:$80 sps:$4 sm:$0xff]  }
 0x763   :  { %10577 = vmatmul.mubr.bf16.vlgmr.msra.gmra.mxu0 %v19175_v22 }
 0x764   :  { %10620 = vmatmul.mubr.bf16.vlgmr.msra.gmra.mxu1 %v19181_v9  ;;  %10631 = vmatpush1.bf16.msra.mxu0 %v17132_v24  ;;  %v17221_v24 = vld [vmem:[#allocation2 + $0xfac] ss:$80 sps:$4 sm:$0xff]  }
 0x765   :  { %10674 = vmatpush1.bf16.msra.mxu1 %v17135_v20  ;;  %10632 = vmatprep.subr.bf16.mxu0 %v17140_v16  ;;  %v17216_v20 = vld [vmem:[#allocation2 + $0x5a8] ss:$80 sps:$4 sm:$0xff]  }
 0x766   :  { %10675 = vmatprep.subr.bf16.mxu1 %v17143_v27  ;;  %10662 = vmatprep.mubr.bf16.mxu0 %v19165_v62  ;;  %v17219_v16 = vld [vmem:[#allocation2 + $0xfa8] ss:$80 sps:$4 sm:$0xff]   ;;  %v17224_v27 = vld [vmem:[#allocation2 + $0x50c] ss:$80 sps:$4 sm:$0xff]  }
 0x767   :  { %10705 = vmatprep.mubr.bf16.mxu1 %v19167_v6 }
 0x768   :  { %10633 = vmatpush1.bf16.msra.mxu0 %v17138_v29  ;;  %v17227_v29 = vld [vmem:[#allocation2 + $0xf0c] ss:$80 sps:$4 sm:$0xff]  }
 0x769   :  { %10676 = vmatpush1.bf16.msra.mxu1 %v17141_v58  ;;  %10634 = vmatprep.subr.bf16.mxu0 %v17146_v32  ;;  %v17222_v58 = vld [vmem:[#allocation2 + $0x508] ss:$80 sps:$4 sm:$0xff]  }
 0x76a   :  { %10677 = vmatprep.subr.bf16.mxu1 %v17149_v3  ;;  %v17225_v32 = vld [vmem:[#allocation2 + $0xf08] ss:$80 sps:$4 sm:$0xff]   ;;  %v17230_v3 = vld [vmem:[#allocation2 + $0x474] ss:$80 sps:$4 sm:$0xff]  }
 0x76c   :  { %10635 = vmatpush1.bf16.msra.mxu0 %v17144_v37  ;;  %v17233_v37 = vld [vmem:[#allocation2 + $0xe74] ss:$80 sps:$4 sm:$0xff]  }
 0x76d   :  { %10678 = vmatpush1.bf16.msra.mxu1 %v17147_v39  ;;  %10636 = vmatprep.subr.bf16.mxu0 %v17152_v40  ;;  %v17228_v39 = vld [vmem:[#allocation2 + $0x470] ss:$80 sps:$4 sm:$0xff]  }
 0x76e   :  { %10679 = vmatprep.subr.bf16.mxu1 %v17155_v41  ;;  %v17231_v40 = vld [vmem:[#allocation2 + $0xe70] ss:$80 sps:$4 sm:$0xff]   ;;  %v17236_v41 = vld [vmem:[#allocation2 + $0x3d4] ss:$80 sps:$4 sm:$0xff]  }
 0x770   :  { %10637 = vmatpush1.bf16.msra.mxu0 %v17150_v21  ;;  %v17239_v21 = vld [vmem:[#allocation2 + $0xdd4] ss:$80 sps:$4 sm:$0xff]  }
 0x771   :  { %10680 = vmatpush1.bf16.msra.mxu1 %v17153_v50  ;;  %10638 = vmatprep.subr.bf16.mxu0 %v17158_v28  ;;  %v17234_v50 = vld [vmem:[#allocation2 + $0x3d0] ss:$80 sps:$4 sm:$0xff]  }
 0x772   :  { %10681 = vmatprep.subr.bf16.mxu1 %v17161_v31  ;;  %v17237_v28 = vld [vmem:[#allocation2 + $0xdd0] ss:$80 sps:$4 sm:$0xff]   ;;  %v17242_v31 = vld [vmem:[#allocation2 + $0x334] ss:$80 sps:$4 sm:$0xff]  }
 0x774   :  { %10639 = vmatpush1.bf16.msra.mxu0 %v17156_v15  ;;  %v17245_v15 = vld [vmem:[#allocation2 + $0xd34] ss:$80 sps:$4 sm:$0xff]  }
 0x775   :  { %10682 = vmatpush1.bf16.msra.mxu1 %v17159_v25  ;;  %10640 = vmatprep.subr.bf16.mxu0 %v17164_v44  ;;  %v17240_v25 = vld [vmem:[#allocation2 + $0x330] ss:$80 sps:$4 sm:$0xff]  }
 0x776   :  { %10683 = vmatprep.subr.bf16.mxu1 %v17167_v2  ;;  %v17243_v44 = vld [vmem:[#allocation2 + $0xd30] ss:$80 sps:$4 sm:$0xff]   ;;  %v17248_v2 = vld [vmem:[#allocation2 + $0x294] ss:$80 sps:$4 sm:$0xff]  }
 0x778   :  { %10641 = vmatpush1.bf16.msra.mxu0 %v17162_v33  ;;  %v17251_v33 = vld [vmem:[#allocation2 + $0xc94] ss:$80 sps:$4 sm:$0xff]  }
 0x779   :  { %10684 = vmatpush1.bf16.msra.mxu1 %v17165_v34  ;;  %10642 = vmatprep.subr.bf16.mxu0 %v17170_v35  ;;  %v17246_v34 = vld [vmem:[#allocation2 + $0x290] ss:$80 sps:$4 sm:$0xff]  }
 0x77a   :  { %10685 = vmatprep.subr.bf16.mxu1 %v17173_v36  ;;  %v17249_v35 = vld [vmem:[#allocation2 + $0xc90] ss:$80 sps:$4 sm:$0xff]   ;;  %v17254_v36 = vld [vmem:[#allocation2 + $0x1f4] ss:$80 sps:$4 sm:$0xff]  }
 0x77c   :  { %10643 = vmatpush1.bf16.msra.mxu0 %v17168_v23  ;;  %v17257_v23 = vld [vmem:[#allocation2 + $0xbf4] ss:$80 sps:$4 sm:$0xff]  }
 0x77d   :  { %10686 = vmatpush1.bf16.msra.mxu1 %v17171_v38  ;;  %10644 = vmatprep.subr.bf16.mxu0 %v17176_v14  ;;  %v17252_v38 = vld [vmem:[#allocation2 + $0x1f0] ss:$80 sps:$4 sm:$0xff]  }
 0x77e   :  { %10687 = vmatprep.subr.bf16.mxu1 %v17179_v56  ;;  %v17255_v14 = vld [vmem:[#allocation2 + $0xbf0] ss:$80 sps:$4 sm:$0xff]   ;;  %v17260_v56 = vld [vmem:[#allocation2 + $0x154] ss:$80 sps:$4 sm:$0xff]  }
 0x780   :  { %10645 = vmatpush1.bf16.msra.mxu0 %v17174_v4  ;;  %v17263_v4 = vld [vmem:[#allocation2 + $0xb54] ss:$80 sps:$4 sm:$0xff]  }
 0x781   :  { %10688 = vmatpush1.bf16.msra.mxu1 %v17177_v63  ;;  %10646 = vmatprep.subr.bf16.mxu0 %v17182_v42  ;;  %v17258_v63 = vld [vmem:[#allocation2 + $0x150] ss:$80 sps:$4 sm:$0xff]  }
 0x782   :  { %10689 = vmatprep.subr.bf16.mxu1 %v17185_v55  ;;  %v17261_v42 = vld [vmem:[#allocation2 + $0xb50] ss:$80 sps:$4 sm:$0xff]   ;;  %v17266_v55 = vld [vmem:[#allocation2 + $0xb4] ss:$80 sps:$4 sm:$0xff]  }
 0x784   :  { %10647 = vmatpush2.bf16.msra.mxu0 %v17180_v43  ;;  %v17269_v43 = vld [vmem:[#allocation2 + $0xab4] ss:$80 sps:$4 sm:$0xff]  }
 0x785   :  { %10690 = vmatpush2.bf16.msra.mxu1 %v17183_v45  ;;  %10648 = vmatprep.subr.bf16.mxu0 %v17188_v46  ;;  %v17264_v45 = vld [vmem:[#allocation2 + $0xb0] ss:$80 sps:$4 sm:$0xff]  }
 0x786   :  { %10691 = vmatprep.subr.bf16.mxu1 %v17191_v13  ;;  %v17267_v46 = vld [vmem:[#allocation2 + $0xab0] ss:$80 sps:$4 sm:$0xff]   ;;  %v17272_v13 = vld [vmem:[#allocation2 + $0x14] ss:$80 sps:$4 sm:$0xff]  }
 0x788   :  { %10649 = vmatpush2.bf16.msra.mxu0 %v17186_v47  ;;  %v17275_v47 = vld [vmem:[#allocation2 + $0xa14] ss:$80 sps:$4 sm:$0xff]  }
 0x789   :  { %10692 = vmatpush2.bf16.msra.mxu1 %v17189_v18  ;;  %10650 = vmatprep.subr.bf16.mxu0 %v17194_v48  ;;  %v17270_v18 = vld [vmem:[#allocation2 + $0x10] ss:$80 sps:$4 sm:$0xff]  }
 0x78a   :  { %10693 = vmatprep.subr.bf16.mxu1 %v17197_v49  ;;  %v17273_v48 = vld [vmem:[#allocation2 + $0xa10] ss:$80 sps:$4 sm:$0xff]   ;;  %v17278_v49 = vld [vmem:[#allocation2 + $0x974] ss:$80 sps:$4 sm:$0xff]  }
 0x78c   :  { %10651 = vmatpush2.bf16.msra.mxu0 %v17192_v51  ;;  %v17281_v51 = vld [vmem:[#allocation2 + $0x1374] ss:$80 sps:$4 sm:$0xff]  }
 0x78d   :  { %10694 = vmatpush2.bf16.msra.mxu1 %v17195_v52  ;;  %10652 = vmatprep.subr.bf16.mxu0 %v17200_v53  ;;  %v17276_v52 = vld [vmem:[#allocation2 + $0x970] ss:$80 sps:$4 sm:$0xff]  }
 0x78e   :  { %10695 = vmatprep.subr.bf16.mxu1 %v17203_v54  ;;  %v17279_v53 = vld [vmem:[#allocation2 + $0x1370] ss:$80 sps:$4 sm:$0xff]   ;;  %v17284_v54 = vld [vmem:[#allocation2 + $0x8d4] ss:$80 sps:$4 sm:$0xff]  }
 0x790   :  { %10653 = vmatpush2.bf16.msra.mxu0 %v17198_v57  ;;  %v17287_v57 = vld [vmem:[#allocation2 + $0x12d4] ss:$80 sps:$4 sm:$0xff]  }
 0x791   :  { %10696 = vmatpush2.bf16.msra.mxu1 %v17201_v59  ;;  %10654 = vmatprep.subr.bf16.mxu0 %v17206_v60  ;;  %v17282_v59 = vld [vmem:[#allocation2 + $0x8d0] ss:$80 sps:$4 sm:$0xff]  }
 0x792   :  { %10697 = vmatprep.subr.bf16.mxu1 %v17209_v61  ;;  %v17285_v60 = vld [vmem:[#allocation2 + $0x12d0] ss:$80 sps:$4 sm:$0xff]   ;;  %v17290_v61 = vld [vmem:[#allocation2 + $0x834] ss:$80 sps:$4 sm:$0xff]  }
 0x794   :  { %10655 = vmatpush2.bf16.msra.mxu0 %v17204_v12  ;;  %v17293_v12 = vld [vmem:[#allocation2 + $0x1234] ss:$80 sps:$4 sm:$0xff]  }
 0x795   :  { %10698 = vmatpush2.bf16.msra.mxu1 %v17207_v1  ;;  %10656 = vmatprep.subr.bf16.mxu0 %v17212_v7  ;;  %v17288_v1 = vld [vmem:[#allocation2 + $0x830] ss:$80 sps:$4 sm:$0xff]  }
 0x796   :  { %10699 = vmatprep.subr.bf16.mxu1 %v17215_v5  ;;  %v17291_v7 = vld [vmem:[#allocation2 + $0x1230] ss:$80 sps:$4 sm:$0xff]   ;;  %v17296_v5 = vld [vmem:[#allocation2 + $0x794] ss:$80 sps:$4 sm:$0xff]  }
 0x798   :  { %10657 = vmatpush2.bf16.msra.mxu0 %v17210_v8  ;;  %v17299_v8 = vld [vmem:[#allocation2 + $0x1194] ss:$80 sps:$4 sm:$0xff]  }
 0x799   :  { %10700 = vmatpush2.bf16.msra.mxu1 %v17213_v17  ;;  %10658 = vmatprep.subr.bf16.mxu0 %v17218_v19  ;;  %v17294_v17 = vld [vmem:[#allocation2 + $0x790] ss:$80 sps:$4 sm:$0xff]  }
 0x79a   :  { %10701 = vmatprep.subr.bf16.mxu1 %v17221_v24  ;;  %v17297_v19 = vld [vmem:[#allocation2 + $0x1190] ss:$80 sps:$4 sm:$0xff]   ;;  %v17302_v24 = vld [vmem:[#allocation2 + $0x6f4] ss:$80 sps:$4 sm:$0xff]  }
 0x79c   :  { %10659 = vmatpush2.bf16.msra.mxu0 %v17216_v20  ;;  %v17305_v20 = vld [vmem:[#allocation2 + $0x10f4] ss:$80 sps:$4 sm:$0xff]  }
 0x79d   :  { %10702 = vmatpush2.bf16.msra.mxu1 %v17219_v16  ;;  %10660 = vmatprep.subr.bf16.mxu0 %v17224_v27  ;;  %v17300_v16 = vld [vmem:[#allocation2 + $0x6f0] ss:$80 sps:$4 sm:$0xff]  }
 0x79e   :  { %10703 = vmatprep.subr.bf16.mxu1 %v17227_v29  ;;  %v17303_v27 = vld [vmem:[#allocation2 + $0x10f0] ss:$80 sps:$4 sm:$0xff]   ;;  %v17308_v29 = vld [vmem:[#allocation2 + $0x654] ss:$80 sps:$4 sm:$0xff]  }
 0x7a0   :  { %10661 = vmatpush2.bf16.msra.mxu0 %v17222_v58  ;;  %v17311_v58 = vld [vmem:[#allocation2 + $0x1054] ss:$80 sps:$4 sm:$0xff]  }
 0x7a1   :  { %10704 = vmatpush2.bf16.msra.mxu1 %v17225_v32  ;;  %10716 = vmatprep.subr.bf16.mxu0 %v17230_v3  ;;  %v17306_v32 = vld [vmem:[#allocation2 + $0x650] ss:$80 sps:$4 sm:$0xff]  }
 0x7a2   :  { %10759 = vmatprep.subr.bf16.mxu1 %v17233_v37  ;;  %v17309_v3 = vld [vmem:[#allocation2 + $0x1050] ss:$80 sps:$4 sm:$0xff]   ;;  %v17314_v37 = vld [vmem:[#allocation2 + $0x5b4] ss:$80 sps:$4 sm:$0xff]  }
 0x7a3   :  { %10663 = vmatmul.mubr.bf16.vlgmr.msra.gmra.mxu0 %v19175_v22 }
 0x7a4   :  { %10706 = vmatmul.mubr.bf16.vlgmr.msra.gmra.mxu1 %v19181_v9  ;;  %10717 = vmatpush1.bf16.msra.mxu0 %v17228_v39  ;;  %v17317_v39 = vld [vmem:[#allocation2 + $0xfb4] ss:$80 sps:$4 sm:$0xff]  }
 0x7a5   :  { %10760 = vmatpush1.bf16.msra.mxu1 %v17231_v40  ;;  %10718 = vmatprep.subr.bf16.mxu0 %v17236_v41  ;;  %v17312_v40 = vld [vmem:[#allocation2 + $0x5b0] ss:$80 sps:$4 sm:$0xff]  }
 0x7a6   :  { %10761 = vmatprep.subr.bf16.mxu1 %v17239_v21  ;;  %10748 = vmatprep.mubr.bf16.mxu0 %v19165_v62  ;;  %v17315_v41 = vld [vmem:[#allocation2 + $0xfb0] ss:$80 sps:$4 sm:$0xff]   ;;  %v17320_v21 = vld [vmem:[#allocation2 + $0x514] ss:$80 sps:$4 sm:$0xff]  }
 0x7a7   :  { %10791 = vmatprep.mubr.bf16.mxu1 %v19167_v6 }
 0x7a8   :  { %10719 = vmatpush1.bf16.msra.mxu0 %v17234_v50  ;;  %v17323_v50 = vld [vmem:[#allocation2 + $0xf14] ss:$80 sps:$4 sm:$0xff]  }
 0x7a9   :  { %10762 = vmatpush1.bf16.msra.mxu1 %v17237_v28  ;;  %10720 = vmatprep.subr.bf16.mxu0 %v17242_v31  ;;  %v17318_v28 = vld [vmem:[#allocation2 + $0x510] ss:$80 sps:$4 sm:$0xff]  }
 0x7aa   :  { %10763 = vmatprep.subr.bf16.mxu1 %v17245_v15  ;;  %v17321_v31 = vld [vmem:[#allocation2 + $0xf10] ss:$80 sps:$4 sm:$0xff]   ;;  %v17326_v15 = vld [vmem:[#allocation2 + $0x47c] ss:$80 sps:$4 sm:$0xff]  }
 0x7ac   :  { %10721 = vmatpush1.bf16.msra.mxu0 %v17240_v25  ;;  %v17329_v25 = vld [vmem:[#allocation2 + $0xe7c] ss:$80 sps:$4 sm:$0xff]  }
 0x7ad   :  { %10764 = vmatpush1.bf16.msra.mxu1 %v17243_v44  ;;  %10722 = vmatprep.subr.bf16.mxu0 %v17248_v2  ;;  %v17324_v44 = vld [vmem:[#allocation2 + $0x478] ss:$80 sps:$4 sm:$0xff]  }
 0x7ae   :  { %10765 = vmatprep.subr.bf16.mxu1 %v17251_v33  ;;  %v17327_v2 = vld [vmem:[#allocation2 + $0xe78] ss:$80 sps:$4 sm:$0xff]   ;;  %v17332_v33 = vld [vmem:[#allocation2 + $0x3dc] ss:$80 sps:$4 sm:$0xff]  }
 0x7b0   :  { %10723 = vmatpush1.bf16.msra.mxu0 %v17246_v34  ;;  %v17335_v34 = vld [vmem:[#allocation2 + $0xddc] ss:$80 sps:$4 sm:$0xff]  }
 0x7b1   :  { %10766 = vmatpush1.bf16.msra.mxu1 %v17249_v35  ;;  %10724 = vmatprep.subr.bf16.mxu0 %v17254_v36  ;;  %v17330_v35 = vld [vmem:[#allocation2 + $0x3d8] ss:$80 sps:$4 sm:$0xff]  }
 0x7b2   :  { %10767 = vmatprep.subr.bf16.mxu1 %v17257_v23  ;;  %v17333_v36 = vld [vmem:[#allocation2 + $0xdd8] ss:$80 sps:$4 sm:$0xff]   ;;  %v17338_v23 = vld [vmem:[#allocation2 + $0x33c] ss:$80 sps:$4 sm:$0xff]  }
 0x7b4   :  { %10725 = vmatpush1.bf16.msra.mxu0 %v17252_v38  ;;  %v17341_v38 = vld [vmem:[#allocation2 + $0xd3c] ss:$80 sps:$4 sm:$0xff]  }
 0x7b5   :  { %10768 = vmatpush1.bf16.msra.mxu1 %v17255_v14  ;;  %10726 = vmatprep.subr.bf16.mxu0 %v17260_v56  ;;  %v17336_v14 = vld [vmem:[#allocation2 + $0x338] ss:$80 sps:$4 sm:$0xff]  }
 0x7b6   :  { %10769 = vmatprep.subr.bf16.mxu1 %v17263_v4  ;;  %v17339_v56 = vld [vmem:[#allocation2 + $0xd38] ss:$80 sps:$4 sm:$0xff]   ;;  %v17344_v4 = vld [vmem:[#allocation2 + $0x29c] ss:$80 sps:$4 sm:$0xff]  }
 0x7b8   :  { %10727 = vmatpush1.bf16.msra.mxu0 %v17258_v63  ;;  %v17347_v63 = vld [vmem:[#allocation2 + $0xc9c] ss:$80 sps:$4 sm:$0xff]  }
 0x7b9   :  { %10770 = vmatpush1.bf16.msra.mxu1 %v17261_v42  ;;  %10728 = vmatprep.subr.bf16.mxu0 %v17266_v55  ;;  %v17342_v42 = vld [vmem:[#allocation2 + $0x298] ss:$80 sps:$4 sm:$0xff]  }
 0x7ba   :  { %10771 = vmatprep.subr.bf16.mxu1 %v17269_v43  ;;  %v17345_v55 = vld [vmem:[#allocation2 + $0xc98] ss:$80 sps:$4 sm:$0xff]   ;;  %v17350_v43 = vld [vmem:[#allocation2 + $0x1fc] ss:$80 sps:$4 sm:$0xff]  }
 0x7bc   :  { %10729 = vmatpush1.bf16.msra.mxu0 %v17264_v45  ;;  %v17353_v45 = vld [vmem:[#allocation2 + $0xbfc] ss:$80 sps:$4 sm:$0xff]  }
 0x7bd   :  { %10772 = vmatpush1.bf16.msra.mxu1 %v17267_v46  ;;  %10730 = vmatprep.subr.bf16.mxu0 %v17272_v13  ;;  %v17348_v46 = vld [vmem:[#allocation2 + $0x1f8] ss:$80 sps:$4 sm:$0xff]  }
 0x7be   :  { %10773 = vmatprep.subr.bf16.mxu1 %v17275_v47  ;;  %v17351_v13 = vld [vmem:[#allocation2 + $0xbf8] ss:$80 sps:$4 sm:$0xff]   ;;  %v17356_v47 = vld [vmem:[#allocation2 + $0x15c] ss:$80 sps:$4 sm:$0xff]  }
 0x7c0   :  { %10731 = vmatpush1.bf16.msra.mxu0 %v17270_v18  ;;  %v17359_v18 = vld [vmem:[#allocation2 + $0xb5c] ss:$80 sps:$4 sm:$0xff]  }
 0x7c1   :  { %10774 = vmatpush1.bf16.msra.mxu1 %v17273_v48  ;;  %10732 = vmatprep.subr.bf16.mxu0 %v17278_v49  ;;  %v17354_v48 = vld [vmem:[#allocation2 + $0x158] ss:$80 sps:$4 sm:$0xff]  }
 0x7c2   :  { %10775 = vmatprep.subr.bf16.mxu1 %v17281_v51  ;;  %v17357_v49 = vld [vmem:[#allocation2 + $0xb58] ss:$80 sps:$4 sm:$0xff]   ;;  %v17362_v51 = vld [vmem:[#allocation2 + $0xbc] ss:$80 sps:$4 sm:$0xff]  }
 0x7c4   :  { %10733 = vmatpush2.bf16.msra.mxu0 %v17276_v52  ;;  %v17365_v52 = vld [vmem:[#allocation2 + $0xabc] ss:$80 sps:$4 sm:$0xff]  }
 0x7c5   :  { %10776 = vmatpush2.bf16.msra.mxu1 %v17279_v53  ;;  %10734 = vmatprep.subr.bf16.mxu0 %v17284_v54  ;;  %v17360_v53 = vld [vmem:[#allocation2 + $0xb8] ss:$80 sps:$4 sm:$0xff]  }
 0x7c6   :  { %10777 = vmatprep.subr.bf16.mxu1 %v17287_v57  ;;  %v17363_v54 = vld [vmem:[#allocation2 + $0xab8] ss:$80 sps:$4 sm:$0xff]   ;;  %v17368_v57 = vld [vmem:[#allocation2 + $0x1c] ss:$80 sps:$4 sm:$0xff]  }
 0x7c8   :  { %10735 = vmatpush2.bf16.msra.mxu0 %v17282_v59  ;;  %v17371_v59 = vld [vmem:[#allocation2 + $0xa1c] ss:$80 sps:$4 sm:$0xff]  }
 0x7c9   :  { %10778 = vmatpush2.bf16.msra.mxu1 %v17285_v60  ;;  %10736 = vmatprep.subr.bf16.mxu0 %v17290_v61  ;;  %v17366_v60 = vld [vmem:[#allocation2 + $0x18] ss:$80 sps:$4 sm:$0xff]  }
 0x7ca   :  { %10779 = vmatprep.subr.bf16.mxu1 %v17293_v12  ;;  %v17369_v61 = vld [vmem:[#allocation2 + $0xa18] ss:$80 sps:$4 sm:$0xff]   ;;  %v17374_v12 = vld [vmem:[#allocation2 + $0x97c] ss:$80 sps:$4 sm:$0xff]  }
 0x7cc   :  { %10737 = vmatpush2.bf16.msra.mxu0 %v17288_v1  ;;  %v17377_v1 = vld [vmem:[#allocation2 + $0x137c] ss:$80 sps:$4 sm:$0xff]  }
 0x7cd   :  { %10780 = vmatpush2.bf16.msra.mxu1 %v17291_v7  ;;  %10738 = vmatprep.subr.bf16.mxu0 %v17296_v5  ;;  %v17372_v7 = vld [vmem:[#allocation2 + $0x978] ss:$80 sps:$4 sm:$0xff]  }
 0x7ce   :  { %10781 = vmatprep.subr.bf16.mxu1 %v17299_v8  ;;  %v17375_v5 = vld [vmem:[#allocation2 + $0x1378] ss:$80 sps:$4 sm:$0xff]   ;;  %v17380_v8 = vld [vmem:[#allocation2 + $0x8dc] ss:$80 sps:$4 sm:$0xff]  }
 0x7d0   :  { %10739 = vmatpush2.bf16.msra.mxu0 %v17294_v17  ;;  %v17383_v17 = vld [vmem:[#allocation2 + $0x12dc] ss:$80 sps:$4 sm:$0xff]  }
 0x7d1   :  { %10782 = vmatpush2.bf16.msra.mxu1 %v17297_v19  ;;  %10740 = vmatprep.subr.bf16.mxu0 %v17302_v24  ;;  %v17378_v19 = vld [vmem:[#allocation2 + $0x8d8] ss:$80 sps:$4 sm:$0xff]  }
 0x7d2   :  { %10783 = vmatprep.subr.bf16.mxu1 %v17305_v20  ;;  %v17381_v24 = vld [vmem:[#allocation2 + $0x12d8] ss:$80 sps:$4 sm:$0xff]   ;;  %v17386_v20 = vld [vmem:[#allocation2 + $0x83c] ss:$80 sps:$4 sm:$0xff]  }
 0x7d4   :  { %10741 = vmatpush2.bf16.msra.mxu0 %v17300_v16  ;;  %v17389_v16 = vld [vmem:[#allocation2 + $0x123c] ss:$80 sps:$4 sm:$0xff]  }
 0x7d5   :  { %10784 = vmatpush2.bf16.msra.mxu1 %v17303_v27  ;;  %10742 = vmatprep.subr.bf16.mxu0 %v17308_v29  ;;  %v17384_v27 = vld [vmem:[#allocation2 + $0x838] ss:$80 sps:$4 sm:$0xff]  }
 0x7d6   :  { %10785 = vmatprep.subr.bf16.mxu1 %v17311_v58  ;;  %v17387_v29 = vld [vmem:[#allocation2 + $0x1238] ss:$80 sps:$4 sm:$0xff]   ;;  %v17392_v58 = vld [vmem:[#allocation2 + $0x79c] ss:$80 sps:$4 sm:$0xff]  }
 0x7d8   :  { %10743 = vmatpush2.bf16.msra.mxu0 %v17306_v32  ;;  %v17395_v32 = vld [vmem:[#allocation2 + $0x119c] ss:$80 sps:$4 sm:$0xff]  }
 0x7d9   :  { %10786 = vmatpush2.bf16.msra.mxu1 %v17309_v3  ;;  %10744 = vmatprep.subr.bf16.mxu0 %v17314_v37  ;;  %v17390_v3 = vld [vmem:[#allocation2 + $0x798] ss:$80 sps:$4 sm:$0xff]  }
 0x7da   :  { %10787 = vmatprep.subr.bf16.mxu1 %v17317_v39  ;;  %v17393_v37 = vld [vmem:[#allocation2 + $0x1198] ss:$80 sps:$4 sm:$0xff]   ;;  %v17398_v39 = vld [vmem:[#allocation2 + $0x6fc] ss:$80 sps:$4 sm:$0xff]  }
 0x7dc   :  { %10745 = vmatpush2.bf16.msra.mxu0 %v17312_v40  ;;  %v17401_v40 = vld [vmem:[#allocation2 + $0x10fc] ss:$80 sps:$4 sm:$0xff]  }
 0x7dd   :  { %10788 = vmatpush2.bf16.msra.mxu1 %v17315_v41  ;;  %10746 = vmatprep.subr.bf16.mxu0 %v17320_v21  ;;  %v17396_v41 = vld [vmem:[#allocation2 + $0x6f8] ss:$80 sps:$4 sm:$0xff]  }
 0x7de   :  { %10789 = vmatprep.subr.bf16.mxu1 %v17323_v50  ;;  %v17399_v21 = vld [vmem:[#allocation2 + $0x10f8] ss:$80 sps:$4 sm:$0xff]   ;;  %v17404_v50 = vld [vmem:[#allocation2 + $0x65c] ss:$80 sps:$4 sm:$0xff]  }
 0x7e0   :  { %10747 = vmatpush2.bf16.msra.mxu0 %v17318_v28  ;;  %v17407_v28 = vld [vmem:[#allocation2 + $0x105c] ss:$80 sps:$4 sm:$0xff]  }
 0x7e1   :  { %10790 = vmatpush2.bf16.msra.mxu1 %v17321_v31  ;;  %10802 = vmatprep.subr.bf16.mxu0 %v17326_v15  ;;  %v17402_v31 = vld [vmem:[#allocation2 + $0x658] ss:$80 sps:$4 sm:$0xff]  }
 0x7e2   :  { %10845 = vmatprep.subr.bf16.mxu1 %v17329_v25  ;;  %v17405_v15 = vld [vmem:[#allocation2 + $0x1058] ss:$80 sps:$4 sm:$0xff]   ;;  %v17410_v25 = vld [vmem:[#allocation2 + $0x5bc] ss:$80 sps:$4 sm:$0xff]  }
 0x7e3   :  { %10749 = vmatmul.mubr.bf16.vlgmr.msra.gmra.mxu0 %v19175_v22 }
 0x7e4   :  { %10792 = vmatmul.mubr.bf16.vlgmr.msra.gmra.mxu1 %v19181_v9  ;;  %10803 = vmatpush1.bf16.msra.mxu0 %v17324_v44  ;;  %v17413_v44 = vld [vmem:[#allocation2 + $0xfbc] ss:$80 sps:$4 sm:$0xff]  }
 0x7e5   :  { %10846 = vmatpush1.bf16.msra.mxu1 %v17327_v2  ;;  %10804 = vmatprep.subr.bf16.mxu0 %v17332_v33  ;;  %v17408_v2 = vld [vmem:[#allocation2 + $0x5b8] ss:$80 sps:$4 sm:$0xff]  }
 0x7e6   :  { %10847 = vmatprep.subr.bf16.mxu1 %v17335_v34  ;;  %10834 = vmatprep.mubr.bf16.mxu0 %v19165_v62  ;;  %v17411_v33 = vld [vmem:[#allocation2 + $0xfb8] ss:$80 sps:$4 sm:$0xff]   ;;  %v17416_v34 = vld [vmem:[#allocation2 + $0x51c] ss:$80 sps:$4 sm:$0xff]  }
 0x7e7   :  { %10877 = vmatprep.mubr.bf16.mxu1 %v19167_v6 }
 0x7e8   :  { %10805 = vmatpush1.bf16.msra.mxu0 %v17330_v35  ;;  %v17419_v35 = vld [vmem:[#allocation2 + $0xf1c] ss:$80 sps:$4 sm:$0xff]  }
 0x7e9   :  { %10848 = vmatpush1.bf16.msra.mxu1 %v17333_v36  ;;  %10806 = vmatprep.subr.bf16.mxu0 %v17338_v23  ;;  %v17414_v36 = vld [vmem:[#allocation2 + $0x518] ss:$80 sps:$4 sm:$0xff]  }
 0x7ea   :  { %10849 = vmatprep.subr.bf16.mxu1 %v17341_v38  ;;  %v17417_v23 = vld [vmem:[#allocation2 + $0xf18] ss:$80 sps:$4 sm:$0xff]   ;;  %v17422_v38 = vld [vmem:[#allocation2 + $0x484] ss:$80 sps:$4 sm:$0xff]  }
 0x7ec   :  { %10807 = vmatpush1.bf16.msra.mxu0 %v17336_v14  ;;  %v17425_v14 = vld [vmem:[#allocation2 + $0xe84] ss:$80 sps:$4 sm:$0xff]  }
 0x7ed   :  { %10850 = vmatpush1.bf16.msra.mxu1 %v17339_v56  ;;  %10808 = vmatprep.subr.bf16.mxu0 %v17344_v4  ;;  %v17420_v56 = vld [vmem:[#allocation2 + $0x480] ss:$80 sps:$4 sm:$0xff]  }
 0x7ee   :  { %10851 = vmatprep.subr.bf16.mxu1 %v17347_v63  ;;  %v17423_v4 = vld [vmem:[#allocation2 + $0xe80] ss:$80 sps:$4 sm:$0xff]   ;;  %v17428_v63 = vld [vmem:[#allocation2 + $0x3e4] ss:$80 sps:$4 sm:$0xff]  }
 0x7f0   :  { %10809 = vmatpush1.bf16.msra.mxu0 %v17342_v42  ;;  %v17431_v42 = vld [vmem:[#allocation2 + $0xde4] ss:$80 sps:$4 sm:$0xff]  }
 0x7f1   :  { %10852 = vmatpush1.bf16.msra.mxu1 %v17345_v55  ;;  %10810 = vmatprep.subr.bf16.mxu0 %v17350_v43  ;;  %v17426_v55 = vld [vmem:[#allocation2 + $0x3e0] ss:$80 sps:$4 sm:$0xff]  }
 0x7f2   :  { %10853 = vmatprep.subr.bf16.mxu1 %v17353_v45  ;;  %v17429_v43 = vld [vmem:[#allocation2 + $0xde0] ss:$80 sps:$4 sm:$0xff]   ;;  %v17434_v45 = vld [vmem:[#allocation2 + $0x344] ss:$80 sps:$4 sm:$0xff]  }
 0x7f4   :  { %10811 = vmatpush1.bf16.msra.mxu0 %v17348_v46  ;;  %v17437_v46 = vld [vmem:[#allocation2 + $0xd44] ss:$80 sps:$4 sm:$0xff]  }
 0x7f5   :  { %10854 = vmatpush1.bf16.msra.mxu1 %v17351_v13  ;;  %10812 = vmatprep.subr.bf16.mxu0 %v17356_v47  ;;  %v17432_v13 = vld [vmem:[#allocation2 + $0x340] ss:$80 sps:$4 sm:$0xff]  }
 0x7f6   :  { %10855 = vmatprep.subr.bf16.mxu1 %v17359_v18  ;;  %v17435_v47 = vld [vmem:[#allocation2 + $0xd40] ss:$80 sps:$4 sm:$0xff]   ;;  %v17440_v18 = vld [vmem:[#allocation2 + $0x2a4] ss:$80 sps:$4 sm:$0xff]  }
 0x7f8   :  { %10813 = vmatpush1.bf16.msra.mxu0 %v17354_v48  ;;  %v17443_v48 = vld [vmem:[#allocation2 + $0xca4] ss:$80 sps:$4 sm:$0xff]  }
 0x7f9   :  { %10856 = vmatpush1.bf16.msra.mxu1 %v17357_v49  ;;  %10814 = vmatprep.subr.bf16.mxu0 %v17362_v51  ;;  %v17438_v49 = vld [vmem:[#allocation2 + $0x2a0] ss:$80 sps:$4 sm:$0xff]  }
 0x7fa   :  { %10857 = vmatprep.subr.bf16.mxu1 %v17365_v52  ;;  %v17441_v51 = vld [vmem:[#allocation2 + $0xca0] ss:$80 sps:$4 sm:$0xff]   ;;  %v17446_v52 = vld [vmem:[#allocation2 + $0x204] ss:$80 sps:$4 sm:$0xff]  }
 0x7fc   :  { %10815 = vmatpush1.bf16.msra.mxu0 %v17360_v53  ;;  %v17449_v53 = vld [vmem:[#allocation2 + $0xc04] ss:$80 sps:$4 sm:$0xff]  }
 0x7fd   :  { %10858 = vmatpush1.bf16.msra.mxu1 %v17363_v54  ;;  %10816 = vmatprep.subr.bf16.mxu0 %v17368_v57  ;;  %v17444_v54 = vld [vmem:[#allocation2 + $0x200] ss:$80 sps:$4 sm:$0xff]  }
 0x7fe   :  { %10859 = vmatprep.subr.bf16.mxu1 %v17371_v59  ;;  %v17447_v57 = vld [vmem:[#allocation2 + $0xc00] ss:$80 sps:$4 sm:$0xff]   ;;  %v17452_v59 = vld [vmem:[#allocation2 + $0x164] ss:$80 sps:$4 sm:$0xff]  }
 0x800   :  { %10817 = vmatpush1.bf16.msra.mxu0 %v17366_v60  ;;  %v17455_v60 = vld [vmem:[#allocation2 + $0xb64] ss:$80 sps:$4 sm:$0xff]  }
 0x801   :  { %10860 = vmatpush1.bf16.msra.mxu1 %v17369_v61  ;;  %10818 = vmatprep.subr.bf16.mxu0 %v17374_v12  ;;  %v17450_v61 = vld [vmem:[#allocation2 + $0x160] ss:$80 sps:$4 sm:$0xff]  }
 0x802   :  { %10861 = vmatprep.subr.bf16.mxu1 %v17377_v1  ;;  %v17453_v12 = vld [vmem:[#allocation2 + $0xb60] ss:$80 sps:$4 sm:$0xff]   ;;  %v17458_v1 = vld [vmem:[#allocation2 + $0xc4] ss:$80 sps:$4 sm:$0xff]  }
 0x804   :  { %10819 = vmatpush2.bf16.msra.mxu0 %v17372_v7  ;;  %v17461_v7 = vld [vmem:[#allocation2 + $0xac4] ss:$80 sps:$4 sm:$0xff]  }
 0x805   :  { %10862 = vmatpush2.bf16.msra.mxu1 %v17375_v5  ;;  %10820 = vmatprep.subr.bf16.mxu0 %v17380_v8  ;;  %v17456_v5 = vld [vmem:[#allocation2 + $0xc0] ss:$80 sps:$4 sm:$0xff]  }
 0x806   :  { %10863 = vmatprep.subr.bf16.mxu1 %v17383_v17  ;;  %v17459_v8 = vld [vmem:[#allocation2 + $0xac0] ss:$80 sps:$4 sm:$0xff]   ;;  %v17464_v17 = vld [vmem:[#allocation2 + $0x24] ss:$80 sps:$4 sm:$0xff]  }
 0x808   :  { %10821 = vmatpush2.bf16.msra.mxu0 %v17378_v19  ;;  %v17467_v19 = vld [vmem:[#allocation2 + $0xa24] ss:$80 sps:$4 sm:$0xff]  }
 0x809   :  { %10864 = vmatpush2.bf16.msra.mxu1 %v17381_v24  ;;  %10822 = vmatprep.subr.bf16.mxu0 %v17386_v20  ;;  %v17462_v24 = vld [vmem:[#allocation2 + $0x20] ss:$80 sps:$4 sm:$0xff]  }
 0x80a   :  { %10865 = vmatprep.subr.bf16.mxu1 %v17389_v16  ;;  %v17465_v20 = vld [vmem:[#allocation2 + $0xa20] ss:$80 sps:$4 sm:$0xff]   ;;  %v17470_v16 = vld [vmem:[#allocation2 + $0x984] ss:$80 sps:$4 sm:$0xff]  }
 0x80c   :  { %10823 = vmatpush2.bf16.msra.mxu0 %v17384_v27  ;;  %v17473_v27 = vld [vmem:[#allocation2 + $0x1384] ss:$80 sps:$4 sm:$0xff]  }
 0x80d   :  { %10866 = vmatpush2.bf16.msra.mxu1 %v17387_v29  ;;  %10824 = vmatprep.subr.bf16.mxu0 %v17392_v58  ;;  %v17468_v29 = vld [vmem:[#allocation2 + $0x980] ss:$80 sps:$4 sm:$0xff]  }
 0x80e   :  { %10867 = vmatprep.subr.bf16.mxu1 %v17395_v32  ;;  %v17471_v58 = vld [vmem:[#allocation2 + $0x1380] ss:$80 sps:$4 sm:$0xff]   ;;  %v17476_v32 = vld [vmem:[#allocation2 + $0x8e4] ss:$80 sps:$4 sm:$0xff]  }
 0x810   :  { %10825 = vmatpush2.bf16.msra.mxu0 %v17390_v3  ;;  %v17479_v3 = vld [vmem:[#allocation2 + $0x12e4] ss:$80 sps:$4 sm:$0xff]  }
 0x811   :  { %10868 = vmatpush2.bf16.msra.mxu1 %v17393_v37  ;;  %10826 = vmatprep.subr.bf16.mxu0 %v17398_v39  ;;  %v17474_v37 = vld [vmem:[#allocation2 + $0x8e0] ss:$80 sps:$4 sm:$0xff]  }
 0x812   :  { %10869 = vmatprep.subr.bf16.mxu1 %v17401_v40  ;;  %v17477_v39 = vld [vmem:[#allocation2 + $0x12e0] ss:$80 sps:$4 sm:$0xff]   ;;  %v17482_v40 = vld [vmem:[#allocation2 + $0x844] ss:$80 sps:$4 sm:$0xff]  }
 0x814   :  { %10827 = vmatpush2.bf16.msra.mxu0 %v17396_v41  ;;  %v17485_v41 = vld [vmem:[#allocation2 + $0x1244] ss:$80 sps:$4 sm:$0xff]  }
 0x815   :  { %10870 = vmatpush2.bf16.msra.mxu1 %v17399_v21  ;;  %10828 = vmatprep.subr.bf16.mxu0 %v17404_v50  ;;  %v17480_v21 = vld [vmem:[#allocation2 + $0x840] ss:$80 sps:$4 sm:$0xff]  }
 0x816   :  { %10871 = vmatprep.subr.bf16.mxu1 %v17407_v28  ;;  %v17483_v50 = vld [vmem:[#allocation2 + $0x1240] ss:$80 sps:$4 sm:$0xff]   ;;  %v17488_v28 = vld [vmem:[#allocation2 + $0x7a4] ss:$80 sps:$4 sm:$0xff]  }
 0x818   :  { %10829 = vmatpush2.bf16.msra.mxu0 %v17402_v31  ;;  %v17491_v31 = vld [vmem:[#allocation2 + $0x11a4] ss:$80 sps:$4 sm:$0xff]  }
 0x819   :  { %10872 = vmatpush2.bf16.msra.mxu1 %v17405_v15  ;;  %10830 = vmatprep.subr.bf16.mxu0 %v17410_v25  ;;  %v17486_v15 = vld [vmem:[#allocation2 + $0x7a0] ss:$80 sps:$4 sm:$0xff]  }
 0x81a   :  { %10873 = vmatprep.subr.bf16.mxu1 %v17413_v44  ;;  %v17489_v25 = vld [vmem:[#allocation2 + $0x11a0] ss:$80 sps:$4 sm:$0xff]   ;;  %v17494_v44 = vld [vmem:[#allocation2 + $0x704] ss:$80 sps:$4 sm:$0xff]  }
 0x81c   :  { %10831 = vmatpush2.bf16.msra.mxu0 %v17408_v2  ;;  %v17497_v2 = vld [vmem:[#allocation2 + $0x1104] ss:$80 sps:$4 sm:$0xff]  }
 0x81d   :  { %10874 = vmatpush2.bf16.msra.mxu1 %v17411_v33  ;;  %10832 = vmatprep.subr.bf16.mxu0 %v17416_v34  ;;  %v17492_v33 = vld [vmem:[#allocation2 + $0x700] ss:$80 sps:$4 sm:$0xff]  }
 0x81e   :  { %10875 = vmatprep.subr.bf16.mxu1 %v17419_v35  ;;  %v17495_v34 = vld [vmem:[#allocation2 + $0x1100] ss:$80 sps:$4 sm:$0xff]   ;;  %v17500_v35 = vld [vmem:[#allocation2 + $0x664] ss:$80 sps:$4 sm:$0xff]  }
 0x820   :  { %10833 = vmatpush2.bf16.msra.mxu0 %v17414_v36  ;;  %v17503_v36 = vld [vmem:[#allocation2 + $0x1064] ss:$80 sps:$4 sm:$0xff]  }
 0x821   :  { %10876 = vmatpush2.bf16.msra.mxu1 %v17417_v23  ;;  %10888 = vmatprep.subr.bf16.mxu0 %v17422_v38  ;;  %v17498_v23 = vld [vmem:[#allocation2 + $0x660] ss:$80 sps:$4 sm:$0xff]  }
 0x822   :  { %10931 = vmatprep.subr.bf16.mxu1 %v17425_v14  ;;  %v17501_v38 = vld [vmem:[#allocation2 + $0x1060] ss:$80 sps:$4 sm:$0xff]   ;;  %v17506_v14 = vld [vmem:[#allocation2 + $0x5c4] ss:$80 sps:$4 sm:$0xff]  }
 0x823   :  { %10835 = vmatmul.mubr.bf16.vlgmr.msra.gmra.mxu0 %v19175_v22 }
 0x824   :  { %10878 = vmatmul.mubr.bf16.vlgmr.msra.gmra.mxu1 %v19181_v9  ;;  %10889 = vmatpush1.bf16.msra.mxu0 %v17420_v56  ;;  %v17509_v56 = vld [vmem:[#allocation2 + $0xfc4] ss:$80 sps:$4 sm:$0xff]  }
 0x825   :  { %10932 = vmatpush1.bf16.msra.mxu1 %v17423_v4  ;;  %10890 = vmatprep.subr.bf16.mxu0 %v17428_v63  ;;  %v17504_v4 = vld [vmem:[#allocation2 + $0x5c0] ss:$80 sps:$4 sm:$0xff]  }
 0x826   :  { %10933 = vmatprep.subr.bf16.mxu1 %v17431_v42  ;;  %10920 = vmatprep.mubr.bf16.mxu0 %v19165_v62  ;;  %v17507_v63 = vld [vmem:[#allocation2 + $0xfc0] ss:$80 sps:$4 sm:$0xff]   ;;  %v17512_v42 = vld [vmem:[#allocation2 + $0x524] ss:$80 sps:$4 sm:$0xff]  }
 0x827   :  { %10963 = vmatprep.mubr.bf16.mxu1 %v19167_v6 }
 0x828   :  { %10891 = vmatpush1.bf16.msra.mxu0 %v17426_v55  ;;  %v17515_v55 = vld [vmem:[#allocation2 + $0xf24] ss:$80 sps:$4 sm:$0xff]  }
 0x829   :  { %10934 = vmatpush1.bf16.msra.mxu1 %v17429_v43  ;;  %10892 = vmatprep.subr.bf16.mxu0 %v17434_v45  ;;  %v17510_v43 = vld [vmem:[#allocation2 + $0x520] ss:$80 sps:$4 sm:$0xff]  }
 0x82a   :  { %10935 = vmatprep.subr.bf16.mxu1 %v17437_v46  ;;  %v17513_v45 = vld [vmem:[#allocation2 + $0xf20] ss:$80 sps:$4 sm:$0xff]   ;;  %v17518_v46 = vld [vmem:[#allocation2 + $0x48c] ss:$80 sps:$4 sm:$0xff]  }
 0x82c   :  { %10893 = vmatpush1.bf16.msra.mxu0 %v17432_v13  ;;  %v17521_v13 = vld [vmem:[#allocation2 + $0xe8c] ss:$80 sps:$4 sm:$0xff]  }
 0x82d   :  { %10936 = vmatpush1.bf16.msra.mxu1 %v17435_v47  ;;  %10894 = vmatprep.subr.bf16.mxu0 %v17440_v18  ;;  %v17516_v47 = vld [vmem:[#allocation2 + $0x488] ss:$80 sps:$4 sm:$0xff]  }
 0x82e   :  { %10937 = vmatprep.subr.bf16.mxu1 %v17443_v48  ;;  %v17519_v18 = vld [vmem:[#allocation2 + $0xe88] ss:$80 sps:$4 sm:$0xff]   ;;  %v17524_v48 = vld [vmem:[#allocation2 + $0x3ec] ss:$80 sps:$4 sm:$0xff]  }
 0x830   :  { %10895 = vmatpush1.bf16.msra.mxu0 %v17438_v49  ;;  %v17527_v49 = vld [vmem:[#allocation2 + $0xdec] ss:$80 sps:$4 sm:$0xff]  }
 0x831   :  { %10938 = vmatpush1.bf16.msra.mxu1 %v17441_v51  ;;  %10896 = vmatprep.subr.bf16.mxu0 %v17446_v52  ;;  %v17522_v51 = vld [vmem:[#allocation2 + $0x3e8] ss:$80 sps:$4 sm:$0xff]  }
 0x832   :  { %10939 = vmatprep.subr.bf16.mxu1 %v17449_v53  ;;  %v17525_v52 = vld [vmem:[#allocation2 + $0xde8] ss:$80 sps:$4 sm:$0xff]   ;;  %v17530_v53 = vld [vmem:[#allocation2 + $0x34c] ss:$80 sps:$4 sm:$0xff]  }
 0x834   :  { %10897 = vmatpush1.bf16.msra.mxu0 %v17444_v54  ;;  %v17533_v54 = vld [vmem:[#allocation2 + $0xd4c] ss:$80 sps:$4 sm:$0xff]  }
 0x835   :  { %10940 = vmatpush1.bf16.msra.mxu1 %v17447_v57  ;;  %10898 = vmatprep.subr.bf16.mxu0 %v17452_v59  ;;  %v17528_v57 = vld [vmem:[#allocation2 + $0x348] ss:$80 sps:$4 sm:$0xff]  }
 0x836   :  { %10941 = vmatprep.subr.bf16.mxu1 %v17455_v60  ;;  %v17531_v59 = vld [vmem:[#allocation2 + $0xd48] ss:$80 sps:$4 sm:$0xff]   ;;  %v17536_v60 = vld [vmem:[#allocation2 + $0x2ac] ss:$80 sps:$4 sm:$0xff]  }
 0x838   :  { %10899 = vmatpush1.bf16.msra.mxu0 %v17450_v61  ;;  %v17539_v61 = vld [vmem:[#allocation2 + $0xcac] ss:$80 sps:$4 sm:$0xff]  }
 0x839   :  { %10942 = vmatpush1.bf16.msra.mxu1 %v17453_v12  ;;  %10900 = vmatprep.subr.bf16.mxu0 %v17458_v1  ;;  %v17534_v12 = vld [vmem:[#allocation2 + $0x2a8] ss:$80 sps:$4 sm:$0xff]  }
 0x83a   :  { %10943 = vmatprep.subr.bf16.mxu1 %v17461_v7  ;;  %v17537_v1 = vld [vmem:[#allocation2 + $0xca8] ss:$80 sps:$4 sm:$0xff]   ;;  %v17542_v7 = vld [vmem:[#allocation2 + $0x20c] ss:$80 sps:$4 sm:$0xff]  }
 0x83c   :  { %10901 = vmatpush1.bf16.msra.mxu0 %v17456_v5  ;;  %v17545_v5 = vld [vmem:[#allocation2 + $0xc0c] ss:$80 sps:$4 sm:$0xff]  }
 0x83d   :  { %10944 = vmatpush1.bf16.msra.mxu1 %v17459_v8  ;;  %10902 = vmatprep.subr.bf16.mxu0 %v17464_v17  ;;  %v17540_v8 = vld [vmem:[#allocation2 + $0x208] ss:$80 sps:$4 sm:$0xff]  }
 0x83e   :  { %10945 = vmatprep.subr.bf16.mxu1 %v17467_v19  ;;  %v17543_v17 = vld [vmem:[#allocation2 + $0xc08] ss:$80 sps:$4 sm:$0xff]   ;;  %v17548_v19 = vld [vmem:[#allocation2 + $0x16c] ss:$80 sps:$4 sm:$0xff]  }
 0x840   :  { %10903 = vmatpush1.bf16.msra.mxu0 %v17462_v24  ;;  %v17551_v24 = vld [vmem:[#allocation2 + $0xb6c] ss:$80 sps:$4 sm:$0xff]  }
 0x841   :  { %10946 = vmatpush1.bf16.msra.mxu1 %v17465_v20  ;;  %10904 = vmatprep.subr.bf16.mxu0 %v17470_v16  ;;  %v17546_v20 = vld [vmem:[#allocation2 + $0x168] ss:$80 sps:$4 sm:$0xff]  }
 0x842   :  { %10947 = vmatprep.subr.bf16.mxu1 %v17473_v27  ;;  %v17549_v16 = vld [vmem:[#allocation2 + $0xb68] ss:$80 sps:$4 sm:$0xff]   ;;  %v17554_v27 = vld [vmem:[#allocation2 + $0xcc] ss:$80 sps:$4 sm:$0xff]  }
 0x844   :  { %10905 = vmatpush2.bf16.msra.mxu0 %v17468_v29  ;;  %v17557_v29 = vld [vmem:[#allocation2 + $0xacc] ss:$80 sps:$4 sm:$0xff]  }
 0x845   :  { %10948 = vmatpush2.bf16.msra.mxu1 %v17471_v58  ;;  %10906 = vmatprep.subr.bf16.mxu0 %v17476_v32  ;;  %v17552_v58 = vld [vmem:[#allocation2 + $0xc8] ss:$80 sps:$4 sm:$0xff]  }
 0x846   :  { %10949 = vmatprep.subr.bf16.mxu1 %v17479_v3  ;;  %v17555_v32 = vld [vmem:[#allocation2 + $0xac8] ss:$80 sps:$4 sm:$0xff]   ;;  %v17560_v3 = vld [vmem:[#allocation2 + $0x2c] ss:$80 sps:$4 sm:$0xff]  }
 0x848   :  { %10907 = vmatpush2.bf16.msra.mxu0 %v17474_v37  ;;  %v17563_v37 = vld [vmem:[#allocation2 + $0xa2c] ss:$80 sps:$4 sm:$0xff]  }
 0x849   :  { %10950 = vmatpush2.bf16.msra.mxu1 %v17477_v39  ;;  %10908 = vmatprep.subr.bf16.mxu0 %v17482_v40  ;;  %v17558_v39 = vld [vmem:[#allocation2 + $0x28] ss:$80 sps:$4 sm:$0xff]  }
 0x84a   :  { %10951 = vmatprep.subr.bf16.mxu1 %v17485_v41  ;;  %v17561_v40 = vld [vmem:[#allocation2 + $0xa28] ss:$80 sps:$4 sm:$0xff]   ;;  %v17566_v41 = vld [vmem:[#allocation2 + $0x98c] ss:$80 sps:$4 sm:$0xff]  }
 0x84c   :  { %10909 = vmatpush2.bf16.msra.mxu0 %v17480_v21  ;;  %v17569_v21 = vld [vmem:[#allocation2 + $0x138c] ss:$80 sps:$4 sm:$0xff]  }
 0x84d   :  { %10952 = vmatpush2.bf16.msra.mxu1 %v17483_v50  ;;  %10910 = vmatprep.subr.bf16.mxu0 %v17488_v28  ;;  %v17564_v50 = vld [vmem:[#allocation2 + $0x988] ss:$80 sps:$4 sm:$0xff]  }
 0x84e   :  { %10953 = vmatprep.subr.bf16.mxu1 %v17491_v31  ;;  %v17567_v28 = vld [vmem:[#allocation2 + $0x1388] ss:$80 sps:$4 sm:$0xff]   ;;  %v17572_v31 = vld [vmem:[#allocation2 + $0x8ec] ss:$80 sps:$4 sm:$0xff]  }
 0x850   :  { %10911 = vmatpush2.bf16.msra.mxu0 %v17486_v15  ;;  %v17575_v15 = vld [vmem:[#allocation2 + $0x12ec] ss:$80 sps:$4 sm:$0xff]  }
 0x851   :  { %10954 = vmatpush2.bf16.msra.mxu1 %v17489_v25  ;;  %10912 = vmatprep.subr.bf16.mxu0 %v17494_v44  ;;  %v17570_v25 = vld [vmem:[#allocation2 + $0x8e8] ss:$80 sps:$4 sm:$0xff]  }
 0x852   :  { %10955 = vmatprep.subr.bf16.mxu1 %v17497_v2  ;;  %v17573_v44 = vld [vmem:[#allocation2 + $0x12e8] ss:$80 sps:$4 sm:$0xff]   ;;  %v17578_v2 = vld [vmem:[#allocation2 + $0x84c] ss:$80 sps:$4 sm:$0xff]  }
 0x854   :  { %10913 = vmatpush2.bf16.msra.mxu0 %v17492_v33  ;;  %v17581_v33 = vld [vmem:[#allocation2 + $0x124c] ss:$80 sps:$4 sm:$0xff]  }
 0x855   :  { %10956 = vmatpush2.bf16.msra.mxu1 %v17495_v34  ;;  %10914 = vmatprep.subr.bf16.mxu0 %v17500_v35  ;;  %v17576_v34 = vld [vmem:[#allocation2 + $0x848] ss:$80 sps:$4 sm:$0xff]  }
 0x856   :  { %10957 = vmatprep.subr.bf16.mxu1 %v17503_v36  ;;  %v17579_v35 = vld [vmem:[#allocation2 + $0x1248] ss:$80 sps:$4 sm:$0xff]   ;;  %v17584_v36 = vld [vmem:[#allocation2 + $0x7ac] ss:$80 sps:$4 sm:$0xff]  }
 0x858   :  { %10915 = vmatpush2.bf16.msra.mxu0 %v17498_v23  ;;  %v17587_v23 = vld [vmem:[#allocation2 + $0x11ac] ss:$80 sps:$4 sm:$0xff]  }
 0x859   :  { %10958 = vmatpush2.bf16.msra.mxu1 %v17501_v38  ;;  %10916 = vmatprep.subr.bf16.mxu0 %v17506_v14  ;;  %v17582_v38 = vld [vmem:[#allocation2 + $0x7a8] ss:$80 sps:$4 sm:$0xff]  }
 0x85a   :  { %10959 = vmatprep.subr.bf16.mxu1 %v17509_v56  ;;  %v17585_v14 = vld [vmem:[#allocation2 + $0x11a8] ss:$80 sps:$4 sm:$0xff]   ;;  %v17590_v56 = vld [vmem:[#allocation2 + $0x70c] ss:$80 sps:$4 sm:$0xff]  }
 0x85c   :  { %10917 = vmatpush2.bf16.msra.mxu0 %v17504_v4  ;;  %v17593_v4 = vld [vmem:[#allocation2 + $0x110c] ss:$80 sps:$4 sm:$0xff]  }
 0x85d   :  { %10960 = vmatpush2.bf16.msra.mxu1 %v17507_v63  ;;  %10918 = vmatprep.subr.bf16.mxu0 %v17512_v42  ;;  %v17588_v63 = vld [vmem:[#allocation2 + $0x708] ss:$80 sps:$4 sm:$0xff]  }
 0x85e   :  { %10961 = vmatprep.subr.bf16.mxu1 %v17515_v55  ;;  %v17591_v42 = vld [vmem:[#allocation2 + $0x1108] ss:$80 sps:$4 sm:$0xff]   ;;  %v17596_v55 = vld [vmem:[#allocation2 + $0x66c] ss:$80 sps:$4 sm:$0xff]  }
 0x860   :  { %10919 = vmatpush2.bf16.msra.mxu0 %v17510_v43  ;;  %v17599_v43 = vld [vmem:[#allocation2 + $0x106c] ss:$80 sps:$4 sm:$0xff]  }
 0x861   :  { %10962 = vmatpush2.bf16.msra.mxu1 %v17513_v45  ;;  %10974 = vmatprep.subr.bf16.mxu0 %v17518_v46  ;;  %v17594_v45 = vld [vmem:[#allocation2 + $0x668] ss:$80 sps:$4 sm:$0xff]  }
 0x862   :  { %11017 = vmatprep.subr.bf16.mxu1 %v17521_v13  ;;  %v17597_v46 = vld [vmem:[#allocation2 + $0x1068] ss:$80 sps:$4 sm:$0xff]   ;;  %v17602_v13 = vld [vmem:[#allocation2 + $0x5cc] ss:$80 sps:$4 sm:$0xff]  }
 0x863   :  { %10921 = vmatmul.mubr.bf16.vlgmr.msra.gmra.mxu0 %v19175_v22 }
 0x864   :  { %10964 = vmatmul.mubr.bf16.vlgmr.msra.gmra.mxu1 %v19181_v9  ;;  %10975 = vmatpush1.bf16.msra.mxu0 %v17516_v47  ;;  %v17605_v47 = vld [vmem:[#allocation2 + $0xfcc] ss:$80 sps:$4 sm:$0xff]  }
 0x865   :  { %11018 = vmatpush1.bf16.msra.mxu1 %v17519_v18  ;;  %10976 = vmatprep.subr.bf16.mxu0 %v17524_v48  ;;  %v17600_v18 = vld [vmem:[#allocation2 + $0x5c8] ss:$80 sps:$4 sm:$0xff]  }
 0x866   :  { %11019 = vmatprep.subr.bf16.mxu1 %v17527_v49  ;;  %11006 = vmatprep.mubr.bf16.mxu0 %v19165_v62  ;;  %v17603_v48 = vld [vmem:[#allocation2 + $0xfc8] ss:$80 sps:$4 sm:$0xff]   ;;  %v17608_v49 = vld [vmem:[#allocation2 + $0x52c] ss:$80 sps:$4 sm:$0xff]  }
 0x867   :  { %11049 = vmatprep.mubr.bf16.mxu1 %v19167_v6 }
 0x868   :  { %10977 = vmatpush1.bf16.msra.mxu0 %v17522_v51  ;;  %v17611_v51 = vld [vmem:[#allocation2 + $0xf2c] ss:$80 sps:$4 sm:$0xff]  }
 0x869   :  { %11020 = vmatpush1.bf16.msra.mxu1 %v17525_v52  ;;  %10978 = vmatprep.subr.bf16.mxu0 %v17530_v53  ;;  %v17606_v52 = vld [vmem:[#allocation2 + $0x528] ss:$80 sps:$4 sm:$0xff]  }
 0x86a   :  { %11021 = vmatprep.subr.bf16.mxu1 %v17533_v54  ;;  %v17609_v53 = vld [vmem:[#allocation2 + $0xf28] ss:$80 sps:$4 sm:$0xff]   ;;  %v17614_v54 = vld [vmem:[#allocation2 + $0x494] ss:$80 sps:$4 sm:$0xff]  }
 0x86c   :  { %10979 = vmatpush1.bf16.msra.mxu0 %v17528_v57  ;;  %v17617_v57 = vld [vmem:[#allocation2 + $0xe94] ss:$80 sps:$4 sm:$0xff]  }
 0x86d   :  { %11022 = vmatpush1.bf16.msra.mxu1 %v17531_v59  ;;  %10980 = vmatprep.subr.bf16.mxu0 %v17536_v60  ;;  %v17612_v59 = vld [vmem:[#allocation2 + $0x490] ss:$80 sps:$4 sm:$0xff]  }
 0x86e   :  { %11023 = vmatprep.subr.bf16.mxu1 %v17539_v61  ;;  %v17615_v60 = vld [vmem:[#allocation2 + $0xe90] ss:$80 sps:$4 sm:$0xff]   ;;  %v17620_v61 = vld [vmem:[#allocation2 + $0x3f4] ss:$80 sps:$4 sm:$0xff]  }
 0x870   :  { %10981 = vmatpush1.bf16.msra.mxu0 %v17534_v12  ;;  %v17623_v12 = vld [vmem:[#allocation2 + $0xdf4] ss:$80 sps:$4 sm:$0xff]  }
 0x871   :  { %11024 = vmatpush1.bf16.msra.mxu1 %v17537_v1  ;;  %10982 = vmatprep.subr.bf16.mxu0 %v17542_v7  ;;  %v17618_v1 = vld [vmem:[#allocation2 + $0x3f0] ss:$80 sps:$4 sm:$0xff]  }
 0x872   :  { %11025 = vmatprep.subr.bf16.mxu1 %v17545_v5  ;;  %v17621_v7 = vld [vmem:[#allocation2 + $0xdf0] ss:$80 sps:$4 sm:$0xff]   ;;  %v17626_v5 = vld [vmem:[#allocation2 + $0x354] ss:$80 sps:$4 sm:$0xff]  }
 0x874   :  { %10983 = vmatpush1.bf16.msra.mxu0 %v17540_v8  ;;  %v17629_v8 = vld [vmem:[#allocation2 + $0xd54] ss:$80 sps:$4 sm:$0xff]  }
 0x875   :  { %11026 = vmatpush1.bf16.msra.mxu1 %v17543_v17  ;;  %10984 = vmatprep.subr.bf16.mxu0 %v17548_v19  ;;  %v17624_v17 = vld [vmem:[#allocation2 + $0x350] ss:$80 sps:$4 sm:$0xff]  }
 0x876   :  { %11027 = vmatprep.subr.bf16.mxu1 %v17551_v24  ;;  %v17627_v19 = vld [vmem:[#allocation2 + $0xd50] ss:$80 sps:$4 sm:$0xff]   ;;  %v17632_v24 = vld [vmem:[#allocation2 + $0x2b4] ss:$80 sps:$4 sm:$0xff]  }
 0x878   :  { %10985 = vmatpush1.bf16.msra.mxu0 %v17546_v20  ;;  %v17635_v20 = vld [vmem:[#allocation2 + $0xcb4] ss:$80 sps:$4 sm:$0xff]  }
 0x879   :  { %11028 = vmatpush1.bf16.msra.mxu1 %v17549_v16  ;;  %10986 = vmatprep.subr.bf16.mxu0 %v17554_v27  ;;  %v17630_v16 = vld [vmem:[#allocation2 + $0x2b0] ss:$80 sps:$4 sm:$0xff]  }
 0x87a   :  { %11029 = vmatprep.subr.bf16.mxu1 %v17557_v29  ;;  %v17633_v27 = vld [vmem:[#allocation2 + $0xcb0] ss:$80 sps:$4 sm:$0xff]   ;;  %v17638_v29 = vld [vmem:[#allocation2 + $0x214] ss:$80 sps:$4 sm:$0xff]  }
 0x87c   :  { %10987 = vmatpush1.bf16.msra.mxu0 %v17552_v58  ;;  %v17641_v58 = vld [vmem:[#allocation2 + $0xc14] ss:$80 sps:$4 sm:$0xff]  }
 0x87d   :  { %11030 = vmatpush1.bf16.msra.mxu1 %v17555_v32  ;;  %10988 = vmatprep.subr.bf16.mxu0 %v17560_v3  ;;  %v17636_v32 = vld [vmem:[#allocation2 + $0x210] ss:$80 sps:$4 sm:$0xff]  }
 0x87e   :  { %11031 = vmatprep.subr.bf16.mxu1 %v17563_v37  ;;  %v17639_v3 = vld [vmem:[#allocation2 + $0xc10] ss:$80 sps:$4 sm:$0xff]   ;;  %v17644_v37 = vld [vmem:[#allocation2 + $0x174] ss:$80 sps:$4 sm:$0xff]  }
 0x880   :  { %10989 = vmatpush1.bf16.msra.mxu0 %v17558_v39  ;;  %v17647_v39 = vld [vmem:[#allocation2 + $0xb74] ss:$80 sps:$4 sm:$0xff]  }
 0x881   :  { %11032 = vmatpush1.bf16.msra.mxu1 %v17561_v40  ;;  %10990 = vmatprep.subr.bf16.mxu0 %v17566_v41  ;;  %v17642_v40 = vld [vmem:[#allocation2 + $0x170] ss:$80 sps:$4 sm:$0xff]  }
 0x882   :  { %11033 = vmatprep.subr.bf16.mxu1 %v17569_v21  ;;  %v17645_v41 = vld [vmem:[#allocation2 + $0xb70] ss:$80 sps:$4 sm:$0xff]   ;;  %v17650_v21 = vld [vmem:[#allocation2 + $0xd4] ss:$80 sps:$4 sm:$0xff]  }
 0x884   :  { %10991 = vmatpush2.bf16.msra.mxu0 %v17564_v50  ;;  %v17653_v50 = vld [vmem:[#allocation2 + $0xad4] ss:$80 sps:$4 sm:$0xff]  }
 0x885   :  { %11034 = vmatpush2.bf16.msra.mxu1 %v17567_v28  ;;  %10992 = vmatprep.subr.bf16.mxu0 %v17572_v31  ;;  %v17648_v28 = vld [vmem:[#allocation2 + $0xd0] ss:$80 sps:$4 sm:$0xff]  }
 0x886   :  { %11035 = vmatprep.subr.bf16.mxu1 %v17575_v15  ;;  %v17651_v31 = vld [vmem:[#allocation2 + $0xad0] ss:$80 sps:$4 sm:$0xff]   ;;  %v17656_v15 = vld [vmem:[#allocation2 + $0x34] ss:$80 sps:$4 sm:$0xff]  }
 0x888   :  { %10993 = vmatpush2.bf16.msra.mxu0 %v17570_v25  ;;  %v17659_v25 = vld [vmem:[#allocation2 + $0xa34] ss:$80 sps:$4 sm:$0xff]  }
 0x889   :  { %11036 = vmatpush2.bf16.msra.mxu1 %v17573_v44  ;;  %10994 = vmatprep.subr.bf16.mxu0 %v17578_v2  ;;  %v17654_v44 = vld [vmem:[#allocation2 + $0x30] ss:$80 sps:$4 sm:$0xff]  }
 0x88a   :  { %11037 = vmatprep.subr.bf16.mxu1 %v17581_v33  ;;  %v17657_v2 = vld [vmem:[#allocation2 + $0xa30] ss:$80 sps:$4 sm:$0xff]   ;;  %v17662_v33 = vld [vmem:[#allocation2 + $0x994] ss:$80 sps:$4 sm:$0xff]  }
 0x88c   :  { %10995 = vmatpush2.bf16.msra.mxu0 %v17576_v34  ;;  %v17665_v34 = vld [vmem:[#allocation2 + $0x1394] ss:$80 sps:$4 sm:$0xff]  }
 0x88d   :  { %11038 = vmatpush2.bf16.msra.mxu1 %v17579_v35  ;;  %10996 = vmatprep.subr.bf16.mxu0 %v17584_v36  ;;  %v17660_v35 = vld [vmem:[#allocation2 + $0x990] ss:$80 sps:$4 sm:$0xff]  }
 0x88e   :  { %11039 = vmatprep.subr.bf16.mxu1 %v17587_v23  ;;  %v17663_v36 = vld [vmem:[#allocation2 + $0x1390] ss:$80 sps:$4 sm:$0xff]   ;;  %v17668_v23 = vld [vmem:[#allocation2 + $0x8f4] ss:$80 sps:$4 sm:$0xff]  }
 0x890   :  { %10997 = vmatpush2.bf16.msra.mxu0 %v17582_v38  ;;  %v17671_v38 = vld [vmem:[#allocation2 + $0x12f4] ss:$80 sps:$4 sm:$0xff]  }
 0x891   :  { %11040 = vmatpush2.bf16.msra.mxu1 %v17585_v14  ;;  %10998 = vmatprep.subr.bf16.mxu0 %v17590_v56  ;;  %v17666_v14 = vld [vmem:[#allocation2 + $0x8f0] ss:$80 sps:$4 sm:$0xff]  }
 0x892   :  { %11041 = vmatprep.subr.bf16.mxu1 %v17593_v4  ;;  %v17669_v56 = vld [vmem:[#allocation2 + $0x12f0] ss:$80 sps:$4 sm:$0xff]   ;;  %v17674_v4 = vld [vmem:[#allocation2 + $0x854] ss:$80 sps:$4 sm:$0xff]  }
 0x894   :  { %10999 = vmatpush2.bf16.msra.mxu0 %v17588_v63  ;;  %v17677_v63 = vld [vmem:[#allocation2 + $0x1254] ss:$80 sps:$4 sm:$0xff]  }
 0x895   :  { %11042 = vmatpush2.bf16.msra.mxu1 %v17591_v42  ;;  %11000 = vmatprep.subr.bf16.mxu0 %v17596_v55  ;;  %v17672_v42 = vld [vmem:[#allocation2 + $0x850] ss:$80 sps:$4 sm:$0xff]  }
 0x896   :  { %11043 = vmatprep.subr.bf16.mxu1 %v17599_v43  ;;  %v17675_v55 = vld [vmem:[#allocation2 + $0x1250] ss:$80 sps:$4 sm:$0xff]   ;;  %v17680_v43 = vld [vmem:[#allocation2 + $0x7b4] ss:$80 sps:$4 sm:$0xff]  }
 0x898   :  { %11001 = vmatpush2.bf16.msra.mxu0 %v17594_v45  ;;  %v17683_v45 = vld [vmem:[#allocation2 + $0x11b4] ss:$80 sps:$4 sm:$0xff]  }
 0x899   :  { %11044 = vmatpush2.bf16.msra.mxu1 %v17597_v46  ;;  %11002 = vmatprep.subr.bf16.mxu0 %v17602_v13  ;;  %v17678_v46 = vld [vmem:[#allocation2 + $0x7b0] ss:$80 sps:$4 sm:$0xff]  }
 0x89a   :  { %11045 = vmatprep.subr.bf16.mxu1 %v17605_v47  ;;  %v17681_v13 = vld [vmem:[#allocation2 + $0x11b0] ss:$80 sps:$4 sm:$0xff]   ;;  %v17686_v47 = vld [vmem:[#allocation2 + $0x714] ss:$80 sps:$4 sm:$0xff]  }
 0x89c   :  { %11003 = vmatpush2.bf16.msra.mxu0 %v17600_v18  ;;  %v17689_v18 = vld [vmem:[#allocation2 + $0x1114] ss:$80 sps:$4 sm:$0xff]  }
 0x89d   :  { %11046 = vmatpush2.bf16.msra.mxu1 %v17603_v48  ;;  %11004 = vmatprep.subr.bf16.mxu0 %v17608_v49  ;;  %v17684_v48 = vld [vmem:[#allocation2 + $0x710] ss:$80 sps:$4 sm:$0xff]  }
 0x89e   :  { %11047 = vmatprep.subr.bf16.mxu1 %v17611_v51  ;;  %v17687_v49 = vld [vmem:[#allocation2 + $0x1110] ss:$80 sps:$4 sm:$0xff]   ;;  %v17692_v51 = vld [vmem:[#allocation2 + $0x674] ss:$80 sps:$4 sm:$0xff]  }
 0x8a0   :  { %11005 = vmatpush2.bf16.msra.mxu0 %v17606_v52  ;;  %v17695_v52 = vld [vmem:[#allocation2 + $0x1074] ss:$80 sps:$4 sm:$0xff]  }
 0x8a1   :  { %11048 = vmatpush2.bf16.msra.mxu1 %v17609_v53  ;;  %11060 = vmatprep.subr.bf16.mxu0 %v17614_v54  ;;  %v17690_v53 = vld [vmem:[#allocation2 + $0x670] ss:$80 sps:$4 sm:$0xff]  }
 0x8a2   :  { %11103 = vmatprep.subr.bf16.mxu1 %v17617_v57  ;;  %v17693_v54 = vld [vmem:[#allocation2 + $0x1070] ss:$80 sps:$4 sm:$0xff]   ;;  %v17698_v57 = vld [vmem:[#allocation2 + $0x5d4] ss:$80 sps:$4 sm:$0xff]  }
 0x8a3   :  { %11007 = vmatmul.mubr.bf16.vlgmr.msra.gmra.mxu0 %v19175_v22 }
 0x8a4   :  { %11050 = vmatmul.mubr.bf16.vlgmr.msra.gmra.mxu1 %v19181_v9  ;;  %11061 = vmatpush1.bf16.msra.mxu0 %v17612_v59  ;;  %v17701_v59 = vld [vmem:[#allocation2 + $0xfd4] ss:$80 sps:$4 sm:$0xff]  }
 0x8a5   :  { %11104 = vmatpush1.bf16.msra.mxu1 %v17615_v60  ;;  %11062 = vmatprep.subr.bf16.mxu0 %v17620_v61  ;;  %v17696_v60 = vld [vmem:[#allocation2 + $0x5d0] ss:$80 sps:$4 sm:$0xff]  }
 0x8a6   :  { %11105 = vmatprep.subr.bf16.mxu1 %v17623_v12  ;;  %11092 = vmatprep.mubr.bf16.mxu0 %v19165_v62  ;;  %v17699_v61 = vld [vmem:[#allocation2 + $0xfd0] ss:$80 sps:$4 sm:$0xff]   ;;  %v17704_v12 = vld [vmem:[#allocation2 + $0x534] ss:$80 sps:$4 sm:$0xff]  }
 0x8a7   :  { %11135 = vmatprep.mubr.bf16.mxu1 %v19167_v6 }
 0x8a8   :  { %11063 = vmatpush1.bf16.msra.mxu0 %v17618_v1  ;;  %v17707_v1 = vld [vmem:[#allocation2 + $0xf34] ss:$80 sps:$4 sm:$0xff]  }
 0x8a9   :  { %11106 = vmatpush1.bf16.msra.mxu1 %v17621_v7  ;;  %11064 = vmatprep.subr.bf16.mxu0 %v17626_v5  ;;  %v17702_v7 = vld [vmem:[#allocation2 + $0x530] ss:$80 sps:$4 sm:$0xff]  }
 0x8aa   :  { %11107 = vmatprep.subr.bf16.mxu1 %v17629_v8  ;;  %v17705_v5 = vld [vmem:[#allocation2 + $0xf30] ss:$80 sps:$4 sm:$0xff]   ;;  %v17710_v8 = vld [vmem:[#allocation2 + $0x49c] ss:$80 sps:$4 sm:$0xff]  }
 0x8ac   :  { %11065 = vmatpush1.bf16.msra.mxu0 %v17624_v17  ;;  %v17713_v17 = vld [vmem:[#allocation2 + $0xe9c] ss:$80 sps:$4 sm:$0xff]  }
 0x8ad   :  { %11108 = vmatpush1.bf16.msra.mxu1 %v17627_v19  ;;  %11066 = vmatprep.subr.bf16.mxu0 %v17632_v24  ;;  %v17708_v19 = vld [vmem:[#allocation2 + $0x498] ss:$80 sps:$4 sm:$0xff]  }
 0x8ae   :  { %11109 = vmatprep.subr.bf16.mxu1 %v17635_v20  ;;  %v17711_v24 = vld [vmem:[#allocation2 + $0xe98] ss:$80 sps:$4 sm:$0xff]   ;;  %v17716_v20 = vld [vmem:[#allocation2 + $0x3fc] ss:$80 sps:$4 sm:$0xff]  }
 0x8b0   :  { %11067 = vmatpush1.bf16.msra.mxu0 %v17630_v16  ;;  %v17719_v16 = vld [vmem:[#allocation2 + $0xdfc] ss:$80 sps:$4 sm:$0xff]  }
 0x8b1   :  { %11110 = vmatpush1.bf16.msra.mxu1 %v17633_v27  ;;  %11068 = vmatprep.subr.bf16.mxu0 %v17638_v29  ;;  %v17714_v27 = vld [vmem:[#allocation2 + $0x3f8] ss:$80 sps:$4 sm:$0xff]  }
 0x8b2   :  { %11111 = vmatprep.subr.bf16.mxu1 %v17641_v58  ;;  %v17717_v29 = vld [vmem:[#allocation2 + $0xdf8] ss:$80 sps:$4 sm:$0xff]   ;;  %v17722_v58 = vld [vmem:[#allocation2 + $0x35c] ss:$80 sps:$4 sm:$0xff]  }
 0x8b4   :  { %11069 = vmatpush1.bf16.msra.mxu0 %v17636_v32  ;;  %v17725_v32 = vld [vmem:[#allocation2 + $0xd5c] ss:$80 sps:$4 sm:$0xff]  }
 0x8b5   :  { %11112 = vmatpush1.bf16.msra.mxu1 %v17639_v3  ;;  %11070 = vmatprep.subr.bf16.mxu0 %v17644_v37  ;;  %v17720_v3 = vld [vmem:[#allocation2 + $0x358] ss:$80 sps:$4 sm:$0xff]  }
 0x8b6   :  { %11113 = vmatprep.subr.bf16.mxu1 %v17647_v39  ;;  %v17723_v37 = vld [vmem:[#allocation2 + $0xd58] ss:$80 sps:$4 sm:$0xff]   ;;  %v17728_v39 = vld [vmem:[#allocation2 + $0x2bc] ss:$80 sps:$4 sm:$0xff]  }
 0x8b8   :  { %11071 = vmatpush1.bf16.msra.mxu0 %v17642_v40  ;;  %v17731_v40 = vld [vmem:[#allocation2 + $0xcbc] ss:$80 sps:$4 sm:$0xff]  }
 0x8b9   :  { %11114 = vmatpush1.bf16.msra.mxu1 %v17645_v41  ;;  %11072 = vmatprep.subr.bf16.mxu0 %v17650_v21  ;;  %v17726_v41 = vld [vmem:[#allocation2 + $0x2b8] ss:$80 sps:$4 sm:$0xff]  }
 0x8ba   :  { %11115 = vmatprep.subr.bf16.mxu1 %v17653_v50  ;;  %v17729_v21 = vld [vmem:[#allocation2 + $0xcb8] ss:$80 sps:$4 sm:$0xff]   ;;  %v17734_v50 = vld [vmem:[#allocation2 + $0x21c] ss:$80 sps:$4 sm:$0xff]  }
 0x8bc   :  { %11073 = vmatpush1.bf16.msra.mxu0 %v17648_v28  ;;  %v17737_v28 = vld [vmem:[#allocation2 + $0xc1c] ss:$80 sps:$4 sm:$0xff]  }
 0x8bd   :  { %11116 = vmatpush1.bf16.msra.mxu1 %v17651_v31  ;;  %11074 = vmatprep.subr.bf16.mxu0 %v17656_v15  ;;  %v17732_v31 = vld [vmem:[#allocation2 + $0x218] ss:$80 sps:$4 sm:$0xff]  }
 0x8be   :  { %11117 = vmatprep.subr.bf16.mxu1 %v17659_v25  ;;  %v17735_v15 = vld [vmem:[#allocation2 + $0xc18] ss:$80 sps:$4 sm:$0xff]   ;;  %v17740_v25 = vld [vmem:[#allocation2 + $0x17c] ss:$80 sps:$4 sm:$0xff]  }
 0x8c0   :  { %11075 = vmatpush1.bf16.msra.mxu0 %v17654_v44  ;;  %v17743_v44 = vld [vmem:[#allocation2 + $0xb7c] ss:$80 sps:$4 sm:$0xff]  }
 0x8c1   :  { %11118 = vmatpush1.bf16.msra.mxu1 %v17657_v2  ;;  %11076 = vmatprep.subr.bf16.mxu0 %v17662_v33  ;;  %v17738_v2 = vld [vmem:[#allocation2 + $0x178] ss:$80 sps:$4 sm:$0xff]  }
 0x8c2   :  { %11119 = vmatprep.subr.bf16.mxu1 %v17665_v34  ;;  %v17741_v33 = vld [vmem:[#allocation2 + $0xb78] ss:$80 sps:$4 sm:$0xff]   ;;  %v17746_v34 = vld [vmem:[#allocation2 + $0xdc] ss:$80 sps:$4 sm:$0xff]  }
 0x8c4   :  { %11077 = vmatpush2.bf16.msra.mxu0 %v17660_v35  ;;  %v17749_v35 = vld [vmem:[#allocation2 + $0xadc] ss:$80 sps:$4 sm:$0xff]  }
 0x8c5   :  { %11120 = vmatpush2.bf16.msra.mxu1 %v17663_v36  ;;  %11078 = vmatprep.subr.bf16.mxu0 %v17668_v23  ;;  %v17744_v36 = vld [vmem:[#allocation2 + $0xd8] ss:$80 sps:$4 sm:$0xff]  }
 0x8c6   :  { %11121 = vmatprep.subr.bf16.mxu1 %v17671_v38  ;;  %v17747_v23 = vld [vmem:[#allocation2 + $0xad8] ss:$80 sps:$4 sm:$0xff]   ;;  %v17752_v38 = vld [vmem:[#allocation2 + $0x3c] ss:$80 sps:$4 sm:$0xff]  }
 0x8c8   :  { %11079 = vmatpush2.bf16.msra.mxu0 %v17666_v14  ;;  %v17755_v14 = vld [vmem:[#allocation2 + $0xa3c] ss:$80 sps:$4 sm:$0xff]  }
 0x8c9   :  { %11122 = vmatpush2.bf16.msra.mxu1 %v17669_v56  ;;  %11080 = vmatprep.subr.bf16.mxu0 %v17674_v4  ;;  %v17750_v56 = vld [vmem:[#allocation2 + $0x38] ss:$80 sps:$4 sm:$0xff]  }
 0x8ca   :  { %11123 = vmatprep.subr.bf16.mxu1 %v17677_v63  ;;  %v17753_v4 = vld [vmem:[#allocation2 + $0xa38] ss:$80 sps:$4 sm:$0xff]   ;;  %v17758_v63 = vld [vmem:[#allocation2 + $0x99c] ss:$80 sps:$4 sm:$0xff]  }
 0x8cc   :  { %11081 = vmatpush2.bf16.msra.mxu0 %v17672_v42  ;;  %v17761_v42 = vld [vmem:[#allocation2 + $0x139c] ss:$80 sps:$4 sm:$0xff]  }
 0x8cd   :  { %11124 = vmatpush2.bf16.msra.mxu1 %v17675_v55  ;;  %11082 = vmatprep.subr.bf16.mxu0 %v17680_v43  ;;  %v17756_v55 = vld [vmem:[#allocation2 + $0x998] ss:$80 sps:$4 sm:$0xff]  }
 0x8ce   :  { %11125 = vmatprep.subr.bf16.mxu1 %v17683_v45  ;;  %v17759_v43 = vld [vmem:[#allocation2 + $0x1398] ss:$80 sps:$4 sm:$0xff]   ;;  %v17764_v45 = vld [vmem:[#allocation2 + $0x8fc] ss:$80 sps:$4 sm:$0xff]  }
 0x8d0   :  { %11083 = vmatpush2.bf16.msra.mxu0 %v17678_v46  ;;  %v17767_v46 = vld [vmem:[#allocation2 + $0x12fc] ss:$80 sps:$4 sm:$0xff]  }
 0x8d1   :  { %11126 = vmatpush2.bf16.msra.mxu1 %v17681_v13  ;;  %11084 = vmatprep.subr.bf16.mxu0 %v17686_v47  ;;  %v17762_v13 = vld [vmem:[#allocation2 + $0x8f8] ss:$80 sps:$4 sm:$0xff]  }
 0x8d2   :  { %11127 = vmatprep.subr.bf16.mxu1 %v17689_v18  ;;  %v17765_v47 = vld [vmem:[#allocation2 + $0x12f8] ss:$80 sps:$4 sm:$0xff]   ;;  %v17770_v18 = vld [vmem:[#allocation2 + $0x85c] ss:$80 sps:$4 sm:$0xff]  }
 0x8d4   :  { %11085 = vmatpush2.bf16.msra.mxu0 %v17684_v48  ;;  %v17773_v48 = vld [vmem:[#allocation2 + $0x125c] ss:$80 sps:$4 sm:$0xff]  }
 0x8d5   :  { %11128 = vmatpush2.bf16.msra.mxu1 %v17687_v49  ;;  %11086 = vmatprep.subr.bf16.mxu0 %v17692_v51  ;;  %v17768_v49 = vld [vmem:[#allocation2 + $0x858] ss:$80 sps:$4 sm:$0xff]  }
 0x8d6   :  { %11129 = vmatprep.subr.bf16.mxu1 %v17695_v52  ;;  %v17771_v51 = vld [vmem:[#allocation2 + $0x1258] ss:$80 sps:$4 sm:$0xff]   ;;  %v17776_v52 = vld [vmem:[#allocation2 + $0x7bc] ss:$80 sps:$4 sm:$0xff]  }
 0x8d8   :  { %11087 = vmatpush2.bf16.msra.mxu0 %v17690_v53  ;;  %v17779_v53 = vld [vmem:[#allocation2 + $0x11bc] ss:$80 sps:$4 sm:$0xff]  }
 0x8d9   :  { %11130 = vmatpush2.bf16.msra.mxu1 %v17693_v54  ;;  %11088 = vmatprep.subr.bf16.mxu0 %v17698_v57  ;;  %v17774_v54 = vld [vmem:[#allocation2 + $0x7b8] ss:$80 sps:$4 sm:$0xff]  }
 0x8da   :  { %11131 = vmatprep.subr.bf16.mxu1 %v17701_v59  ;;  %v17777_v57 = vld [vmem:[#allocation2 + $0x11b8] ss:$80 sps:$4 sm:$0xff]   ;;  %v17782_v59 = vld [vmem:[#allocation2 + $0x71c] ss:$80 sps:$4 sm:$0xff]  }
 0x8dc   :  { %11089 = vmatpush2.bf16.msra.mxu0 %v17696_v60  ;;  %v17785_v60 = vld [vmem:[#allocation2 + $0x111c] ss:$80 sps:$4 sm:$0xff]  }
 0x8dd   :  { %11132 = vmatpush2.bf16.msra.mxu1 %v17699_v61  ;;  %11090 = vmatprep.subr.bf16.mxu0 %v17704_v12  ;;  %v17780_v61 = vld [vmem:[#allocation2 + $0x718] ss:$80 sps:$4 sm:$0xff]  }
 0x8de   :  { %11133 = vmatprep.subr.bf16.mxu1 %v17707_v1  ;;  %v17783_v12 = vld [vmem:[#allocation2 + $0x1118] ss:$80 sps:$4 sm:$0xff]   ;;  %v17788_v1 = vld [vmem:[#allocation2 + $0x67c] ss:$80 sps:$4 sm:$0xff]  }
 0x8e0   :  { %11091 = vmatpush2.bf16.msra.mxu0 %v17702_v7  ;;  %v17791_v7 = vld [vmem:[#allocation2 + $0x107c] ss:$80 sps:$4 sm:$0xff]  }
 0x8e1   :  { %11134 = vmatpush2.bf16.msra.mxu1 %v17705_v5  ;;  %11146 = vmatprep.subr.bf16.mxu0 %v17710_v8  ;;  %v17786_v5 = vld [vmem:[#allocation2 + $0x678] ss:$80 sps:$4 sm:$0xff]  }
 0x8e2   :  { %11189 = vmatprep.subr.bf16.mxu1 %v17713_v17  ;;  %v17789_v8 = vld [vmem:[#allocation2 + $0x1078] ss:$80 sps:$4 sm:$0xff]   ;;  %v17794_v17 = vld [vmem:[#allocation2 + $0x5dc] ss:$80 sps:$4 sm:$0xff]  }
 0x8e3   :  { %11093 = vmatmul.mubr.bf16.vlgmr.msra.gmra.mxu0 %v19175_v22 }
 0x8e4   :  { %11136 = vmatmul.mubr.bf16.vlgmr.msra.gmra.mxu1 %v19181_v9  ;;  %11147 = vmatpush1.bf16.msra.mxu0 %v17708_v19  ;;  %v17797_v19 = vld [vmem:[#allocation2 + $0xfdc] ss:$80 sps:$4 sm:$0xff]  }
 0x8e5   :  { %11190 = vmatpush1.bf16.msra.mxu1 %v17711_v24  ;;  %11148 = vmatprep.subr.bf16.mxu0 %v17716_v20  ;;  %v17792_v24 = vld [vmem:[#allocation2 + $0x5d8] ss:$80 sps:$4 sm:$0xff]  }
 0x8e6   :  { %11191 = vmatprep.subr.bf16.mxu1 %v17719_v16  ;;  %11178 = vmatprep.mubr.bf16.mxu0 %v19165_v62  ;;  %v17795_v20 = vld [vmem:[#allocation2 + $0xfd8] ss:$80 sps:$4 sm:$0xff]   ;;  %v17800_v16 = vld [vmem:[#allocation2 + $0x53c] ss:$80 sps:$4 sm:$0xff]  }
 0x8e7   :  { %11221 = vmatprep.mubr.bf16.mxu1 %v19167_v6 }
 0x8e8   :  { %11149 = vmatpush1.bf16.msra.mxu0 %v17714_v27  ;;  %v17803_v27 = vld [vmem:[#allocation2 + $0xf3c] ss:$80 sps:$4 sm:$0xff]  }
 0x8e9   :  { %11192 = vmatpush1.bf16.msra.mxu1 %v17717_v29  ;;  %11150 = vmatprep.subr.bf16.mxu0 %v17722_v58  ;;  %v17798_v29 = vld [vmem:[#allocation2 + $0x538] ss:$80 sps:$4 sm:$0xff]  }
 0x8ea   :  { %11193 = vmatprep.subr.bf16.mxu1 %v17725_v32  ;;  %v17801_v58 = vld [vmem:[#allocation2 + $0xf38] ss:$80 sps:$4 sm:$0xff]   ;;  %v17806_v32 = vld [vmem:[#allocation2 + $0x4a4] ss:$80 sps:$4 sm:$0xff]  }
 0x8ec   :  { %11151 = vmatpush1.bf16.msra.mxu0 %v17720_v3  ;;  %v17809_v3 = vld [vmem:[#allocation2 + $0xea4] ss:$80 sps:$4 sm:$0xff]  }
 0x8ed   :  { %11194 = vmatpush1.bf16.msra.mxu1 %v17723_v37  ;;  %11152 = vmatprep.subr.bf16.mxu0 %v17728_v39  ;;  %v17804_v37 = vld [vmem:[#allocation2 + $0x4a0] ss:$80 sps:$4 sm:$0xff]  }
 0x8ee   :  { %11195 = vmatprep.subr.bf16.mxu1 %v17731_v40  ;;  %v17807_v39 = vld [vmem:[#allocation2 + $0xea0] ss:$80 sps:$4 sm:$0xff]   ;;  %v17812_v40 = vld [vmem:[#allocation2 + $0x404] ss:$80 sps:$4 sm:$0xff]  }
 0x8f0   :  { %11153 = vmatpush1.bf16.msra.mxu0 %v17726_v41  ;;  %v17815_v41 = vld [vmem:[#allocation2 + $0xe04] ss:$80 sps:$4 sm:$0xff]  }
 0x8f1   :  { %11196 = vmatpush1.bf16.msra.mxu1 %v17729_v21  ;;  %11154 = vmatprep.subr.bf16.mxu0 %v17734_v50  ;;  %v17810_v21 = vld [vmem:[#allocation2 + $0x400] ss:$80 sps:$4 sm:$0xff]  }
 0x8f2   :  { %11197 = vmatprep.subr.bf16.mxu1 %v17737_v28  ;;  %v17813_v50 = vld [vmem:[#allocation2 + $0xe00] ss:$80 sps:$4 sm:$0xff]   ;;  %v17818_v28 = vld [vmem:[#allocation2 + $0x364] ss:$80 sps:$4 sm:$0xff]  }
 0x8f4   :  { %11155 = vmatpush1.bf16.msra.mxu0 %v17732_v31  ;;  %v17821_v31 = vld [vmem:[#allocation2 + $0xd64] ss:$80 sps:$4 sm:$0xff]  }
 0x8f5   :  { %11198 = vmatpush1.bf16.msra.mxu1 %v17735_v15  ;;  %11156 = vmatprep.subr.bf16.mxu0 %v17740_v25  ;;  %v17816_v15 = vld [vmem:[#allocation2 + $0x360] ss:$80 sps:$4 sm:$0xff]  }
 0x8f6   :  { %11199 = vmatprep.subr.bf16.mxu1 %v17743_v44  ;;  %v17819_v25 = vld [vmem:[#allocation2 + $0xd60] ss:$80 sps:$4 sm:$0xff]   ;;  %v17824_v44 = vld [vmem:[#allocation2 + $0x2c4] ss:$80 sps:$4 sm:$0xff]  }
 0x8f8   :  { %11157 = vmatpush1.bf16.msra.mxu0 %v17738_v2  ;;  %v17827_v2 = vld [vmem:[#allocation2 + $0xcc4] ss:$80 sps:$4 sm:$0xff]  }
 0x8f9   :  { %11200 = vmatpush1.bf16.msra.mxu1 %v17741_v33  ;;  %11158 = vmatprep.subr.bf16.mxu0 %v17746_v34  ;;  %v17822_v33 = vld [vmem:[#allocation2 + $0x2c0] ss:$80 sps:$4 sm:$0xff]  }
 0x8fa   :  { %11201 = vmatprep.subr.bf16.mxu1 %v17749_v35  ;;  %v17825_v34 = vld [vmem:[#allocation2 + $0xcc0] ss:$80 sps:$4 sm:$0xff]   ;;  %v17830_v35 = vld [vmem:[#allocation2 + $0x224] ss:$80 sps:$4 sm:$0xff]  }
 0x8fc   :  { %11159 = vmatpush1.bf16.msra.mxu0 %v17744_v36  ;;  %v17833_v36 = vld [vmem:[#allocation2 + $0xc24] ss:$80 sps:$4 sm:$0xff]  }
 0x8fd   :  { %11202 = vmatpush1.bf16.msra.mxu1 %v17747_v23  ;;  %11160 = vmatprep.subr.bf16.mxu0 %v17752_v38  ;;  %v17828_v23 = vld [vmem:[#allocation2 + $0x220] ss:$80 sps:$4 sm:$0xff]  }
 0x8fe   :  { %11203 = vmatprep.subr.bf16.mxu1 %v17755_v14  ;;  %v17831_v38 = vld [vmem:[#allocation2 + $0xc20] ss:$80 sps:$4 sm:$0xff]   ;;  %v17836_v14 = vld [vmem:[#allocation2 + $0x184] ss:$80 sps:$4 sm:$0xff]  }
 0x900   :  { %11161 = vmatpush1.bf16.msra.mxu0 %v17750_v56  ;;  %v17839_v56 = vld [vmem:[#allocation2 + $0xb84] ss:$80 sps:$4 sm:$0xff]  }
 0x901   :  { %11204 = vmatpush1.bf16.msra.mxu1 %v17753_v4  ;;  %11162 = vmatprep.subr.bf16.mxu0 %v17758_v63  ;;  %v17834_v4 = vld [vmem:[#allocation2 + $0x180] ss:$80 sps:$4 sm:$0xff]  }
 0x902   :  { %11205 = vmatprep.subr.bf16.mxu1 %v17761_v42  ;;  %v17837_v63 = vld [vmem:[#allocation2 + $0xb80] ss:$80 sps:$4 sm:$0xff]   ;;  %v17842_v42 = vld [vmem:[#allocation2 + $0xe4] ss:$80 sps:$4 sm:$0xff]  }
 0x904   :  { %11163 = vmatpush2.bf16.msra.mxu0 %v17756_v55  ;;  %v17845_v55 = vld [vmem:[#allocation2 + $0xae4] ss:$80 sps:$4 sm:$0xff]  }
 0x905   :  { %11206 = vmatpush2.bf16.msra.mxu1 %v17759_v43  ;;  %11164 = vmatprep.subr.bf16.mxu0 %v17764_v45  ;;  %v17840_v43 = vld [vmem:[#allocation2 + $0xe0] ss:$80 sps:$4 sm:$0xff]  }
 0x906   :  { %11207 = vmatprep.subr.bf16.mxu1 %v17767_v46  ;;  %v17843_v45 = vld [vmem:[#allocation2 + $0xae0] ss:$80 sps:$4 sm:$0xff]   ;;  %v17848_v46 = vld [vmem:[#allocation2 + $0x44] ss:$80 sps:$4 sm:$0xff]  }
 0x908   :  { %11165 = vmatpush2.bf16.msra.mxu0 %v17762_v13  ;;  %v17851_v13 = vld [vmem:[#allocation2 + $0xa44] ss:$80 sps:$4 sm:$0xff]  }
 0x909   :  { %11208 = vmatpush2.bf16.msra.mxu1 %v17765_v47  ;;  %11166 = vmatprep.subr.bf16.mxu0 %v17770_v18  ;;  %v17846_v47 = vld [vmem:[#allocation2 + $0x40] ss:$80 sps:$4 sm:$0xff]  }
 0x90a   :  { %11209 = vmatprep.subr.bf16.mxu1 %v17773_v48  ;;  %v17849_v18 = vld [vmem:[#allocation2 + $0xa40] ss:$80 sps:$4 sm:$0xff]   ;;  %v17854_v48 = vld [vmem:[#allocation2 + $0x9a4] ss:$80 sps:$4 sm:$0xff]  }
 0x90c   :  { %11167 = vmatpush2.bf16.msra.mxu0 %v17768_v49  ;;  %v17857_v49 = vld [vmem:[#allocation2 + $0x13a4] ss:$80 sps:$4 sm:$0xff]  }
 0x90d   :  { %11210 = vmatpush2.bf16.msra.mxu1 %v17771_v51  ;;  %11168 = vmatprep.subr.bf16.mxu0 %v17776_v52  ;;  %v17852_v51 = vld [vmem:[#allocation2 + $0x9a0] ss:$80 sps:$4 sm:$0xff]  }
 0x90e   :  { %11211 = vmatprep.subr.bf16.mxu1 %v17779_v53  ;;  %v17855_v52 = vld [vmem:[#allocation2 + $0x13a0] ss:$80 sps:$4 sm:$0xff]   ;;  %v17860_v53 = vld [vmem:[#allocation2 + $0x904] ss:$80 sps:$4 sm:$0xff]  }
 0x910   :  { %11169 = vmatpush2.bf16.msra.mxu0 %v17774_v54  ;;  %v17863_v54 = vld [vmem:[#allocation2 + $0x1304] ss:$80 sps:$4 sm:$0xff]  }
 0x911   :  { %11212 = vmatpush2.bf16.msra.mxu1 %v17777_v57  ;;  %11170 = vmatprep.subr.bf16.mxu0 %v17782_v59  ;;  %v17858_v57 = vld [vmem:[#allocation2 + $0x900] ss:$80 sps:$4 sm:$0xff]  }
 0x912   :  { %11213 = vmatprep.subr.bf16.mxu1 %v17785_v60  ;;  %v17861_v59 = vld [vmem:[#allocation2 + $0x1300] ss:$80 sps:$4 sm:$0xff]   ;;  %v17866_v60 = vld [vmem:[#allocation2 + $0x864] ss:$80 sps:$4 sm:$0xff]  }
 0x914   :  { %11171 = vmatpush2.bf16.msra.mxu0 %v17780_v61  ;;  %v17869_v61 = vld [vmem:[#allocation2 + $0x1264] ss:$80 sps:$4 sm:$0xff]  }
 0x915   :  { %11214 = vmatpush2.bf16.msra.mxu1 %v17783_v12  ;;  %11172 = vmatprep.subr.bf16.mxu0 %v17788_v1  ;;  %v17864_v12 = vld [vmem:[#allocation2 + $0x860] ss:$80 sps:$4 sm:$0xff]  }
 0x916   :  { %11215 = vmatprep.subr.bf16.mxu1 %v17791_v7  ;;  %v17867_v1 = vld [vmem:[#allocation2 + $0x1260] ss:$80 sps:$4 sm:$0xff]   ;;  %v17872_v7 = vld [vmem:[#allocation2 + $0x7c4] ss:$80 sps:$4 sm:$0xff]  }
 0x918   :  { %11173 = vmatpush2.bf16.msra.mxu0 %v17786_v5  ;;  %v17875_v5 = vld [vmem:[#allocation2 + $0x11c4] ss:$80 sps:$4 sm:$0xff]  }
 0x919   :  { %11216 = vmatpush2.bf16.msra.mxu1 %v17789_v8  ;;  %11174 = vmatprep.subr.bf16.mxu0 %v17794_v17  ;;  %v17870_v8 = vld [vmem:[#allocation2 + $0x7c0] ss:$80 sps:$4 sm:$0xff]  }
 0x91a   :  { %11217 = vmatprep.subr.bf16.mxu1 %v17797_v19  ;;  %v17873_v17 = vld [vmem:[#allocation2 + $0x11c0] ss:$80 sps:$4 sm:$0xff]   ;;  %v17878_v19 = vld [vmem:[#allocation2 + $0x724] ss:$80 sps:$4 sm:$0xff]  }
 0x91c   :  { %11175 = vmatpush2.bf16.msra.mxu0 %v17792_v24  ;;  %v17881_v24 = vld [vmem:[#allocation2 + $0x1124] ss:$80 sps:$4 sm:$0xff]  }
 0x91d   :  { %11218 = vmatpush2.bf16.msra.mxu1 %v17795_v20  ;;  %11176 = vmatprep.subr.bf16.mxu0 %v17800_v16  ;;  %v17876_v20 = vld [vmem:[#allocation2 + $0x720] ss:$80 sps:$4 sm:$0xff]  }
 0x91e   :  { %11219 = vmatprep.subr.bf16.mxu1 %v17803_v27  ;;  %v17879_v16 = vld [vmem:[#allocation2 + $0x1120] ss:$80 sps:$4 sm:$0xff]   ;;  %v17884_v27 = vld [vmem:[#allocation2 + $0x684] ss:$80 sps:$4 sm:$0xff]  }
 0x920   :  { %11177 = vmatpush2.bf16.msra.mxu0 %v17798_v29  ;;  %v17887_v29 = vld [vmem:[#allocation2 + $0x1084] ss:$80 sps:$4 sm:$0xff]  }
 0x921   :  { %11220 = vmatpush2.bf16.msra.mxu1 %v17801_v58  ;;  %11232 = vmatprep.subr.bf16.mxu0 %v17806_v32  ;;  %v19215_v58 = vpop.f32.mrf.mxu0  ;;  %v19217_v32 = vpop.f32.mrf.mxu1 }
 0x922   :  { %11275 = vmatprep.subr.bf16.mxu1 %v17809_v3  ;;  %v17882_v3 = vld [vmem:[#allocation2 + $0x680] ss:$80 sps:$4 sm:$0xff]  }
 0x923   :  { %11179 = vmatmul.mubr.bf16.vlgmr.msra.gmra.mxu0 %v19175_v22 }
 0x924   :  { %11222 = vmatmul.mubr.bf16.vlgmr.msra.gmra.mxu1 %v19181_v9  ;;  %11233 = vmatpush1.bf16.msra.mxu0 %v17804_v37  ;;  %v17885_v37 = vld [vmem:[#allocation2 + $0x1080] ss:$80 sps:$4 sm:$0xff]  }
 0x925   :  { %11276 = vmatpush1.bf16.msra.mxu1 %v17807_v39  ;;  %11234 = vmatprep.subr.bf16.mxu0 %v17812_v40  ;;  %v17890_v39 = vld [vmem:[#allocation2 + $0x5e4] ss:$80 sps:$4 sm:$0xff]  }
 0x926   :  { %11277 = vmatprep.subr.bf16.mxu1 %v17815_v41  ;;  %11264 = vmatprep.mubr.bf16.mxu0 %v19165_v62  ;;  %v17893_v40 = vld [vmem:[#allocation2 + $0xfe4] ss:$80 sps:$4 sm:$0xff]   ;;  %v19219_v41 = vpop.f32.mrf.mxu0 }
 0x927   :  { %11307 = vmatprep.mubr.bf16.mxu1 %v19167_v6 }
 0x928   :  { %11235 = vmatpush1.bf16.msra.mxu0 %v17810_v21  ;;  %v19221_v21 = vpop.f32.mrf.mxu1 }
 0x929   :  { %11278 = vmatpush1.bf16.msra.mxu1 %v17813_v50  ;;  %11236 = vmatprep.subr.bf16.mxu0 %v17818_v28  ;;  %v17888_v50 = vld [vmem:[#allocation2 + $0x5e0] ss:$80 sps:$4 sm:$0xff]  }
 0x92a   :  { %11279 = vmatprep.subr.bf16.mxu1 %v17821_v31  ;;  %v17891_v28 = vld [vmem:[#allocation2 + $0xfe0] ss:$80 sps:$4 sm:$0xff]   ;;  %v17896_v31 = vld [vmem:[#allocation2 + $0x544] ss:$80 sps:$4 sm:$0xff]  }
 0x92c   :  { %11237 = vmatpush1.bf16.msra.mxu0 %v17816_v15  ;;  %v17899_v15 = vld [vmem:[#allocation2 + $0xf44] ss:$80 sps:$4 sm:$0xff]  }
 0x92d   :  { %11280 = vmatpush1.bf16.msra.mxu1 %v17819_v25  ;;  %11238 = vmatprep.subr.bf16.mxu0 %v17824_v44  ;;  %v19223_v25 = vpop.f32.mrf.mxu0  ;;  %v19225_v44 = vpop.f32.mrf.mxu1 }
 0x92e   :  { %11281 = vmatprep.subr.bf16.mxu1 %v17827_v2  ;;  %v17894_v2 = vld [vmem:[#allocation2 + $0x540] ss:$80 sps:$4 sm:$0xff]  }
 0x930   :  { %11239 = vmatpush1.bf16.msra.mxu0 %v17822_v33  ;;  %v17897_v33 = vld [vmem:[#allocation2 + $0xf40] ss:$80 sps:$4 sm:$0xff]  }
 0x931   :  { %11282 = vmatpush1.bf16.msra.mxu1 %v17825_v34  ;;  %11240 = vmatprep.subr.bf16.mxu0 %v17830_v35  ;;  %v17902_v34 = vld [vmem:[#allocation2 + $0x4ac] ss:$80 sps:$4 sm:$0xff]  }
 0x932   :  { %11283 = vmatprep.subr.bf16.mxu1 %v17833_v36  ;;  %v17905_v35 = vld [vmem:[#allocation2 + $0xeac] ss:$80 sps:$4 sm:$0xff]   ;;  %v19227_v36 = vpop.f32.mrf.mxu0 }
 0x934   :  { %11241 = vmatpush1.bf16.msra.mxu0 %v17828_v23  ;;  %v19229_v23 = vpop.f32.mrf.mxu1 }
 0x935   :  { %11284 = vmatpush1.bf16.msra.mxu1 %v17831_v38  ;;  %11242 = vmatprep.subr.bf16.mxu0 %v17836_v14  ;;  %v19231_v38 = vpop.f32.mrf.mxu0 }
 0x936   :  { %11285 = vmatprep.subr.bf16.mxu1 %v17839_v56  ;;  %v19233_v14 = vpop.f32.mrf.mxu1  ;;  %v17900_v56 = vld [vmem:[#allocation2 + $0x4a8] ss:$80 sps:$4 sm:$0xff]  }
 0x938   :  { %11243 = vmatpush1.bf16.msra.mxu0 %v17834_v4  ;;  %v17903_v4 = vld [vmem:[#allocation2 + $0xea8] ss:$80 sps:$4 sm:$0xff]  }
 0x939   :  { %11286 = vmatpush1.bf16.msra.mxu1 %v17837_v63  ;;  %11244 = vmatprep.subr.bf16.mxu0 %v17842_v42  ;;  %v17908_v63 = vld [vmem:[#allocation2 + $0x40c] ss:$80 sps:$4 sm:$0xff]  }
 0x93a   :  { %11287 = vmatprep.subr.bf16.mxu1 %v17845_v55  ;;  %v17911_v42 = vld [vmem:[#allocation2 + $0xe0c] ss:$80 sps:$4 sm:$0xff]   ;;  %v19237_v55 = vpop.f32.mrf.mxu0 }
 0x93c   :  { %11245 = vmatpush1.bf16.msra.mxu0 %v17840_v43  ;;  %v19239_v43 = vpop.f32.mrf.mxu1 }
 0x93d   :  { %11288 = vmatpush1.bf16.msra.mxu1 %v17843_v45  ;;  %11246 = vmatprep.subr.bf16.mxu0 %v17848_v46  ;;  %v17906_v45 = vld [vmem:[#allocation2 + $0x408] ss:$80 sps:$4 sm:$0xff]  }
 0x93e   :  { %11289 = vmatprep.subr.bf16.mxu1 %v17851_v13  ;;  %v17909_v46 = vld [vmem:[#allocation2 + $0xe08] ss:$80 sps:$4 sm:$0xff]   ;;  %v17914_v13 = vld [vmem:[#allocation2 + $0x36c] ss:$80 sps:$4 sm:$0xff]  }
 0x940   :  { %11247 = vmatpush1.bf16.msra.mxu0 %v17846_v47  ;;  %v17917_v47 = vld [vmem:[#allocation2 + $0xd6c] ss:$80 sps:$4 sm:$0xff]  }
 0x941   :  { %11290 = vmatpush1.bf16.msra.mxu1 %v17849_v18  ;;  %11248 = vmatprep.subr.bf16.mxu0 %v17854_v48  ;;  %v19243_v18 = vpop.f32.mrf.mxu0  ;;  %v19245_v48 = vpop.f32.mrf.mxu1 }
 0x942   :  { %11291 = vmatprep.subr.bf16.mxu1 %v17857_v49  ;;  %v17912_v49 = vld [vmem:[#allocation2 + $0x368] ss:$80 sps:$4 sm:$0xff]  }
 0x944   :  { %11249 = vmatpush2.bf16.msra.mxu0 %v17852_v51  ;;  %v17915_v51 = vld [vmem:[#allocation2 + $0xd68] ss:$80 sps:$4 sm:$0xff]  }
 0x945   :  { %11292 = vmatpush2.bf16.msra.mxu1 %v17855_v52  ;;  %11250 = vmatprep.subr.bf16.mxu0 %v17860_v53  ;;  %v17920_v52 = vld [vmem:[#allocation2 + $0x2cc] ss:$80 sps:$4 sm:$0xff]  }
 0x946   :  { %11293 = vmatprep.subr.bf16.mxu1 %v17863_v54  ;;  %v17923_v53 = vld [vmem:[#allocation2 + $0xccc] ss:$80 sps:$4 sm:$0xff]   ;;  %v19247_v54 = vpop.f32.mrf.mxu0 }
 0x948   :  { %11251 = vmatpush2.bf16.msra.mxu0 %v17858_v57  ;;  %v19249_v57 = vpop.f32.mrf.mxu1 }
 0x949   :  { %11294 = vmatpush2.bf16.msra.mxu1 %v17861_v59  ;;  %11252 = vmatprep.subr.bf16.mxu0 %v17866_v60  ;;  %v17926_v59 = vld [vmem:[#allocation2 + $0x22c] ss:$80 sps:$4 sm:$0xff]  }
 0x94a   :  { %11295 = vmatprep.subr.bf16.mxu1 %v17869_v61  ;;  %v17929_v60 = vld [vmem:[#allocation2 + $0xc2c] ss:$80 sps:$4 sm:$0xff]   ;;  %v19251_v61 = vpop.f32.mrf.mxu0 }
 0x94c   :  { %11253 = vmatpush2.bf16.msra.mxu0 %v17864_v12  ;;  %v19253_v12 = vpop.f32.mrf.mxu1 }
 0x94d   :  { %11296 = vmatpush2.bf16.msra.mxu1 %v17867_v1  ;;  %11254 = vmatprep.subr.bf16.mxu0 %v17872_v7  ;;  %v17924_v1 = vld [vmem:[#allocation2 + $0x228] ss:$80 sps:$4 sm:$0xff]  }
 0x94e   :  { %11297 = vmatprep.subr.bf16.mxu1 %v17875_v5  ;;  %v17927_v7 = vld [vmem:[#allocation2 + $0xc28] ss:$80 sps:$4 sm:$0xff]   ;;  %v17932_v5 = vld [vmem:[#allocation2 + $0x18c] ss:$80 sps:$4 sm:$0xff]  }
 0x950   :  { %11255 = vmatpush2.bf16.msra.mxu0 %v17870_v8  ;;  %v17935_v8 = vld [vmem:[#allocation2 + $0xb8c] ss:$80 sps:$4 sm:$0xff]  }
 0x951   :  { %11298 = vmatpush2.bf16.msra.mxu1 %v17873_v17  ;;  %11256 = vmatprep.subr.bf16.mxu0 %v17878_v19  ;;  %v19255_v17 = vpop.f32.mrf.mxu0  ;;  %v19257_v19 = vpop.f32.mrf.mxu1 }
 0x952   :  { %11299 = vmatprep.subr.bf16.mxu1 %v17881_v24  ;;  %v17930_v24 = vld [vmem:[#allocation2 + $0x188] ss:$80 sps:$4 sm:$0xff]  }
 0x954   :  { %11257 = vmatpush2.bf16.msra.mxu0 %v17876_v20  ;;  %v17933_v20 = vld [vmem:[#allocation2 + $0xb88] ss:$80 sps:$4 sm:$0xff]  }
 0x955   :  { %11300 = vmatpush2.bf16.msra.mxu1 %v17879_v16  ;;  %11258 = vmatprep.subr.bf16.mxu0 %v17884_v27  ;;  %v17938_v16 = vld [vmem:[#allocation2 + $0xec] ss:$80 sps:$4 sm:$0xff]  }
 0x956   :  { %11301 = vmatprep.subr.bf16.mxu1 %v17887_v29  ;;  %v17941_v27 = vld [vmem:[#allocation2 + $0xaec] ss:$80 sps:$4 sm:$0xff]   ;;  %v19259_v29 = vpop.f32.mrf.mxu0 }
 0x958   :  { %11259 = vmatpush2.bf16.msra.mxu0 %v17882_v3  ;;  %v19261_v3 = vpop.f32.mrf.mxu1 }
 0x959   :  { %11302 = vmatpush2.bf16.msra.mxu1 %v17885_v37  ;;  %11260 = vmatprep.subr.bf16.mxu0 %v17890_v39  ;;  %v17936_v37 = vld [vmem:[#allocation2 + $0xe8] ss:$80 sps:$4 sm:$0xff]  }
 0x95a   :  { %11303 = vmatprep.subr.bf16.mxu1 %v17893_v40  ;;  %v17939_v39 = vld [vmem:[#allocation2 + $0xae8] ss:$80 sps:$4 sm:$0xff]   ;;  %v17944_v40 = vld [vmem:[#allocation2 + $0x4c] ss:$80 sps:$4 sm:$0xff]  }
 0x95c   :  { %11261 = vmatpush2.bf16.msra.mxu0 %v17888_v50  ;;  %v17947_v50 = vld [vmem:[#allocation2 + $0xa4c] ss:$80 sps:$4 sm:$0xff]  }
 0x95d   :  { %11304 = vmatpush2.bf16.msra.mxu1 %v17891_v28  ;;  %11262 = vmatprep.subr.bf16.mxu0 %v17896_v31  ;;  %v19263_v28 = vpop.f32.mrf.mxu0  ;;  %v19265_v31 = vpop.f32.mrf.mxu1 }
 0x95e   :  { %11305 = vmatprep.subr.bf16.mxu1 %v17899_v15 }
 0x95f   :  { %v19267_v15 = vpop.f32.mrf.mxu0 }
 0x960   :  { %11263 = vmatpush2.bf16.msra.mxu0 %v17894_v2  ;;  %v19269_v2 = vpop.f32.mrf.mxu1 }
 0x961   :  { %11306 = vmatpush2.bf16.msra.mxu1 %v17897_v33  ;;  %11318 = vmatprep.subr.bf16.mxu0 %v17902_v34  ;;  %v17942_v33 = vld [vmem:[#allocation2 + $0x48] ss:$80 sps:$4 sm:$0xff]  }
 0x962   :  { %11361 = vmatprep.subr.bf16.mxu1 %v17905_v35  ;;  %v17945_v34 = vld [vmem:[#allocation2 + $0xa48] ss:$80 sps:$4 sm:$0xff]   ;;  %v17950_v35 = vld [vmem:[#allocation2 + $0x9ac] ss:$80 sps:$4 sm:$0xff]  }
 0x963   :  { %11265 = vmatmul.mubr.bf16.vlgmr.msra.gmra.mxu0 %v19175_v22 }
 0x964   :  { %11308 = vmatmul.mubr.bf16.vlgmr.msra.gmra.mxu1 %v19181_v9  ;;  %11319 = vmatpush1.bf16.msra.mxu0 %v17900_v56  ;;  %v17953_v56 = vld [vmem:[#allocation2 + $0x13ac] ss:$80 sps:$4 sm:$0xff]  }
 0x965   :  { %11362 = vmatpush1.bf16.msra.mxu1 %v17903_v4  ;;  %11320 = vmatprep.subr.bf16.mxu0 %v17908_v63  ;;  %v19271_v4 = vpop.f32.mrf.mxu0  ;;  %v19273_v63 = vpop.f32.mrf.mxu1 }
 0x966   :  { %11363 = vmatprep.subr.bf16.mxu1 %v17911_v42  ;;  %11350 = vmatprep.mubr.bf16.mxu0 %v19165_v62  ;;  %v17918_v62 = vld [vmem:[#allocation2 + $0x2c8] ss:$80 sps:$4 sm:$0xff]  }
 0x967   :  { %11393 = vmatprep.mubr.bf16.mxu1 %v19167_v6  ;;  %v17921_v6 = vld [vmem:[#allocation2 + $0xcc8] ss:$80 sps:$4 sm:$0xff]  }
 0x968   :  { %11321 = vmatpush1.bf16.msra.mxu0 %v17906_v45  ;;  %v17948_v42 = vld [vmem:[#allocation2 + $0x9a8] ss:$80 sps:$4 sm:$0xff]  }
 0x969   :  { %11364 = vmatpush1.bf16.msra.mxu1 %v17909_v46  ;;  %11322 = vmatprep.subr.bf16.mxu0 %v17914_v13  ;;  %v17951_v45 = vld [vmem:[#allocation2 + $0x13a8] ss:$80 sps:$4 sm:$0xff]   ;;  %v17956_v46 = vld [vmem:[#allocation2 + $0x90c] ss:$80 sps:$4 sm:$0xff]  }
 0x96a   :  { %11365 = vmatprep.subr.bf16.mxu1 %v17917_v47  ;;  %v17959_v13 = vld [vmem:[#allocation2 + $0x130c] ss:$80 sps:$4 sm:$0xff]   ;;  %v19275_v47 = vpop.f32.mrf.mxu0 }
 0x96c   :  { %11323 = vmatpush1.bf16.msra.mxu0 %v17912_v49  ;;  %v19277_v49 = vpop.f32.mrf.mxu1 }
 0x96d   :  { %11366 = vmatpush1.bf16.msra.mxu1 %v17915_v51  ;;  %11324 = vmatprep.subr.bf16.mxu0 %v17920_v52  ;;  %v17954_v51 = vld [vmem:[#allocation2 + $0x908] ss:$80 sps:$4 sm:$0xff]  }
 0x96e   :  { %11367 = vmatprep.subr.bf16.mxu1 %v17923_v53  ;;  %v17957_v52 = vld [vmem:[#allocation2 + $0x1308] ss:$80 sps:$4 sm:$0xff]   ;;  %v17962_v53 = vld [vmem:[#allocation2 + $0x86c] ss:$80 sps:$4 sm:$0xff]  }
 0x970   :  { %11325 = vmatpush1.bf16.msra.mxu0 %v17918_v62  ;;  %v17965_v62 = vld [vmem:[#allocation2 + $0x126c] ss:$80 sps:$4 sm:$0xff]  }
 0x971   :  { %11368 = vmatpush1.bf16.msra.mxu1 %v17921_v6  ;;  %11326 = vmatprep.subr.bf16.mxu0 %v17926_v59  ;;  %v10842_v6 = vpop.f32.mrf.mxu0  ;;  %v10885_v59 = vpop.f32.mrf.mxu1 }
 0x972   :  { %11369 = vmatprep.subr.bf16.mxu1 %v17929_v60  ;;  %v17960_v60 = vld [vmem:[#allocation2 + $0x868] ss:$80 sps:$4 sm:$0xff]  }
 0x974   :  { %11327 = vmatpush1.bf16.msra.mxu0 %v17924_v1  ;;  %v17963_v1 = vld [vmem:[#allocation2 + $0x1268] ss:$80 sps:$4 sm:$0xff]  }
 0x975   :  { %11370 = vmatpush1.bf16.msra.mxu1 %v17927_v7  ;;  %11328 = vmatprep.subr.bf16.mxu0 %v17932_v5  ;;  %v17968_v7 = vld [vmem:[#allocation2 + $0x7cc] ss:$80 sps:$4 sm:$0xff]  }
 0x976   :  { %11371 = vmatprep.subr.bf16.mxu1 %v17935_v8  ;;  %v17971_v5 = vld [vmem:[#allocation2 + $0x11cc] ss:$80 sps:$4 sm:$0xff]   ;;  %v19279_v8 = vpop.f32.mrf.mxu0 }
 0x978   :  { %11329 = vmatpush1.bf16.msra.mxu0 %v17930_v24  ;;  %v19281_v24 = vpop.f32.mrf.mxu1 }
 0x979   :  { %11372 = vmatpush1.bf16.msra.mxu1 %v17933_v20  ;;  %11330 = vmatprep.subr.bf16.mxu0 %v17938_v16  ;;  %v17966_v20 = vld [vmem:[#allocation2 + $0x7c8] ss:$80 sps:$4 sm:$0xff]  }
 0x97a   :  { %11373 = vmatprep.subr.bf16.mxu1 %v17941_v27  ;;  %v17969_v16 = vld [vmem:[#allocation2 + $0x11c8] ss:$80 sps:$4 sm:$0xff]   ;;  %v17974_v27 = vld [vmem:[#allocation2 + $0x72c] ss:$80 sps:$4 sm:$0xff]  }
 0x97c   :  { %11331 = vmatpush1.bf16.msra.mxu0 %v17936_v37  ;;  %v17977_v37 = vld [vmem:[#allocation2 + $0x112c] ss:$80 sps:$4 sm:$0xff]  }
 0x97d   :  { %11374 = vmatpush1.bf16.msra.mxu1 %v17939_v39  ;;  %11332 = vmatprep.subr.bf16.mxu0 %v17944_v40  ;;  %v19283_v39 = vpop.f32.mrf.mxu0  ;;  %v19285_v40 = vpop.f32.mrf.mxu1 }
 0x97e   :  { %11375 = vmatprep.subr.bf16.mxu1 %v17947_v50  ;;  %v17972_v50 = vld [vmem:[#allocation2 + $0x728] ss:$80 sps:$4 sm:$0xff]  }
 0x980   :  { %11333 = vmatpush1.bf16.msra.mxu0 %v17942_v33  ;;  %v17975_v33 = vld [vmem:[#allocation2 + $0x1128] ss:$80 sps:$4 sm:$0xff]  }
 0x981   :  { %11376 = vmatpush1.bf16.msra.mxu1 %v17945_v34  ;;  %11334 = vmatprep.subr.bf16.mxu0 %v17950_v35  ;;  %v17980_v34 = vld [vmem:[#allocation2 + $0x68c] ss:$80 sps:$4 sm:$0xff]  }
 0x982   :  { %11377 = vmatprep.subr.bf16.mxu1 %v17953_v56  ;;  %v17983_v35 = vld [vmem:[#allocation2 + $0x108c] ss:$80 sps:$4 sm:$0xff]   ;;  %v19287_v56 = vpop.f32.mrf.mxu0 }
 0x984   :  { %11335 = vmatpush2.bf16.msra.mxu0 %v17948_v42  ;;  %v19289_v42 = vpop.f32.mrf.mxu1 }
 0x985   :  { %11378 = vmatpush2.bf16.msra.mxu1 %v17951_v45  ;;  %11336 = vmatprep.subr.bf16.mxu0 %v17956_v46  ;;  %v17978_v45 = vld [vmem:[#allocation2 + $0x688] ss:$80 sps:$4 sm:$0xff]  }
 0x986   :  { %11379 = vmatprep.subr.bf16.mxu1 %v17959_v13  ;;  %v17981_v46 = vld [vmem:[#allocation2 + $0x1088] ss:$80 sps:$4 sm:$0xff]   ;;  %v17986_v13 = vld [vmem:[#allocation2 + $0x5ec] ss:$80 sps:$4 sm:$0xff]  }
 0x988   :  { %11337 = vmatpush2.bf16.msra.mxu0 %v17954_v51  ;;  %v17989_v51 = vld [vmem:[#allocation2 + $0xfec] ss:$80 sps:$4 sm:$0xff]  }
 0x989   :  { %11380 = vmatpush2.bf16.msra.mxu1 %v17957_v52  ;;  %11338 = vmatprep.subr.bf16.mxu0 %v17962_v53  ;;  %v19291_v52 = vpop.f32.mrf.mxu0  ;;  %v10971_v53 = vpop.f32.mrf.mxu1 }
 0x98a   :  { %11381 = vmatprep.subr.bf16.mxu1 %v17965_v62 }
 0x98b   :  { %v19293_v62 = vpop.f32.mrf.mxu0 }
 0x98c   :  { %11339 = vmatpush2.bf16.msra.mxu0 %v17960_v60  ;;  %v19295_v60 = vpop.f32.mrf.mxu1 }
 0x98d   :  { %11382 = vmatpush2.bf16.msra.mxu1 %v17963_v1  ;;  %11340 = vmatprep.subr.bf16.mxu0 %v17968_v7  ;;  %v17984_v1 = vld [vmem:[#allocation2 + $0x5e8] ss:$80 sps:$4 sm:$0xff]  }
 0x98e   :  { %11383 = vmatprep.subr.bf16.mxu1 %v17971_v5  ;;  %v17987_v7 = vld [vmem:[#allocation2 + $0xfe8] ss:$80 sps:$4 sm:$0xff]   ;;  %v17992_v5 = vld [vmem:[#allocation2 + $0x54c] ss:$80 sps:$4 sm:$0xff]  }
 0x990   :  { %11341 = vmatpush2.bf16.msra.mxu0 %v17966_v20  ;;  %v17995_v20 = vld [vmem:[#allocation2 + $0xf4c] ss:$80 sps:$4 sm:$0xff]  }
 0x991   :  { %11384 = vmatpush2.bf16.msra.mxu1 %v17969_v16  ;;  %11342 = vmatprep.subr.bf16.mxu0 %v17974_v27  ;;  %v10798_v16 = vadd.f32 %v19261_v3, %v19259_v29  ;;  %v10800_v27 = vadd.f32 %v19265_v31, %v19263_v28  ;;  %v10880_v29 = vadd.f32 %v19269_v2, %v19267_v15 }
 0x992   :  { %11385 = vmatprep.subr.bf16.mxu1 %v17977_v37  ;;  %v10884_v37 = vadd.f32 %v19277_v49, %v19275_v47  ;;  %v10882_v3 = vadd.f32 %v19273_v63, %v19271_v4  ;;  %v10710_v2 = vadd.f32 %v19239_v43, %v19237_v55 }
 0x994   :  { %11343 = vmatpush2.bf16.msra.mxu0 %v17972_v50  ;;  %v10886_v50 = vadd.f32 %v10885_v59, %v10842_v6  ;;  %v11410_v47 = vpack.c.bf16 %v10884_v37, %v10880_v29  ;;  %v11052_v37 = vadd.f32 %v19295_v60, %v19293_v62 }
 0x995   :  { %11386 = vmatpush2.bf16.msra.mxu1 %v17975_v33  ;;  %11344 = vmatprep.subr.bf16.mxu0 %v17980_v34  ;;  %v10794_v33 = vadd.f32 %v19253_v12, %v19251_v61  ;;  %v11010_v34 = vpop.f32.mrf.mxu0  ;;  %v10628_v61 = vadd.f32 %v19229_v23, %v19227_v36  ;;  %v10714_v12 = vadd.f32 %v19249_v57, %v19247_v54 }
 0x996   :  { %11387 = vmatprep.subr.bf16.mxu1 %v17983_v35  ;;  %v11053_v35 = vpop.f32.mrf.mxu1  ;;  %v11411_v49 = vpack.c.bf16 %v10886_v50, %v10882_v3  ;;  %v10626_v36 = vadd.f32 %v19225_v44, %v19223_v25  ;;  %v10712_v54 = vadd.f32 %v19245_v48, %v19243_v18  ;;  %v11458_v55 = vsel %vm11450_vm7, %v11410_v47, 0  ;;  %v18001_v3 = vld [vmem:[%s20068_s10 + $0x28] sm:$0x3f]  }
 0x997   :  { %v11408_v28 = vpack.c.bf16 %v10798_v16, %v10794_v33  ;;  %v10622_v25 = vadd.f32 %v19217_v32, %v19215_v58  ;;  %v10708_v44 = vadd.f32 %v19233_v14, %v19231_v38  ;;  %v10972_v18 = vadd.f32 %v10971_v53, %v19291_v52  ;;  %v17996_v58 = vld [vmem:[%s20068_s10 + $0x10] sm:$0xff]  }
 0x998   :  { %11345 = vmatpush2.bf16.msra.mxu0 %v17978_v45  ;;  %v17990_v45 = vld [vmem:[#allocation2 + $0x548] ss:$80 sps:$4 sm:$0xff]   ;;  %v11055_v15 = vpop.f32.mrf.mxu1  ;;  %v10968_v38 = vadd.f32 %v19285_v40, %v19283_v39  ;;  %v11054_v14 = vadd.f32 %v11053_v35, %v11010_v34 }
 0x999   :  { %11388 = vmatpush2.bf16.msra.mxu1 %v17981_v46  ;;  %11346 = vmatprep.subr.bf16.mxu0 %v17986_v13  ;;  %v17993_v46 = vld [vmem:[#allocation2 + $0xf48] ss:$80 sps:$4 sm:$0xff]   ;;  %v10796_v13 = vadd.f32 %v19257_v19, %v19255_v17  ;;  %v10624_v17 = vadd.f32 %v19221_v21, %v19219_v41  ;;  %v11012_v19 = vpop.f32.mrf.mxu0  ;;  %v11407_v41 = vpack.c.bf16 %v10714_v12, %v10710_v2  ;;  %v11452_v21 = vsel %vm11450_vm7, %v11408_v28, 0 }
 0x99a   :  { %11389 = vmatprep.subr.bf16.mxu1 %v17989_v51  ;;  %v11057_v57 = vpop.f32.mrf.mxu1  ;;  %v11413_v63 = vpack.c.bf16 %v10972_v18, %v10968_v38  ;;  %v17997_v39 = vld [vmem:[%s20068_s10 + $0x18] sm:$0x3f]  }
 0x99b   :  { %v11409_v31 = vpack.c.bf16 %v10800_v27, %v10796_v13  ;;  %v11405_v23 = vpack.c.bf16 %v10628_v61, %v10624_v17  ;;  %v11014_v43 = vpop.f32.mrf.mxu0  ;;  %v10966_v27 = vadd.f32 %v19281_v24, %v19279_v8  ;;  %v17999_v24 = vld [vmem:[%s20068_s10 + $0x8] sm:$0x3f]   ;;  %v18000_v13 = vld [vmem:[%s20068_s10 + $0x20] sm:$0xff]   ;;  %v18002_v61 = vld [vmem:[%s20068_s10 + $0x30] sm:$0xff]  }
 0x99c   :  { %11347 = vmatpush2.bf16.msra.mxu0 %v17984_v1  ;;  %v11058_v48 = vadd.f32 %v11057_v57, %v11014_v43  ;;  %v18003_v12 = vld [vmem:[%s20068_s10 + $0x38] sm:$0x3f]  }
 0x99d   :  { %11390 = vmatpush2.bf16.msra.mxu1 %v17987_v7  ;;  %11348 = vmatprep.subr.bf16.mxu0 %v17992_v5  ;;  %v10970_v7 = vadd.f32 %v19289_v42, %v19287_v56  ;;  %v11056_v5 = vadd.f32 %v11055_v15, %v11012_v19  ;;  %v17998_v42 = vld [vmem:[%s20068_s10] sm:$0xff]  }
 0x99e   :  { %11391 = vmatprep.subr.bf16.mxu1 %v17995_v20  ;;  %v11415_v6 = vpack.c.bf16 %v11058_v48, %v11054_v14 }
 0x99f   :  { %v11412_v50 = vpack.c.bf16 %v10970_v7, %v10966_v27  ;;  %v11414_v33 = vpack.c.bf16 %v11056_v5, %v11052_v37 }
 0x9a0   :  { %11349 = vmatpush2.bf16.msra.mxu0 %v17990_v45 }
 0x9a1   :  { %11392 = vmatpush2.bf16.msra.mxu1 %v17993_v46  ;;  %15595 = vmatprep.subr.msk.bf16.mxu0 %vm11450_vm7, %v11409_v31  ;;  %v11725_v45 = vsel %vm11450_vm7, %v11412_v50, 0  ;;  %v11731_v8 = vsel %vm11450_vm7, %v11414_v33, 0 }
 0x9a2   :  { %15598 = vmatprep.subr.msk.bf16.mxu1 %vm11450_vm7, %v11411_v49 }
 0x9a3   :  { %11351 = vmatmul.mubr.bf16.vlgmr.msra.gmra.mxu0 %v19175_v22  ;;  %v11404_v22 = vpack.c.bf16 %v10626_v36, %v10622_v25  ;;  %v11094_v32 = vpop.f32.mrf.mxu0 }
 0x9a4   :  { %11394 = vmatmul.mubr.bf16.vlgmr.msra.gmra.mxu1 %v19181_v9  ;;  %11478 = vmatpush1.bf16.msra.mxu0 %v11452_v21  ;;  %v11406_v9 = vpack.c.bf16 %v10712_v54, %v10708_v44  ;;  %v11137_v4 = vpop.f32.mrf.mxu1 }
 0x9a5   :  { %11531 = vmatpush1.bf16.msra.mxu1 %v11458_v55  ;;  %15603 = vmatprep.subr.msk.bf16.mxu0 %vm11450_vm7, %v11405_v23  ;;  %v11586_v59 = vsel %vm11450_vm7, %v11404_v22, 0  ;;  %v11096_v52 = vpop.f32.mrf.mxu0  ;;  %v11138_v60 = vadd.f32 %v11137_v4, %v11094_v32 }
 0x9a6   :  { %15606 = vmatprep.subr.msk.bf16.mxu1 %vm11450_vm7, %v11407_v41  ;;  %11495 = vmatprep.mubr.bf16.mxu0 %v18523_v0  ;;  %v11592_v51 = vsel %vm11450_vm7, %v11406_v9, 0  ;;  %v11139_v53 = vpop.f32.mrf.mxu1 }
 0x9a7   :  { %11548 = vmatprep.mubr.bf16.mxu1 %v18523_v0  ;;  %v11098_v40 = vpop.f32.mrf.mxu0  ;;  %v11140_v34 = vadd.f32 %v11139_v53, %v11096_v52  ;;  %v18005_v52 = vld [vmem:[%s20068_s10 + $0x48] sm:$0x3f]  }
 0x9a8   :  { %v11141_v1 = vpop.f32.mrf.mxu1 }
 0x9a9   :  { %v11100_v20 = vpop.f32.mrf.mxu0  ;;  %v11142_v62 = vadd.f32 %v11141_v1, %v11098_v40 }
 0x9aa   :  { %v11143_v16 = vpop.f32.mrf.mxu1 }
 0x9ab   :  { %15596 = vmatmul.mubr.msk.bf16.vlgmr.msra.gmra.mxu0 %vm11443_vm8, %v17996_v58  ;;  %v11144_v56 = vadd.f32 %v11143_v16, %v11100_v20  ;;  %v11416_v46 = vpack.c.bf16 %v11142_v62, %v11138_v60  ;;  %v12298_v62 = vld [vmem:[%s20069_s11 + $0xf0] sm:$0xff] }
 0x9ac   :  { %15599 = vmatmul.mubr.msk.bf16.vlgmr.msra.gmra.mxu1 %vm11443_vm8, %v17996_v58  ;;  %11612 = vmatpush1.bf16.msra.mxu0 %v11586_v59 }
 0x9ad   :  { %11665 = vmatpush1.bf16.msra.mxu1 %v11592_v51  ;;  %15615 = vmatprep.subr.msk.bf16.mxu0 %vm11450_vm7, %v11413_v63  ;;  %v11417_v35 = vpack.c.bf16 %v11144_v56, %v11140_v34  ;;  %v11880_v29 = vsel %vm11450_vm7, %v11416_v46, 0  ;;  %v18004_v51 = vld [vmem:[%s20068_s10 + $0x40] sm:$0xff]   ;;  %v12297_v46 = vld [vmem:[%s20069_s11 + $0xe8] sm:$0xff] }
 0x9ae   :  { %15618 = vmatprep.subr.msk.bf16.mxu1 %vm11450_vm7, %v11415_v6  ;;  %11505 = vmatprep.mubr.bf16.mxu0 %v18523_v0 }
 0x9af   :  { %11558 = vmatprep.mubr.bf16.mxu1 %v18523_v0 }
 0x9b3   :  { %15597 = vmatmul.mubr.msk.bf16.gmra.mxu0 %vm11443_vm8, %v17997_v39 }
 0x9b4   :  { %15600 = vmatmul.mubr.msk.bf16.gmra.mxu1 %vm11443_vm8, %v17997_v39  ;;  %11629 = vmatprep.mubr.bf16.mxu0 %v18523_v0 }
 0x9b5   :  { %11682 = vmatprep.mubr.bf16.mxu1 %v18523_v0 }
 0x9bb   :  { %15604 = vmatmul.mubr.msk.bf16.vlgmr.msra.gmra.mxu0 %vm11443_vm8, %v17998_v42 }
 0x9bc   :  { %15607 = vmatmul.mubr.msk.bf16.vlgmr.msra.gmra.mxu1 %vm11443_vm8, %v17998_v42  ;;  %11751 = vmatpush1.bf16.msra.mxu0 %v11725_v45 }
 0x9bd   :  { %11804 = vmatpush1.bf16.msra.mxu1 %v11731_v8  ;;  %15627 = vmatprep.subr.msk.bf16.mxu0 %vm11450_vm7, %v11417_v35  ;;  %v12299_v8 = vld [vmem:[%s20069_s11 + $0xf8] sm:$0xff] }
 0x9be   :  { %11639 = vmatprep.mubr.bf16.mxu0 %v18523_v0  ;;  %11692 = vmatprep.mubr.bf16.mxu1 %v18523_v0 }
 0x9c3   :  { %15605 = vmatmul.mubr.msk.bf16.gmra.mxu0 %vm11443_vm8, %v17999_v24 }
 0x9c4   :  { %15608 = vmatmul.mubr.msk.bf16.gmra.mxu1 %vm11443_vm8, %v17999_v24  ;;  %11768 = vmatprep.mubr.bf16.mxu0 %v18523_v0  ;;  %v12283_v24 = vld [vmem:[%s20069_s11 + $0x78] sm:$0xff] }
 0x9c5   :  { %11821 = vmatprep.mubr.bf16.mxu1 %v18523_v0 }
 0x9cb   :  { %15616 = vmatmul.mubr.msk.bf16.vlgmr.msra.gmra.mxu0 %vm11443_vm8, %v18000_v13 }
 0x9cc   :  { %15619 = vmatmul.mubr.msk.bf16.vlgmr.msra.gmra.mxu1 %vm11443_vm8, %v18000_v13  ;;  %11906 = vmatpush1.bf16.msra.mxu0 %v11880_v29  ;;  %v12281_v13 = vld [vmem:[%s20069_s11 + $0x68] sm:$0xff]  ;;  %v12296_v29 = vld [vmem:[%s20069_s11 + $0xe0] sm:$0xff] }
 0x9cd   :  { %11778 = vmatprep.mubr.bf16.mxu0 %v18523_v0  ;;  %11831 = vmatprep.mubr.bf16.mxu1 %v18523_v0 }
 0x9d3   :  { %15617 = vmatmul.mubr.msk.bf16.gmra.mxu0 %vm11443_vm8, %v18001_v3 }
 0x9d4   :  { %15620 = vmatmul.mubr.msk.bf16.gmra.mxu1 %vm11443_vm8, %v18001_v3  ;;  %11923 = vmatprep.mubr.bf16.mxu0 %v18523_v0  ;;  %v12280_v3 = vld [vmem:[%s20069_s11 + $0x60] sm:$0xff] }
 0x9d5   :  { %11976 = vmatprep.mubr.bf16.mxu1 %v18523_v0 }
 0x9db   :  { %15628 = vmatmul.mubr.msk.bf16.vlgmr.msra.gmra.mxu0 %vm11443_vm8, %v18002_v61 }
 0x9dc   :  { %11933 = vmatprep.mubr.bf16.mxu0 %v18523_v0 }
 0x9e3   :  { %v11180_v28 = vpop.f32.mrf.mxu0  ;;  %15629 = vmatmul.mubr.msk.bf16.gmra.mxu0 %vm11443_vm8, %v18003_v12 }
 0x9e4   :  { %v11223_v31 = vpop.f32.mrf.mxu1  ;;  %12078 = vmatprep.mubr.bf16.mxu0 %v18523_v0 }
 0x9e5   :  { %v11182_v47 = vpop.f32.mrf.mxu0  ;;  %v11224_v15 = vadd.f32 %v11223_v31, %v11180_v28  ;;  %v12279_v28 = vld [vmem:[%s20069_s11 + $0x58] sm:$0xff]  ;;  %v12294_v31 = vld [vmem:[%s20069_s11 + $0xd0] sm:$0xff] }
 0x9e6   :  { %v11225_v49 = vpop.f32.mrf.mxu1 }
 0x9e7   :  { %v11184_v17 = vpop.f32.mrf.mxu0  ;;  %v11226_v54 = vadd.f32 %v11225_v49, %v11182_v47  ;;  %v12278_v47 = vld [vmem:[%s20069_s11 + $0x50] sm:$0xff] }
 0x9e8   :  { %v11227_v19 = vpop.f32.mrf.mxu1 }
 0x9e9   :  { %v11228_v2 = vadd.f32 %v11227_v19, %v11184_v17  ;;  %v11186_v36 = vpop.f32.mrf.mxu0  ;;  %v12293_v17 = vld [vmem:[%s20069_s11 + $0xc8] sm:$0xff] }
 0x9ea   :  { %v11229_v23 = vpop.f32.mrf.mxu1  ;;  %v12277_v19 = vld [vmem:[%s20069_s11 + $0x48] sm:$0xff] }
 0x9eb   :  { %v11418_v41 = vpack.c.bf16 %v11228_v2, %v11224_v15  ;;  %v11230_v21 = vadd.f32 %v11229_v23, %v11186_v36  ;;  %v12292_v15 = vld [vmem:[%s20069_s11 + $0xc0] sm:$0xff]  ;;  %v12291_v23 = vld [vmem:[%s20069_s11 + $0xb8] sm:$0xff] }
 0x9ec   :  { %v12276_v2 = vld [vmem:[%s20069_s11 + $0x40] sm:$0xff] }
 0x9ed   :  { %v11419_v55 = vpack.c.bf16 %v11230_v21, %v11226_v54  ;;  %v11886_v43 = vsel %vm11450_vm7, %v11418_v41, 0  ;;  %v12275_v54 = vld [vmem:[%s20069_s11 + $0x38] sm:$0xff]  ;;  %v12290_v41 = vld [vmem:[%s20069_s11 + $0xb0] sm:$0xff] }
 0x9ee   :  { %v12274_v21 = vld [vmem:[%s20069_s11 + $0x30] sm:$0xff] }
 0x9ef   :  { %15630 = vmatprep.subr.msk.bf16.mxu1 %vm11450_vm7, %v11419_v55 }
 0x9f0   :  { %11959 = vmatpush1.bf16.msra.mxu1 %v11886_v43  ;;  %v12289_v43 = vld [vmem:[%s20069_s11 + $0xa8] sm:$0xff] }
 0x9f3   :  { %15631 = vmatmul.mubr.msk.bf16.vlgmr.msra.gmra.mxu1 %vm11443_vm8, %v18002_v61 }
 0x9f4   :  { %11986 = vmatprep.mubr.bf16.mxu1 %v18523_v0 }
 0x9fb   :  { %15632 = vmatmul.mubr.msk.bf16.gmra.mxu1 %vm11443_vm8, %v18003_v12  ;;  %v12295_v12 = vld [vmem:[%s20069_s11 + $0xd8] sm:$0xff] }
 0x9fc   :  { %12131 = vmatprep.mubr.bf16.mxu1 %v18523_v0 }
 0xa23   :  { %v11266_v57 = vpop.f32.mrf.mxu0 }
 0xa24   :  { %v11309_v25 = vpop.f32.mrf.mxu1 }
 0xa25   :  { %v11268_v44 = vpop.f32.mrf.mxu0  ;;  %v11310_v48 = vadd.f32 %v11309_v25, %v11266_v57  ;;  %v12273_v57 = vld [vmem:[%s20069_s11 + $0x28] sm:$0xff]  ;;  %v12288_v25 = vld [vmem:[%s20069_s11 + $0xa0] sm:$0xff] }
 0xa26   :  { %v11311_v22 = vpop.f32.mrf.mxu1 }
 0xa27   :  { %v11270_v9 = vpop.f32.mrf.mxu0  ;;  %v11312_v38 = vadd.f32 %v11311_v22, %v11268_v44  ;;  %v12272_v44 = vld [vmem:[%s20069_s11 + $0x20] sm:$0xff]  ;;  %v12287_v22 = vld [vmem:[%s20069_s11 + $0x98] sm:$0xff] }
 0xa28   :  { %v11313_v18 = vpop.f32.mrf.mxu1 }
 0xa29   :  { %v11314_v58 = vadd.f32 %v11313_v18, %v11270_v9  ;;  %v11272_v32 = vpop.f32.mrf.mxu0  ;;  %v12271_v9 = vld [vmem:[%s20069_s11 + $0x18] sm:$0xff] }
 0xa2a   :  { %v11315_v4 = vpop.f32.mrf.mxu1 }
 0xa2b   :  { %v11420_v14 = vpack.c.bf16 %v11314_v58, %v11310_v48  ;;  %v11316_v63 = vadd.f32 %v11315_v4, %v11272_v32  ;;  %v12286_v48 = vld [vmem:[%s20069_s11 + $0x90] sm:$0xff]  ;;  %v12285_v32 = vld [vmem:[%s20069_s11 + $0x88] sm:$0xff] }
 0xa2c   :  { %v12270_v58 = vld [vmem:[%s20069_s11 + $0x10] sm:$0xff]  ;;  %v12269_v4 = vld [vmem:[%s20069_s11 + $0x8] sm:$0xff] }
 0xa2d   :  { %v11421_v6 = vpack.c.bf16 %v11316_v63, %v11312_v38  ;;  %v12035_v59 = vsel %vm11450_vm7, %v11420_v14, 0  ;;  %v12284_v14 = vld [vmem:[%s20069_s11 + $0x80] sm:$0xff] }
 0xa2e   :  { %v12268_v63 = vld [vmem:[%s20069_s11] sm:$0xff] }
 0xa2f   :  { %15639 = vmatprep.subr.msk.bf16.mxu0 %vm11450_vm7, %v11421_v6 }
 0xa30   :  { %12061 = vmatpush1.bf16.msra.mxu0 %v12035_v59 }
 0xa31   :  { %15901 = vmatprep.subr.mxu0 %v12299_v8  ;;  %v12328_v8 = vld [vmem:[%s20069_s11 + $0x1e0] sm:$0xff] }
 0xa33   :  { %15640 = vmatmul.mubr.msk.bf16.vlgmr.msra.gmra.mxu0 %vm11443_vm8, %v18004_v51 }
 0xa34   :  { %12088 = vmatprep.mubr.bf16.mxu0 %v18523_v0  ;;  %15902 = vmatpush3.msra.mxu0 %v12283_v24  ;;  %v12312_v24 = vld [vmem:[%s20069_s11 + $0x160] sm:$0xff] }
 0xa35   :  { %15903 = vmatprep.subr.mxu0 %v12298_v62 }
 0xa3b   :  { %15641 = vmatmul.mubr.msk.bf16.gmra.mxu0 %vm11443_vm8, %v18005_v52 }
 0xa63   :  { %v11352_v53 = vpop.f32.mrf.mxu0 }
 0xa64   :  { %v11395_v39 = vpop.f32.mrf.mxu1 }
 0xa65   :  { %v11354_v40 = vpop.f32.mrf.mxu0  ;;  %v11396_v20 = vadd.f32 %v11395_v39, %v11352_v53 }
 0xa66   :  { %v11397_v1 = vpop.f32.mrf.mxu1 }
 0xa67   :  { %v11356_v7 = vpop.f32.mrf.mxu0  ;;  %v11398_v50 = vadd.f32 %v11397_v1, %v11354_v40 }
 0xa68   :  { %v11399_v5 = vpop.f32.mrf.mxu1 }
 0xa69   :  { %v11400_v16 = vadd.f32 %v11399_v5, %v11356_v7  ;;  %v11358_v27 = vpop.f32.mrf.mxu0 }
 0xa6a   :  { %v11401_v37 = vpop.f32.mrf.mxu1 }
 0xa6b   :  { %v11422_v33 = vpack.c.bf16 %v11400_v16, %v11396_v20  ;;  %v11402_v56 = vadd.f32 %v11401_v37, %v11358_v27  ;;  %v19426_v35 = vpop.f32.mrf.mxu0  ;;  %v12331_v20 = vld [vmem:[%s20069_s11 + $0x1f8] sm:$0xff]  ;;  %v12330_v37 = vld [vmem:[%s20069_s11 + $0x1f0] sm:$0xff] }
 0xa6c   :  { %v19558_v7 = vpop.f32.mrf.mxu1  ;;  %v12315_v16 = vld [vmem:[%s20069_s11 + $0x178] sm:$0xff] }
 0xa6d   :  { %v11423_v42 = vpack.c.bf16 %v11402_v56, %v11398_v50  ;;  %v12041_v34 = vsel %vm11450_vm7, %v11422_v33, 0  ;;  %v19429_v45 = vpop.f32.mrf.mxu0  ;;  %v12314_v50 = vld [vmem:[%s20069_s11 + $0x170] sm:$0xff]  ;;  %v12329_v56 = vld [vmem:[%s20069_s11 + $0x1e8] sm:$0xff] }
 0xa6e   :  { %v19568_v27 = vpop.f32.mrf.mxu1 }
 0xa6f   :  { %15642 = vmatprep.subr.msk.bf16.mxu1 %vm11450_vm7, %v11423_v42  ;;  %v19444_v60 = vpop.f32.mrf.mxu0  ;;  %v12313_v42 = vld [vmem:[%s20069_s11 + $0x168] sm:$0xff] }
 0xa70   :  { %12114 = vmatpush1.bf16.msra.mxu1 %v12041_v34  ;;  %v19584_v34 = vpop.f32.mrf.mxu1 }
 0xa71   :  { %v19458_v61 = vpop.f32.mrf.mxu0  ;;  %15936 = vmatprep.subr.mxu1 %v12331_v20  ;;  %v12317_v20 = vld [vmem:[%s20069_s11 + $0x188] sm:$0xff] }
 0xa73   :  { %15643 = vmatmul.mubr.msk.bf16.vlgmr.msra.gmra.mxu1 %vm11443_vm8, %v18004_v51  ;;  %v19472_v49 = vpop.f32.mrf.mxu0 }
 0xa74   :  { %12141 = vmatprep.mubr.bf16.mxu1 %v18523_v0  ;;  %v12282_v0 = vld [vmem:[%s20069_s11 + $0x70] sm:$0xff]  ;;  %15937 = vmatpush3.msra.mxu1 %v12315_v16  ;;  %v12301_v16 = vld [vmem:[%s20069_s11 + $0x108] sm:$0xff] }
 0xa75   :  { %15904 = vmatpush3.msra.mxu0 %v12282_v0  ;;  %v19486_v36 = vpop.f32.mrf.mxu0  ;;  %15938 = vmatprep.subr.mxu1 %v12330_v37  ;;  %v12327_v0 = vld [vmem:[%s20069_s11 + $0x1d8] sm:$0xff] }
 0xa76   :  { %15905 = vmatprep.subr.mxu0 %v12297_v46  ;;  %15939 = vmatpush3.msra.mxu1 %v12314_v50  ;;  %v12311_v46 = vld [vmem:[%s20069_s11 + $0x158] sm:$0xff]  ;;  %v12316_v50 = vld [vmem:[%s20069_s11 + $0x180] sm:$0xff] }
 0xa77   :  { %15906 = vmatpush3.msra.mxu0 %v12281_v13  ;;  %v19500_v55 = vpop.f32.mrf.mxu0  ;;  %15940 = vmatprep.subr.mxu1 %v12329_v56  ;;  %v19600_v13 = vpop.f32.mrf.mxu1  ;;  %v12300_v56 = vld [vmem:[%s20069_s11 + $0x100] sm:$0xff] }
 0xa78   :  { %15907 = vmatprep.subr.mxu0 %v12296_v29  ;;  %15941 = vmatpush3.msra.mxu1 %v12313_v42  ;;  %v12326_v29 = vld [vmem:[%s20069_s11 + $0x1d0] sm:$0xff] }
 0xa79   :  { %15908 = vmatpush3.msra.mxu0 %v12280_v3  ;;  %v19520_v18 = vpop.f32.mrf.mxu0  ;;  %15942 = vmatprep.subr.mxu1 %v12328_v8  ;;  %v12310_v3 = vld [vmem:[%s20069_s11 + $0x150] sm:$0xff] }
 0xa7a   :  { %15909 = vmatprep.subr.mxu0 %v12295_v12  ;;  %15943 = vmatpush3.msra.mxu1 %v12312_v24 }
 0xa7b   :  { %15644 = vmatmul.mubr.msk.bf16.gmra.mxu1 %vm11443_vm8, %v18005_v52  ;;  %15910 = vmatpush3.msra.mxu0 %v12279_v28  ;;  %v19534_v38 = vpop.f32.mrf.mxu0  ;;  %v12325_v28 = vld [vmem:[%s20069_s11 + $0x1c8] sm:$0xff] }
 0xa7c   :  { %15911 = vmatprep.subr.mxu0 %v12294_v31  ;;  %15944 = vmatprep.subr.mxu1 %v12327_v0  ;;  %v12309_v31 = vld [vmem:[%s20069_s11 + $0x148] sm:$0xff] }
 0xa7d   :  { %15912 = vmatpush3.msra.mxu0 %v12278_v47  ;;  %v19542_v6 = vpop.f32.mrf.mxu0  ;;  %15945 = vmatpush3.msra.mxu1 %v12311_v46  ;;  %v19616_v47 = vpop.f32.mrf.mxu1 }
 0xa7e   :  { %15913 = vmatprep.subr.mxu0 %v12293_v17  ;;  %15946 = vmatprep.subr.mxu1 %v12326_v29  ;;  %v12324_v17 = vld [vmem:[%s20069_s11 + $0x1c0] sm:$0xff] }
 0xa7f   :  { %15914 = vmatpush3.msra.mxu0 %v12277_v19  ;;  %v19544_v59 = vpop.f32.mrf.mxu0  ;;  %15947 = vmatpush3.msra.mxu1 %v12310_v3  ;;  %v12308_v19 = vld [vmem:[%s20069_s11 + $0x140] sm:$0xff] }
 0xa80   :  { %15915 = vmatprep.subr.mxu0 %v12292_v15  ;;  %15948 = vmatprep.subr.mxu1 %v12325_v28 }
 0xa81   :  { %15916 = vmatpush3.msra.mxu0 %v12276_v2  ;;  %v19546_v51 = vpop.f32.mrf.mxu0  ;;  %15949 = vmatpush3.msra.mxu1 %v12309_v31  ;;  %v12323_v2 = vld [vmem:[%s20069_s11 + $0x1b8] sm:$0xff] }
 0xa82   :  { %15917 = vmatprep.subr.mxu0 %v12291_v23  ;;  %15950 = vmatprep.subr.mxu1 %v12324_v17  ;;  %v12307_v23 = vld [vmem:[%s20069_s11 + $0x138] sm:$0xff] }
 0xa83   :  { %15918 = vmatpush3.msra.mxu0 %v12275_v54  ;;  %v19548_v52 = vpop.f32.mrf.mxu0  ;;  %15951 = vmatpush3.msra.mxu1 %v12308_v19  ;;  %v19632_v54 = vpop.f32.mrf.mxu1 }
 0xa84   :  { %15919 = vmatprep.subr.mxu0 %v12290_v41  ;;  %15952 = vmatprep.subr.mxu1 %v12323_v2  ;;  %v12322_v41 = vld [vmem:[%s20069_s11 + $0x1b0] sm:$0xff]  ;;  %v11632_v2 = vadd.f32 %v19534_v38, %v19426_v35 }
 0xa85   :  { %15920 = vmatpush3.msra.mxu0 %v12274_v21  ;;  %v19550_v53 = vpop.f32.mrf.mxu0  ;;  %15953 = vmatpush3.msra.mxu1 %v12307_v23  ;;  %v12306_v21 = vld [vmem:[%s20069_s11 + $0x130] sm:$0xff] }
 0xa86   :  { %15921 = vmatprep.subr.mxu0 %v12289_v43  ;;  %15954 = vmatprep.subr.mxu1 %v12322_v41  ;;  %v11636_v41 = vadd.f32 %v19544_v59, %v19444_v60  ;;  %v11644_v60 = vadd.f32 %v19550_v53, %v19486_v36 }
 0xa87   :  { %15922 = vmatpush3.msra.mxu0 %v12273_v57  ;;  %v19552_v39 = vpop.f32.mrf.mxu0  ;;  %15955 = vmatpush3.msra.mxu1 %v12306_v21  ;;  %v12321_v57 = vld [vmem:[%s20069_s11 + $0x1a8] sm:$0xff] }
 0xa88   :  { %15923 = vmatprep.subr.mxu0 %v12288_v25  ;;  %v12305_v25 = vld [vmem:[%s20069_s11 + $0x128] sm:$0xff]  ;;  %15956 = vmatprep.subr.mxu1 %v12321_v57  ;;  %v11634_v57 = vadd.f32 %v19542_v6, %v19429_v45 }
 0xa89   :  { %15924 = vmatpush3.msra.mxu0 %v12272_v44  ;;  %v19554_v40 = vpop.f32.mrf.mxu0  ;;  %v12320_v44 = vld [vmem:[%s20069_s11 + $0x1a0] sm:$0xff]  ;;  %15957 = vmatpush3.msra.mxu1 %v12305_v25  ;;  %v11638_v25 = vadd.f32 %v19546_v51, %v19458_v61  ;;  %v11646_v61 = vadd.f32 %v19552_v39, %v19500_v55 }
 0xa8a   :  { %15925 = vmatprep.subr.mxu0 %v12287_v22  ;;  %v12304_v22 = vld [vmem:[%s20069_s11 + $0x120] sm:$0xff]  ;;  %15958 = vmatprep.subr.mxu1 %v12320_v44 }
 0xa8b   :  { %15926 = vmatpush3.msra.mxu0 %v12271_v9  ;;  %v19556_v1 = vpop.f32.mrf.mxu0  ;;  %v19654_v9 = vpop.f32.mrf.mxu1  ;;  %15959 = vmatpush3.msra.mxu1 %v12304_v22 }
 0xa8c   :  { %15927 = vmatprep.subr.mxu0 %v12286_v48  ;;  %v12319_v48 = vld [vmem:[%s20069_s11 + $0x198] sm:$0xff]  ;;  %v11842_v44 = vadd.f32 %v19556_v1, %v11632_v2 }
 0xa8d   :  { %15928 = vmatpush3.msra.mxu0 %v12270_v58  ;;  %v19560_v5 = vpop.f32.mrf.mxu0  ;;  %v12303_v58 = vld [vmem:[%s20069_s11 + $0x118] sm:$0xff]  ;;  %15960 = vmatprep.subr.mxu1 %v12319_v48  ;;  %v11642_v48 = vadd.f32 %v19548_v52, %v19472_v49 }
 0xa8e   :  { %15929 = vmatprep.subr.mxu0 %v12285_v32  ;;  %15961 = vmatpush3.msra.mxu1 %v12303_v58  ;;  %v11843_v59 = vadd.f32 %v19560_v5, %v11634_v57 }
 0xa8f   :  { %15930 = vmatpush3.msra.mxu0 %v12269_v4  ;;  %v19576_v33 = vpop.f32.mrf.mxu0  ;;  %v12318_v4 = vld [vmem:[%s20069_s11 + $0x190] sm:$0xff] }
 0xa90   :  { %15931 = vmatprep.subr.mxu0 %v12284_v14  ;;  %v12302_v14 = vld [vmem:[%s20069_s11 + $0x110] sm:$0xff]  ;;  %15962 = vmatprep.subr.mxu1 %v12318_v4  ;;  %v11846_v35 = vadd.f32 %v19576_v33, %v11636_v41  ;;  %v11648_v33 = vadd.f32 %v19554_v40, %v19520_v18 }
 0xa91   :  { %15932 = vmatpush3.msra.mxu0 %v12268_v63  ;;  %v19592_v62 = vpop.f32.mrf.mxu0  ;;  %v19668_v63 = vpop.f32.mrf.mxu1  ;;  %15963 = vmatpush3.msra.mxu1 %v12302_v14 }
 0xa92   :  { %15964 = vmatprep.subr.mxu1 %v12317_v20  ;;  %v11847_v45 = vadd.f32 %v19592_v62, %v11638_v25 }
 0xa93   :  { %v19608_v12 = vpop.f32.mrf.mxu0  ;;  %v19682_v42 = vpop.f32.mrf.mxu1  ;;  %15965 = vmatpush3.msra.mxu1 %v12301_v16 }
 0xa94   :  { %15966 = vmatprep.subr.mxu1 %v12316_v50  ;;  %v11850_v51 = vadd.f32 %v19608_v12, %v11642_v48 }
 0xa95   :  { %v19624_v15 = vpop.f32.mrf.mxu0  ;;  %15967 = vmatpush3.msra.mxu1 %v12300_v56  ;;  %v19684_v24 = vpop.f32.mrf.mxu1 }
 0xa96   :  { %v11851_v36 = vadd.f32 %v19624_v15, %v11644_v60 }
 0xa97   :  { %v19640_v43 = vpop.f32.mrf.mxu0  ;;  %v19686_v46 = vpop.f32.mrf.mxu1 }
 0xa98   :  { %v11854_v14 = vadd.f32 %v19640_v43, %v11646_v61 }
 0xa99   :  { %v11786_v32 = vpop.f32.mrf.mxu0  ;;  %v19688_v3 = vpop.f32.mrf.mxu1 }
 0xa9a   :  { %v11855_v16 = vadd.f32 %v11786_v32, %v11648_v33 }
 0xa9b   :  { %v11925_v37 = vpop.f32.mrf.mxu0  ;;  %v19690_v31 = vpop.f32.mrf.mxu1 }
 0xa9c   :  { %v11997_v6 = vadd.f32 %v11925_v37, %v11842_v44 }
 0xa9d   :  { %v11927_v8 = vpop.f32.mrf.mxu0  ;;  %v19692_v19 = vpop.f32.mrf.mxu1 }
 0xa9e   :  { %v11998_v53 = vadd.f32 %v11927_v8, %v11843_v59 }
 0xa9f   :  { %v11929_v0 = vpop.f32.mrf.mxu0  ;;  %v19698_v21 = vpop.f32.mrf.mxu1 }
 0xaa0   :  { %v12001_v1 = vadd.f32 %v11929_v0, %v11846_v35 }
 0xaa1   :  { %v11931_v29 = vpop.f32.mrf.mxu0  ;;  %v19708_v38 = vpop.f32.mrf.mxu1 }
 0xaa2   :  { %v12002_v5 = vadd.f32 %v11931_v29, %v11847_v45 }
 0xaa3   :  { %v11935_v28 = vpop.f32.mrf.mxu0  ;;  %v19717_v49 = vpop.f32.mrf.mxu1 }
 0xaa4   :  { %v12005_v20 = vadd.f32 %v11935_v28, %v11850_v51 }
 0xaa5   :  { %v11937_v17 = vpop.f32.mrf.mxu0  ;;  %v19727_v39 = vpop.f32.mrf.mxu1 }
 0xaa6   :  { %v12006_v37 = vadd.f32 %v11937_v17, %v11851_v36 }
 0xaa7   :  { %v11939_v23 = vpop.f32.mrf.mxu0  ;;  %v19739_v0 = vpop.f32.mrf.mxu1 }
 0xaa8   :  { %v12009_v43 = vadd.f32 %v11939_v23, %v11854_v14 }
 0xaa9   :  { %v11941_v22 = vpop.f32.mrf.mxu0  ;;  %v19753_v48 = vpop.f32.mrf.mxu1 }
 0xaaa   :  { %v12010_v28 = vadd.f32 %v11941_v22, %v11855_v16 }
 0xaf3   :  { %v12080_v58 = vpop.f32.mrf.mxu0 }
 0xaf4   :  { %v19722_v4 = vadd.f32 %v12080_v58, %v11997_v6 }
 0xaf5   :  { %v12082_v52 = vpop.f32.mrf.mxu0 }
 0xaf6   :  { %v12208_v18 = vmul.f32 %v19722_v4, %v19722_v4  ;;  %v19731_v40 = vadd.f32 %v12082_v52, %v11998_v53 }
 0xaf7   :  { %v12084_v62 = vpop.f32.mrf.mxu0 }
 0xaf8   :  { %v19725_v55 = vadd.f32 %v12084_v62, %v12001_v1  ;;  %v12209_v2 = vmul.f32 %v19731_v40, %v19731_v40 }
 0xaf9   :  { %v12086_v12 = vpop.f32.mrf.mxu0 }
 0xafa   :  { %v12212_v15 = vmul.f32 %v19725_v55, %v19725_v55  ;;  %v19735_v50 = vadd.f32 %v12086_v12, %v12002_v5  ;;  %v12168_v32 = vadd.f32 %v19725_v55, %v19722_v4  ;;  %v11833_v5 = vpop.f32.mrf.mxu1 }
 0xafb   :  { %v12090_v56 = vpop.f32.mrf.mxu0 }
 0xafc   :  { %v19737_v8 = vadd.f32 %v12090_v56, %v12005_v20  ;;  %v12224_v41 = vadd.f32 %v12212_v15, %v12208_v18  ;;  %v12213_v57 = vmul.f32 %v19735_v50, %v19735_v50  ;;  %v12178_v22 = vadd.f32 %v19735_v50, %v19731_v40 }
 0xafd   :  { %v12092_v29 = vpop.f32.mrf.mxu0 }
 0xafe   :  { %v19743_v17 = vadd.f32 %v12092_v29, %v12006_v37  ;;  %v12216_v23 = vmul.f32 %v19737_v8, %v19737_v8  ;;  %v12169_v35 = vadd.f32 %v12168_v32, %v19737_v8  ;;  %v12234_v61 = vadd.f32 %v12213_v57, %v12209_v2 }
 0xaff   :  { %v12094_v25 = vpop.f32.mrf.mxu0 }
 0xb00   :  { %v19751_v44 = vadd.f32 %v12094_v25, %v12009_v43  ;;  %v12217_v60 = vmul.f32 %v19743_v17, %v19743_v17  ;;  %v12225_v51 = vadd.f32 %v12224_v41, %v12216_v23  ;;  %v12179_v1 = vadd.f32 %v12178_v22, %v19743_v17  ;;  %v11835_v43 = vpop.f32.mrf.mxu1 }
 0xb01   :  { %v12096_v59 = vpop.f32.mrf.mxu0 }
 0xb02   :  { %v12170_v45 = vsel %vm881_vm2, %v19751_v44, 0.0  ;;  %v12220_v6 = vmul.f32 %v19751_v44, %v19751_v44  ;;  %v19764_v58 = vadd.f32 %v12096_v59, %v12010_v28  ;;  %v12235_v62 = vadd.f32 %v12234_v61, %v12217_v60  ;;  %v11837_v22 = vpop.f32.mrf.mxu1 }
 0xb03   :  { %v12171_v52 = vadd.f32 %v12170_v45, %v12169_v35 }
 0xb04   :  { %v12226_v33 = vsel %vm881_vm2, %v12220_v6, 0.0  ;;  %v12180_v36 = vsel %vm881_vm2, %v19764_v58, 0.0  ;;  %v12221_v53 = vmul.f32 %v19764_v58, %v19764_v58 }
 0xb05   :  { %v12172_v14 = vrot.slane %v12171_v52, 4  ;;  %v12227_v20 = vadd.f32 %v12226_v33, %v12225_v51  ;;  %v12181_v12 = vadd.f32 %v12180_v36, %v12179_v1  ;;  %v11839_v1 = vpop.f32.mrf.mxu1 }
 0xb06   :  { %v12236_v16 = vsel %vm881_vm2, %v12221_v53, 0.0 }
 0xb07   :  { %v12173_v37 = vadd.f32 %v12172_v14, %v12171_v52  ;;  %v12228_v18 = vrot.slane %v12227_v20, 4  ;;  %v12182_v15 = vrot.slane %v12181_v12, 4  ;;  %v12237_v56 = vadd.f32 %v12236_v16, %v12235_v62  ;;  %v11978_v14 = vpop.f32.mrf.mxu1 }
 0xb09   :  { %v12174_v32 = vrot.slane %v12173_v37, 2  ;;  %v12229_v29 = vadd.f32 %v12228_v18, %v12227_v20  ;;  %v12238_v28 = vrot.slane %v12237_v56, 4  ;;  %v12183_v2 = vadd.f32 %v12182_v15, %v12181_v12  ;;  %v11980_v16 = vpop.f32.mrf.mxu1 }
 0xb0b   :  { %v12230_v41 = vrot.slane %v12229_v29, 2  ;;  %v12184_v57 = vrot.slane %v12183_v2, 2  ;;  %v12239_v23 = vadd.f32 %v12238_v28, %v12237_v56  ;;  %v12175_v25 = vadd.f32 %v12174_v32, %v12173_v37  ;;  %v11982_v37 = vpop.f32.mrf.mxu1 }
 0xb0c   :  { %v11685_v28 = vadd.f32 %v19682_v42, %v19558_v7 }
 0xb0d   :  { %v12185_v35 = vadd.f32 %v12184_v57, %v12183_v2  ;;  %v12240_v60 = vrot.slane %v12239_v23, 2  ;;  %v12231_v59 = vadd.f32 %v12230_v41, %v12229_v29  ;;  %v12176_v51 = vrot.slane %v12175_v25, 1  ;;  %v11984_v18 = vpop.f32.mrf.mxu1 }
 0xb0e   :  { %v11689_v29 = vadd.f32 %v19686_v46, %v19584_v34  ;;  %v11691_v2 = vadd.f32 %v19688_v3, %v19600_v13  ;;  %v11687_v57 = vadd.f32 %v19684_v24, %v19568_v27  ;;  %v11844_v34 = vadd.f32 %v19717_v49, %v11685_v28 }
 0xb0f   :  { %v12186_v45 = vrot.slane %v12185_v35, 1  ;;  %v12241_v6 = vadd.f32 %v12240_v60, %v12239_v23  ;;  %v12232_v61 = vrot.slane %v12231_v59, 1  ;;  %v12177_v62 = vadd.f32 %v12176_v51, %v12175_v25  ;;  %v11988_v15 = vpop.f32.mrf.mxu1 }
 0xb10   :  { %v11695_v23 = vadd.f32 %v19690_v31, %v19616_v47  ;;  %v11848_v25 = vadd.f32 %v19739_v0, %v11689_v29  ;;  %v11697_v60 = vadd.f32 %v19692_v19, %v19632_v54  ;;  %v11849_v7 = vadd.f32 %v19753_v48, %v11691_v2 }
 0xb11   :  { %v12242_v52 = vrot.slane %v12241_v6, 1  ;;  %v12233_v33 = vadd.f32 %v12232_v61, %v12231_v59  ;;  %v12187_v36 = vadd.f32 %v12186_v45, %v12185_v35  ;;  %v11990_v56 = vpop.f32.mrf.mxu1  ;;  %v11699_v13 = vadd.f32 %v19698_v21, %v19654_v9 }
 0xb12   :  { %v11845_v46 = vadd.f32 %v19727_v39, %v11687_v57  ;;  %v11852_v27 = vadd.f32 %v11833_v5, %v11695_v23  ;;  %v12003_v24 = vadd.f32 %v11982_v37, %v11848_v25  ;;  %v11701_v47 = vadd.f32 %v19708_v38, %v19668_v63 }
 0xb13   :  { %v12243_v53 = vadd.f32 %v12242_v52, %v12241_v6  ;;  %v12264_v12 = vsel %vm6216_vm5, %v12177_v62, %v12233_v33  ;;  %v11992_v32 = vpop.f32.mrf.mxu1  ;;  %v11853_v31 = vadd.f32 %v11835_v43, %v11697_v60  ;;  %v11999_v0 = vadd.f32 %v11978_v14, %v11844_v34 }
 0xb14   :  { %v12004_v59 = vadd.f32 %v11984_v18, %v11849_v7  ;;  %v11856_v49 = vadd.f32 %v11837_v22, %v11699_v13  ;;  %v12000_v48 = vadd.f32 %v11980_v16, %v11845_v46  ;;  %v12007_v45 = vadd.f32 %v11988_v15, %v11852_v27 }
 0xb15   :  { %v12265_v20 = vsel %vm6216_vm5, %v12187_v36, %v12243_v53  ;;  %v11994_v41 = vpop.f32.mrf.mxu1  ;;  %v11857_v39 = vadd.f32 %v11839_v1, %v11701_v47  ;;  %v12008_v5 = vadd.f32 %v11990_v56, %v11853_v31 }
 0xb16   :  { %12396 = vmatprep.mubr.f32.mxu0 %v12265_v20  ;;  %v12011_v43 = vadd.f32 %v11992_v32, %v11856_v49 }
 0xb17   :  { %12397 = vmatmul.mubr.f32.vlgmr.msra.gmra.mxu0 %v12264_v12  ;;  %v12012_v62 = vadd.f32 %v11994_v41, %v11857_v39 }
 0xb18   :  { %12592 = vmatprep.mubr.f32.mxu0 %v18524_v10 }
 0xb33   :  { %v12133_v35 = vpop.f32.mrf.mxu1 }
 0xb34   :  { %v19798_v6 = vadd.f32 %v12133_v35, %v11999_v0 }
 0xb35   :  { %v12135_v42 = vpop.f32.mrf.mxu1 }
 0xb36   :  { %v19802_v61 = vadd.f32 %v12135_v42, %v12000_v48  ;;  %v12210_v22 = vmul.f32 %v19798_v6, %v19798_v6 }
 0xb37   :  { %v12137_v3 = vpop.f32.mrf.mxu1 }
 0xb38   :  { %v19796_v54 = vadd.f32 %v12137_v3, %v12003_v24  ;;  %v12211_v14 = vmul.f32 %v19802_v61, %v19802_v61 }
 0xb39   :  { %v12139_v19 = vpop.f32.mrf.mxu1 }
 0xb3a   :  { %v19800_v9 = vadd.f32 %v12139_v19, %v12004_v59  ;;  %v12214_v63 = vmul.f32 %v19796_v54, %v19796_v54  ;;  %v12188_v33 = vadd.f32 %v19796_v54, %v19798_v6 }
 0xb3b   :  { %v12143_v21 = vpop.f32.mrf.mxu1 }
 0xb3c   :  { %v19804_v51 = vadd.f32 %v12143_v21, %v12007_v45  ;;  %v12215_v1 = vmul.f32 %v19800_v9, %v19800_v9  ;;  %v12244_v12 = vadd.f32 %v12214_v63, %v12210_v22  ;;  %v12198_v16 = vadd.f32 %v19800_v9, %v19802_v61 }
 0xb3d   :  { %v12145_v38 = vpop.f32.mrf.mxu1 }
 0xb3e   :  { %v19808_v52 = vadd.f32 %v12145_v38, %v12008_v5  ;;  %v12218_v36 = vmul.f32 %v19804_v51, %v19804_v51  ;;  %v12189_v37 = vadd.f32 %v12188_v33, %v19804_v51  ;;  %v12254_v28 = vadd.f32 %v12215_v1, %v12211_v14 }
 0xb3f   :  { %v12147_v53 = vpop.f32.mrf.mxu1 }
 0xb40   :  { %v19820_v20 = vadd.f32 %v12147_v53, %v12011_v43  ;;  %v12219_v18 = vmul.f32 %v19808_v52, %v19808_v52  ;;  %v12245_v2 = vadd.f32 %v12244_v12, %v12218_v36  ;;  %v12199_v41 = vadd.f32 %v12198_v16, %v19808_v52  ;;  %v12522_v16 = vld [vmem:[#allocation16 + $0x68] sm:$0xff] }
 0xb41   :  { %v12149_v15 = vpop.f32.mrf.mxu1  ;;  %12552 = vmatprep.subr.mxu0 %v12522_v16 }
 0xb42   :  { %v12190_v56 = vsel %vm881_vm2, %v19820_v20, 0.0  ;;  %v12222_v32 = vmul.f32 %v19820_v20, %v19820_v20  ;;  %v19831_v29 = vadd.f32 %v12149_v15, %v12012_v62  ;;  %v12255_v60 = vadd.f32 %v12254_v28, %v12219_v18  ;;  %v12521_v18 = vld [vmem:[#allocation16 + $0x60] sm:$0xff]  ;;  %v12523_v15 = vld [vmem:[#allocation16 + $0x70] sm:$0xff] }
 0xb43   :  { %v12191_v57 = vadd.f32 %v12190_v56, %v12189_v37  ;;  %v12524_v37 = vld [vmem:[#allocation16 + $0x78] sm:$0xff]  ;;  %v12518_v56 = vld [vmem:[#allocation16 + $0x48] sm:$0xff]  ;;  %12553 = vmatpush1.msra.mxu0 %v12521_v18  ;;  %v12517_v28 = vld [vmem:[#allocation16 + $0x40] sm:$0xff] }
 0xb44   :  { %v12246_v23 = vsel %vm881_vm2, %v12222_v32, 0.0  ;;  %v12200_v25 = vsel %vm881_vm2, %v19831_v29, 0.0  ;;  %v12223_v35 = vmul.f32 %v19831_v29, %v19831_v29  ;;  %12623 = vmatprep.subr.mxu1 %v12524_v37  ;;  %v12520_v32 = vld [vmem:[#allocation16 + $0x58] sm:$0xff]  ;;  %12554 = vmatprep.subr.mxu0 %v12518_v56 }
 0xb45   :  { %v12192_v34 = vrot.slane %v12191_v57, 4  ;;  %v12247_v7 = vadd.f32 %v12246_v23, %v12245_v2  ;;  %v12201_v42 = vadd.f32 %v12200_v25, %v12199_v41  ;;  %v12519_v2 = vld [vmem:[#allocation16 + $0x50] sm:$0xff]  ;;  %v12514_v41 = vld [vmem:[#allocation16 + $0x28] sm:$0xff]  ;;  %v12513_v23 = vld [vmem:[#allocation16 + $0x20] sm:$0xff]  ;;  %12555 = vmatpush1.msra.mxu0 %v12517_v28 }
 0xb46   :  { %v12256_v13 = vsel %vm881_vm2, %v12223_v35, 0.0  ;;  %v12515_v25 = vld [vmem:[#allocation16 + $0x30] sm:$0xff]  ;;  %v12512_v35 = vld [vmem:[#allocation16 + $0x18] sm:$0xff]  ;;  %12556 = vmatprep.subr.mxu0 %v12514_v41 }
 0xb47   :  { %v12193_v46 = vadd.f32 %v12192_v34, %v12191_v57  ;;  %v12248_v27 = vrot.slane %v12247_v7, 4  ;;  %v12202_v24 = vrot.slane %v12201_v42, 4  ;;  %v12257_v3 = vadd.f32 %v12256_v13, %v12255_v60  ;;  %v12516_v57 = vld [vmem:[#allocation16 + $0x38] sm:$0xff]  ;;  %v12509_v60 = vld [vmem:[#allocation16] sm:$0xff]  ;;  %v12511_v34 = vld [vmem:[#allocation16 + $0x10] sm:$0xff]  ;;  %12557 = vmatpush1.msra.mxu0 %v12513_v23 }
 0xb49   :  { %v12194_v47 = vrot.slane %v12193_v46, 2  ;;  %v12249_v31 = vadd.f32 %v12248_v27, %v12247_v7  ;;  %v12258_v0 = vrot.slane %v12257_v3, 4  ;;  %v12203_v59 = vadd.f32 %v12202_v24, %v12201_v42 }
 0xb4b   :  { %v12250_v19 = vrot.slane %v12249_v31, 2  ;;  %v12204_v49 = vrot.slane %v12203_v59, 2  ;;  %v12259_v48 = vadd.f32 %v12258_v0, %v12257_v3  ;;  %v12195_v45 = vadd.f32 %v12194_v47, %v12193_v46 }
 0xb4d   :  { %v12205_v21 = vadd.f32 %v12204_v49, %v12203_v59  ;;  %v12260_v39 = vrot.slane %v12259_v48, 2  ;;  %v12251_v5 = vadd.f32 %v12250_v19, %v12249_v31  ;;  %v12196_v22 = vrot.slane %v12195_v45, 1 }
 0xb4f   :  { %v12206_v63 = vrot.slane %v12205_v21, 1  ;;  %v12261_v38 = vadd.f32 %v12260_v39, %v12259_v48  ;;  %v12252_v43 = vrot.slane %v12251_v5, 1  ;;  %v12197_v62 = vadd.f32 %v12196_v22, %v12195_v45 }
 0xb51   :  { %v12262_v33 = vrot.slane %v12261_v38, 1  ;;  %v12253_v1 = vadd.f32 %v12252_v43, %v12251_v5  ;;  %v12207_v36 = vadd.f32 %v12206_v63, %v12205_v21  ;;  %v12478_v21 = vld [vmem:[#allocation18] sm:$0x1]  ;;  %v12499_v63 = vld [vmem:[#allocation19] sm:$0x1] }
 0xb53   :  { %v12263_v53 = vadd.f32 %v12262_v33, %v12261_v38  ;;  %v12266_v12 = vsel %vm6216_vm5, %v12197_v62, %v12253_v1 }
 0xb55   :  { %v12267_v14 = vsel %vm6216_vm5, %v12207_v36, %v12263_v53 }
 0xb56   :  { %12466 = vmatprep.mubr.f32.mxu1 %v12267_v14 }
 0xb57   :  { %12467 = vmatmul.mubr.f32.vlgmr.msra.gmra.mxu1 %v12266_v12 }
 0xb58   :  { %12663 = vmatprep.mubr.f32.mxu1 %v18524_v10  ;;  %12624 = vmatpush1.msra.mxu1 %v12523_v15  ;;  %v12510_v10 = vld [vmem:[#allocation16 + $0x8] sm:$0xff] }
 0xb59   :  { %12625 = vmatprep.subr.mxu1 %v12520_v32  ;;  %12558 = vmatprep.subr.mxu0 %v12510_v10 }
 0xb5a   :  { %12626 = vmatpush1.msra.mxu1 %v12519_v2  ;;  %12559 = vmatpush1.msra.mxu0 %v12509_v60 }
 0xb5b   :  { %12627 = vmatprep.subr.mxu1 %v12516_v57 }
 0xb5c   :  { %12628 = vmatpush1.msra.mxu1 %v12515_v25 }
 0xb5d   :  { %12629 = vmatprep.subr.mxu1 %v12512_v35 }
 0xb5e   :  { %12630 = vmatpush1.msra.mxu1 %v12511_v34 }
 0xbd7   :  { %v15933_v7 = vpop.f32.mrf.mxu0 }
 0xbd9   :  { %v15934_v42 = vpop.f32.mrf.mxu0 }
 0xbda   :  { %v15935_v27 = vadd.f32 %v15934_v42, %v15933_v7 }
 0xc17   :  { %v15968_v13 = vpop.f32.mrf.mxu1 }
 0xc19   :  { %v15969_v46 = vpop.f32.mrf.mxu1 }
 0xc1a   :  { %v15970_v24 = vadd.f32 %v15969_v46, %v15968_v13 }
 0xc1c   :  { %v12469_v3 = vadd.f32 %v15970_v24, %v15935_v27 }
 0xc1e   :  { %v12472_v47 = vmul.f32 0.0025510204, %v12469_v3 }
 0xc20   :  { %v12473_v31 = vmul.f32 %v12472_v47, %v12472_v47 }
 0xc22   :  { %v12475_v0 = vrot.slane %v12473_v31, 7 }
 0xc24   :  { %v12477_v59 = vsub.f32 %v12472_v47, %v12475_v0 }
 0xc26   :  { %v12479_v19 = vadd.f32 1e-05, %v12477_v59 }
 0xc28   :  { %18006 = vrsqrt.f32 %v12479_v19 }
 0xc35   :  { %v18007_v49 = vpop.eup %18006 }
 0xc36   :  { %v12488_v48 = vrot.slane %v18007_v49, %v19125_v11 }
 0xc38   :  { %v12489_v45 = vcombine.high %v12488_v48, %v12488_v48 }
 0xc3a   :  { %v12496_v39 = vrot.slane %v12489_v45, %v19125_v11 }
 0xc3c   :  { %v12498_v5 = vmul.f32 %v12496_v39, %v12478_v21 }
 0xc3e   :  { %v12500_v38 = vmul.f32 %v12498_v5, %v12472_v47 }
 0xc40   :  { %v12501_v43 = vsub.f32 %v12499_v63, %v12500_v38 }
 0xc42   :  { %v12506_v22 = vrot.slane %v12501_v43, %v18695_v26 }
 0xc44   :  { %v12508_v33 = vsel %vm6216_vm5, %v12498_v5, %v12506_v22 }
 0xc45   :  { %15645 = vmatmul.mubr.msk.f32.vlgmr.msra.gmra.mxu0 %vm492_vm0, %v12508_v33  ;;  %15646 = vmatmul.mubr.msk.f32.vlgmr.msra.gmra.mxu1 %vm492_vm0, %v12508_v33 }
 0xd05   :  { %v12594_v1 = vpop.f32.mrf.mxu0  ;;  %v12665_v36 = vpop.f32.mrf.mxu1 }
 0xd06   :  { %v12673_v53 = vrot.slane %v12594_v1, %v18695_v26  ;;  %v12681_v62 = vrot.slane %v12665_v36, %v18695_v26  ;;  %v12705_v11 = vrot.slane %v12594_v1, %v18699_v30  ;;  %v12713_v14 = vrot.slane %v12665_v36, %v18699_v30 }
 0xd08   :  { %v12686_v12 = vmul.f32 %v12673_v53, %v19722_v4  ;;  %v12690_v16 = vmul.f32 %v12673_v53, %v19725_v55  ;;  %v12694_v37 = vmul.f32 %v12673_v53, %v19737_v8  ;;  %v12698_v18 = vmul.f32 %v12673_v53, %v19751_v44 }
 0xd09   :  { %v12688_v15 = vmul.f32 %v12681_v62, %v19798_v6  ;;  %v12692_v56 = vmul.f32 %v12681_v62, %v19796_v54  ;;  %v12696_v32 = vmul.f32 %v12681_v62, %v19804_v51  ;;  %v12700_v28 = vmul.f32 %v12681_v62, %v19820_v20  ;;  %v12596_v54 = vpop.f32.mrf.mxu0  ;;  %v12667_v51 = vpop.f32.mrf.mxu1 }
 0xd0a   :  { %v19861_v2 = vadd.f32 %v12705_v11, %v12686_v12  ;;  %v19863_v41 = vadd.f32 %v12705_v11, %v12690_v16  ;;  %v19865_v57 = vadd.f32 %v12705_v11, %v12694_v37  ;;  %v19867_v4 = vadd.f32 %v12705_v11, %v12698_v18 }
 0xd0b   :  { %v19869_v55 = vadd.f32 %v12713_v14, %v12688_v15  ;;  %v19871_v8 = vadd.f32 %v12713_v14, %v12692_v56  ;;  %v19873_v44 = vadd.f32 %v12713_v14, %v12696_v32  ;;  %v19875_v6 = vadd.f32 %v12713_v14, %v12700_v28 }
 0xd0c   :  { %v12734_v20 = vmax.f32 %v19861_v2, 0.0  ;;  %v12738_v23 = vmax.f32 %v19863_v41, 0.0  ;;  %v12742_v25 = vmax.f32 %v19865_v57, 0.0  ;;  %v12746_v10 = vmax.f32 %v19867_v4, 0.0 }
 0xd0d   :  { %v12736_v35 = vmax.f32 %v19869_v55, 0.0  ;;  %v12740_v60 = vmax.f32 %v19871_v8, 0.0  ;;  %v12744_v34 = vmax.f32 %v19873_v44, 0.0  ;;  %v12748_v7 = vmax.f32 %v19875_v6, 0.0 }
 0xd0e   :  { %v12677_v42 = vrot.slane %v12596_v54, %v18695_v26  ;;  %v12685_v13 = vrot.slane %v12667_v51, %v18695_v26  ;;  %v12709_v46 = vrot.slane %v12596_v54, %v18699_v30  ;;  %v12717_v27 = vrot.slane %v12667_v51, %v18699_v30 }
 0xd10   :  { %v12687_v24 = vmul.f32 %v12677_v42, %v19731_v40  ;;  %v12691_v3 = vmul.f32 %v12677_v42, %v19735_v50  ;;  %v12695_v47 = vmul.f32 %v12677_v42, %v19743_v17  ;;  %v12699_v31 = vmul.f32 %v12677_v42, %v19764_v58 }
 0xd11   :  { %v12689_v0 = vmul.f32 %v12685_v13, %v19802_v61  ;;  %v12693_v59 = vmul.f32 %v12685_v13, %v19800_v9  ;;  %v12697_v19 = vmul.f32 %v12685_v13, %v19808_v52  ;;  %v12701_v26 = vmul.f32 %v12685_v13, %v19831_v29 }
 0xd12   :  { %v12719_v49 = vadd.f32 %v12709_v46, %v12687_v24  ;;  %v12723_v48 = vadd.f32 %v12709_v46, %v12691_v3  ;;  %v19897_v45 = vadd.f32 %v12709_v46, %v12695_v47  ;;  %v19899_v30 = vadd.f32 %v12709_v46, %v12699_v31 }
 0xd13   :  { %v12721_v40 = vadd.f32 %v12717_v27, %v12689_v0  ;;  %v12725_v50 = vadd.f32 %v12717_v27, %v12693_v59  ;;  %v19901_v21 = vadd.f32 %v12717_v27, %v12697_v19  ;;  %v19903_v17 = vadd.f32 %v12717_v27, %v12701_v26 }
 0xd14   :  { %v12735_v58 = vmax.f32 %v12719_v49, 0.0  ;;  %v12739_v61 = vmax.f32 %v12723_v48, 0.0  ;;  %v12743_v9 = vmax.f32 %v19897_v45, 0.0  ;;  %v12747_v52 = vmax.f32 %v19899_v30, 0.0 }
 0xd15   :  { %v12737_v39 = vmax.f32 %v12721_v40, 0.0  ;;  %v12741_v29 = vmax.f32 %v12725_v50, 0.0  ;;  %v12745_v5 = vmax.f32 %v19901_v21, 0.0  ;;  %v12749_v63 = vmax.f32 %v19903_v17, 0.0 }
 0xd16   :  { %18504 = dma.done.wait [#allocation4 + $0x1], 16384 }
 0xd17   :  { %18505 = vsyncadd [#allocation4 + $0x1], 4294950912  ;;  %v19909_v38 = vpack.c.bf16 %v12739_v61, %v12735_v58  ;;  %v19911_v43 = vpack.c.bf16 %v12741_v29, %v12737_v39  ;;  %v18008_v22 = vld [vmem:[#allocation3 + $0xe4] ss:$16 sps:$4 sm:$0xff]   ;;  %v18012_v1 = vld [vmem:[#allocation3 + $0xe0] ss:$16 sps:$4 sm:$0xff]   ;;  %v19931_v2 = vpack.c.bf16 %v12747_v52, %v12743_v9  ;;  %v19937_v41 = vpack.c.bf16 %v12749_v63, %v12745_v5 }
 0xd18   :  { %v18010_v33 = vld [vmem:[#allocation3 + $0x2e4] ss:$16 sps:$4 sm:$0xff]   ;;  %13529 = vmatprep.subr.bf16.mxu0 %v18008_v22  ;;  %v18013_v36 = vld [vmem:[#allocation3 + $0x2e0] ss:$16 sps:$4 sm:$0xff]   ;;  %v18110_v55 = vld [vmem:[#allocation3 + $0xc8] ss:$16 sps:$4 sm:$0xff]  }
 0xd19   :  { %13561 = vmatprep.mubr.bf16.mxu0 %v19909_v38  ;;  %13614 = vmatprep.mubr.bf16.mxu1 %v19911_v43  ;;  %v18014_v53 = vld [vmem:[#allocation3 + $0xc4] ss:$16 sps:$4 sm:$0xff]   ;;  %v18018_v11 = vld [vmem:[#allocation3 + $0xc0] ss:$16 sps:$4 sm:$0xff]   ;;  %v18113_v8 = vld [vmem:[#allocation3 + $0x2c8] ss:$16 sps:$4 sm:$0xff]  }
 0xd1a   :  { %13582 = vmatprep.subr.bf16.mxu1 %v18010_v33  ;;  %13530 = vmatpush1.bf16.msra.mxu0 %v18012_v1  ;;  %v18016_v62 = vld [vmem:[#allocation3 + $0x2c4] ss:$16 sps:$4 sm:$0xff]   ;;  %v18019_v14 = vld [vmem:[#allocation3 + $0x2c0] ss:$16 sps:$4 sm:$0xff]   ;;  %v18116_v45 = vld [vmem:[#allocation3 + $0xa8] ss:$16 sps:$4 sm:$0xff]  }
 0xd1b   :  { %13583 = vmatpush1.bf16.msra.mxu1 %v18013_v36  ;;  %13531 = vmatprep.subr.bf16.mxu0 %v18014_v53  ;;  %v18020_v12 = vld [vmem:[#allocation3 + $0xa4] ss:$16 sps:$4 sm:$0xff]   ;;  %v18024_v37 = vld [vmem:[#allocation3 + $0xa0] ss:$16 sps:$4 sm:$0xff]   ;;  %v18119_v30 = vld [vmem:[#allocation3 + $0x2a8] ss:$16 sps:$4 sm:$0xff]  }
 0xd1c   :  { %13584 = vmatprep.subr.bf16.mxu1 %v18016_v62  ;;  %v18022_v16 = vld [vmem:[#allocation3 + $0x2a4] ss:$16 sps:$4 sm:$0xff]   ;;  %v18025_v18 = vld [vmem:[#allocation3 + $0x2a0] ss:$16 sps:$4 sm:$0xff]   ;;  %v18124_v21 = vld [vmem:[#allocation3 + $0x8c] ss:$16 sps:$4 sm:$0xff]  }
 0xd1d   :  { %v18026_v15 = vld [vmem:[#allocation3 + $0x84] ss:$16 sps:$4 sm:$0xff]   ;;  %v18030_v32 = vld [vmem:[#allocation3 + $0x80] ss:$16 sps:$4 sm:$0xff]   ;;  %v18127_v17 = vld [vmem:[#allocation3 + $0x28c] ss:$16 sps:$4 sm:$0xff]  }
 0xd1e   :  { %13532 = vmatpush1.bf16.msra.mxu0 %v18018_v11  ;;  %v18028_v56 = vld [vmem:[#allocation3 + $0x284] ss:$16 sps:$4 sm:$0xff]   ;;  %v18031_v28 = vld [vmem:[#allocation3 + $0x280] ss:$16 sps:$4 sm:$0xff]   ;;  %v18122_v57 = vld [vmem:[#allocation3 + $0x88] ss:$16 sps:$4 sm:$0xff]  }
 0xd1f   :  { %13585 = vmatpush1.bf16.msra.mxu1 %v18019_v14  ;;  %13533 = vmatprep.subr.bf16.mxu0 %v18020_v12  ;;  %v18032_v54 = vld [vmem:[#allocation3 + $0x64] ss:$16 sps:$4 sm:$0xff]   ;;  %v18036_v42 = vld [vmem:[#allocation3 + $0x60] ss:$16 sps:$4 sm:$0xff]   ;;  %v18125_v4 = vld [vmem:[#allocation3 + $0x288] ss:$16 sps:$4 sm:$0xff]  }
 0xd20   :  { %13586 = vmatprep.subr.bf16.mxu1 %v18022_v16  ;;  %v18034_v51 = vld [vmem:[#allocation3 + $0x264] ss:$16 sps:$4 sm:$0xff]   ;;  %v18037_v13 = vld [vmem:[#allocation3 + $0x260] ss:$16 sps:$4 sm:$0xff]   ;;  %v18130_v44 = vld [vmem:[#allocation3 + $0x6c] ss:$16 sps:$4 sm:$0xff]  }
 0xd21   :  { %v18038_v46 = vld [vmem:[#allocation3 + $0x44] ss:$16 sps:$4 sm:$0xff]   ;;  %v18042_v24 = vld [vmem:[#allocation3 + $0x40] ss:$16 sps:$4 sm:$0xff]   ;;  %v18133_v6 = vld [vmem:[#allocation3 + $0x26c] ss:$16 sps:$4 sm:$0xff]  }
 0xd22   :  { %13534 = vmatpush1.bf16.msra.mxu0 %v18024_v37  ;;  %v18040_v27 = vld [vmem:[#allocation3 + $0x244] ss:$16 sps:$4 sm:$0xff]   ;;  %v18043_v3 = vld [vmem:[#allocation3 + $0x240] ss:$16 sps:$4 sm:$0xff]   ;;  %v18134_v9 = vld [vmem:[#allocation3 + $0x48] ss:$16 sps:$4 sm:$0xff]  }
 0xd23   :  { %13587 = vmatpush1.bf16.msra.mxu1 %v18025_v18  ;;  %13535 = vmatprep.subr.bf16.mxu0 %v18026_v15  ;;  %v18044_v47 = vld [vmem:[#allocation3 + $0x24] ss:$16 sps:$4 sm:$0xff]   ;;  %v18048_v0 = vld [vmem:[#allocation3 + $0x20] ss:$16 sps:$4 sm:$0xff]   ;;  %v18137_v52 = vld [vmem:[#allocation3 + $0x248] ss:$16 sps:$4 sm:$0xff]  }
 0xd24   :  { %13588 = vmatprep.subr.bf16.mxu1 %v18028_v56  ;;  %v18046_v31 = vld [vmem:[#allocation3 + $0x224] ss:$16 sps:$4 sm:$0xff]   ;;  %v18049_v59 = vld [vmem:[#allocation3 + $0x220] ss:$16 sps:$4 sm:$0xff]   ;;  %v18142_v5 = vld [vmem:[#allocation3 + $0x2c] ss:$16 sps:$4 sm:$0xff]  }
 0xd25   :  { %v18050_v19 = vld [vmem:[#allocation3 + $0x4] ss:$16 sps:$4 sm:$0xff]   ;;  %v18054_v49 = vld [vmem:[#allocation3] ss:$16 sps:$4 sm:$0xff]   ;;  %v18145_v63 = vld [vmem:[#allocation3 + $0x22c] ss:$16 sps:$4 sm:$0xff]  }
 0xd26   :  { %13536 = vmatpush1.bf16.msra.mxu0 %v18030_v32  ;;  %v18052_v26 = vld [vmem:[#allocation3 + $0x204] ss:$16 sps:$4 sm:$0xff]   ;;  %v18055_v48 = vld [vmem:[#allocation3 + $0x200] ss:$16 sps:$4 sm:$0xff]   ;;  %vm13782_vm9 = vcmask 228352  }
 0xd27   :  { %13589 = vmatpush1.bf16.msra.mxu1 %v18031_v28  ;;  %13537 = vmatprep.subr.bf16.mxu0 %v18032_v54  ;;  %v18056_v40 = vld [vmem:[#allocation3 + $0x1e4] ss:$16 sps:$4 sm:$0xff]   ;;  %v18060_v58 = vld [vmem:[#allocation3 + $0x1e0] ss:$16 sps:$4 sm:$0xff]  }
 0xd28   :  { %13590 = vmatprep.subr.bf16.mxu1 %v18034_v51  ;;  %v18058_v50 = vld [vmem:[#allocation3 + $0x3e4] ss:$16 sps:$4 sm:$0xff]   ;;  %v18061_v61 = vld [vmem:[#allocation3 + $0x3e0] ss:$16 sps:$4 sm:$0xff]  }
 0xd29   :  { %v18062_v39 = vld [vmem:[#allocation3 + $0x1c4] ss:$16 sps:$4 sm:$0xff]   ;;  %v18066_v22 = vld [vmem:[#allocation3 + $0x1c0] ss:$16 sps:$4 sm:$0xff]  }
 0xd2a   :  { %13538 = vmatpush1.bf16.msra.mxu0 %v18036_v42  ;;  %v18064_v29 = vld [vmem:[#allocation3 + $0x3c4] ss:$16 sps:$4 sm:$0xff]   ;;  %v18067_v33 = vld [vmem:[#allocation3 + $0x3c0] ss:$16 sps:$4 sm:$0xff]  }
 0xd2b   :  { %13591 = vmatpush1.bf16.msra.mxu1 %v18037_v13  ;;  %13539 = vmatprep.subr.bf16.mxu0 %v18038_v46  ;;  %v18068_v1 = vld [vmem:[#allocation3 + $0x1a4] ss:$16 sps:$4 sm:$0xff]   ;;  %v18072_v53 = vld [vmem:[#allocation3 + $0x1a0] ss:$16 sps:$4 sm:$0xff]  }
 0xd2c   :  { %13592 = vmatprep.subr.bf16.mxu1 %v18040_v27  ;;  %v18070_v36 = vld [vmem:[#allocation3 + $0x3a4] ss:$16 sps:$4 sm:$0xff]   ;;  %v18073_v62 = vld [vmem:[#allocation3 + $0x3a0] ss:$16 sps:$4 sm:$0xff]  }
 0xd2d   :  { %v18074_v11 = vld [vmem:[#allocation3 + $0x184] ss:$16 sps:$4 sm:$0xff]   ;;  %v18078_v12 = vld [vmem:[#allocation3 + $0x180] ss:$16 sps:$4 sm:$0xff]  }
 0xd2e   :  { %13540 = vmatpush1.bf16.msra.mxu0 %v18042_v24  ;;  %v18076_v14 = vld [vmem:[#allocation3 + $0x384] ss:$16 sps:$4 sm:$0xff]   ;;  %v18079_v16 = vld [vmem:[#allocation3 + $0x380] ss:$16 sps:$4 sm:$0xff]  }
 0xd2f   :  { %13593 = vmatpush1.bf16.msra.mxu1 %v18043_v3  ;;  %13541 = vmatprep.subr.bf16.mxu0 %v18044_v47  ;;  %v18080_v37 = vld [vmem:[#allocation3 + $0x164] ss:$16 sps:$4 sm:$0xff]   ;;  %v18084_v15 = vld [vmem:[#allocation3 + $0x160] ss:$16 sps:$4 sm:$0xff]  }
 0xd30   :  { %13594 = vmatprep.subr.bf16.mxu1 %v18046_v31  ;;  %v18082_v18 = vld [vmem:[#allocation3 + $0x364] ss:$16 sps:$4 sm:$0xff]   ;;  %v18085_v56 = vld [vmem:[#allocation3 + $0x360] ss:$16 sps:$4 sm:$0xff]  }
 0xd31   :  { %v18086_v32 = vld [vmem:[#allocation3 + $0x144] ss:$16 sps:$4 sm:$0xff]   ;;  %v18090_v54 = vld [vmem:[#allocation3 + $0x140] ss:$16 sps:$4 sm:$0xff]  }
 0xd32   :  { %13542 = vmatpush1.bf16.msra.mxu0 %v18048_v0  ;;  %v18088_v28 = vld [vmem:[#allocation3 + $0x344] ss:$16 sps:$4 sm:$0xff]   ;;  %v18091_v51 = vld [vmem:[#allocation3 + $0x340] ss:$16 sps:$4 sm:$0xff]   ;;  %v18106_v0 = vld [vmem:[#allocation3 + $0xec] ss:$16 sps:$4 sm:$0xff]  }
 0xd33   :  { %13595 = vmatpush1.bf16.msra.mxu1 %v18049_v59  ;;  %13543 = vmatprep.subr.bf16.mxu0 %v18050_v19  ;;  %v18092_v42 = vld [vmem:[#allocation3 + $0x124] ss:$16 sps:$4 sm:$0xff]   ;;  %v18096_v46 = vld [vmem:[#allocation3 + $0x120] ss:$16 sps:$4 sm:$0xff]   ;;  %v18109_v59 = vld [vmem:[#allocation3 + $0x2ec] ss:$16 sps:$4 sm:$0xff]   ;;  %v19919_v19 = vpack.c.bf16 %v12738_v23, %v12734_v20 }
 0xd34   :  { %13596 = vmatprep.subr.bf16.mxu1 %v18052_v26  ;;  %v18094_v13 = vld [vmem:[#allocation3 + $0x324] ss:$16 sps:$4 sm:$0xff]   ;;  %v18097_v27 = vld [vmem:[#allocation3 + $0x320] ss:$16 sps:$4 sm:$0xff]   ;;  %v19925_v26 = vpack.c.bf16 %v12740_v60, %v12736_v35  ;;  %v18118_v20 = vld [vmem:[#allocation3 + $0xac] ss:$16 sps:$4 sm:$0xff]   ;;  %v19947_v35 = vpack.c.bf16 %v12746_v10, %v12742_v25  ;;  %v19953_v60 = vpack.c.bf16 %v12748_v7, %v12744_v34 }
 0xd35   :  { %v18098_v24 = vld [vmem:[#allocation3 + $0x104] ss:$16 sps:$4 sm:$0xff]   ;;  %v18102_v47 = vld [vmem:[#allocation3 + $0x100] ss:$16 sps:$4 sm:$0xff]   ;;  %v18121_v23 = vld [vmem:[#allocation3 + $0x2ac] ss:$16 sps:$4 sm:$0xff]  }
 0xd36   :  { %13544 = vmatpush1.bf16.msra.mxu0 %v18054_v49  ;;  %v18100_v3 = vld [vmem:[#allocation3 + $0x304] ss:$16 sps:$4 sm:$0xff]   ;;  %v18103_v31 = vld [vmem:[#allocation3 + $0x300] ss:$16 sps:$4 sm:$0xff]   ;;  %v18104_v49 = vld [vmem:[#allocation3 + $0xe8] ss:$16 sps:$4 sm:$0xff]  }
 0xd37   :  { %13597 = vmatpush1.bf16.msra.mxu1 %v18055_v48  ;;  %13545 = vmatprep.subr.bf16.mxu0 %v18056_v40  ;;  %v18107_v48 = vld [vmem:[#allocation3 + $0x2e8] ss:$16 sps:$4 sm:$0xff]   ;;  %v18112_v40 = vld [vmem:[#allocation3 + $0xcc] ss:$16 sps:$4 sm:$0xff]  }
 0xd38   :  { %13598 = vmatprep.subr.bf16.mxu1 %v18058_v50  ;;  %v18115_v50 = vld [vmem:[#allocation3 + $0x2cc] ss:$16 sps:$4 sm:$0xff]   ;;  %v18128_v25 = vld [vmem:[#allocation3 + $0x68] ss:$16 sps:$4 sm:$0xff]  }
 0xd39   :  { %v18131_v10 = vld [vmem:[#allocation3 + $0x268] ss:$16 sps:$4 sm:$0xff]   ;;  %v18136_v34 = vld [vmem:[#allocation3 + $0x4c] ss:$16 sps:$4 sm:$0xff]  }
 0xd3a   :  { %13546 = vmatpush2.bf16.msra.mxu0 %v18060_v58  ;;  %v18139_v7 = vld [vmem:[#allocation3 + $0x24c] ss:$16 sps:$4 sm:$0xff]   ;;  %v18140_v58 = vld [vmem:[#allocation3 + $0x28] ss:$16 sps:$4 sm:$0xff]  }
 0xd3b   :  { %13599 = vmatpush2.bf16.msra.mxu1 %v18061_v61  ;;  %13547 = vmatprep.subr.bf16.mxu0 %v18062_v39  ;;  %v18148_v61 = vld [vmem:[#allocation3 + $0xc] ss:$16 sps:$4 sm:$0xff]   ;;  %v18146_v39 = vld [vmem:[#allocation3 + $0x8] ss:$16 sps:$4 sm:$0xff]  }
 0xd3c   :  { %13600 = vmatprep.subr.bf16.mxu1 %v18064_v29  ;;  %v18149_v29 = vld [vmem:[#allocation3 + $0x208] ss:$16 sps:$4 sm:$0xff]  }
 0xd3e   :  { %13548 = vmatpush2.bf16.msra.mxu0 %v18066_v22  ;;  %v18154_v22 = vld [vmem:[#allocation3 + $0x1ec] ss:$16 sps:$4 sm:$0xff]  }
 0xd3f   :  { %13601 = vmatpush2.bf16.msra.mxu1 %v18067_v33  ;;  %13549 = vmatprep.subr.bf16.mxu0 %v18068_v1  ;;  %v18157_v33 = vld [vmem:[#allocation3 + $0x3ec] ss:$16 sps:$4 sm:$0xff]   ;;  %v18152_v1 = vld [vmem:[#allocation3 + $0x1e8] ss:$16 sps:$4 sm:$0xff]  }
 0xd40   :  { %13602 = vmatprep.subr.bf16.mxu1 %v18070_v36  ;;  %v18155_v36 = vld [vmem:[#allocation3 + $0x3e8] ss:$16 sps:$4 sm:$0xff]  }
 0xd42   :  { %13550 = vmatpush2.bf16.msra.mxu0 %v18072_v53  ;;  %v18160_v53 = vld [vmem:[#allocation3 + $0x1cc] ss:$16 sps:$4 sm:$0xff]  }
 0xd43   :  { %13603 = vmatpush2.bf16.msra.mxu1 %v18073_v62  ;;  %13551 = vmatprep.subr.bf16.mxu0 %v18074_v11  ;;  %v18163_v62 = vld [vmem:[#allocation3 + $0x3cc] ss:$16 sps:$4 sm:$0xff]   ;;  %v18158_v11 = vld [vmem:[#allocation3 + $0x1c8] ss:$16 sps:$4 sm:$0xff]  }
 0xd44   :  { %13604 = vmatprep.subr.bf16.mxu1 %v18076_v14  ;;  %v18161_v14 = vld [vmem:[#allocation3 + $0x3c8] ss:$16 sps:$4 sm:$0xff]  }
 0xd46   :  { %13552 = vmatpush2.bf16.msra.mxu0 %v18078_v12  ;;  %v18166_v12 = vld [vmem:[#allocation3 + $0x1ac] ss:$16 sps:$4 sm:$0xff]  }
 0xd47   :  { %13605 = vmatpush2.bf16.msra.mxu1 %v18079_v16  ;;  %13553 = vmatprep.subr.bf16.mxu0 %v18080_v37  ;;  %v18169_v16 = vld [vmem:[#allocation3 + $0x3ac] ss:$16 sps:$4 sm:$0xff]   ;;  %v18164_v37 = vld [vmem:[#allocation3 + $0x1a8] ss:$16 sps:$4 sm:$0xff]  }
 0xd48   :  { %13606 = vmatprep.subr.bf16.mxu1 %v18082_v18  ;;  %v18167_v18 = vld [vmem:[#allocation3 + $0x3a8] ss:$16 sps:$4 sm:$0xff]  }
 0xd4a   :  { %13554 = vmatpush2.bf16.msra.mxu0 %v18084_v15  ;;  %v18172_v15 = vld [vmem:[#allocation3 + $0x18c] ss:$16 sps:$4 sm:$0xff]  }
 0xd4b   :  { %13607 = vmatpush2.bf16.msra.mxu1 %v18085_v56  ;;  %13555 = vmatprep.subr.bf16.mxu0 %v18086_v32  ;;  %v18175_v56 = vld [vmem:[#allocation3 + $0x38c] ss:$16 sps:$4 sm:$0xff]   ;;  %v18170_v32 = vld [vmem:[#allocation3 + $0x188] ss:$16 sps:$4 sm:$0xff]  }
 0xd4c   :  { %13608 = vmatprep.subr.bf16.mxu1 %v18088_v28  ;;  %v18173_v28 = vld [vmem:[#allocation3 + $0x388] ss:$16 sps:$4 sm:$0xff]  }
 0xd4e   :  { %13556 = vmatpush2.bf16.msra.mxu0 %v18090_v54  ;;  %v18178_v54 = vld [vmem:[#allocation3 + $0x16c] ss:$16 sps:$4 sm:$0xff]  }
 0xd4f   :  { %13609 = vmatpush2.bf16.msra.mxu1 %v18091_v51  ;;  %13557 = vmatprep.subr.bf16.mxu0 %v18092_v42  ;;  %v18181_v51 = vld [vmem:[#allocation3 + $0x36c] ss:$16 sps:$4 sm:$0xff]   ;;  %v18176_v42 = vld [vmem:[#allocation3 + $0x168] ss:$16 sps:$4 sm:$0xff]  }
 0xd50   :  { %13610 = vmatprep.subr.bf16.mxu1 %v18094_v13  ;;  %v18179_v13 = vld [vmem:[#allocation3 + $0x368] ss:$16 sps:$4 sm:$0xff]  }
 0xd52   :  { %13558 = vmatpush2.bf16.msra.mxu0 %v18096_v46  ;;  %v18184_v46 = vld [vmem:[#allocation3 + $0x14c] ss:$16 sps:$4 sm:$0xff]  }
 0xd53   :  { %13611 = vmatpush2.bf16.msra.mxu1 %v18097_v27  ;;  %13559 = vmatprep.subr.bf16.mxu0 %v18098_v24  ;;  %v18187_v27 = vld [vmem:[#allocation3 + $0x34c] ss:$16 sps:$4 sm:$0xff]   ;;  %v18182_v24 = vld [vmem:[#allocation3 + $0x148] ss:$16 sps:$4 sm:$0xff]  }
 0xd54   :  { %13612 = vmatprep.subr.bf16.mxu1 %v18100_v3  ;;  %v18185_v3 = vld [vmem:[#allocation3 + $0x348] ss:$16 sps:$4 sm:$0xff]  }
 0xd56   :  { %13560 = vmatpush2.bf16.msra.mxu0 %v18102_v47  ;;  %v18190_v47 = vld [vmem:[#allocation3 + $0x12c] ss:$16 sps:$4 sm:$0xff]  }
 0xd57   :  { %13613 = vmatpush2.bf16.msra.mxu1 %v18103_v31  ;;  %13635 = vmatprep.subr.bf16.mxu0 %v18106_v0  ;;  %v18193_v31 = vld [vmem:[#allocation3 + $0x32c] ss:$16 sps:$4 sm:$0xff]   ;;  %v18188_v0 = vld [vmem:[#allocation3 + $0x128] ss:$16 sps:$4 sm:$0xff]  }
 0xd58   :  { %13688 = vmatprep.subr.bf16.mxu1 %v18109_v59  ;;  %v18191_v59 = vld [vmem:[#allocation3 + $0x328] ss:$16 sps:$4 sm:$0xff]  }
 0xd59   :  { %13562 = vmatmul.mubr.bf16.vlgmr.msra.gmra.mxu0 %v19919_v19 }
 0xd5a   :  { %13615 = vmatmul.mubr.bf16.vlgmr.msra.gmra.mxu1 %v19925_v26  ;;  %13636 = vmatpush1.bf16.msra.mxu0 %v18104_v49  ;;  %v18196_v49 = vld [vmem:[#allocation3 + $0x10c] ss:$16 sps:$4 sm:$0xff]  }
 0xd5b   :  { %13689 = vmatpush1.bf16.msra.mxu1 %v18107_v48  ;;  %13637 = vmatprep.subr.bf16.mxu0 %v18112_v40  ;;  %v18199_v48 = vld [vmem:[#allocation3 + $0x30c] ss:$16 sps:$4 sm:$0xff]   ;;  %v18194_v40 = vld [vmem:[#allocation3 + $0x108] ss:$16 sps:$4 sm:$0xff]  }
 0xd5c   :  { %13690 = vmatprep.subr.bf16.mxu1 %v18115_v50  ;;  %13571 = vmatprep.mubr.bf16.mxu0 %v19931_v2  ;;  %v18197_v50 = vld [vmem:[#allocation3 + $0x308] ss:$16 sps:$4 sm:$0xff]  }
 0xd5d   :  { %13624 = vmatprep.mubr.bf16.mxu1 %v19937_v41 }
 0xd5e   :  { %13638 = vmatpush1.bf16.msra.mxu0 %v18110_v55  ;;  %v18200_v55 = vld [vmem:[%s20074_s16 + $0x1c] sm:$0xff]  }
 0xd5f   :  { %13691 = vmatpush1.bf16.msra.mxu1 %v18113_v8  ;;  %13639 = vmatprep.subr.bf16.mxu0 %v18118_v20  ;;  %v18202_v8 = vld [vmem:[%s20074_s16] sm:$0xff]  }
 0xd60   :  { %13692 = vmatprep.subr.bf16.mxu1 %v18121_v23 }
 0xd61   :  { %13572 = vmatmul.mubr.bf16.gmra.mxu0 %v19947_v35 }
 0xd62   :  { %13625 = vmatmul.mubr.bf16.gmra.mxu1 %v19953_v60  ;;  %13640 = vmatpush1.bf16.msra.mxu0 %v18116_v45 }
 0xd63   :  { %13693 = vmatpush1.bf16.msra.mxu1 %v18119_v30  ;;  %13641 = vmatprep.subr.bf16.mxu0 %v18124_v21 }
 0xd64   :  { %13694 = vmatprep.subr.bf16.mxu1 %v18127_v17  ;;  %13667 = vmatprep.mubr.bf16.mxu0 %v19909_v38  ;;  %v18143_v38 = vld [vmem:[#allocation3 + $0x228] ss:$16 sps:$4 sm:$0xff]  }
 0xd65   :  { %13720 = vmatprep.mubr.bf16.mxu1 %v19911_v43  ;;  %v18151_v43 = vld [vmem:[#allocation3 + $0x20c] ss:$16 sps:$4 sm:$0xff]  }
 0xd66   :  { %13642 = vmatpush1.bf16.msra.mxu0 %v18122_v57 }
 0xd67   :  { %13695 = vmatpush1.bf16.msra.mxu1 %v18125_v4  ;;  %13643 = vmatprep.subr.bf16.mxu0 %v18130_v44 }
 0xd68   :  { %13696 = vmatprep.subr.bf16.mxu1 %v18133_v6 }
 0xd6a   :  { %13644 = vmatpush1.bf16.msra.mxu0 %v18128_v25 }
 0xd6b   :  { %13697 = vmatpush1.bf16.msra.mxu1 %v18131_v10  ;;  %13645 = vmatprep.subr.bf16.mxu0 %v18136_v34 }
 0xd6c   :  { %13698 = vmatprep.subr.bf16.mxu1 %v18139_v7 }
 0xd6e   :  { %13646 = vmatpush1.bf16.msra.mxu0 %v18134_v9 }
 0xd6f   :  { %13699 = vmatpush1.bf16.msra.mxu1 %v18137_v52  ;;  %13647 = vmatprep.subr.bf16.mxu0 %v18142_v5 }
 0xd70   :  { %13700 = vmatprep.subr.bf16.mxu1 %v18145_v63 }
 0xd72   :  { %13648 = vmatpush1.bf16.msra.mxu0 %v18140_v58 }
 0xd73   :  { %13701 = vmatpush1.bf16.msra.mxu1 %v18143_v38  ;;  %13649 = vmatprep.subr.bf16.mxu0 %v18148_v61 }
 0xd74   :  { %13702 = vmatprep.subr.bf16.mxu1 %v18151_v43 }
 0xd76   :  { %13650 = vmatpush1.bf16.msra.mxu0 %v18146_v39 }
 0xd77   :  { %13703 = vmatpush1.bf16.msra.mxu1 %v18149_v29  ;;  %13651 = vmatprep.subr.bf16.mxu0 %v18154_v22  ;;  %v18203_v22 = vld [vmem:[%s20074_s16 + $0x8] sm:$0xff]  }
 0xd78   :  { %13704 = vmatprep.subr.bf16.mxu1 %v18157_v33  ;;  %v18206_v33 = vld [vmem:[%s20074_s16 + $0x10] sm:$0xff]  }
 0xd7a   :  { %13652 = vmatpush2.bf16.msra.mxu0 %v18152_v1  ;;  %v18201_v1 = vld [vmem:[%s20074_s16 + $0x24] sm:$0xff]  }
 0xd7b   :  { %13705 = vmatpush2.bf16.msra.mxu1 %v18155_v36  ;;  %13653 = vmatprep.subr.bf16.mxu0 %v18160_v53  ;;  %v18204_v36 = vld [vmem:[%s20074_s16 + $0x2c] sm:$0xff]   ;;  %v18207_v53 = vld [vmem:[%s20074_s16 + $0x18] ss:$0 sps:$4 sm:$0xff]  }
 0xd7c   :  { %13706 = vmatprep.subr.bf16.mxu1 %v18163_v62  ;;  %v18210_v62 = vld [vmem:[%s20074_s16 + $0x54] sm:$0xff]  }
 0xd7e   :  { %13654 = vmatpush2.bf16.msra.mxu0 %v18158_v11  ;;  %v18205_v11 = vld [vmem:[%s20074_s16 + $0x34] ss:$0 sps:$4 sm:$0xff]  }
 0xd7f   :  { %13707 = vmatpush2.bf16.msra.mxu1 %v18161_v14  ;;  %13655 = vmatprep.subr.bf16.mxu0 %v18166_v12  ;;  %v18208_v14 = vld [vmem:[%s20074_s16 + $0x38] sm:$0xff]  }
 0xd80   :  { %13708 = vmatprep.subr.bf16.mxu1 %v18169_v16 }
 0xd82   :  { %13656 = vmatpush2.bf16.msra.mxu0 %v18164_v37 }
 0xd83   :  { %13709 = vmatpush2.bf16.msra.mxu1 %v18167_v18  ;;  %13657 = vmatprep.subr.bf16.mxu0 %v18172_v15 }
 0xd84   :  { %13710 = vmatprep.subr.bf16.mxu1 %v18175_v56 }
 0xd86   :  { %13658 = vmatpush2.bf16.msra.mxu0 %v18170_v32 }
 0xd87   :  { %13711 = vmatpush2.bf16.msra.mxu1 %v18173_v28  ;;  %13659 = vmatprep.subr.bf16.mxu0 %v18178_v54 }
 0xd88   :  { %13712 = vmatprep.subr.bf16.mxu1 %v18181_v51 }
 0xd8a   :  { %13660 = vmatpush2.bf16.msra.mxu0 %v18176_v42 }
 0xd8b   :  { %13713 = vmatpush2.bf16.msra.mxu1 %v18179_v13  ;;  %13661 = vmatprep.subr.bf16.mxu0 %v18184_v46 }
 0xd8c   :  { %13714 = vmatprep.subr.bf16.mxu1 %v18187_v27 }
 0xd8e   :  { %13662 = vmatpush2.bf16.msra.mxu0 %v18182_v24 }
 0xd8f   :  { %13715 = vmatpush2.bf16.msra.mxu1 %v18185_v3  ;;  %13663 = vmatprep.subr.bf16.mxu0 %v18190_v47 }
 0xd90   :  { %13716 = vmatprep.subr.bf16.mxu1 %v18193_v31 }
 0xd92   :  { %13664 = vmatpush2.bf16.msra.mxu0 %v18188_v0 }
 0xd93   :  { %13717 = vmatpush2.bf16.msra.mxu1 %v18191_v59  ;;  %13665 = vmatprep.subr.bf16.mxu0 %v18196_v49 }
 0xd94   :  { %13718 = vmatprep.subr.bf16.mxu1 %v18199_v48 }
 0xd96   :  { %13666 = vmatpush2.bf16.msra.mxu0 %v18194_v40 }
 0xd97   :  { %13719 = vmatpush2.bf16.msra.mxu1 %v18197_v50 }
 0xd99   :  { %13668 = vmatmul.mubr.bf16.vlgmr.msra.gmra.mxu0 %v19919_v19 }
 0xd9a   :  { %13721 = vmatmul.mubr.bf16.vlgmr.msra.gmra.mxu1 %v19925_v26  ;;  %13677 = vmatprep.mubr.bf16.mxu0 %v19931_v2 }
 0xd9b   :  { %13730 = vmatprep.mubr.bf16.mxu1 %v19937_v41 }
 0xda1   :  { %13678 = vmatmul.mubr.bf16.gmra.mxu0 %v19947_v35 }
 0xda2   :  { %13731 = vmatmul.mubr.bf16.gmra.mxu1 %v19953_v60  ;;  %15999 = vmatprep.mubr.msk.bf16.mxu0 %vm13782_vm9, %v18200_v55 }
 0xda3   :  { %16011 = vmatprep.mubr.msk.bf16.mxu1 %vm13782_vm9, %v18202_v8 }
 0xe19   :  { %v13563_v19 = vpop.f32.mrf.mxu0 }
 0xe1a   :  { %v13616_v26 = vpop.f32.mrf.mxu1 }
 0xe1b   :  { %v13565_v2 = vpop.f32.mrf.mxu0  ;;  %v13617_v9 = vadd.f32 %v13616_v26, %v13563_v19 }
 0xe1c   :  { %v13618_v41 = vpop.f32.mrf.mxu1 }
 0xe1d   :  { %v13567_v20 = vpop.f32.mrf.mxu0  ;;  %v13619_v58 = vadd.f32 %v13618_v41, %v13565_v2 }
 0xe1e   :  { %v13620_v23 = vpop.f32.mrf.mxu1 }
 0xe1f   :  { %v13569_v35 = vpop.f32.mrf.mxu0  ;;  %v13621_v6 = vadd.f32 %v13620_v23, %v13567_v20  ;;  %v18209_v20 = vld [vmem:[%s20074_s16 + $0x40] sm:$0xff]   ;;  %v18212_v23 = vld [vmem:[%s20074_s16 + $0x48] sm:$0xff]  }
 0xe20   :  { %v13622_v60 = vpop.f32.mrf.mxu1 }
 0xe21   :  { %v13573_v45 = vpop.f32.mrf.mxu0  ;;  %v13623_v52 = vadd.f32 %v13622_v60, %v13569_v35  ;;  %v13741_v38 = vpack.c.bf16 %v13621_v6, %v13617_v9  ;;  %v18211_v35 = vld [vmem:[%s20074_s16 + $0x5c] sm:$0xff]   ;;  %v18214_v60 = vld [vmem:[%s20074_s16 + $0x64] sm:$0xff]  }
 0xe22   :  { %v13626_v30 = vpop.f32.mrf.mxu1 }
 0xe23   :  { %v13575_v21 = vpop.f32.mrf.mxu0  ;;  %v13627_v57 = vadd.f32 %v13626_v30, %v13573_v45  ;;  %v13742_v39 = vpack.c.bf16 %v13623_v52, %v13619_v58  ;;  %v18213_v45 = vld [vmem:[%s20074_s16 + $0x50] ss:$0 sps:$4 sm:$0xff]   ;;  %v18215_v30 = vld [vmem:[%s20074_s16 + $0x6c] ss:$0 sps:$4 sm:$0xff]  }
 0xe24   :  { %v13628_v17 = vpop.f32.mrf.mxu1 }
 0xe25   :  { %v13577_v4 = vpop.f32.mrf.mxu0  ;;  %v13629_v25 = vadd.f32 %v13628_v17, %v13575_v21 }
 0xe26   :  { %v13630_v44 = vpop.f32.mrf.mxu1 }
 0xe27   :  { %v13631_v10 = vadd.f32 %v13630_v44, %v13577_v4  ;;  %v13579_v34 = vpop.f32.mrf.mxu0 }
 0xe28   :  { %v13632_v7 = vpop.f32.mrf.mxu1 }
 0xe29   :  { %v13745_v5 = vpack.c.bf16 %v13631_v10, %v13627_v57  ;;  %v13633_v63 = vadd.f32 %v13632_v7, %v13579_v34 }
 0xe2b   :  { %v13746_v61 = vpack.c.bf16 %v13633_v63, %v13629_v25  ;;  %16044 = vmatprep.subr.msk.bf16.mxu1 %vm886_vm3, %v13745_v5  ;;  %v13893_v43 = vsel %vm886_vm3, %v13745_v5, 0 }
 0xe2c   :  { %16008 = vmatpush3.bf16.msra.mxu1 %v13893_v43 }
 0xe2d   :  { %16043 = vmatprep.subr.msk.bf16.mxu0 %vm886_vm3, %v13746_v61  ;;  %16009 = vmatprep.subr.bf16.mxu1 %v13741_v38  ;;  %v13796_v29 = vsel %vm886_vm3, %v13746_v61, 0 }
 0xe2e   :  { %15996 = vmatpush3.bf16.msra.mxu0 %v13796_v29 }
 0xe2f   :  { %15997 = vmatprep.subr.bf16.mxu0 %v13742_v39 }
 0xe30   :  { %16010 = vmatpush3.bf16.msra.mxu1 %v13741_v38 }
 0xe32   :  { %15998 = vmatpush3.bf16.msra.mxu0 %v13742_v39 }
 0xe33   :  { %16012 = vmatmul.mubr.msk.bf16.vlgmr.msra.gmra.mxu1 %vm13782_vm9, %v18203_v22 }
 0xe34   :  { %16015 = vmatprep.mubr.msk.bf16.mxu1 %vm13782_vm9, %v18206_v33 }
 0xe35   :  { %16000 = vmatmul.mubr.msk.bf16.vlgmr.msra.gmra.mxu0 %vm13782_vm9, %v18201_v1  ;;  %v15828_v1 = vld [vmem:[#allocation21] ss:$0 sm:$0xff] }
 0xe36   :  { %16003 = vmatprep.mubr.msk.bf16.mxu0 %vm13782_vm9, %v18204_v36 }
 0xe3b   :  { %16016 = vmatmul.mubr.msk.bf16.gmra.mxu1 %vm13782_vm9, %v18207_v53 }
 0xe3c   :  { %16035 = vmatprep.mubr.msk.bf16.mxu1 %vm13782_vm9, %v18210_v62 }
 0xe3d   :  { %16004 = vmatmul.mubr.msk.bf16.gmra.mxu0 %vm13782_vm9, %v18205_v11 }
 0xe3e   :  { %16023 = vmatprep.mubr.msk.bf16.mxu0 %vm13782_vm9, %v18208_v14 }
 0xe59   :  { %v13669_v12 = vpop.f32.mrf.mxu0 }
 0xe5a   :  { %v13722_v16 = vpop.f32.mrf.mxu1 }
 0xe5b   :  { %v13671_v37 = vpop.f32.mrf.mxu0  ;;  %v13723_v31 = vadd.f32 %v13722_v16, %v13669_v12 }
 0xe5c   :  { %v13724_v18 = vpop.f32.mrf.mxu1 }
 0xe5d   :  { %v13673_v15 = vpop.f32.mrf.mxu0  ;;  %v13725_v55 = vadd.f32 %v13724_v18, %v13671_v37 }
 0xe5e   :  { %v13726_v56 = vpop.f32.mrf.mxu1 }
 0xe5f   :  { %v13675_v32 = vpop.f32.mrf.mxu0  ;;  %v13727_v24 = vadd.f32 %v13726_v56, %v13673_v15 }
 0xe60   :  { %v13728_v28 = vpop.f32.mrf.mxu1 }
 0xe61   :  { %v13679_v54 = vpop.f32.mrf.mxu0  ;;  %v13729_v49 = vadd.f32 %v13728_v28, %v13675_v32  ;;  %v13743_v8 = vpack.c.bf16 %v13727_v24, %v13723_v31 }
 0xe62   :  { %v13732_v51 = vpop.f32.mrf.mxu1 }
 0xe63   :  { %v13681_v42 = vpop.f32.mrf.mxu0  ;;  %v13733_v3 = vadd.f32 %v13732_v51, %v13679_v54  ;;  %v13744_v2 = vpack.c.bf16 %v13729_v49, %v13725_v55 }
 0xe64   :  { %v13734_v13 = vpop.f32.mrf.mxu1 }
 0xe65   :  { %v13683_v46 = vpop.f32.mrf.mxu0  ;;  %v13735_v48 = vadd.f32 %v13734_v13, %v13681_v42 }
 0xe66   :  { %v13736_v27 = vpop.f32.mrf.mxu1 }
 0xe67   :  { %v13737_v47 = vadd.f32 %v13736_v27, %v13683_v46  ;;  %v13685_v0 = vpop.f32.mrf.mxu0 }
 0xe68   :  { %v13738_v59 = vpop.f32.mrf.mxu1 }
 0xe69   :  { %v13747_v40 = vpack.c.bf16 %v13737_v47, %v13733_v3  ;;  %v13739_v50 = vadd.f32 %v13738_v59, %v13685_v0 }
 0xe6b   :  { %v13748_v19 = vpack.c.bf16 %v13739_v50, %v13735_v48  ;;  %16045 = vmatprep.subr.msk.bf16.mxu0 %vm886_vm3, %v13747_v40  ;;  %v13998_v26 = vsel %vm886_vm3, %v13747_v40, 0 }
 0xe6c   :  { %16020 = vmatpush3.bf16.msra.mxu0 %v13998_v26 }
 0xe6d   :  { %16021 = vmatprep.subr.bf16.mxu0 %v13743_v8  ;;  %16046 = vmatprep.subr.msk.bf16.mxu1 %vm886_vm3, %v13748_v19  ;;  %v14110_v41 = vsel %vm886_vm3, %v13748_v19, 0 }
 0xe6e   :  { %16032 = vmatpush3.bf16.msra.mxu1 %v14110_v41 }
 0xe6f   :  { %16033 = vmatprep.subr.bf16.mxu1 %v13744_v2 }
 0xe70   :  { %16022 = vmatpush3.bf16.msra.mxu0 %v13743_v8 }
 0xe72   :  { %16034 = vmatpush3.bf16.msra.mxu1 %v13744_v2 }
 0xe73   :  { %16024 = vmatmul.mubr.msk.bf16.vlgmr.msra.gmra.mxu0 %vm13782_vm9, %v18209_v20 }
 0xe74   :  { %16027 = vmatprep.mubr.msk.bf16.mxu0 %vm13782_vm9, %v18212_v23 }
 0xe75   :  { %16036 = vmatmul.mubr.msk.bf16.vlgmr.msra.gmra.mxu1 %vm13782_vm9, %v18211_v35 }
 0xe76   :  { %16039 = vmatprep.mubr.msk.bf16.mxu1 %vm13782_vm9, %v18214_v60 }
 0xe7b   :  { %16028 = vmatmul.mubr.msk.bf16.gmra.mxu0 %vm13782_vm9, %v18213_v45 }
 0xe7d   :  { %16040 = vmatmul.mubr.msk.bf16.gmra.mxu1 %vm13782_vm9, %v18215_v30 }
 0xef3   :  { %v16013_v21 = vpop.f32.mrf.mxu1 }
 0xef5   :  { %v16001_v17 = vpop.f32.mrf.mxu0  ;;  %v13929_v57 = vpop.f32.mrf.mxu1 }
 0xef6   :  { %v13938_v38 = vadd.f32 %v16013_v21, %v16001_v17 }
 0xef7   :  { %v13832_v4 = vpop.f32.mrf.mxu0  ;;  %v16014_v44 = vpop.f32.mrf.mxu1 }
 0xef8   :  { %v13930_v39 = vadd.f32 %v13929_v57, %v13832_v4 }
 0xef9   :  { %v16002_v6 = vpop.f32.mrf.mxu0  ;;  %v13932_v25 = vpop.f32.mrf.mxu1 }
 0xefa   :  { %v13941_v36 = vadd.f32 %v16014_v44, %v16002_v6 }
 0xefb   :  { %v13835_v10 = vpop.f32.mrf.mxu0  ;;  %v16017_v34 = vpop.f32.mrf.mxu1 }
 0xefc   :  { %v13933_v12 = vadd.f32 %v13932_v25, %v13835_v10 }
 0xefd   :  { %v16005_v7 = vpop.f32.mrf.mxu0  ;;  %v13945_v9 = vpop.f32.mrf.mxu1 }
 0xefe   :  { %v13954_v15 = vadd.f32 %v16017_v34, %v16005_v7 }
 0xeff   :  { %v13848_v52 = vpop.f32.mrf.mxu0  ;;  %v16018_v5 = vpop.f32.mrf.mxu1 }
 0xf00   :  { %v13946_v42 = vadd.f32 %v13945_v9, %v13848_v52 }
 0xf01   :  { %v16006_v63 = vpop.f32.mrf.mxu0  ;;  %v13948_v61 = vpop.f32.mrf.mxu1 }
 0xf03   :  { %v13851_v58 = vpop.f32.mrf.mxu0 }
 0xf04   :  { %v13949_v50 = vadd.f32 %v13948_v61, %v13851_v58 }
 0xf33   :  { %v16025_v43 = vpop.f32.mrf.mxu0 }
 0xf34   :  { %v14066_v29 = vadd.f32 %v16025_v43, %v13938_v38 }
 0xf35   :  { %v14034_v22 = vpop.f32.mrf.mxu0  ;;  %v16037_v33 = vpop.f32.mrf.mxu1 }
 0xf36   :  { %v14064_v53 = vadd.f32 %v14034_v22, %v13930_v39  ;;  %v14178_v62 = vadd.f32 %v16037_v33, %v14066_v29 }
 0xf37   :  { %v16026_v11 = vpop.f32.mrf.mxu0  ;;  %v14146_v14 = vpop.f32.mrf.mxu1 }
 0xf38   :  { %v14192_v16 = vadd.f32 %v15828_v1, %v14178_v62  ;;  %v14067_v37 = vadd.f32 %v16026_v11, %v13941_v36  ;;  %v14176_v18 = vadd.f32 %v14146_v14, %v14064_v53 }
 0xf39   :  { %v14037_v56 = vpop.f32.mrf.mxu0  ;;  %v16038_v32 = vpop.f32.mrf.mxu1 }
 0xf3a   :  { %18216 = vtanh.f32 %v14192_v16  ;;  %v14190_v28 = vadd.f32 %v15828_v1, %v14176_v18  ;;  %v14065_v54 = vadd.f32 %v14037_v56, %v13933_v12  ;;  %v14179_v51 = vadd.f32 %v16038_v32, %v14067_v37 }
 0xf3b   :  { %v16029_v13 = vpop.f32.mrf.mxu0  ;;  %v14149_v46 = vpop.f32.mrf.mxu1 }
 0xf3c   :  { %18218 = vtanh.f32 %v14190_v28  ;;  %v14193_v27 = vadd.f32 %v15828_v1, %v14179_v51  ;;  %v14070_v24 = vadd.f32 %v16029_v13, %v13954_v15  ;;  %v14177_v3 = vadd.f32 %v14149_v46, %v14065_v54 }
 0xf3d   :  { %v14050_v47 = vpop.f32.mrf.mxu0  ;;  %v16041_v31 = vpop.f32.mrf.mxu1 }
 0xf3e   :  { %18220 = vtanh.f32 %v14193_v27  ;;  %v14191_v0 = vadd.f32 %v15828_v1, %v14177_v3  ;;  %v14068_v59 = vadd.f32 %v14050_v47, %v13946_v42  ;;  %v14182_v49 = vadd.f32 %v16041_v31, %v14070_v24 }
 0xf3f   :  { %v16030_v48 = vpop.f32.mrf.mxu0  ;;  %v14162_v40 = vpop.f32.mrf.mxu1 }
 0xf40   :  { %18222 = vtanh.f32 %v14191_v0  ;;  %v14196_v55 = vadd.f32 %v15828_v1, %v14182_v49  ;;  %v14180_v8 = vadd.f32 %v14162_v40, %v14068_v59 }
 0xf41   :  { %v14053_v19 = vpop.f32.mrf.mxu0  ;;  %v16042_v26 = vpop.f32.mrf.mxu1 }
 0xf42   :  { %18224 = vtanh.f32 %v14196_v55  ;;  %v14194_v2 = vadd.f32 %v15828_v1, %v14180_v8  ;;  %v14069_v41 = vadd.f32 %v14053_v19, %v13949_v50 }
 0xf43   :  { %v14165_v20 = vpop.f32.mrf.mxu1 }
 0xf44   :  { %18226 = vtanh.f32 %v14194_v2  ;;  %v14181_v23 = vadd.f32 %v14165_v20, %v14069_v41 }
 0xf46   :  { %v14195_v35 = vadd.f32 %v15828_v1, %v14181_v23 }
 0xf47   :  { %v18217_v60 = vpop.eup %18216 }
 0xf48   :  { %14206 = vst [vmem:[%s20076_s18 + $0x10] sm:$0xff] %v18217_v60  ;;  %18228 = vtanh.f32 %v14195_v35 }
 0xf49   :  { %v18219_v45 = vpop.eup %18218 }
 0xf4a   :  { %14204 = vst [vmem:[%s20076_s18] sm:$0xff] %v18219_v45 }
 0xf4b   :  { %v18221_v30 = vpop.eup %18220 }
 0xf4c   :  { %14207 = vst [vmem:[%s20076_s18 + $0x18] sm:$0xff] %v18221_v30 }
 0xf4d   :  { %v18223_v21 = vpop.eup %18222 }
 0xf4e   :  { %14205 = vst [vmem:[%s20076_s18 + $0x8] sm:$0xff] %v18223_v21 }
 0xf4f   :  { %v18225_v17 = vpop.eup %18224 }
 0xf50   :  { %14210 = vst [vmem:[%s20076_s18 + $0x30] sm:$0xff] %v18225_v17 }
 0xf51   :  { %v18227_v57 = vpop.eup %18226 }
 0xf52   :  { %14208 = vst [vmem:[%s20076_s18 + $0x20] sm:$0xff] %v18227_v57 }
 0xf55   :  { %v18229_v4 = vpop.eup %18228 }
 0xf56   :  { %14209 = vst [vmem:[%s20076_s18 + $0x28] sm:$0xff] %v18229_v4 }
 0xf57   :  { %14215 = vsyncpa [#allocation6], 1 }
 0xf58   :  { %14216 = vsyncpa [#allocation8], 1 }
 0xf59   :  { %14217 = vsyncpa [#allocation11], 1 }
 0xf5a   :  { %14218 = vsyncpa [#allocation14], 1 }
 0xf5b   :  { %14219 = vsyncpa [#allocation17], 1 }
 0xf5c   :  { %14220 = vsyncpa [#allocation20], 1 }
 0xf5d   :  { %14221 = vsyncmov [#allocation4] }
 0xf60   :  { %s14222_s25 = vpop.sfrf %14221 }
 0xf61   :  { %p15829_p9 = scmp.ne.s32.totalorder %s14222_s25, 0 }
 0xf63   :  { %14226 = shalt.err (%p15829_p9)  }
 0xf64   :  { %14228 = vsyncmov [#allocation4 + $0x1] }
 0xf67   :  { %s14229_s7 = vpop.sfrf %14228 }
 0xf68   :  { %p15830_p10 = scmp.ne.s32.totalorder %s14229_s7, 0 }
 0xf6a   :  { %14233 = shalt.err (%p15830_p10)  }

</bundles_post_ra>
